<compile_context>
chip_gen: v7x
topology: tpu7x:2x2x1
jax: 0.10.0
libtpu: 0.0.40
codegen_flags: <defaults>
</compile_context>

<pallas_src>
import functools
import math

import jax
import jax.numpy as jnp
import numpy as np
from jax.experimental import pallas as pl
from jax.experimental.pallas import tpu as pltpu

_LANE = 128                       # channel padding target (lane-dense stores)
_TM_MAX = 1024                    # row tile upper bound (full M when it fits)
_VMEM_LIMIT = 32 * 1024 * 1024    # safe on v5e/v6e (128 MiB) and v7x (64 MiB)


def _round_up(x, m):
    return ((x + m - 1) // m) * m


# ----------------------------------------------------------------------------
# Kernel 1: (TM, K) @ (K, 128) bf16 matmul + f32 bias [+ residual] [+ ReLU6]
# ----------------------------------------------------------------------------
def _mm_kernel(x_ref, w_ref, b_ref, *rest, act, has_res):
    if has_res:
        r_ref, o_ref = rest
    else:
        (o_ref,) = rest
    y = jnp.dot(x_ref[...], w_ref[...], preferred_element_type=jnp.float32)
    y = y + b_ref[...]
    if has_res:
        y = y + r_ref[...].astype(jnp.float32)
    if act:
        y = jnp.clip(y, 0.0, 6.0)          # ReLU6, f32 epilogue (v5e-safe)
    o_ref[...] = y.astype(o_ref.dtype)


def matmul_bias_act(x2d, w, b, act, residual=None):
    """(M, K) @ (K, Coutp) + bias [+ residual] [ReLU6] -> (M, Coutp) bf16."""
    m, k = x2d.shape
    coutp = w.shape[1]

    mp = _round_up(m, 8)                   # keep rows sublane-aligned (<=7 pad)
    if mp != m:
        x2d = jnp.pad(x2d, ((0, mp - m), (0, 0)))
        if residual is not None:
            residual = jnp.pad(residual, ((0, mp - m), (0, 0)))

    tm = mp if mp <= _TM_MAX else _TM_MAX
    tn = _LANE
    grid = (pl.cdiv(mp, tm), coutp // tn)

    in_specs = [
        pl.BlockSpec((tm, k), lambda i, j: (i, 0)),
        pl.BlockSpec((k, tn), lambda i, j: (0, j)),
        pl.BlockSpec((1, tn), lambda i, j: (0, j)),
    ]
    args = [x2d, w, b]
    if residual is not None:
        in_specs.append(pl.BlockSpec((tm, tn), lambda i, j: (i, j)))
        args.append(residual)

    out = pl.pallas_call(
        functools.partial(_mm_kernel, act=act, has_res=residual is not None),
        out_shape=jax.ShapeDtypeStruct((mp, coutp), jnp.bfloat16),
        grid=grid,
        in_specs=in_specs,
        out_specs=pl.BlockSpec((tm, tn), lambda i, j: (i, j)),
        compiler_params=pltpu.CompilerParams(
            dimension_semantics=("parallel", "parallel"),
            vmem_limit_bytes=_VMEM_LIMIT),
    )(*args)
    return out[:m] if mp != m else out


# ----------------------------------------------------------------------------
# Kernel 2: depthwise 3x3x3 (stride 1, pad 1) + bias + ReLU6, channels-last.
# Single full-tile load, 27 statically-unrolled shifted accumulates -- no
# im2col, no (M, 27, C) patches, one (T,H,W,C) f32 accumulator.
# ----------------------------------------------------------------------------
def _dw_kernel(x_ref, w_ref, b_ref, o_ref, *, T, H, W):
    c = o_ref.shape[-1]
    x = x_ref[...].astype(jnp.float32)              # (T+2, H+2, W+2, C) once
    wts = w_ref[...].astype(jnp.float32)            # (27, C) once
    acc = jnp.zeros((T, H, W, c), jnp.float32)
    tap = 0
    for kt in range(3):
        for kh in range(3):
            for kw in range(3):
                xt = x[kt:kt + T, kh:kh + H, kw:kw + W, :]
                wt = wts[tap:tap + 1, :].reshape(1, 1, 1, c)
                acc = acc + xt * wt
                tap += 1
    acc = acc + b_ref[...].reshape(1, 1, 1, c)
    o_ref[...] = jnp.clip(acc, 0.0, 6.0).astype(o_ref.dtype)


def dw_conv3x3x3(h, wd, bd):
    """h: (N, T, H, W, C) bf16.  Stride-1 depthwise 3x3x3 conv (pad 1) + bias
    + ReLU6, same shape out (bf16)."""
    n, t, hh, ww, c = h.shape
    hp = jnp.pad(h, ((0, 0), (1, 1), (1, 1), (1, 1), (0, 0)))
    kernel = functools.partial(_dw_kernel, T=t, H=hh, W=ww)
    return pl.pallas_call(
        kernel,
        out_shape=jax.ShapeDtypeStruct((n, t, hh, ww, c), jnp.bfloat16),
        grid=(n,),
        in_specs=[
            pl.BlockSpec((None, t + 2, hh + 2, ww + 2, c),
                         lambda b: (b, 0, 0, 0, 0)),
            pl.BlockSpec((27, c), lambda b: (0, 0)),
            pl.BlockSpec((1, c), lambda b: (0, 0)),
        ],
        out_specs=pl.BlockSpec((None, t, hh, ww, c), lambda b: (b, 0, 0, 0, 0)),
        compiler_params=pltpu.CompilerParams(
            dimension_semantics=("parallel",),
            vmem_limit_bytes=_VMEM_LIMIT),
    )(hp, wd, bd)


# ----------------------------------------------------------------------------
# Glue: stem im2col (3-channel input only)
# ----------------------------------------------------------------------------
def _im2col_3d(x, ksize, stride, pad):
    """x: (N,C,T,H,W) -> ((M, C*prod(k)) columns, (N,To,Ho,Wo)).
    Feature order follows conv_general_dilated_patches (channel-major); the
    stem weight rows use the same ordering."""
    patches = jax.lax.conv_general_dilated_patches(
        x, filter_shape=ksize, window_strides=stride,
        padding=[(p, p) for p in pad])
    n, ck, t, h, w = patches.shape
    cols = jnp.transpose(patches, (0, 2, 3, 4, 1)).reshape(n * t * h * w, ck)
    return cols, (n, t, h, w)


# ----------------------------------------------------------------------------
# Parameter construction (deterministic, BN folded, zero-padded to 128 lanes)
# ----------------------------------------------------------------------------
def _dense_params(key, k_real, cout_real, cout_pad, k_pad=None):
    k_pad = k_real if k_pad is None else k_pad
    kw_, kb_ = jax.random.split(key)
    w = jax.random.normal(kw_, (k_real, cout_real), jnp.float32) / math.sqrt(k_real)
    b = jax.random.normal(kb_, (cout_real,), jnp.float32) * 0.1
    wp = jnp.zeros((k_pad, cout_pad), jnp.float32).at[:k_real, :cout_real].set(w)
    bp = jnp.zeros((1, cout_pad), jnp.float32).at[0, :cout_real].set(b)
    return wp.astype(jnp.bfloat16), bp


def _dw_params(key, c_real, c_pad):
    kw_, kb_ = jax.random.split(key)
    w = jax.random.normal(kw_, (27, c_real), jnp.float32) / math.sqrt(27.0)
    b = jax.random.normal(kb_, (c_real,), jnp.float32) * 0.1
    wp = jnp.zeros((27, c_pad), jnp.float32).at[:, :c_real].set(w)
    bp = jnp.zeros((1, c_pad), jnp.float32).at[0, :c_real].set(b)
    return wp.astype(jnp.bfloat16), bp


# MobileNetV2 inverted-residual settings: (expand t, channels c, repeats n, stride s)
_IR_SETTINGS = [
    (1, 16, 1, 1),
    (6, 24, 2, 2),
    (6, 32, 3, 2),
    (6, 64, 4, 2),
    (6, 96, 3, 1),
    (6, 160, 3, 2),
    (6, 320, 1, 1),
]


def build_encoder(key, n_reduced):
    rc = lambda ch: max(4, ch // n_reduced)
    pad = lambda ch: _round_up(ch, _LANE)
    keys = iter(jax.random.split(key, 64))
    configs, params = [], []

    # module 0: inflated stem ConvBNReLU 3 -> rc(32), k=(3,3,3), stride=(1,2,2)
    cout = rc(32)
    w, b = _dense_params(next(keys), 3 * 27, cout, pad(cout))
    configs.append(dict(type="conv", cout=cout, cout_pad=pad(cout),
                        ksize=(3, 3, 3), stride=(1, 2, 2), padding=(1, 1, 1)))
    params.append(dict(w=w, b=b))
    in_c = cout

    # modules 1..17: inflated InvertedResidual blocks
    for t, ch, n, s in _IR_SETTINGS:
        out_c = rc(ch)
        for bi in range(n):
            stride = s if bi == 0 else 1
            hidden = in_c * t
            cfg = dict(type="ir", stride=stride, expand=(t != 1),
                       use_res=(stride == 1 and in_c == out_c),
                       cin=in_c, cin_pad=pad(in_c),
                       hidden=hidden, hidden_pad=pad(hidden),
                       cout=out_c, cout_pad=pad(out_c))
            p = {}
            if t != 1:
                p["we"], p["be"] = _dense_params(next(keys), in_c, hidden,
                                                 pad(hidden), k_pad=pad(in_c))
            p["wd"], p["bd"] = _dw_params(next(keys), hidden, pad(hidden))
            p["wp"], p["bp"] = _dense_params(next(keys), hidden, out_c,
                                             pad(out_c), k_pad=pad(hidden))
            configs.append(cfg)
            params.append(p)
            in_c = out_c

    # module 18: ConvBNReLU 1x1x1 rc(320) -> rc(1280)
    cout = rc(1280)
    w, b = _dense_params(next(keys), in_c, cout, pad(cout), k_pad=pad(in_c))
    configs.append(dict(type="conv1", cout=cout, cout_pad=pad(cout)))
    params.append(dict(w=w, b=b))

    assert len(configs) == 19
    return tuple(configs), tuple(params)


# ----------------------------------------------------------------------------
# Forward (traced once inside a single jax.jit)
# ----------------------------------------------------------------------------
def apply_ir_block(h, p, cfg):
    n, t, hh, ww, cpad = h.shape
    x_in = h

    if cfg["expand"]:                       # pointwise expand + ReLU6 (MXU)
        y = matmul_bias_act(h.reshape(-1, cpad), p["we"], p["be"], act=True)
        h = y.reshape(n, t, hh, ww, cfg["hidden_pad"])

    # depthwise 3x3x3 + ReLU6 at stride 1; spatial stride via subsampling
    d = dw_conv3x3x3(h, p["wd"], p["bd"])
    s = cfg["stride"]
    if s > 1:
        d = d[:, :, ::s, ::s, :]
    no, to, ho, wo, hid = d.shape

    # pointwise linear projection; residual fused in-kernel (same NDHWC layout)
    res = x_in.reshape(-1, cpad) if cfg["use_res"] else None
    y = matmul_bias_act(d.reshape(-1, hid), p["wp"], p["bp"], act=False,
                        residual=res)
    return y.reshape(no, to, ho, wo, cfg["cout_pad"])


def _forward(params, x, *, configs, hook_index):
    feats = {}

    # module 0: stem conv via one small im2col (3-channel input) + MXU matmul
    cfg, p = configs[0], params[0]
    cols, shp = _im2col_3d(x.astype(jnp.float32), cfg["ksize"], cfg["stride"],
                           cfg["padding"])
    y = matmul_bias_act(cols.astype(jnp.bfloat16), p["w"], p["b"], act=True)
    h = y.reshape(*shp, cfg["cout_pad"])     # channels-last NDHWC, padded C

    for i in range(1, 19):
        cfg, p = configs[i], params[i]
        if cfg["type"] == "ir":
            h = apply_ir_block(h, p, cfg)
        else:                                # module 18: 1x1x1 ConvBNReLU
            n, t, hh, ww, c = h.shape
            y = matmul_bias_act(h.reshape(-1, c), p["w"], p["b"], act=True)
            h = y.reshape(n, t, hh, ww, cfg["cout_pad"])
        if i in hook_index:
            feats[i] = h

    # hooked features -> original NCDHW float32 layout with real channel count
    outs = []
    for i in hook_index:
        f = feats[i][..., :configs[i]["cout"]].astype(jnp.float32)
        outs.append(jnp.transpose(f, (0, 4, 1, 2, 3)))
    return outs


# ----------------------------------------------------------------------------
# Encoder_wrapper equivalent
# ----------------------------------------------------------------------------
class EncoderWrapperPallas:
    """JAX/Pallas equivalent of fastsal3D Encoder_wrapper: forward() returns
    the 18 feature maps hooked on encoder modules 1..18 (NCDHW, float32)."""

    def __init__(self, n_reduced, decoder_config, single_mode, force_multi, key):
        # TODO(synk): mbv2_inflate_config vs mbv2_inflate_config_3dd selection
        # (driven by decoder_config/single_mode/force_multi) is unavailable; a
        # single (3,3,3)-depthwise / (1,1,1)-pointwise inflation is used.
        del decoder_config, single_mode, force_multi
        self.hook_key = "student_encoder"
        self.hook_index = tuple(range(1, 19, 1))
        self.configs, self.params = build_encoder(key, n_reduced)
        # Whole 19-block forward is one jitted graph: one dispatch, all layout
        # glue fused around the Pallas kernels.
        self._fwd = jax.jit(functools.partial(_forward, configs=self.configs,
                                              hook_index=self.hook_index))

    def forward(self, x):
        return self._fwd(self.params, x)


if __name__ == "__main__":
    key = jax.random.PRNGKey(0)
    kx, kp = jax.random.split(key)

    # small video clip, NCDHW: (batch=1, rgb=3, time=2, H=16, W=16)
    x = jax.random.normal(kx, (1, 3, 2, 16, 16), jnp.float32)

    enc = EncoderWrapperPallas(
        n_reduced=8,
        decoder_config=["d0", "d1", "d2"],
        single_mode=[True, True, True],
        force_multi=False,
        key=kp,
    )
    feats = enc.forward(x)
    feats = jax.block_until_ready(feats)

    assert len(feats) == 18, f"expected 18 hooked features, got {len(feats)}"
    assert all(np.isfinite(np.asarray(f)).all() for f in feats)
    print("KERNEL_OK")
</pallas_src>

<mosaic_0001>
module attributes {stable_mosaic.version = 11 : i64} {
  func.func @_mm_kernel(%arg0: i32, %arg1: i32, %arg2: memref<128x81xbf16, #tpu.memory_space<vmem>>, %arg3: memref<81x128xbf16, #tpu.memory_space<vmem>>, %arg4: memref<1x128xf32, #tpu.memory_space<vmem>>, %arg5: memref<128x128xbf16, #tpu.memory_space<vmem>>) attributes {dimension_semantics = [#tpu.dimension_semantics<parallel>, #tpu.dimension_semantics<parallel>], iteration_bounds = array<i64: 1, 1>, scalar_prefetch = 0 : i64, scratch_operands = 0 : i64, tpu.core_type = #tpu.core_type<tc>, window_params = [{transform_indices = @transform_0, window_bounds = array<i64: 128, 81>}, {transform_indices = @transform_1, window_bounds = array<i64: 81, 128>}, {transform_indices = @transform_2, window_bounds = array<i64: 1, 128>}, {transform_indices = @transform_3, window_bounds = array<i64: 128, 128>}]} {
    %c0 = arith.constant 0 : index
    %c0_0 = arith.constant 0 : index
    %0 = vector.load %arg2[%c0, %c0_0] : memref<128x81xbf16, #tpu.memory_space<vmem>>, vector<128x81xbf16>
    %c0_1 = arith.constant 0 : index
    %c0_2 = arith.constant 0 : index
    %1 = vector.load %arg3[%c0_1, %c0_2] : memref<81x128xbf16, #tpu.memory_space<vmem>>, vector<81x128xbf16>
    %cst = arith.constant dense<0.000000e+00> : vector<128x128xf32>
    %2 = tpu.matmul %0, %1, %cst {dimension_numbers = #tpu.dot_dimension_numbers<[1], [0], [0], [1], [0, 0, 1, 1], [], []>} : vector<128x81xbf16>, vector<81x128xbf16>, vector<128x128xf32> -> vector<128x128xf32>
    %c0_3 = arith.constant 0 : index
    %c0_4 = arith.constant 0 : index
    %3 = vector.load %arg4[%c0_3, %c0_4] : memref<1x128xf32, #tpu.memory_space<vmem>>, vector<1x128xf32>
    %4 = vector.broadcast %3 : vector<1x128xf32> to vector<128x128xf32>
    %5 = arith.addf %2, %4 : vector<128x128xf32>
    %cst_5 = arith.constant 0.000000e+00 : f32
    %cst_6 = arith.constant 6.000000e+00 : f32
    %6 = vector.broadcast %cst_5 : f32 to vector<128x128xf32>
    %7 = arith.maximumf %6, %5 : vector<128x128xf32>
    %8 = vector.broadcast %cst_6 : f32 to vector<128x128xf32>
    %9 = arith.minimumf %8, %7 : vector<128x128xf32>
    %10 = arith.truncf %9 : vector<128x128xf32> to vector<128x128xbf16>
    %c0_7 = arith.constant 0 : index
    %c0_8 = arith.constant 0 : index
    %11 = vector.load %arg5[%c0_7, %c0_8] : memref<128x128xbf16, #tpu.memory_space<vmem>>, vector<128x128xbf16>
    tpu.vector_store %arg5[%c0_7, %c0_8], %10 {strides = array<i32>} : memref<128x128xbf16, #tpu.memory_space<vmem>>, vector<128x128xbf16>,
    return
  }
  func.func @transform_0(%arg0: i32, %arg1: i32) -> (i32, i32) {
    %c0_i32 = arith.constant 0 : i32
    %c0_i32_0 = arith.constant 0 : i32
    return %arg0, %c0_i32 : i32, i32
  }
  func.func @transform_1(%arg0: i32, %arg1: i32) -> (i32, i32) {
    %c0_i32 = arith.constant 0 : i32
    %c0_i32_0 = arith.constant 0 : i32
    return %c0_i32, %arg1 : i32, i32
  }
  func.func @transform_2(%arg0: i32, %arg1: i32) -> (i32, i32) {
    %c0_i32 = arith.constant 0 : i32
    %c0_i32_0 = arith.constant 0 : i32
    return %c0_i32, %arg1 : i32, i32
  }
  func.func @transform_3(%arg0: i32, %arg1: i32) -> (i32, i32) {
    %c0_i32 = arith.constant 0 : i32
    return %arg0, %arg1 : i32, i32
  }
}

module attributes {stable_mosaic.version = 11 : i64} {
  func.func @_dw_kernel(%arg0: i32, %arg1: memref<1x4x10x10x128xbf16, #tpu.memory_space<vmem>>, %arg2: memref<27x128xbf16, #tpu.memory_space<vmem>>, %arg3: memref<1x128xf32, #tpu.memory_space<vmem>>, %arg4: memref<1x2x8x8x128xbf16, #tpu.memory_space<vmem>>) attributes {dimension_semantics = [#tpu.dimension_semantics<parallel>], iteration_bounds = array<i64: 1>, scalar_prefetch = 0 : i64, scratch_operands = 0 : i64, tpu.core_type = #tpu.core_type<tc>, window_params = [{transform_indices = @transform_0, window_bounds = array<i64: 1, 4, 10, 10, 128>}, {pipeline_mode = #tpu.pipeline_mode<synchronous>, transform_indices = @transform_1, window_bounds = array<i64: 27, 128>}, {pipeline_mode = #tpu.pipeline_mode<synchronous>, transform_indices = @transform_2, window_bounds = array<i64: 1, 128>}, {transform_indices = @transform_3, window_bounds = array<i64: 1, 2, 8, 8, 128>}]} {
    %c0 = arith.constant 0 : index
    %c0_0 = arith.constant 0 : index
    %c0_1 = arith.constant 0 : index
    %c0_2 = arith.constant 0 : index
    %c0_3 = arith.constant 0 : index
    %0 = vector.load %arg1[%c0, %c0_0, %c0_1, %c0_2, %c0_3] : memref<1x4x10x10x128xbf16, #tpu.memory_space<vmem>>, vector<1x4x10x10x128xbf16>
    %1 = vector.shape_cast %0 : vector<1x4x10x10x128xbf16> to vector<4x10x10x128xbf16>
    %2 = arith.extf %1 : vector<4x10x10x128xbf16> to vector<4x10x10x128xf32>
    %c0_4 = arith.constant 0 : index
    %c0_5 = arith.constant 0 : index
    %3 = vector.load %arg2[%c0_4, %c0_5] : memref<27x128xbf16, #tpu.memory_space<vmem>>, vector<27x128xbf16>
    %4 = arith.extf %3 : vector<27x128xbf16> to vector<27x128xf32>
    %cst = arith.constant 0.000000e+00 : f32
    %5 = vector.broadcast %cst : f32 to vector<2x8x8x128xf32>
    %6 = vector.extract_strided_slice %2 {offsets = [0, 0, 0, 0], sizes = [2, 8, 8, 128], strides = [1, 1, 1, 1]} : vector<4x10x10x128xf32> to vector<2x8x8x128xf32>
    %7 = vector.extract_strided_slice %4 {offsets = [0, 0], sizes = [1, 128], strides = [1, 1]} : vector<27x128xf32> to vector<1x128xf32>
    %8 = vector.shape_cast %7 : vector<1x128xf32> to vector<1x1x1x128xf32>
    %9 = vector.broadcast %8 : vector<1x1x1x128xf32> to vector<2x8x8x128xf32>
    %10 = arith.mulf %6, %9 : vector<2x8x8x128xf32>
    %11 = arith.addf %5, %10 : vector<2x8x8x128xf32>
    %12 = vector.extract_strided_slice %2 {offsets = [0, 0, 1, 0], sizes = [2, 8, 8, 128], strides = [1, 1, 1, 1]} : vector<4x10x10x128xf32> to vector<2x8x8x128xf32>
    %13 = vector.extract_strided_slice %4 {offsets = [1, 0], sizes = [1, 128], strides = [1, 1]} : vector<27x128xf32> to vector<1x128xf32>
    %14 = vector.shape_cast %13 : vector<1x128xf32> to vector<1x1x1x128xf32>
    %15 = vector.broadcast %14 : vector<1x1x1x128xf32> to vector<2x8x8x128xf32>
    %16 = arith.mulf %12, %15 : vector<2x8x8x128xf32>
    %17 = arith.addf %11, %16 : vector<2x8x8x128xf32>
    %18 = vector.extract_strided_slice %2 {offsets = [0, 0, 2, 0], sizes = [2, 8, 8, 128], strides = [1, 1, 1, 1]} : vector<4x10x10x128xf32> to vector<2x8x8x128xf32>
    %19 = vector.extract_strided_slice %4 {offsets = [2, 0], sizes = [1, 128], strides = [1, 1]} : vector<27x128xf32> to vector<1x128xf32>
    %20 = vector.shape_cast %19 : vector<1x128xf32> to vector<1x1x1x128xf32>
    %21 = vector.broadcast %20 : vector<1x1x1x128xf32> to vector<2x8x8x128xf32>
    %22 = arith.mulf %18, %21 : vector<2x8x8x128xf32>
    %23 = arith.addf %17, %22 : vector<2x8x8x128xf32>
    %24 = vector.extract_strided_slice %2 {offsets = [0, 1, 0, 0], sizes = [2, 8, 8, 128], strides = [1, 1, 1, 1]} : vector<4x10x10x128xf32> to vector<2x8x8x128xf32>
    %25 = vector.extract_strided_slice %4 {offsets = [3, 0], sizes = [1, 128], strides = [1, 1]} : vector<27x128xf32> to vector<1x128xf32>
    %26 = vector.shape_cast %25 : vector<1x128xf32> to vector<1x1x1x128xf32>
    %27 = vector.broadcast %26 : vector<1x1x1x128xf32> to vector<2x8x8x128xf32>
    %28 = arith.mulf %24, %27 : vector<2x8x8x128xf32>
    %29 = arith.addf %23, %28 : vector<2x8x8x128xf32>
    %30 = vector.extract_strided_slice %2 {offsets = [0, 1, 1, 0], sizes = [2, 8, 8, 128], strides = [1, 1, 1, 1]} : vector<4x10x10x128xf32> to vector<2x8x8x128xf32>
    %31 = vector.extract_strided_slice %4 {offsets = [4, 0], sizes = [1, 128], strides = [1, 1]} : vector<27x128xf32> to vector<1x128xf32>
    %32 = vector.shape_cast %31 : vector<1x128xf32> to vector<1x1x1x128xf32>
    %33 = vector.broadcast %32 : vector<1x1x1x128xf32> to vector<2x8x8x128xf32>
    %34 = arith.mulf %30, %33 : vector<2x8x8x128xf32>
    %35 = arith.addf %29, %34 : vector<2x8x8x128xf32>
    %36 = vector.extract_strided_slice %2 {offsets = [0, 1, 2, 0], sizes = [2, 8, 8, 128], strides = [1, 1, 1, 1]} : vector<4x10x10x128xf32> to vector<2x8x8x128xf32>
    %37 = vector.extract_strided_slice %4 {offsets = [5, 0], sizes = [1, 128], strides = [1, 1]} : vector<27x128xf32> to vector<1x128xf32>
    %38 = vector.shape_cast %37 : vector<1x128xf32> to vector<1x1x1x128xf32>
    %39 = vector.broadcast %38 : vector<1x1x1x128xf32> to vector<2x8x8x128xf32>
    %40 = arith.mulf %36, %39 : vector<2x8x8x128xf32>
    %41 = arith.addf %35, %40 : vector<2x8x8x128xf32>
    %42 = vector.extract_strided_slice %2 {offsets = [0, 2, 0, 0], sizes = [2, 8, 8, 128], strides = [1, 1, 1, 1]} : vector<4x10x10x128xf32> to vector<2x8x8x128xf32>
    %43 = vector.extract_strided_slice %4 {offsets = [6, 0], sizes = [1, 128], strides = [1, 1]} : vector<27x128xf32> to vector<1x128xf32>
    %44 = vector.shape_cast %43 : vector<1x128xf32> to vector<1x1x1x128xf32>
    %45 = vector.broadcast %44 : vector<1x1x1x128xf32> to vector<2x8x8x128xf32>
    %46 = arith.mulf %42, %45 : vector<2x8x8x128xf32>
    %47 = arith.addf %41, %46 : vector<2x8x8x128xf32>
    %48 = vector.extract_strided_slice %2 {offsets = [0, 2, 1, 0], sizes = [2, 8, 8, 128], strides = [1, 1, 1, 1]} : vector<4x10x10x128xf32> to vector<2x8x8x128xf32>
    %49 = vector.extract_strided_slice %4 {offsets = [7, 0], sizes = [1, 128], strides = [1, 1]} : vector<27x128xf32> to vector<1x128xf32>
    %50 = vector.shape_cast %49 : vector<1x128xf32> to vector<1x1x1x128xf32>
    %51 = vector.broadcast %50 : vector<1x1x1x128xf32> to vector<2x8x8x128xf32>
    %52 = arith.mulf %48, %51 : vector<2x8x8x128xf32>
    %53 = arith.addf %47, %52 : vector<2x8x8x128xf32>
    %54 = vector.extract_strided_slice %2 {offsets = [0, 2, 2, 0], sizes = [2, 8, 8, 128], strides = [1, 1, 1, 1]} : vector<4x10x10x128xf32> to vector<2x8x8x128xf32>
    %55 = vector.extract_strided_slice %4 {offsets = [8, 0], sizes = [1, 128], strides = [1, 1]} : vector<27x128xf32> to vector<1x128xf32>
    %56 = vector.shape_cast %55 : vector<1x128xf32> to vector<1x1x1x128xf32>
    %57 = vector.broadcast %56 : vector<1x1x1x128xf32> to vector<2x8x8x128xf32>
    %58 = arith.mulf %54, %57 : vector<2x8x8x128xf32>
    %59 = arith.addf %53, %58 : vector<2x8x8x128xf32>
    %60 = vector.extract_strided_slice %2 {offsets = [1, 0, 0, 0], sizes = [2, 8, 8, 128], strides = [1, 1, 1, 1]} : vector<4x10x10x128xf32> to vector<2x8x8x128xf32>
    %61 = vector.extract_strided_slice %4 {offsets = [9, 0], sizes = [1, 128], strides = [1, 1]} : vector<27x128xf32> to vector<1x128xf32>
    %62 = vector.shape_cast %61 : vector<1x128xf32> to vector<1x1x1x128xf32>
    %63 = vector.broadcast %62 : vector<1x1x1x128xf32> to vector<2x8x8x128xf32>
    %64 = arith.mulf %60, %63 : vector<2x8x8x128xf32>
    %65 = arith.addf %59, %64 : vector<2x8x8x128xf32>
    %66 = vector.extract_strided_slice %2 {offsets = [1, 0, 1, 0], sizes = [2, 8, 8, 128], strides = [1, 1, 1, 1]} : vector<4x10x10x128xf32> to vector<2x8x8x128xf32>
    %67 = vector.extract_strided_slice %4 {offsets = [10, 0], sizes = [1, 128], strides = [1, 1]} : vector<27x128xf32> to vector<1x128xf32>
    %68 = vector.shape_cast %67 : vector<1x128xf32> to vector<1x1x1x128xf32>
    %69 = vector.broadcast %68 : vector<1x1x1x128xf32> to vector<2x8x8x128xf32>
    %70 = arith.mulf %66, %69 : vector<2x8x8x128xf32>
    %71 = arith.addf %65, %70 : vector<2x8x8x128xf32>
    %72 = vector.extract_strided_slice %2 {offsets = [1, 0, 2, 0], sizes = [2, 8, 8, 128], strides = [1, 1, 1, 1]} : vector<4x10x10x128xf32> to vector<2x8x8x128xf32>
    %73 = vector.extract_strided_slice %4 {offsets = [11, 0], sizes = [1, 128], strides = [1, 1]} : vector<27x128xf32> to vector<1x128xf32>
    %74 = vector.shape_cast %73 : vector<1x128xf32> to vector<1x1x1x128xf32>
    %75 = vector.broadcast %74 : vector<1x1x1x128xf32> to vector<2x8x8x128xf32>
    %76 = arith.mulf %72, %75 : vector<2x8x8x128xf32>
    %77 = arith.addf %71, %76 : vector<2x8x8x128xf32>
    %78 = vector.extract_strided_slice %2 {offsets = [1, 1, 0, 0], sizes = [2, 8, 8, 128], strides = [1, 1, 1, 1]} : vector<4x10x10x128xf32> to vector<2x8x8x128xf32>
    %79 = vector.extract_strided_slice %4 {offsets = [12, 0], sizes = [1, 128], strides = [1, 1]} : vector<27x128xf32> to vector<1x128xf32>
    %80 = vector.shape_cast %79 : vector<1x128xf32> to vector<1x1x1x128xf32>
    %81 = vector.broadcast %80 : vector<1x1x1x128xf32> to vector<2x8x8x128xf32>
    %82 = arith.mulf %78, %81 : vector<2x8x8x128xf32>
    %83 = arith.addf %77, %82 : vector<2x8x8x128xf32>
    %84 = vector.extract_strided_slice %2 {offsets = [1, 1, 1, 0], sizes = [2, 8, 8, 128], strides = [1, 1, 1, 1]} : vector<4x10x10x128xf32> to vector<2x8x8x128xf32>
    %85 = vector.extract_strided_slice %4 {offsets = [13, 0], sizes = [1, 128], strides = [1, 1]} : vector<27x128xf32> to vector<1x128xf32>
    %86 = vector.shape_cast %85 : vector<1x128xf32> to vector<1x1x1x128xf32>
    %87 = vector.broadcast %86 : vector<1x1x1x128xf32> to vector<2x8x8x128xf32>
    %88 = arith.mulf %84, %87 : vector<2x8x8x128xf32>
    %89 = arith.addf %83, %88 : vector<2x8x8x128xf32>
    %90 = vector.extract_strided_slice %2 {offsets = [1, 1, 2, 0], sizes = [2, 8, 8, 128], strides = [1, 1, 1, 1]} : vector<4x10x10x128xf32> to vector<2x8x8x128xf32>
    %91 = vector.extract_strided_slice %4 {offsets = [14, 0], sizes = [1, 128], strides = [1, 1]} : vector<27x128xf32> to vector<1x128xf32>
    %92 = vector.shape_cast %91 : vector<1x128xf32> to vector<1x1x1x128xf32>
    %93 = vector.broadcast %92 : vector<1x1x1x128xf32> to vector<2x8x8x128xf32>
    %94 = arith.mulf %90, %93 : vector<2x8x8x128xf32>
    %95 = arith.addf %89, %94 : vector<2x8x8x128xf32>
    %96 = vector.extract_strided_slice %2 {offsets = [1, 2, 0, 0], sizes = [2, 8, 8, 128], strides = [1, 1, 1, 1]} : vector<4x10x10x128xf32> to vector<2x8x8x128xf32>
    %97 = vector.extract_strided_slice %4 {offsets = [15, 0], sizes = [1, 128], strides = [1, 1]} : vector<27x128xf32> to vector<1x128xf32>
    %98 = vector.shape_cast %97 : vector<1x128xf32> to vector<1x1x1x128xf32>
    %99 = vector.broadcast %98 : vector<1x1x1x128xf32> to vector<2x8x8x128xf32>
    %100 = arith.mulf %96, %99 : vector<2x8x8x128xf32>
    %101 = arith.addf %95, %100 : vector<2x8x8x128xf32>
    %102 = vector.extract_strided_slice %2 {offsets = [1, 2, 1, 0], sizes = [2, 8, 8, 128], strides = [1, 1, 1, 1]} : vector<4x10x10x128xf32> to vector<2x8x8x128xf32>
    %103 = vector.extract_strided_slice %4 {offsets = [16, 0], sizes = [1, 128], strides = [1, 1]} : vector<27x128xf32> to vector<1x128xf32>
    %104 = vector.shape_cast %103 : vector<1x128xf32> to vector<1x1x1x128xf32>
    %105 = vector.broadcast %104 : vector<1x1x1x128xf32> to vector<2x8x8x128xf32>
    %106 = arith.mulf %102, %105 : vector<2x8x8x128xf32>
    %107 = arith.addf %101, %106 : vector<2x8x8x128xf32>
    %108 = vector.extract_strided_slice %2 {offsets = [1, 2, 2, 0], sizes = [2, 8, 8, 128], strides = [1, 1, 1, 1]} : vector<4x10x10x128xf32> to vector<2x8x8x128xf32>
    %109 = vector.extract_strided_slice %4 {offsets = [17, 0], sizes = [1, 128], strides = [1, 1]} : vector<27x128xf32> to vector<1x128xf32>
    %110 = vector.shape_cast %109 : vector<1x128xf32> to vector<1x1x1x128xf32>
    %111 = vector.broadcast %110 : vector<1x1x1x128xf32> to vector<2x8x8x128xf32>
    %112 = arith.mulf %108, %111 : vector<2x8x8x128xf32>
    %113 = arith.addf %107, %112 : vector<2x8x8x128xf32>
    %114 = vector.extract_strided_slice %2 {offsets = [2, 0, 0, 0], sizes = [2, 8, 8, 128], strides = [1, 1, 1, 1]} : vector<4x10x10x128xf32> to vector<2x8x8x128xf32>
    %115 = vector.extract_strided_slice %4 {offsets = [18, 0], sizes = [1, 128], strides = [1, 1]} : vector<27x128xf32> to vector<1x128xf32>
    %116 = vector.shape_cast %115 : vector<1x128xf32> to vector<1x1x1x128xf32>
    %117 = vector.broadcast %116 : vector<1x1x1x128xf32> to vector<2x8x8x128xf32>
    %118 = arith.mulf %114, %117 : vector<2x8x8x128xf32>
    %119 = arith.addf %113, %118 : vector<2x8x8x128xf32>
    %120 = vector.extract_strided_slice %2 {offsets = [2, 0, 1, 0], sizes = [2, 8, 8, 128], strides = [1, 1, 1, 1]} : vector<4x10x10x128xf32> to vector<2x8x8x128xf32>
    %121 = vector.extract_strided_slice %4 {offsets = [19, 0], sizes = [1, 128], strides = [1, 1]} : vector<27x128xf32> to vector<1x128xf32>
    %122 = vector.shape_cast %121 : vector<1x128xf32> to vector<1x1x1x128xf32>
    %123 = vector.broadcast %122 : vector<1x1x1x128xf32> to vector<2x8x8x128xf32>
    %124 = arith.mulf %120, %123 : vector<2x8x8x128xf32>
    %125 = arith.addf %119, %124 : vector<2x8x8x128xf32>
    %126 = vector.extract_strided_slice %2 {offsets = [2, 0, 2, 0], sizes = [2, 8, 8, 128], strides = [1, 1, 1, 1]} : vector<4x10x10x128xf32> to vector<2x8x8x128xf32>
    %127 = vector.extract_strided_slice %4 {offsets = [20, 0], sizes = [1, 128], strides = [1, 1]} : vector<27x128xf32> to vector<1x128xf32>
    %128 = vector.shape_cast %127 : vector<1x128xf32> to vector<1x1x1x128xf32>
    %129 = vector.broadcast %128 : vector<1x1x1x128xf32> to vector<2x8x8x128xf32>
    %130 = arith.mulf %126, %129 : vector<2x8x8x128xf32>
    %131 = arith.addf %125, %130 : vector<2x8x8x128xf32>
    %132 = vector.extract_strided_slice %2 {offsets = [2, 1, 0, 0], sizes = [2, 8, 8, 128], strides = [1, 1, 1, 1]} : vector<4x10x10x128xf32> to vector<2x8x8x128xf32>
    %133 = vector.extract_strided_slice %4 {offsets = [21, 0], sizes = [1, 128], strides = [1, 1]} : vector<27x128xf32> to vector<1x128xf32>
    %134 = vector.shape_cast %133 : vector<1x128xf32> to vector<1x1x1x128xf32>
    %135 = vector.broadcast %134 : vector<1x1x1x128xf32> to vector<2x8x8x128xf32>
    %136 = arith.mulf %132, %135 : vector<2x8x8x128xf32>
    %137 = arith.addf %131, %136 : vector<2x8x8x128xf32>
    %138 = vector.extract_strided_slice %2 {offsets = [2, 1, 1, 0], sizes = [2, 8, 8, 128], strides = [1, 1, 1, 1]} : vector<4x10x10x128xf32> to vector<2x8x8x128xf32>
    %139 = vector.extract_strided_slice %4 {offsets = [22, 0], sizes = [1, 128], strides = [1, 1]} : vector<27x128xf32> to vector<1x128xf32>
    %140 = vector.shape_cast %139 : vector<1x128xf32> to vector<1x1x1x128xf32>
    %141 = vector.broadcast %140 : vector<1x1x1x128xf32> to vector<2x8x8x128xf32>
    %142 = arith.mulf %138, %141 : vector<2x8x8x128xf32>
    %143 = arith.addf %137, %142 : vector<2x8x8x128xf32>
    %144 = vector.extract_strided_slice %2 {offsets = [2, 1, 2, 0], sizes = [2, 8, 8, 128], strides = [1, 1, 1, 1]} : vector<4x10x10x128xf32> to vector<2x8x8x128xf32>
    %145 = vector.extract_strided_slice %4 {offsets = [23, 0], sizes = [1, 128], strides = [1, 1]} : vector<27x128xf32> to vector<1x128xf32>
    %146 = vector.shape_cast %145 : vector<1x128xf32> to vector<1x1x1x128xf32>
    %147 = vector.broadcast %146 : vector<1x1x1x128xf32> to vector<2x8x8x128xf32>
    %148 = arith.mulf %144, %147 : vector<2x8x8x128xf32>
    %149 = arith.addf %143, %148 : vector<2x8x8x128xf32>
    %150 = vector.extract_strided_slice %2 {offsets = [2, 2, 0, 0], sizes = [2, 8, 8, 128], strides = [1, 1, 1, 1]} : vector<4x10x10x128xf32> to vector<2x8x8x128xf32>
    %151 = vector.extract_strided_slice %4 {offsets = [24, 0], sizes = [1, 128], strides = [1, 1]} : vector<27x128xf32> to vector<1x128xf32>
    %152 = vector.shape_cast %151 : vector<1x128xf32> to vector<1x1x1x128xf32>
    %153 = vector.broadcast %152 : vector<1x1x1x128xf32> to vector<2x8x8x128xf32>
    %154 = arith.mulf %150, %153 : vector<2x8x8x128xf32>
    %155 = arith.addf %149, %154 : vector<2x8x8x128xf32>
    %156 = vector.extract_strided_slice %2 {offsets = [2, 2, 1, 0], sizes = [2, 8, 8, 128], strides = [1, 1, 1, 1]} : vector<4x10x10x128xf32> to vector<2x8x8x128xf32>
    %157 = vector.extract_strided_slice %4 {offsets = [25, 0], sizes = [1, 128], strides = [1, 1]} : vector<27x128xf32> to vector<1x128xf32>
    %158 = vector.shape_cast %157 : vector<1x128xf32> to vector<1x1x1x128xf32>
    %159 = vector.broadcast %158 : vector<1x1x1x128xf32> to vector<2x8x8x128xf32>
    %160 = arith.mulf %156, %159 : vector<2x8x8x128xf32>
    %161 = arith.addf %155, %160 : vector<2x8x8x128xf32>
    %162 = vector.extract_strided_slice %2 {offsets = [2, 2, 2, 0], sizes = [2, 8, 8, 128], strides = [1, 1, 1, 1]} : vector<4x10x10x128xf32> to vector<2x8x8x128xf32>
    %163 = vector.extract_strided_slice %4 {offsets = [26, 0], sizes = [1, 128], strides = [1, 1]} : vector<27x128xf32> to vector<1x128xf32>
    %164 = vector.shape_cast %163 : vector<1x128xf32> to vector<1x1x1x128xf32>
    %165 = vector.broadcast %164 : vector<1x1x1x128xf32> to vector<2x8x8x128xf32>
    %166 = arith.mulf %162, %165 : vector<2x8x8x128xf32>
    %167 = arith.addf %161, %166 : vector<2x8x8x128xf32>
    %c0_6 = arith.constant 0 : index
    %c0_7 = arith.constant 0 : index
    %168 = vector.load %arg3[%c0_6, %c0_7] : memref<1x128xf32, #tpu.memory_space<vmem>>, vector<1x128xf32>
    %169 = vector.shape_cast %168 : vector<1x128xf32> to vector<1x1x1x128xf32>
    %170 = vector.broadcast %169 : vector<1x1x1x128xf32> to vector<2x8x8x128xf32>
    %171 = arith.addf %167, %170 : vector<2x8x8x128xf32>
    %cst_8 = arith.constant 0.000000e+00 : f32
    %cst_9 = arith.constant 6.000000e+00 : f32
    %172 = vector.broadcast %cst_8 : f32 to vector<2x8x8x128xf32>
    %173 = arith.maximumf %172, %171 : vector<2x8x8x128xf32>
    %174 = vector.broadcast %cst_9 : f32 to vector<2x8x8x128xf32>
    %175 = arith.minimumf %174, %173 : vector<2x8x8x128xf32>
    %176 = arith.truncf %175 : vector<2x8x8x128xf32> to vector<2x8x8x128xbf16>
    %c0_10 = arith.constant 0 : index
    %c0_11 = arith.constant 0 : index
    %c0_12 = arith.constant 0 : index
    %c0_13 = arith.constant 0 : index
    %c0_14 = arith.constant 0 : index
    %177 = vector.load %arg4[%c0_10, %c0_11, %c0_12, %c0_13, %c0_14] : memref<1x2x8x8x128xbf16, #tpu.memory_space<vmem>>, vector<1x2x8x8x128xbf16>
    %178 = vector.shape_cast %177 : vector<1x2x8x8x128xbf16> to vector<2x8x8x128xbf16>
    %179 = vector.shape_cast %176 : vector<2x8x8x128xbf16> to vector<1x2x8x8x128xbf16>
    tpu.vector_store %arg4[%c0_10, %c0_11, %c0_12, %c0_13, %c0_14], %179 {strides = array<i32>} : memref<1x2x8x8x128xbf16, #tpu.memory_space<vmem>>, vector<1x2x8x8x128xbf16>,
    return
  }
  func.func @transform_0(%arg0: i32) -> (i32, i32, i32, i32, i32) {
    %c0_i32 = arith.constant 0 : i32
    %c0_i32_0 = arith.constant 0 : i32
    %c0_i32_1 = arith.constant 0 : i32
    %c0_i32_2 = arith.constant 0 : i32
    %c0_i32_3 = arith.constant 0 : i32
    return %arg0, %c0_i32, %c0_i32_0, %c0_i32_1, %c0_i32_2 : i32, i32, i32, i32, i32
  }
  func.func @transform_1(%arg0: i32) -> (i32, i32) {
    %c0_i32 = arith.constant 0 : i32
    %c0_i32_0 = arith.constant 0 : i32
    %c0_i32_1 = arith.constant 0 : i32
    return %c0_i32, %c0_i32_0 : i32, i32
  }
  func.func @transform_2(%arg0: i32) -> (i32, i32) {
    %c0_i32 = arith.constant 0 : i32
    %c0_i32_0 = arith.constant 0 : i32
    %c0_i32_1 = arith.constant 0 : i32
    return %c0_i32, %c0_i32_0 : i32, i32
  }
  func.func @transform_3(%arg0: i32) -> (i32, i32, i32, i32, i32) {
    %c0_i32 = arith.constant 0 : i32
    %c0_i32_0 = arith.constant 0 : i32
    %c0_i32_1 = arith.constant 0 : i32
    %c0_i32_2 = arith.constant 0 : i32
    %c0_i32_3 = arith.constant 0 : i32
    return %arg0, %c0_i32, %c0_i32_0, %c0_i32_1, %c0_i32_2 : i32, i32, i32, i32, i32
  }
}

module attributes {stable_mosaic.version = 11 : i64} {
  func.func @_mm_kernel(%arg0: i32, %arg1: i32, %arg2: memref<128x128xbf16, #tpu.memory_space<vmem>>, %arg3: memref<128x128xbf16, #tpu.memory_space<vmem>>, %arg4: memref<1x128xf32, #tpu.memory_space<vmem>>, %arg5: memref<128x128xbf16, #tpu.memory_space<vmem>>, %arg6: memref<128x128xbf16, #tpu.memory_space<vmem>>) attributes {dimension_semantics = [#tpu.dimension_semantics<parallel>, #tpu.dimension_semantics<parallel>], iteration_bounds = array<i64: 1, 1>, scalar_prefetch = 0 : i64, scratch_operands = 0 : i64, tpu.core_type = #tpu.core_type<tc>, window_params = [{transform_indices = @transform_0, window_bounds = array<i64: 128, 128>}, {transform_indices = @transform_1, window_bounds = array<i64: 128, 128>}, {transform_indices = @transform_2, window_bounds = array<i64: 1, 128>}, {transform_indices = @transform_3, window_bounds = array<i64: 128, 128>}, {transform_indices = @transform_4, window_bounds = array<i64: 128, 128>}]} {
    %c0 = arith.constant 0 : index
    %c0_0 = arith.constant 0 : index
    %0 = vector.load %arg2[%c0, %c0_0] : memref<128x128xbf16, #tpu.memory_space<vmem>>, vector<128x128xbf16>
    %c0_1 = arith.constant 0 : index
    %c0_2 = arith.constant 0 : index
    %1 = vector.load %arg3[%c0_1, %c0_2] : memref<128x128xbf16, #tpu.memory_space<vmem>>, vector<128x128xbf16>
    %cst = arith.constant dense<0.000000e+00> : vector<128x128xf32>
    %2 = tpu.matmul %0, %1, %cst {dimension_numbers = #tpu.dot_dimension_numbers<[1], [0], [0], [1], [0, 0, 1, 1], [], []>} : vector<128x128xbf16>, vector<128x128xbf16>, vector<128x128xf32> -> vector<128x128xf32>
    %c0_3 = arith.constant 0 : index
    %c0_4 = arith.constant 0 : index
    %3 = vector.load %arg4[%c0_3, %c0_4] : memref<1x128xf32, #tpu.memory_space<vmem>>, vector<1x128xf32>
    %4 = vector.broadcast %3 : vector<1x128xf32> to vector<128x128xf32>
    %5 = arith.addf %2, %4 : vector<128x128xf32>
    %c0_5 = arith.constant 0 : index
    %c0_6 = arith.constant 0 : index
    %6 = vector.load %arg5[%c0_5, %c0_6] : memref<128x128xbf16, #tpu.memory_space<vmem>>, vector<128x128xbf16>
    %7 = arith.extf %6 : vector<128x128xbf16> to vector<128x128xf32>
    %8 = arith.addf %5, %7 : vector<128x128xf32>
    %9 = arith.truncf %8 : vector<128x128xf32> to vector<128x128xbf16>
    %c0_7 = arith.constant 0 : index
    %c0_8 = arith.constant 0 : index
    %10 = vector.load %arg6[%c0_7, %c0_8] : memref<128x128xbf16, #tpu.memory_space<vmem>>, vector<128x128xbf16>
    tpu.vector_store %arg6[%c0_7, %c0_8], %9 {strides = array<i32>} : memref<128x128xbf16, #tpu.memory_space<vmem>>, vector<128x128xbf16>,
    return
  }
  func.func @transform_0(%arg0: i32, %arg1: i32) -> (i32, i32) {
    %c0_i32 = arith.constant 0 : i32
    %c0_i32_0 = arith.constant 0 : i32
    return %arg0, %c0_i32 : i32, i32
  }
  func.func @transform_1(%arg0: i32, %arg1: i32) -> (i32, i32) {
    %c0_i32 = arith.constant 0 : i32
    %c0_i32_0 = arith.constant 0 : i32
    return %c0_i32, %arg1 : i32, i32
  }
  func.func @transform_2(%arg0: i32, %arg1: i32) -> (i32, i32) {
    %c0_i32 = arith.constant 0 : i32
    %c0_i32_0 = arith.constant 0 : i32
    return %c0_i32, %arg1 : i32, i32
  }
  func.func @transform_3(%arg0: i32, %arg1: i32) -> (i32, i32) {
    %c0_i32 = arith.constant 0 : i32
    return %arg0, %arg1 : i32, i32
  }
  func.func @transform_4(%arg0: i32, %arg1: i32) -> (i32, i32) {
    %c0_i32 = arith.constant 0 : i32
    return %arg0, %arg1 : i32, i32
  }
}

module attributes {stable_mosaic.version = 11 : i64} {
  func.func @_mm_kernel(%arg0: i32, %arg1: i32, %arg2: memref<128x128xbf16, #tpu.memory_space<vmem>>, %arg3: memref<128x128xbf16, #tpu.memory_space<vmem>>, %arg4: memref<1x128xf32, #tpu.memory_space<vmem>>, %arg5: memref<128x128xbf16, #tpu.memory_space<vmem>>) attributes {dimension_semantics = [#tpu.dimension_semantics<parallel>, #tpu.dimension_semantics<parallel>], iteration_bounds = array<i64: 1, 1>, scalar_prefetch = 0 : i64, scratch_operands = 0 : i64, tpu.core_type = #tpu.core_type<tc>, window_params = [{transform_indices = @transform_0, window_bounds = array<i64: 128, 128>}, {transform_indices = @transform_1, window_bounds = array<i64: 128, 128>}, {transform_indices = @transform_2, window_bounds = array<i64: 1, 128>}, {transform_indices = @transform_3, window_bounds = array<i64: 128, 128>}]} {
    %c0 = arith.constant 0 : index
    %c0_0 = arith.constant 0 : index
    %0 = vector.load %arg2[%c0, %c0_0] : memref<128x128xbf16, #tpu.memory_space<vmem>>, vector<128x128xbf16>
    %c0_1 = arith.constant 0 : index
    %c0_2 = arith.constant 0 : index
    %1 = vector.load %arg3[%c0_1, %c0_2] : memref<128x128xbf16, #tpu.memory_space<vmem>>, vector<128x128xbf16>
    %cst = arith.constant dense<0.000000e+00> : vector<128x128xf32>
    %2 = tpu.matmul %0, %1, %cst {dimension_numbers = #tpu.dot_dimension_numbers<[1], [0], [0], [1], [0, 0, 1, 1], [], []>} : vector<128x128xbf16>, vector<128x128xbf16>, vector<128x128xf32> -> vector<128x128xf32>
    %c0_3 = arith.constant 0 : index
    %c0_4 = arith.constant 0 : index
    %3 = vector.load %arg4[%c0_3, %c0_4] : memref<1x128xf32, #tpu.memory_space<vmem>>, vector<1x128xf32>
    %4 = vector.broadcast %3 : vector<1x128xf32> to vector<128x128xf32>
    %5 = arith.addf %2, %4 : vector<128x128xf32>
    %cst_5 = arith.constant 0.000000e+00 : f32
    %cst_6 = arith.constant 6.000000e+00 : f32
    %6 = vector.broadcast %cst_5 : f32 to vector<128x128xf32>
    %7 = arith.maximumf %6, %5 : vector<128x128xf32>
    %8 = vector.broadcast %cst_6 : f32 to vector<128x128xf32>
    %9 = arith.minimumf %8, %7 : vector<128x128xf32>
    %10 = arith.truncf %9 : vector<128x128xf32> to vector<128x128xbf16>
    %c0_7 = arith.constant 0 : index
    %c0_8 = arith.constant 0 : index
    %11 = vector.load %arg5[%c0_7, %c0_8] : memref<128x128xbf16, #tpu.memory_space<vmem>>, vector<128x128xbf16>
    tpu.vector_store %arg5[%c0_7, %c0_8], %10 {strides = array<i32>} : memref<128x128xbf16, #tpu.memory_space<vmem>>, vector<128x128xbf16>,
    return
  }
  func.func @transform_0(%arg0: i32, %arg1: i32) -> (i32, i32) {
    %c0_i32 = arith.constant 0 : i32
    %c0_i32_0 = arith.constant 0 : i32
    return %arg0, %c0_i32 : i32, i32
  }
  func.func @transform_1(%arg0: i32, %arg1: i32) -> (i32, i32) {
    %c0_i32 = arith.constant 0 : i32
    %c0_i32_0 = arith.constant 0 : i32
    return %c0_i32, %arg1 : i32, i32
  }
  func.func @transform_2(%arg0: i32, %arg1: i32) -> (i32, i32) {
    %c0_i32 = arith.constant 0 : i32
    %c0_i32_0 = arith.constant 0 : i32
    return %c0_i32, %arg1 : i32, i32
  }
  func.func @transform_3(%arg0: i32, %arg1: i32) -> (i32, i32) {
    %c0_i32 = arith.constant 0 : i32
    return %arg0, %arg1 : i32, i32
  }
}

module attributes {stable_mosaic.version = 11 : i64} {
  func.func @_mm_kernel(%arg0: i32, %arg1: i32, %arg2: memref<32x128xbf16, #tpu.memory_space<vmem>>, %arg3: memref<128x128xbf16, #tpu.memory_space<vmem>>, %arg4: memref<1x128xf32, #tpu.memory_space<vmem>>, %arg5: memref<32x128xbf16, #tpu.memory_space<vmem>>) attributes {dimension_semantics = [#tpu.dimension_semantics<parallel>, #tpu.dimension_semantics<parallel>], iteration_bounds = array<i64: 1, 1>, scalar_prefetch = 0 : i64, scratch_operands = 0 : i64, tpu.core_type = #tpu.core_type<tc>, window_params = [{transform_indices = @transform_0, window_bounds = array<i64: 32, 128>}, {transform_indices = @transform_1, window_bounds = array<i64: 128, 128>}, {transform_indices = @transform_2, window_bounds = array<i64: 1, 128>}, {transform_indices = @transform_3, window_bounds = array<i64: 32, 128>}]} {
    %c0 = arith.constant 0 : index
    %c0_0 = arith.constant 0 : index
    %0 = vector.load %arg2[%c0, %c0_0] : memref<32x128xbf16, #tpu.memory_space<vmem>>, vector<32x128xbf16>
    %c0_1 = arith.constant 0 : index
    %c0_2 = arith.constant 0 : index
    %1 = vector.load %arg3[%c0_1, %c0_2] : memref<128x128xbf16, #tpu.memory_space<vmem>>, vector<128x128xbf16>
    %cst = arith.constant dense<0.000000e+00> : vector<32x128xf32>
    %2 = tpu.matmul %0, %1, %cst {dimension_numbers = #tpu.dot_dimension_numbers<[1], [0], [0], [1], [0, 0, 1, 1], [], []>} : vector<32x128xbf16>, vector<128x128xbf16>, vector<32x128xf32> -> vector<32x128xf32>
    %c0_3 = arith.constant 0 : index
    %c0_4 = arith.constant 0 : index
    %3 = vector.load %arg4[%c0_3, %c0_4] : memref<1x128xf32, #tpu.memory_space<vmem>>, vector<1x128xf32>
    %4 = vector.broadcast %3 : vector<1x128xf32> to vector<32x128xf32>
    %5 = arith.addf %2, %4 : vector<32x128xf32>
    %6 = arith.truncf %5 : vector<32x128xf32> to vector<32x128xbf16>
    %c0_5 = arith.constant 0 : index
    %c0_6 = arith.constant 0 : index
    %7 = vector.load %arg5[%c0_5, %c0_6] : memref<32x128xbf16, #tpu.memory_space<vmem>>, vector<32x128xbf16>
    tpu.vector_store %arg5[%c0_5, %c0_6], %6 {strides = array<i32>} : memref<32x128xbf16, #tpu.memory_space<vmem>>, vector<32x128xbf16>,
    return
  }
  func.func @transform_0(%arg0: i32, %arg1: i32) -> (i32, i32) {
    %c0_i32 = arith.constant 0 : i32
    %c0_i32_0 = arith.constant 0 : i32
    return %arg0, %c0_i32 : i32, i32
  }
  func.func @transform_1(%arg0: i32, %arg1: i32) -> (i32, i32) {
    %c0_i32 = arith.constant 0 : i32
    %c0_i32_0 = arith.constant 0 : i32
    return %c0_i32, %arg1 : i32, i32
  }
  func.func @transform_2(%arg0: i32, %arg1: i32) -> (i32, i32) {
    %c0_i32 = arith.constant 0 : i32
    %c0_i32_0 = arith.constant 0 : i32
    return %c0_i32, %arg1 : i32, i32
  }
  func.func @transform_3(%arg0: i32, %arg1: i32) -> (i32, i32) {
    %c0_i32 = arith.constant 0 : i32
    return %arg0, %arg1 : i32, i32
  }
}

module attributes {stable_mosaic.version = 11 : i64} {
  func.func @_mm_kernel(%arg0: i32, %arg1: i32, %arg2: memref<32x128xbf16, #tpu.memory_space<vmem>>, %arg3: memref<128x128xbf16, #tpu.memory_space<vmem>>, %arg4: memref<1x128xf32, #tpu.memory_space<vmem>>, %arg5: memref<32x128xbf16, #tpu.memory_space<vmem>>) attributes {dimension_semantics = [#tpu.dimension_semantics<parallel>, #tpu.dimension_semantics<parallel>], iteration_bounds = array<i64: 1, 1>, scalar_prefetch = 0 : i64, scratch_operands = 0 : i64, tpu.core_type = #tpu.core_type<tc>, window_params = [{transform_indices = @transform_0, window_bounds = array<i64: 32, 128>}, {transform_indices = @transform_1, window_bounds = array<i64: 128, 128>}, {transform_indices = @transform_2, window_bounds = array<i64: 1, 128>}, {transform_indices = @transform_3, window_bounds = array<i64: 32, 128>}]} {
    %c0 = arith.constant 0 : index
    %c0_0 = arith.constant 0 : index
    %0 = vector.load %arg2[%c0, %c0_0] : memref<32x128xbf16, #tpu.memory_space<vmem>>, vector<32x128xbf16>
    %c0_1 = arith.constant 0 : index
    %c0_2 = arith.constant 0 : index
    %1 = vector.load %arg3[%c0_1, %c0_2] : memref<128x128xbf16, #tpu.memory_space<vmem>>, vector<128x128xbf16>
    %cst = arith.constant dense<0.000000e+00> : vector<32x128xf32>
    %2 = tpu.matmul %0, %1, %cst {dimension_numbers = #tpu.dot_dimension_numbers<[1], [0], [0], [1], [0, 0, 1, 1], [], []>} : vector<32x128xbf16>, vector<128x128xbf16>, vector<32x128xf32> -> vector<32x128xf32>
    %c0_3 = arith.constant 0 : index
    %c0_4 = arith.constant 0 : index
    %3 = vector.load %arg4[%c0_3, %c0_4] : memref<1x128xf32, #tpu.memory_space<vmem>>, vector<1x128xf32>
    %4 = vector.broadcast %3 : vector<1x128xf32> to vector<32x128xf32>
    %5 = arith.addf %2, %4 : vector<32x128xf32>
    %cst_5 = arith.constant 0.000000e+00 : f32
    %cst_6 = arith.constant 6.000000e+00 : f32
    %6 = vector.broadcast %cst_5 : f32 to vector<32x128xf32>
    %7 = arith.maximumf %6, %5 : vector<32x128xf32>
    %8 = vector.broadcast %cst_6 : f32 to vector<32x128xf32>
    %9 = arith.minimumf %8, %7 : vector<32x128xf32>
    %10 = arith.truncf %9 : vector<32x128xf32> to vector<32x128xbf16>
    %c0_7 = arith.constant 0 : index
    %c0_8 = arith.constant 0 : index
    %11 = vector.load %arg5[%c0_7, %c0_8] : memref<32x128xbf16, #tpu.memory_space<vmem>>, vector<32x128xbf16>
    tpu.vector_store %arg5[%c0_7, %c0_8], %10 {strides = array<i32>} : memref<32x128xbf16, #tpu.memory_space<vmem>>, vector<32x128xbf16>,
    return
  }
  func.func @transform_0(%arg0: i32, %arg1: i32) -> (i32, i32) {
    %c0_i32 = arith.constant 0 : i32
    %c0_i32_0 = arith.constant 0 : i32
    return %arg0, %c0_i32 : i32, i32
  }
  func.func @transform_1(%arg0: i32, %arg1: i32) -> (i32, i32) {
    %c0_i32 = arith.constant 0 : i32
    %c0_i32_0 = arith.constant 0 : i32
    return %c0_i32, %arg1 : i32, i32
  }
  func.func @transform_2(%arg0: i32, %arg1: i32) -> (i32, i32) {
    %c0_i32 = arith.constant 0 : i32
    %c0_i32_0 = arith.constant 0 : i32
    return %c0_i32, %arg1 : i32, i32
  }
  func.func @transform_3(%arg0: i32, %arg1: i32) -> (i32, i32) {
    %c0_i32 = arith.constant 0 : i32
    return %arg0, %arg1 : i32, i32
  }
}

module attributes {stable_mosaic.version = 11 : i64} {
  func.func @_dw_kernel(%arg0: i32, %arg1: memref<1x4x6x6x128xbf16, #tpu.memory_space<vmem>>, %arg2: memref<27x128xbf16, #tpu.memory_space<vmem>>, %arg3: memref<1x128xf32, #tpu.memory_space<vmem>>, %arg4: memref<1x2x4x4x128xbf16, #tpu.memory_space<vmem>>) attributes {dimension_semantics = [#tpu.dimension_semantics<parallel>], iteration_bounds = array<i64: 1>, scalar_prefetch = 0 : i64, scratch_operands = 0 : i64, tpu.core_type = #tpu.core_type<tc>, window_params = [{transform_indices = @transform_0, window_bounds = array<i64: 1, 4, 6, 6, 128>}, {pipeline_mode = #tpu.pipeline_mode<synchronous>, transform_indices = @transform_1, window_bounds = array<i64: 27, 128>}, {pipeline_mode = #tpu.pipeline_mode<synchronous>, transform_indices = @transform_2, window_bounds = array<i64: 1, 128>}, {transform_indices = @transform_3, window_bounds = array<i64: 1, 2, 4, 4, 128>}]} {
    %c0 = arith.constant 0 : index
    %c0_0 = arith.constant 0 : index
    %c0_1 = arith.constant 0 : index
    %c0_2 = arith.constant 0 : index
    %c0_3 = arith.constant 0 : index
    %0 = vector.load %arg1[%c0, %c0_0, %c0_1, %c0_2, %c0_3] : memref<1x4x6x6x128xbf16, #tpu.memory_space<vmem>>, vector<1x4x6x6x128xbf16>
    %1 = vector.shape_cast %0 : vector<1x4x6x6x128xbf16> to vector<4x6x6x128xbf16>
    %2 = arith.extf %1 : vector<4x6x6x128xbf16> to vector<4x6x6x128xf32>
    %c0_4 = arith.constant 0 : index
    %c0_5 = arith.constant 0 : index
    %3 = vector.load %arg2[%c0_4, %c0_5] : memref<27x128xbf16, #tpu.memory_space<vmem>>, vector<27x128xbf16>
    %4 = arith.extf %3 : vector<27x128xbf16> to vector<27x128xf32>
    %cst = arith.constant 0.000000e+00 : f32
    %5 = vector.broadcast %cst : f32 to vector<2x4x4x128xf32>
    %6 = vector.extract_strided_slice %2 {offsets = [0, 0, 0, 0], sizes = [2, 4, 4, 128], strides = [1, 1, 1, 1]} : vector<4x6x6x128xf32> to vector<2x4x4x128xf32>
    %7 = vector.extract_strided_slice %4 {offsets = [0, 0], sizes = [1, 128], strides = [1, 1]} : vector<27x128xf32> to vector<1x128xf32>
    %8 = vector.shape_cast %7 : vector<1x128xf32> to vector<1x1x1x128xf32>
    %9 = vector.broadcast %8 : vector<1x1x1x128xf32> to vector<2x4x4x128xf32>
    %10 = arith.mulf %6, %9 : vector<2x4x4x128xf32>
    %11 = arith.addf %5, %10 : vector<2x4x4x128xf32>
    %12 = vector.extract_strided_slice %2 {offsets = [0, 0, 1, 0], sizes = [2, 4, 4, 128], strides = [1, 1, 1, 1]} : vector<4x6x6x128xf32> to vector<2x4x4x128xf32>
    %13 = vector.extract_strided_slice %4 {offsets = [1, 0], sizes = [1, 128], strides = [1, 1]} : vector<27x128xf32> to vector<1x128xf32>
    %14 = vector.shape_cast %13 : vector<1x128xf32> to vector<1x1x1x128xf32>
    %15 = vector.broadcast %14 : vector<1x1x1x128xf32> to vector<2x4x4x128xf32>
    %16 = arith.mulf %12, %15 : vector<2x4x4x128xf32>
    %17 = arith.addf %11, %16 : vector<2x4x4x128xf32>
    %18 = vector.extract_strided_slice %2 {offsets = [0, 0, 2, 0], sizes = [2, 4, 4, 128], strides = [1, 1, 1, 1]} : vector<4x6x6x128xf32> to vector<2x4x4x128xf32>
    %19 = vector.extract_strided_slice %4 {offsets = [2, 0], sizes = [1, 128], strides = [1, 1]} : vector<27x128xf32> to vector<1x128xf32>
    %20 = vector.shape_cast %19 : vector<1x128xf32> to vector<1x1x1x128xf32>
    %21 = vector.broadcast %20 : vector<1x1x1x128xf32> to vector<2x4x4x128xf32>
    %22 = arith.mulf %18, %21 : vector<2x4x4x128xf32>
    %23 = arith.addf %17, %22 : vector<2x4x4x128xf32>
    %24 = vector.extract_strided_slice %2 {offsets = [0, 1, 0, 0], sizes = [2, 4, 4, 128], strides = [1, 1, 1, 1]} : vector<4x6x6x128xf32> to vector<2x4x4x128xf32>
    %25 = vector.extract_strided_slice %4 {offsets = [3, 0], sizes = [1, 128], strides = [1, 1]} : vector<27x128xf32> to vector<1x128xf32>
    %26 = vector.shape_cast %25 : vector<1x128xf32> to vector<1x1x1x128xf32>
    %27 = vector.broadcast %26 : vector<1x1x1x128xf32> to vector<2x4x4x128xf32>
    %28 = arith.mulf %24, %27 : vector<2x4x4x128xf32>
    %29 = arith.addf %23, %28 : vector<2x4x4x128xf32>
    %30 = vector.extract_strided_slice %2 {offsets = [0, 1, 1, 0], sizes = [2, 4, 4, 128], strides = [1, 1, 1, 1]} : vector<4x6x6x128xf32> to vector<2x4x4x128xf32>
    %31 = vector.extract_strided_slice %4 {offsets = [4, 0], sizes = [1, 128], strides = [1, 1]} : vector<27x128xf32> to vector<1x128xf32>
    %32 = vector.shape_cast %31 : vector<1x128xf32> to vector<1x1x1x128xf32>
    %33 = vector.broadcast %32 : vector<1x1x1x128xf32> to vector<2x4x4x128xf32>
    %34 = arith.mulf %30, %33 : vector<2x4x4x128xf32>
    %35 = arith.addf %29, %34 : vector<2x4x4x128xf32>
    %36 = vector.extract_strided_slice %2 {offsets = [0, 1, 2, 0], sizes = [2, 4, 4, 128], strides = [1, 1, 1, 1]} : vector<4x6x6x128xf32> to vector<2x4x4x128xf32>
    %37 = vector.extract_strided_slice %4 {offsets = [5, 0], sizes = [1, 128], strides = [1, 1]} : vector<27x128xf32> to vector<1x128xf32>
    %38 = vector.shape_cast %37 : vector<1x128xf32> to vector<1x1x1x128xf32>
    %39 = vector.broadcast %38 : vector<1x1x1x128xf32> to vector<2x4x4x128xf32>
    %40 = arith.mulf %36, %39 : vector<2x4x4x128xf32>
    %41 = arith.addf %35, %40 : vector<2x4x4x128xf32>
    %42 = vector.extract_strided_slice %2 {offsets = [0, 2, 0, 0], sizes = [2, 4, 4, 128], strides = [1, 1, 1, 1]} : vector<4x6x6x128xf32> to vector<2x4x4x128xf32>
    %43 = vector.extract_strided_slice %4 {offsets = [6, 0], sizes = [1, 128], strides = [1, 1]} : vector<27x128xf32> to vector<1x128xf32>
    %44 = vector.shape_cast %43 : vector<1x128xf32> to vector<1x1x1x128xf32>
    %45 = vector.broadcast %44 : vector<1x1x1x128xf32> to vector<2x4x4x128xf32>
    %46 = arith.mulf %42, %45 : vector<2x4x4x128xf32>
    %47 = arith.addf %41, %46 : vector<2x4x4x128xf32>
    %48 = vector.extract_strided_slice %2 {offsets = [0, 2, 1, 0], sizes = [2, 4, 4, 128], strides = [1, 1, 1, 1]} : vector<4x6x6x128xf32> to vector<2x4x4x128xf32>
    %49 = vector.extract_strided_slice %4 {offsets = [7, 0], sizes = [1, 128], strides = [1, 1]} : vector<27x128xf32> to vector<1x128xf32>
    %50 = vector.shape_cast %49 : vector<1x128xf32> to vector<1x1x1x128xf32>
    %51 = vector.broadcast %50 : vector<1x1x1x128xf32> to vector<2x4x4x128xf32>
    %52 = arith.mulf %48, %51 : vector<2x4x4x128xf32>
    %53 = arith.addf %47, %52 : vector<2x4x4x128xf32>
    %54 = vector.extract_strided_slice %2 {offsets = [0, 2, 2, 0], sizes = [2, 4, 4, 128], strides = [1, 1, 1, 1]} : vector<4x6x6x128xf32> to vector<2x4x4x128xf32>
    %55 = vector.extract_strided_slice %4 {offsets = [8, 0], sizes = [1, 128], strides = [1, 1]} : vector<27x128xf32> to vector<1x128xf32>
    %56 = vector.shape_cast %55 : vector<1x128xf32> to vector<1x1x1x128xf32>
    %57 = vector.broadcast %56 : vector<1x1x1x128xf32> to vector<2x4x4x128xf32>
    %58 = arith.mulf %54, %57 : vector<2x4x4x128xf32>
    %59 = arith.addf %53, %58 : vector<2x4x4x128xf32>
    %60 = vector.extract_strided_slice %2 {offsets = [1, 0, 0, 0], sizes = [2, 4, 4, 128], strides = [1, 1, 1, 1]} : vector<4x6x6x128xf32> to vector<2x4x4x128xf32>
    %61 = vector.extract_strided_slice %4 {offsets = [9, 0], sizes = [1, 128], strides = [1, 1]} : vector<27x128xf32> to vector<1x128xf32>
    %62 = vector.shape_cast %61 : vector<1x128xf32> to vector<1x1x1x128xf32>
    %63 = vector.broadcast %62 : vector<1x1x1x128xf32> to vector<2x4x4x128xf32>
    %64 = arith.mulf %60, %63 : vector<2x4x4x128xf32>
    %65 = arith.addf %59, %64 : vector<2x4x4x128xf32>
    %66 = vector.extract_strided_slice %2 {offsets = [1, 0, 1, 0], sizes = [2, 4, 4, 128], strides = [1, 1, 1, 1]} : vector<4x6x6x128xf32> to vector<2x4x4x128xf32>
    %67 = vector.extract_strided_slice %4 {offsets = [10, 0], sizes = [1, 128], strides = [1, 1]} : vector<27x128xf32> to vector<1x128xf32>
    %68 = vector.shape_cast %67 : vector<1x128xf32> to vector<1x1x1x128xf32>
    %69 = vector.broadcast %68 : vector<1x1x1x128xf32> to vector<2x4x4x128xf32>
    %70 = arith.mulf %66, %69 : vector<2x4x4x128xf32>
    %71 = arith.addf %65, %70 : vector<2x4x4x128xf32>
    %72 = vector.extract_strided_slice %2 {offsets = [1, 0, 2, 0], sizes = [2, 4, 4, 128], strides = [1, 1, 1, 1]} : vector<4x6x6x128xf32> to vector<2x4x4x128xf32>
    %73 = vector.extract_strided_slice %4 {offsets = [11, 0], sizes = [1, 128], strides = [1, 1]} : vector<27x128xf32> to vector<1x128xf32>
    %74 = vector.shape_cast %73 : vector<1x128xf32> to vector<1x1x1x128xf32>
    %75 = vector.broadcast %74 : vector<1x1x1x128xf32> to vector<2x4x4x128xf32>
    %76 = arith.mulf %72, %75 : vector<2x4x4x128xf32>
    %77 = arith.addf %71, %76 : vector<2x4x4x128xf32>
    %78 = vector.extract_strided_slice %2 {offsets = [1, 1, 0, 0], sizes = [2, 4, 4, 128], strides = [1, 1, 1, 1]} : vector<4x6x6x128xf32> to vector<2x4x4x128xf32>
    %79 = vector.extract_strided_slice %4 {offsets = [12, 0], sizes = [1, 128], strides = [1, 1]} : vector<27x128xf32> to vector<1x128xf32>
    %80 = vector.shape_cast %79 : vector<1x128xf32> to vector<1x1x1x128xf32>
    %81 = vector.broadcast %80 : vector<1x1x1x128xf32> to vector<2x4x4x128xf32>
    %82 = arith.mulf %78, %81 : vector<2x4x4x128xf32>
    %83 = arith.addf %77, %82 : vector<2x4x4x128xf32>
    %84 = vector.extract_strided_slice %2 {offsets = [1, 1, 1, 0], sizes = [2, 4, 4, 128], strides = [1, 1, 1, 1]} : vector<4x6x6x128xf32> to vector<2x4x4x128xf32>
    %85 = vector.extract_strided_slice %4 {offsets = [13, 0], sizes = [1, 128], strides = [1, 1]} : vector<27x128xf32> to vector<1x128xf32>
    %86 = vector.shape_cast %85 : vector<1x128xf32> to vector<1x1x1x128xf32>
    %87 = vector.broadcast %86 : vector<1x1x1x128xf32> to vector<2x4x4x128xf32>
    %88 = arith.mulf %84, %87 : vector<2x4x4x128xf32>
    %89 = arith.addf %83, %88 : vector<2x4x4x128xf32>
    %90 = vector.extract_strided_slice %2 {offsets = [1, 1, 2, 0], sizes = [2, 4, 4, 128], strides = [1, 1, 1, 1]} : vector<4x6x6x128xf32> to vector<2x4x4x128xf32>
    %91 = vector.extract_strided_slice %4 {offsets = [14, 0], sizes = [1, 128], strides = [1, 1]} : vector<27x128xf32> to vector<1x128xf32>
    %92 = vector.shape_cast %91 : vector<1x128xf32> to vector<1x1x1x128xf32>
    %93 = vector.broadcast %92 : vector<1x1x1x128xf32> to vector<2x4x4x128xf32>
    %94 = arith.mulf %90, %93 : vector<2x4x4x128xf32>
    %95 = arith.addf %89, %94 : vector<2x4x4x128xf32>
    %96 = vector.extract_strided_slice %2 {offsets = [1, 2, 0, 0], sizes = [2, 4, 4, 128], strides = [1, 1, 1, 1]} : vector<4x6x6x128xf32> to vector<2x4x4x128xf32>
    %97 = vector.extract_strided_slice %4 {offsets = [15, 0], sizes = [1, 128], strides = [1, 1]} : vector<27x128xf32> to vector<1x128xf32>
    %98 = vector.shape_cast %97 : vector<1x128xf32> to vector<1x1x1x128xf32>
    %99 = vector.broadcast %98 : vector<1x1x1x128xf32> to vector<2x4x4x128xf32>
    %100 = arith.mulf %96, %99 : vector<2x4x4x128xf32>
    %101 = arith.addf %95, %100 : vector<2x4x4x128xf32>
    %102 = vector.extract_strided_slice %2 {offsets = [1, 2, 1, 0], sizes = [2, 4, 4, 128], strides = [1, 1, 1, 1]} : vector<4x6x6x128xf32> to vector<2x4x4x128xf32>
    %103 = vector.extract_strided_slice %4 {offsets = [16, 0], sizes = [1, 128], strides = [1, 1]} : vector<27x128xf32> to vector<1x128xf32>
    %104 = vector.shape_cast %103 : vector<1x128xf32> to vector<1x1x1x128xf32>
    %105 = vector.broadcast %104 : vector<1x1x1x128xf32> to vector<2x4x4x128xf32>
    %106 = arith.mulf %102, %105 : vector<2x4x4x128xf32>
    %107 = arith.addf %101, %106 : vector<2x4x4x128xf32>
    %108 = vector.extract_strided_slice %2 {offsets = [1, 2, 2, 0], sizes = [2, 4, 4, 128], strides = [1, 1, 1, 1]} : vector<4x6x6x128xf32> to vector<2x4x4x128xf32>
    %109 = vector.extract_strided_slice %4 {offsets = [17, 0], sizes = [1, 128], strides = [1, 1]} : vector<27x128xf32> to vector<1x128xf32>
    %110 = vector.shape_cast %109 : vector<1x128xf32> to vector<1x1x1x128xf32>
    %111 = vector.broadcast %110 : vector<1x1x1x128xf32> to vector<2x4x4x128xf32>
    %112 = arith.mulf %108, %111 : vector<2x4x4x128xf32>
    %113 = arith.addf %107, %112 : vector<2x4x4x128xf32>
    %114 = vector.extract_strided_slice %2 {offsets = [2, 0, 0, 0], sizes = [2, 4, 4, 128], strides = [1, 1, 1, 1]} : vector<4x6x6x128xf32> to vector<2x4x4x128xf32>
    %115 = vector.extract_strided_slice %4 {offsets = [18, 0], sizes = [1, 128], strides = [1, 1]} : vector<27x128xf32> to vector<1x128xf32>
    %116 = vector.shape_cast %115 : vector<1x128xf32> to vector<1x1x1x128xf32>
    %117 = vector.broadcast %116 : vector<1x1x1x128xf32> to vector<2x4x4x128xf32>
    %118 = arith.mulf %114, %117 : vector<2x4x4x128xf32>
    %119 = arith.addf %113, %118 : vector<2x4x4x128xf32>
    %120 = vector.extract_strided_slice %2 {offsets = [2, 0, 1, 0], sizes = [2, 4, 4, 128], strides = [1, 1, 1, 1]} : vector<4x6x6x128xf32> to vector<2x4x4x128xf32>
    %121 = vector.extract_strided_slice %4 {offsets = [19, 0], sizes = [1, 128], strides = [1, 1]} : vector<27x128xf32> to vector<1x128xf32>
    %122 = vector.shape_cast %121 : vector<1x128xf32> to vector<1x1x1x128xf32>
    %123 = vector.broadcast %122 : vector<1x1x1x128xf32> to vector<2x4x4x128xf32>
    %124 = arith.mulf %120, %123 : vector<2x4x4x128xf32>
    %125 = arith.addf %119, %124 : vector<2x4x4x128xf32>
    %126 = vector.extract_strided_slice %2 {offsets = [2, 0, 2, 0], sizes = [2, 4, 4, 128], strides = [1, 1, 1, 1]} : vector<4x6x6x128xf32> to vector<2x4x4x128xf32>
    %127 = vector.extract_strided_slice %4 {offsets = [20, 0], sizes = [1, 128], strides = [1, 1]} : vector<27x128xf32> to vector<1x128xf32>
    %128 = vector.shape_cast %127 : vector<1x128xf32> to vector<1x1x1x128xf32>
    %129 = vector.broadcast %128 : vector<1x1x1x128xf32> to vector<2x4x4x128xf32>
    %130 = arith.mulf %126, %129 : vector<2x4x4x128xf32>
    %131 = arith.addf %125, %130 : vector<2x4x4x128xf32>
    %132 = vector.extract_strided_slice %2 {offsets = [2, 1, 0, 0], sizes = [2, 4, 4, 128], strides = [1, 1, 1, 1]} : vector<4x6x6x128xf32> to vector<2x4x4x128xf32>
    %133 = vector.extract_strided_slice %4 {offsets = [21, 0], sizes = [1, 128], strides = [1, 1]} : vector<27x128xf32> to vector<1x128xf32>
    %134 = vector.shape_cast %133 : vector<1x128xf32> to vector<1x1x1x128xf32>
    %135 = vector.broadcast %134 : vector<1x1x1x128xf32> to vector<2x4x4x128xf32>
    %136 = arith.mulf %132, %135 : vector<2x4x4x128xf32>
    %137 = arith.addf %131, %136 : vector<2x4x4x128xf32>
    %138 = vector.extract_strided_slice %2 {offsets = [2, 1, 1, 0], sizes = [2, 4, 4, 128], strides = [1, 1, 1, 1]} : vector<4x6x6x128xf32> to vector<2x4x4x128xf32>
    %139 = vector.extract_strided_slice %4 {offsets = [22, 0], sizes = [1, 128], strides = [1, 1]} : vector<27x128xf32> to vector<1x128xf32>
    %140 = vector.shape_cast %139 : vector<1x128xf32> to vector<1x1x1x128xf32>
    %141 = vector.broadcast %140 : vector<1x1x1x128xf32> to vector<2x4x4x128xf32>
    %142 = arith.mulf %138, %141 : vector<2x4x4x128xf32>
    %143 = arith.addf %137, %142 : vector<2x4x4x128xf32>
    %144 = vector.extract_strided_slice %2 {offsets = [2, 1, 2, 0], sizes = [2, 4, 4, 128], strides = [1, 1, 1, 1]} : vector<4x6x6x128xf32> to vector<2x4x4x128xf32>
    %145 = vector.extract_strided_slice %4 {offsets = [23, 0], sizes = [1, 128], strides = [1, 1]} : vector<27x128xf32> to vector<1x128xf32>
    %146 = vector.shape_cast %145 : vector<1x128xf32> to vector<1x1x1x128xf32>
    %147 = vector.broadcast %146 : vector<1x1x1x128xf32> to vector<2x4x4x128xf32>
    %148 = arith.mulf %144, %147 : vector<2x4x4x128xf32>
    %149 = arith.addf %143, %148 : vector<2x4x4x128xf32>
    %150 = vector.extract_strided_slice %2 {offsets = [2, 2, 0, 0], sizes = [2, 4, 4, 128], strides = [1, 1, 1, 1]} : vector<4x6x6x128xf32> to vector<2x4x4x128xf32>
    %151 = vector.extract_strided_slice %4 {offsets = [24, 0], sizes = [1, 128], strides = [1, 1]} : vector<27x128xf32> to vector<1x128xf32>
    %152 = vector.shape_cast %151 : vector<1x128xf32> to vector<1x1x1x128xf32>
    %153 = vector.broadcast %152 : vector<1x1x1x128xf32> to vector<2x4x4x128xf32>
    %154 = arith.mulf %150, %153 : vector<2x4x4x128xf32>
    %155 = arith.addf %149, %154 : vector<2x4x4x128xf32>
    %156 = vector.extract_strided_slice %2 {offsets = [2, 2, 1, 0], sizes = [2, 4, 4, 128], strides = [1, 1, 1, 1]} : vector<4x6x6x128xf32> to vector<2x4x4x128xf32>
    %157 = vector.extract_strided_slice %4 {offsets = [25, 0], sizes = [1, 128], strides = [1, 1]} : vector<27x128xf32> to vector<1x128xf32>
    %158 = vector.shape_cast %157 : vector<1x128xf32> to vector<1x1x1x128xf32>
    %159 = vector.broadcast %158 : vector<1x1x1x128xf32> to vector<2x4x4x128xf32>
    %160 = arith.mulf %156, %159 : vector<2x4x4x128xf32>
    %161 = arith.addf %155, %160 : vector<2x4x4x128xf32>
    %162 = vector.extract_strided_slice %2 {offsets = [2, 2, 2, 0], sizes = [2, 4, 4, 128], strides = [1, 1, 1, 1]} : vector<4x6x6x128xf32> to vector<2x4x4x128xf32>
    %163 = vector.extract_strided_slice %4 {offsets = [26, 0], sizes = [1, 128], strides = [1, 1]} : vector<27x128xf32> to vector<1x128xf32>
    %164 = vector.shape_cast %163 : vector<1x128xf32> to vector<1x1x1x128xf32>
    %165 = vector.broadcast %164 : vector<1x1x1x128xf32> to vector<2x4x4x128xf32>
    %166 = arith.mulf %162, %165 : vector<2x4x4x128xf32>
    %167 = arith.addf %161, %166 : vector<2x4x4x128xf32>
    %c0_6 = arith.constant 0 : index
    %c0_7 = arith.constant 0 : index
    %168 = vector.load %arg3[%c0_6, %c0_7] : memref<1x128xf32, #tpu.memory_space<vmem>>, vector<1x128xf32>
    %169 = vector.shape_cast %168 : vector<1x128xf32> to vector<1x1x1x128xf32>
    %170 = vector.broadcast %169 : vector<1x1x1x128xf32> to vector<2x4x4x128xf32>
    %171 = arith.addf %167, %170 : vector<2x4x4x128xf32>
    %cst_8 = arith.constant 0.000000e+00 : f32
    %cst_9 = arith.constant 6.000000e+00 : f32
    %172 = vector.broadcast %cst_8 : f32 to vector<2x4x4x128xf32>
    %173 = arith.maximumf %172, %171 : vector<2x4x4x128xf32>
    %174 = vector.broadcast %cst_9 : f32 to vector<2x4x4x128xf32>
    %175 = arith.minimumf %174, %173 : vector<2x4x4x128xf32>
    %176 = arith.truncf %175 : vector<2x4x4x128xf32> to vector<2x4x4x128xbf16>
    %c0_10 = arith.constant 0 : index
    %c0_11 = arith.constant 0 : index
    %c0_12 = arith.constant 0 : index
    %c0_13 = arith.constant 0 : index
    %c0_14 = arith.constant 0 : index
    %177 = vector.load %arg4[%c0_10, %c0_11, %c0_12, %c0_13, %c0_14] : memref<1x2x4x4x128xbf16, #tpu.memory_space<vmem>>, vector<1x2x4x4x128xbf16>
    %178 = vector.shape_cast %177 : vector<1x2x4x4x128xbf16> to vector<2x4x4x128xbf16>
    %179 = vector.shape_cast %176 : vector<2x4x4x128xbf16> to vector<1x2x4x4x128xbf16>
    tpu.vector_store %arg4[%c0_10, %c0_11, %c0_12, %c0_13, %c0_14], %179 {strides = array<i32>} : memref<1x2x4x4x128xbf16, #tpu.memory_space<vmem>>, vector<1x2x4x4x128xbf16>,
    return
  }
  func.func @transform_0(%arg0: i32) -> (i32, i32, i32, i32, i32) {
    %c0_i32 = arith.constant 0 : i32
    %c0_i32_0 = arith.constant 0 : i32
    %c0_i32_1 = arith.constant 0 : i32
    %c0_i32_2 = arith.constant 0 : i32
    %c0_i32_3 = arith.constant 0 : i32
    return %arg0, %c0_i32, %c0_i32_0, %c0_i32_1, %c0_i32_2 : i32, i32, i32, i32, i32
  }
  func.func @transform_1(%arg0: i32) -> (i32, i32) {
    %c0_i32 = arith.constant 0 : i32
    %c0_i32_0 = arith.constant 0 : i32
    %c0_i32_1 = arith.constant 0 : i32
    return %c0_i32, %c0_i32_0 : i32, i32
  }
  func.func @transform_2(%arg0: i32) -> (i32, i32) {
    %c0_i32 = arith.constant 0 : i32
    %c0_i32_0 = arith.constant 0 : i32
    %c0_i32_1 = arith.constant 0 : i32
    return %c0_i32, %c0_i32_0 : i32, i32
  }
  func.func @transform_3(%arg0: i32) -> (i32, i32, i32, i32, i32) {
    %c0_i32 = arith.constant 0 : i32
    %c0_i32_0 = arith.constant 0 : i32
    %c0_i32_1 = arith.constant 0 : i32
    %c0_i32_2 = arith.constant 0 : i32
    %c0_i32_3 = arith.constant 0 : i32
    return %arg0, %c0_i32, %c0_i32_0, %c0_i32_1, %c0_i32_2 : i32, i32, i32, i32, i32
  }
}

module attributes {stable_mosaic.version = 11 : i64} {
  func.func @_mm_kernel(%arg0: i32, %arg1: i32, %arg2: memref<32x128xbf16, #tpu.memory_space<vmem>>, %arg3: memref<128x128xbf16, #tpu.memory_space<vmem>>, %arg4: memref<1x128xf32, #tpu.memory_space<vmem>>, %arg5: memref<32x128xbf16, #tpu.memory_space<vmem>>, %arg6: memref<32x128xbf16, #tpu.memory_space<vmem>>) attributes {dimension_semantics = [#tpu.dimension_semantics<parallel>, #tpu.dimension_semantics<parallel>], iteration_bounds = array<i64: 1, 1>, scalar_prefetch = 0 : i64, scratch_operands = 0 : i64, tpu.core_type = #tpu.core_type<tc>, window_params = [{transform_indices = @transform_0, window_bounds = array<i64: 32, 128>}, {transform_indices = @transform_1, window_bounds = array<i64: 128, 128>}, {transform_indices = @transform_2, window_bounds = array<i64: 1, 128>}, {transform_indices = @transform_3, window_bounds = array<i64: 32, 128>}, {transform_indices = @transform_4, window_bounds = array<i64: 32, 128>}]} {
    %c0 = arith.constant 0 : index
    %c0_0 = arith.constant 0 : index
    %0 = vector.load %arg2[%c0, %c0_0] : memref<32x128xbf16, #tpu.memory_space<vmem>>, vector<32x128xbf16>
    %c0_1 = arith.constant 0 : index
    %c0_2 = arith.constant 0 : index
    %1 = vector.load %arg3[%c0_1, %c0_2] : memref<128x128xbf16, #tpu.memory_space<vmem>>, vector<128x128xbf16>
    %cst = arith.constant dense<0.000000e+00> : vector<32x128xf32>
    %2 = tpu.matmul %0, %1, %cst {dimension_numbers = #tpu.dot_dimension_numbers<[1], [0], [0], [1], [0, 0, 1, 1], [], []>} : vector<32x128xbf16>, vector<128x128xbf16>, vector<32x128xf32> -> vector<32x128xf32>
    %c0_3 = arith.constant 0 : index
    %c0_4 = arith.constant 0 : index
    %3 = vector.load %arg4[%c0_3, %c0_4] : memref<1x128xf32, #tpu.memory_space<vmem>>, vector<1x128xf32>
    %4 = vector.broadcast %3 : vector<1x128xf32> to vector<32x128xf32>
    %5 = arith.addf %2, %4 : vector<32x128xf32>
    %c0_5 = arith.constant 0 : index
    %c0_6 = arith.constant 0 : index
    %6 = vector.load %arg5[%c0_5, %c0_6] : memref<32x128xbf16, #tpu.memory_space<vmem>>, vector<32x128xbf16>
    %7 = arith.extf %6 : vector<32x128xbf16> to vector<32x128xf32>
    %8 = arith.addf %5, %7 : vector<32x128xf32>
    %9 = arith.truncf %8 : vector<32x128xf32> to vector<32x128xbf16>
    %c0_7 = arith.constant 0 : index
    %c0_8 = arith.constant 0 : index
    %10 = vector.load %arg6[%c0_7, %c0_8] : memref<32x128xbf16, #tpu.memory_space<vmem>>, vector<32x128xbf16>
    tpu.vector_store %arg6[%c0_7, %c0_8], %9 {strides = array<i32>} : memref<32x128xbf16, #tpu.memory_space<vmem>>, vector<32x128xbf16>,
    return
  }
  func.func @transform_0(%arg0: i32, %arg1: i32) -> (i32, i32) {
    %c0_i32 = arith.constant 0 : i32
    %c0_i32_0 = arith.constant 0 : i32
    return %arg0, %c0_i32 : i32, i32
  }
  func.func @transform_1(%arg0: i32, %arg1: i32) -> (i32, i32) {
    %c0_i32 = arith.constant 0 : i32
    %c0_i32_0 = arith.constant 0 : i32
    return %c0_i32, %arg1 : i32, i32
  }
  func.func @transform_2(%arg0: i32, %arg1: i32) -> (i32, i32) {
    %c0_i32 = arith.constant 0 : i32
    %c0_i32_0 = arith.constant 0 : i32
    return %c0_i32, %arg1 : i32, i32
  }
  func.func @transform_3(%arg0: i32, %arg1: i32) -> (i32, i32) {
    %c0_i32 = arith.constant 0 : i32
    return %arg0, %arg1 : i32, i32
  }
  func.func @transform_4(%arg0: i32, %arg1: i32) -> (i32, i32) {
    %c0_i32 = arith.constant 0 : i32
    return %arg0, %arg1 : i32, i32
  }
}

module attributes {stable_mosaic.version = 11 : i64} {
  func.func @_mm_kernel(%arg0: i32, %arg1: i32, %arg2: memref<8x128xbf16, #tpu.memory_space<vmem>>, %arg3: memref<128x128xbf16, #tpu.memory_space<vmem>>, %arg4: memref<1x128xf32, #tpu.memory_space<vmem>>, %arg5: memref<8x128xbf16, #tpu.memory_space<vmem>>) attributes {dimension_semantics = [#tpu.dimension_semantics<parallel>, #tpu.dimension_semantics<parallel>], iteration_bounds = array<i64: 1, 1>, scalar_prefetch = 0 : i64, scratch_operands = 0 : i64, tpu.core_type = #tpu.core_type<tc>, window_params = [{transform_indices = @transform_0, window_bounds = array<i64: 8, 128>}, {transform_indices = @transform_1, window_bounds = array<i64: 128, 128>}, {transform_indices = @transform_2, window_bounds = array<i64: 1, 128>}, {transform_indices = @transform_3, window_bounds = array<i64: 8, 128>}]} {
    %c0 = arith.constant 0 : index
    %c0_0 = arith.constant 0 : index
    %0 = vector.load %arg2[%c0, %c0_0] : memref<8x128xbf16, #tpu.memory_space<vmem>>, vector<8x128xbf16>
    %c0_1 = arith.constant 0 : index
    %c0_2 = arith.constant 0 : index
    %1 = vector.load %arg3[%c0_1, %c0_2] : memref<128x128xbf16, #tpu.memory_space<vmem>>, vector<128x128xbf16>
    %cst = arith.constant dense<0.000000e+00> : vector<8x128xf32>
    %2 = tpu.matmul %0, %1, %cst {dimension_numbers = #tpu.dot_dimension_numbers<[1], [0], [0], [1], [0, 0, 1, 1], [], []>} : vector<8x128xbf16>, vector<128x128xbf16>, vector<8x128xf32> -> vector<8x128xf32>
    %c0_3 = arith.constant 0 : index
    %c0_4 = arith.constant 0 : index
    %3 = vector.load %arg4[%c0_3, %c0_4] : memref<1x128xf32, #tpu.memory_space<vmem>>, vector<1x128xf32>
    %4 = vector.broadcast %3 : vector<1x128xf32> to vector<8x128xf32>
    %5 = arith.addf %2, %4 : vector<8x128xf32>
    %cst_5 = arith.constant 0.000000e+00 : f32
    %cst_6 = arith.constant 6.000000e+00 : f32
    %6 = vector.broadcast %cst_5 : f32 to vector<8x128xf32>
    %7 = arith.maximumf %6, %5 : vector<8x128xf32>
    %8 = vector.broadcast %cst_6 : f32 to vector<8x128xf32>
    %9 = arith.minimumf %8, %7 : vector<8x128xf32>
    %10 = arith.truncf %9 : vector<8x128xf32> to vector<8x128xbf16>
    %c0_7 = arith.constant 0 : index
    %c0_8 = arith.constant 0 : index
    %11 = vector.load %arg5[%c0_7, %c0_8] : memref<8x128xbf16, #tpu.memory_space<vmem>>, vector<8x128xbf16>
    tpu.vector_store %arg5[%c0_7, %c0_8], %10 {strides = array<i32>} : memref<8x128xbf16, #tpu.memory_space<vmem>>, vector<8x128xbf16>,
    return
  }
  func.func @transform_0(%arg0: i32, %arg1: i32) -> (i32, i32) {
    %c0_i32 = arith.constant 0 : i32
    %c0_i32_0 = arith.constant 0 : i32
    return %arg0, %c0_i32 : i32, i32
  }
  func.func @transform_1(%arg0: i32, %arg1: i32) -> (i32, i32) {
    %c0_i32 = arith.constant 0 : i32
    %c0_i32_0 = arith.constant 0 : i32
    return %c0_i32, %arg1 : i32, i32
  }
  func.func @transform_2(%arg0: i32, %arg1: i32) -> (i32, i32) {
    %c0_i32 = arith.constant 0 : i32
    %c0_i32_0 = arith.constant 0 : i32
    return %c0_i32, %arg1 : i32, i32
  }
  func.func @transform_3(%arg0: i32, %arg1: i32) -> (i32, i32) {
    %c0_i32 = arith.constant 0 : i32
    return %arg0, %arg1 : i32, i32
  }
}

module attributes {stable_mosaic.version = 11 : i64} {
  func.func @_mm_kernel(%arg0: i32, %arg1: i32, %arg2: memref<8x128xbf16, #tpu.memory_space<vmem>>, %arg3: memref<128x128xbf16, #tpu.memory_space<vmem>>, %arg4: memref<1x128xf32, #tpu.memory_space<vmem>>, %arg5: memref<8x128xbf16, #tpu.memory_space<vmem>>) attributes {dimension_semantics = [#tpu.dimension_semantics<parallel>, #tpu.dimension_semantics<parallel>], iteration_bounds = array<i64: 1, 1>, scalar_prefetch = 0 : i64, scratch_operands = 0 : i64, tpu.core_type = #tpu.core_type<tc>, window_params = [{transform_indices = @transform_0, window_bounds = array<i64: 8, 128>}, {transform_indices = @transform_1, window_bounds = array<i64: 128, 128>}, {transform_indices = @transform_2, window_bounds = array<i64: 1, 128>}, {transform_indices = @transform_3, window_bounds = array<i64: 8, 128>}]} {
    %c0 = arith.constant 0 : index
    %c0_0 = arith.constant 0 : index
    %0 = vector.load %arg2[%c0, %c0_0] : memref<8x128xbf16, #tpu.memory_space<vmem>>, vector<8x128xbf16>
    %c0_1 = arith.constant 0 : index
    %c0_2 = arith.constant 0 : index
    %1 = vector.load %arg3[%c0_1, %c0_2] : memref<128x128xbf16, #tpu.memory_space<vmem>>, vector<128x128xbf16>
    %cst = arith.constant dense<0.000000e+00> : vector<8x128xf32>
    %2 = tpu.matmul %0, %1, %cst {dimension_numbers = #tpu.dot_dimension_numbers<[1], [0], [0], [1], [0, 0, 1, 1], [], []>} : vector<8x128xbf16>, vector<128x128xbf16>, vector<8x128xf32> -> vector<8x128xf32>
    %c0_3 = arith.constant 0 : index
    %c0_4 = arith.constant 0 : index
    %3 = vector.load %arg4[%c0_3, %c0_4] : memref<1x128xf32, #tpu.memory_space<vmem>>, vector<1x128xf32>
    %4 = vector.broadcast %3 : vector<1x128xf32> to vector<8x128xf32>
    %5 = arith.addf %2, %4 : vector<8x128xf32>
    %6 = arith.truncf %5 : vector<8x128xf32> to vector<8x128xbf16>
    %c0_5 = arith.constant 0 : index
    %c0_6 = arith.constant 0 : index
    %7 = vector.load %arg5[%c0_5, %c0_6] : memref<8x128xbf16, #tpu.memory_space<vmem>>, vector<8x128xbf16>
    tpu.vector_store %arg5[%c0_5, %c0_6], %6 {strides = array<i32>} : memref<8x128xbf16, #tpu.memory_space<vmem>>, vector<8x128xbf16>,
    return
  }
  func.func @transform_0(%arg0: i32, %arg1: i32) -> (i32, i32) {
    %c0_i32 = arith.constant 0 : i32
    %c0_i32_0 = arith.constant 0 : i32
    return %arg0, %c0_i32 : i32, i32
  }
  func.func @transform_1(%arg0: i32, %arg1: i32) -> (i32, i32) {
    %c0_i32 = arith.constant 0 : i32
    %c0_i32_0 = arith.constant 0 : i32
    return %c0_i32, %arg1 : i32, i32
  }
  func.func @transform_2(%arg0: i32, %arg1: i32) -> (i32, i32) {
    %c0_i32 = arith.constant 0 : i32
    %c0_i32_0 = arith.constant 0 : i32
    return %c0_i32, %arg1 : i32, i32
  }
  func.func @transform_3(%arg0: i32, %arg1: i32) -> (i32, i32) {
    %c0_i32 = arith.constant 0 : i32
    return %arg0, %arg1 : i32, i32
  }
}

module attributes {stable_mosaic.version = 11 : i64} {
  func.func @_dw_kernel(%arg0: i32, %arg1: memref<1x4x4x4x128xbf16, #tpu.memory_space<vmem>>, %arg2: memref<27x128xbf16, #tpu.memory_space<vmem>>, %arg3: memref<1x128xf32, #tpu.memory_space<vmem>>, %arg4: memref<1x2x2x2x128xbf16, #tpu.memory_space<vmem>>) attributes {dimension_semantics = [#tpu.dimension_semantics<parallel>], iteration_bounds = array<i64: 1>, scalar_prefetch = 0 : i64, scratch_operands = 0 : i64, tpu.core_type = #tpu.core_type<tc>, window_params = [{transform_indices = @transform_0, window_bounds = array<i64: 1, 4, 4, 4, 128>}, {pipeline_mode = #tpu.pipeline_mode<synchronous>, transform_indices = @transform_1, window_bounds = array<i64: 27, 128>}, {pipeline_mode = #tpu.pipeline_mode<synchronous>, transform_indices = @transform_2, window_bounds = array<i64: 1, 128>}, {transform_indices = @transform_3, window_bounds = array<i64: 1, 2, 2, 2, 128>}]} {
    %c0 = arith.constant 0 : index
    %c0_0 = arith.constant 0 : index
    %c0_1 = arith.constant 0 : index
    %c0_2 = arith.constant 0 : index
    %c0_3 = arith.constant 0 : index
    %0 = vector.load %arg1[%c0, %c0_0, %c0_1, %c0_2, %c0_3] : memref<1x4x4x4x128xbf16, #tpu.memory_space<vmem>>, vector<1x4x4x4x128xbf16>
    %1 = vector.shape_cast %0 : vector<1x4x4x4x128xbf16> to vector<4x4x4x128xbf16>
    %2 = arith.extf %1 : vector<4x4x4x128xbf16> to vector<4x4x4x128xf32>
    %c0_4 = arith.constant 0 : index
    %c0_5 = arith.constant 0 : index
    %3 = vector.load %arg2[%c0_4, %c0_5] : memref<27x128xbf16, #tpu.memory_space<vmem>>, vector<27x128xbf16>
    %4 = arith.extf %3 : vector<27x128xbf16> to vector<27x128xf32>
    %cst = arith.constant 0.000000e+00 : f32
    %5 = vector.broadcast %cst : f32 to vector<2x2x2x128xf32>
    %6 = vector.extract_strided_slice %2 {offsets = [0, 0, 0, 0], sizes = [2, 2, 2, 128], strides = [1, 1, 1, 1]} : vector<4x4x4x128xf32> to vector<2x2x2x128xf32>
    %7 = vector.extract_strided_slice %4 {offsets = [0, 0], sizes = [1, 128], strides = [1, 1]} : vector<27x128xf32> to vector<1x128xf32>
    %8 = vector.shape_cast %7 : vector<1x128xf32> to vector<1x1x1x128xf32>
    %9 = vector.broadcast %8 : vector<1x1x1x128xf32> to vector<2x2x2x128xf32>
    %10 = arith.mulf %6, %9 : vector<2x2x2x128xf32>
    %11 = arith.addf %5, %10 : vector<2x2x2x128xf32>
    %12 = vector.extract_strided_slice %2 {offsets = [0, 0, 1, 0], sizes = [2, 2, 2, 128], strides = [1, 1, 1, 1]} : vector<4x4x4x128xf32> to vector<2x2x2x128xf32>
    %13 = vector.extract_strided_slice %4 {offsets = [1, 0], sizes = [1, 128], strides = [1, 1]} : vector<27x128xf32> to vector<1x128xf32>
    %14 = vector.shape_cast %13 : vector<1x128xf32> to vector<1x1x1x128xf32>
    %15 = vector.broadcast %14 : vector<1x1x1x128xf32> to vector<2x2x2x128xf32>
    %16 = arith.mulf %12, %15 : vector<2x2x2x128xf32>
    %17 = arith.addf %11, %16 : vector<2x2x2x128xf32>
    %18 = vector.extract_strided_slice %2 {offsets = [0, 0, 2, 0], sizes = [2, 2, 2, 128], strides = [1, 1, 1, 1]} : vector<4x4x4x128xf32> to vector<2x2x2x128xf32>
    %19 = vector.extract_strided_slice %4 {offsets = [2, 0], sizes = [1, 128], strides = [1, 1]} : vector<27x128xf32> to vector<1x128xf32>
    %20 = vector.shape_cast %19 : vector<1x128xf32> to vector<1x1x1x128xf32>
    %21 = vector.broadcast %20 : vector<1x1x1x128xf32> to vector<2x2x2x128xf32>
    %22 = arith.mulf %18, %21 : vector<2x2x2x128xf32>
    %23 = arith.addf %17, %22 : vector<2x2x2x128xf32>
    %24 = vector.extract_strided_slice %2 {offsets = [0, 1, 0, 0], sizes = [2, 2, 2, 128], strides = [1, 1, 1, 1]} : vector<4x4x4x128xf32> to vector<2x2x2x128xf32>
    %25 = vector.extract_strided_slice %4 {offsets = [3, 0], sizes = [1, 128], strides = [1, 1]} : vector<27x128xf32> to vector<1x128xf32>
    %26 = vector.shape_cast %25 : vector<1x128xf32> to vector<1x1x1x128xf32>
    %27 = vector.broadcast %26 : vector<1x1x1x128xf32> to vector<2x2x2x128xf32>
    %28 = arith.mulf %24, %27 : vector<2x2x2x128xf32>
    %29 = arith.addf %23, %28 : vector<2x2x2x128xf32>
    %30 = vector.extract_strided_slice %2 {offsets = [0, 1, 1, 0], sizes = [2, 2, 2, 128], strides = [1, 1, 1, 1]} : vector<4x4x4x128xf32> to vector<2x2x2x128xf32>
    %31 = vector.extract_strided_slice %4 {offsets = [4, 0], sizes = [1, 128], strides = [1, 1]} : vector<27x128xf32> to vector<1x128xf32>
    %32 = vector.shape_cast %31 : vector<1x128xf32> to vector<1x1x1x128xf32>
    %33 = vector.broadcast %32 : vector<1x1x1x128xf32> to vector<2x2x2x128xf32>
    %34 = arith.mulf %30, %33 : vector<2x2x2x128xf32>
    %35 = arith.addf %29, %34 : vector<2x2x2x128xf32>
    %36 = vector.extract_strided_slice %2 {offsets = [0, 1, 2, 0], sizes = [2, 2, 2, 128], strides = [1, 1, 1, 1]} : vector<4x4x4x128xf32> to vector<2x2x2x128xf32>
    %37 = vector.extract_strided_slice %4 {offsets = [5, 0], sizes = [1, 128], strides = [1, 1]} : vector<27x128xf32> to vector<1x128xf32>
    %38 = vector.shape_cast %37 : vector<1x128xf32> to vector<1x1x1x128xf32>
    %39 = vector.broadcast %38 : vector<1x1x1x128xf32> to vector<2x2x2x128xf32>
    %40 = arith.mulf %36, %39 : vector<2x2x2x128xf32>
    %41 = arith.addf %35, %40 : vector<2x2x2x128xf32>
    %42 = vector.extract_strided_slice %2 {offsets = [0, 2, 0, 0], sizes = [2, 2, 2, 128], strides = [1, 1, 1, 1]} : vector<4x4x4x128xf32> to vector<2x2x2x128xf32>
    %43 = vector.extract_strided_slice %4 {offsets = [6, 0], sizes = [1, 128], strides = [1, 1]} : vector<27x128xf32> to vector<1x128xf32>
    %44 = vector.shape_cast %43 : vector<1x128xf32> to vector<1x1x1x128xf32>
    %45 = vector.broadcast %44 : vector<1x1x1x128xf32> to vector<2x2x2x128xf32>
    %46 = arith.mulf %42, %45 : vector<2x2x2x128xf32>
    %47 = arith.addf %41, %46 : vector<2x2x2x128xf32>
    %48 = vector.extract_strided_slice %2 {offsets = [0, 2, 1, 0], sizes = [2, 2, 2, 128], strides = [1, 1, 1, 1]} : vector<4x4x4x128xf32> to vector<2x2x2x128xf32>
    %49 = vector.extract_strided_slice %4 {offsets = [7, 0], sizes = [1, 128], strides = [1, 1]} : vector<27x128xf32> to vector<1x128xf32>
    %50 = vector.shape_cast %49 : vector<1x128xf32> to vector<1x1x1x128xf32>
    %51 = vector.broadcast %50 : vector<1x1x1x128xf32> to vector<2x2x2x128xf32>
    %52 = arith.mulf %48, %51 : vector<2x2x2x128xf32>
    %53 = arith.addf %47, %52 : vector<2x2x2x128xf32>
    %54 = vector.extract_strided_slice %2 {offsets = [0, 2, 2, 0], sizes = [2, 2, 2, 128], strides = [1, 1, 1, 1]} : vector<4x4x4x128xf32> to vector<2x2x2x128xf32>
    %55 = vector.extract_strided_slice %4 {offsets = [8, 0], sizes = [1, 128], strides = [1, 1]} : vector<27x128xf32> to vector<1x128xf32>
    %56 = vector.shape_cast %55 : vector<1x128xf32> to vector<1x1x1x128xf32>
    %57 = vector.broadcast %56 : vector<1x1x1x128xf32> to vector<2x2x2x128xf32>
    %58 = arith.mulf %54, %57 : vector<2x2x2x128xf32>
    %59 = arith.addf %53, %58 : vector<2x2x2x128xf32>
    %60 = vector.extract_strided_slice %2 {offsets = [1, 0, 0, 0], sizes = [2, 2, 2, 128], strides = [1, 1, 1, 1]} : vector<4x4x4x128xf32> to vector<2x2x2x128xf32>
    %61 = vector.extract_strided_slice %4 {offsets = [9, 0], sizes = [1, 128], strides = [1, 1]} : vector<27x128xf32> to vector<1x128xf32>
    %62 = vector.shape_cast %61 : vector<1x128xf32> to vector<1x1x1x128xf32>
    %63 = vector.broadcast %62 : vector<1x1x1x128xf32> to vector<2x2x2x128xf32>
    %64 = arith.mulf %60, %63 : vector<2x2x2x128xf32>
    %65 = arith.addf %59, %64 : vector<2x2x2x128xf32>
    %66 = vector.extract_strided_slice %2 {offsets = [1, 0, 1, 0], sizes = [2, 2, 2, 128], strides = [1, 1, 1, 1]} : vector<4x4x4x128xf32> to vector<2x2x2x128xf32>
    %67 = vector.extract_strided_slice %4 {offsets = [10, 0], sizes = [1, 128], strides = [1, 1]} : vector<27x128xf32> to vector<1x128xf32>
    %68 = vector.shape_cast %67 : vector<1x128xf32> to vector<1x1x1x128xf32>
    %69 = vector.broadcast %68 : vector<1x1x1x128xf32> to vector<2x2x2x128xf32>
    %70 = arith.mulf %66, %69 : vector<2x2x2x128xf32>
    %71 = arith.addf %65, %70 : vector<2x2x2x128xf32>
    %72 = vector.extract_strided_slice %2 {offsets = [1, 0, 2, 0], sizes = [2, 2, 2, 128], strides = [1, 1, 1, 1]} : vector<4x4x4x128xf32> to vector<2x2x2x128xf32>
    %73 = vector.extract_strided_slice %4 {offsets = [11, 0], sizes = [1, 128], strides = [1, 1]} : vector<27x128xf32> to vector<1x128xf32>
    %74 = vector.shape_cast %73 : vector<1x128xf32> to vector<1x1x1x128xf32>
    %75 = vector.broadcast %74 : vector<1x1x1x128xf32> to vector<2x2x2x128xf32>
    %76 = arith.mulf %72, %75 : vector<2x2x2x128xf32>
    %77 = arith.addf %71, %76 : vector<2x2x2x128xf32>
    %78 = vector.extract_strided_slice %2 {offsets = [1, 1, 0, 0], sizes = [2, 2, 2, 128], strides = [1, 1, 1, 1]} : vector<4x4x4x128xf32> to vector<2x2x2x128xf32>
    %79 = vector.extract_strided_slice %4 {offsets = [12, 0], sizes = [1, 128], strides = [1, 1]} : vector<27x128xf32> to vector<1x128xf32>
    %80 = vector.shape_cast %79 : vector<1x128xf32> to vector<1x1x1x128xf32>
    %81 = vector.broadcast %80 : vector<1x1x1x128xf32> to vector<2x2x2x128xf32>
    %82 = arith.mulf %78, %81 : vector<2x2x2x128xf32>
    %83 = arith.addf %77, %82 : vector<2x2x2x128xf32>
    %84 = vector.extract_strided_slice %2 {offsets = [1, 1, 1, 0], sizes = [2, 2, 2, 128], strides = [1, 1, 1, 1]} : vector<4x4x4x128xf32> to vector<2x2x2x128xf32>
    %85 = vector.extract_strided_slice %4 {offsets = [13, 0], sizes = [1, 128], strides = [1, 1]} : vector<27x128xf32> to vector<1x128xf32>
    %86 = vector.shape_cast %85 : vector<1x128xf32> to vector<1x1x1x128xf32>
    %87 = vector.broadcast %86 : vector<1x1x1x128xf32> to vector<2x2x2x128xf32>
    %88 = arith.mulf %84, %87 : vector<2x2x2x128xf32>
    %89 = arith.addf %83, %88 : vector<2x2x2x128xf32>
    %90 = vector.extract_strided_slice %2 {offsets = [1, 1, 2, 0], sizes = [2, 2, 2, 128], strides = [1, 1, 1, 1]} : vector<4x4x4x128xf32> to vector<2x2x2x128xf32>
    %91 = vector.extract_strided_slice %4 {offsets = [14, 0], sizes = [1, 128], strides = [1, 1]} : vector<27x128xf32> to vector<1x128xf32>
    %92 = vector.shape_cast %91 : vector<1x128xf32> to vector<1x1x1x128xf32>
    %93 = vector.broadcast %92 : vector<1x1x1x128xf32> to vector<2x2x2x128xf32>
    %94 = arith.mulf %90, %93 : vector<2x2x2x128xf32>
    %95 = arith.addf %89, %94 : vector<2x2x2x128xf32>
    %96 = vector.extract_strided_slice %2 {offsets = [1, 2, 0, 0], sizes = [2, 2, 2, 128], strides = [1, 1, 1, 1]} : vector<4x4x4x128xf32> to vector<2x2x2x128xf32>
    %97 = vector.extract_strided_slice %4 {offsets = [15, 0], sizes = [1, 128], strides = [1, 1]} : vector<27x128xf32> to vector<1x128xf32>
    %98 = vector.shape_cast %97 : vector<1x128xf32> to vector<1x1x1x128xf32>
    %99 = vector.broadcast %98 : vector<1x1x1x128xf32> to vector<2x2x2x128xf32>
    %100 = arith.mulf %96, %99 : vector<2x2x2x128xf32>
    %101 = arith.addf %95, %100 : vector<2x2x2x128xf32>
    %102 = vector.extract_strided_slice %2 {offsets = [1, 2, 1, 0], sizes = [2, 2, 2, 128], strides = [1, 1, 1, 1]} : vector<4x4x4x128xf32> to vector<2x2x2x128xf32>
    %103 = vector.extract_strided_slice %4 {offsets = [16, 0], sizes = [1, 128], strides = [1, 1]} : vector<27x128xf32> to vector<1x128xf32>
    %104 = vector.shape_cast %103 : vector<1x128xf32> to vector<1x1x1x128xf32>
    %105 = vector.broadcast %104 : vector<1x1x1x128xf32> to vector<2x2x2x128xf32>
    %106 = arith.mulf %102, %105 : vector<2x2x2x128xf32>
    %107 = arith.addf %101, %106 : vector<2x2x2x128xf32>
    %108 = vector.extract_strided_slice %2 {offsets = [1, 2, 2, 0], sizes = [2, 2, 2, 128], strides = [1, 1, 1, 1]} : vector<4x4x4x128xf32> to vector<2x2x2x128xf32>
    %109 = vector.extract_strided_slice %4 {offsets = [17, 0], sizes = [1, 128], strides = [1, 1]} : vector<27x128xf32> to vector<1x128xf32>
    %110 = vector.shape_cast %109 : vector<1x128xf32> to vector<1x1x1x128xf32>
    %111 = vector.broadcast %110 : vector<1x1x1x128xf32> to vector<2x2x2x128xf32>
    %112 = arith.mulf %108, %111 : vector<2x2x2x128xf32>
    %113 = arith.addf %107, %112 : vector<2x2x2x128xf32>
    %114 = vector.extract_strided_slice %2 {offsets = [2, 0, 0, 0], sizes = [2, 2, 2, 128], strides = [1, 1, 1, 1]} : vector<4x4x4x128xf32> to vector<2x2x2x128xf32>
    %115 = vector.extract_strided_slice %4 {offsets = [18, 0], sizes = [1, 128], strides = [1, 1]} : vector<27x128xf32> to vector<1x128xf32>
    %116 = vector.shape_cast %115 : vector<1x128xf32> to vector<1x1x1x128xf32>
    %117 = vector.broadcast %116 : vector<1x1x1x128xf32> to vector<2x2x2x128xf32>
    %118 = arith.mulf %114, %117 : vector<2x2x2x128xf32>
    %119 = arith.addf %113, %118 : vector<2x2x2x128xf32>
    %120 = vector.extract_strided_slice %2 {offsets = [2, 0, 1, 0], sizes = [2, 2, 2, 128], strides = [1, 1, 1, 1]} : vector<4x4x4x128xf32> to vector<2x2x2x128xf32>
    %121 = vector.extract_strided_slice %4 {offsets = [19, 0], sizes = [1, 128], strides = [1, 1]} : vector<27x128xf32> to vector<1x128xf32>
    %122 = vector.shape_cast %121 : vector<1x128xf32> to vector<1x1x1x128xf32>
    %123 = vector.broadcast %122 : vector<1x1x1x128xf32> to vector<2x2x2x128xf32>
    %124 = arith.mulf %120, %123 : vector<2x2x2x128xf32>
    %125 = arith.addf %119, %124 : vector<2x2x2x128xf32>
    %126 = vector.extract_strided_slice %2 {offsets = [2, 0, 2, 0], sizes = [2, 2, 2, 128], strides = [1, 1, 1, 1]} : vector<4x4x4x128xf32> to vector<2x2x2x128xf32>
    %127 = vector.extract_strided_slice %4 {offsets = [20, 0], sizes = [1, 128], strides = [1, 1]} : vector<27x128xf32> to vector<1x128xf32>
    %128 = vector.shape_cast %127 : vector<1x128xf32> to vector<1x1x1x128xf32>
    %129 = vector.broadcast %128 : vector<1x1x1x128xf32> to vector<2x2x2x128xf32>
    %130 = arith.mulf %126, %129 : vector<2x2x2x128xf32>
    %131 = arith.addf %125, %130 : vector<2x2x2x128xf32>
    %132 = vector.extract_strided_slice %2 {offsets = [2, 1, 0, 0], sizes = [2, 2, 2, 128], strides = [1, 1, 1, 1]} : vector<4x4x4x128xf32> to vector<2x2x2x128xf32>
    %133 = vector.extract_strided_slice %4 {offsets = [21, 0], sizes = [1, 128], strides = [1, 1]} : vector<27x128xf32> to vector<1x128xf32>
    %134 = vector.shape_cast %133 : vector<1x128xf32> to vector<1x1x1x128xf32>
    %135 = vector.broadcast %134 : vector<1x1x1x128xf32> to vector<2x2x2x128xf32>
    %136 = arith.mulf %132, %135 : vector<2x2x2x128xf32>
    %137 = arith.addf %131, %136 : vector<2x2x2x128xf32>
    %138 = vector.extract_strided_slice %2 {offsets = [2, 1, 1, 0], sizes = [2, 2, 2, 128], strides = [1, 1, 1, 1]} : vector<4x4x4x128xf32> to vector<2x2x2x128xf32>
    %139 = vector.extract_strided_slice %4 {offsets = [22, 0], sizes = [1, 128], strides = [1, 1]} : vector<27x128xf32> to vector<1x128xf32>
    %140 = vector.shape_cast %139 : vector<1x128xf32> to vector<1x1x1x128xf32>
    %141 = vector.broadcast %140 : vector<1x1x1x128xf32> to vector<2x2x2x128xf32>
    %142 = arith.mulf %138, %141 : vector<2x2x2x128xf32>
    %143 = arith.addf %137, %142 : vector<2x2x2x128xf32>
    %144 = vector.extract_strided_slice %2 {offsets = [2, 1, 2, 0], sizes = [2, 2, 2, 128], strides = [1, 1, 1, 1]} : vector<4x4x4x128xf32> to vector<2x2x2x128xf32>
    %145 = vector.extract_strided_slice %4 {offsets = [23, 0], sizes = [1, 128], strides = [1, 1]} : vector<27x128xf32> to vector<1x128xf32>
    %146 = vector.shape_cast %145 : vector<1x128xf32> to vector<1x1x1x128xf32>
    %147 = vector.broadcast %146 : vector<1x1x1x128xf32> to vector<2x2x2x128xf32>
    %148 = arith.mulf %144, %147 : vector<2x2x2x128xf32>
    %149 = arith.addf %143, %148 : vector<2x2x2x128xf32>
    %150 = vector.extract_strided_slice %2 {offsets = [2, 2, 0, 0], sizes = [2, 2, 2, 128], strides = [1, 1, 1, 1]} : vector<4x4x4x128xf32> to vector<2x2x2x128xf32>
    %151 = vector.extract_strided_slice %4 {offsets = [24, 0], sizes = [1, 128], strides = [1, 1]} : vector<27x128xf32> to vector<1x128xf32>
    %152 = vector.shape_cast %151 : vector<1x128xf32> to vector<1x1x1x128xf32>
    %153 = vector.broadcast %152 : vector<1x1x1x128xf32> to vector<2x2x2x128xf32>
    %154 = arith.mulf %150, %153 : vector<2x2x2x128xf32>
    %155 = arith.addf %149, %154 : vector<2x2x2x128xf32>
    %156 = vector.extract_strided_slice %2 {offsets = [2, 2, 1, 0], sizes = [2, 2, 2, 128], strides = [1, 1, 1, 1]} : vector<4x4x4x128xf32> to vector<2x2x2x128xf32>
    %157 = vector.extract_strided_slice %4 {offsets = [25, 0], sizes = [1, 128], strides = [1, 1]} : vector<27x128xf32> to vector<1x128xf32>
    %158 = vector.shape_cast %157 : vector<1x128xf32> to vector<1x1x1x128xf32>
    %159 = vector.broadcast %158 : vector<1x1x1x128xf32> to vector<2x2x2x128xf32>
    %160 = arith.mulf %156, %159 : vector<2x2x2x128xf32>
    %161 = arith.addf %155, %160 : vector<2x2x2x128xf32>
    %162 = vector.extract_strided_slice %2 {offsets = [2, 2, 2, 0], sizes = [2, 2, 2, 128], strides = [1, 1, 1, 1]} : vector<4x4x4x128xf32> to vector<2x2x2x128xf32>
    %163 = vector.extract_strided_slice %4 {offsets = [26, 0], sizes = [1, 128], strides = [1, 1]} : vector<27x128xf32> to vector<1x128xf32>
    %164 = vector.shape_cast %163 : vector<1x128xf32> to vector<1x1x1x128xf32>
    %165 = vector.broadcast %164 : vector<1x1x1x128xf32> to vector<2x2x2x128xf32>
    %166 = arith.mulf %162, %165 : vector<2x2x2x128xf32>
    %167 = arith.addf %161, %166 : vector<2x2x2x128xf32>
    %c0_6 = arith.constant 0 : index
    %c0_7 = arith.constant 0 : index
    %168 = vector.load %arg3[%c0_6, %c0_7] : memref<1x128xf32, #tpu.memory_space<vmem>>, vector<1x128xf32>
    %169 = vector.shape_cast %168 : vector<1x128xf32> to vector<1x1x1x128xf32>
    %170 = vector.broadcast %169 : vector<1x1x1x128xf32> to vector<2x2x2x128xf32>
    %171 = arith.addf %167, %170 : vector<2x2x2x128xf32>
    %cst_8 = arith.constant 0.000000e+00 : f32
    %cst_9 = arith.constant 6.000000e+00 : f32
    %172 = vector.broadcast %cst_8 : f32 to vector<2x2x2x128xf32>
    %173 = arith.maximumf %172, %171 : vector<2x2x2x128xf32>
    %174 = vector.broadcast %cst_9 : f32 to vector<2x2x2x128xf32>
    %175 = arith.minimumf %174, %173 : vector<2x2x2x128xf32>
    %176 = arith.truncf %175 : vector<2x2x2x128xf32> to vector<2x2x2x128xbf16>
    %c0_10 = arith.constant 0 : index
    %c0_11 = arith.constant 0 : index
    %c0_12 = arith.constant 0 : index
    %c0_13 = arith.constant 0 : index
    %c0_14 = arith.constant 0 : index
    %177 = vector.load %arg4[%c0_10, %c0_11, %c0_12, %c0_13, %c0_14] : memref<1x2x2x2x128xbf16, #tpu.memory_space<vmem>>, vector<1x2x2x2x128xbf16>
    %178 = vector.shape_cast %177 : vector<1x2x2x2x128xbf16> to vector<2x2x2x128xbf16>
    %179 = vector.shape_cast %176 : vector<2x2x2x128xbf16> to vector<1x2x2x2x128xbf16>
    tpu.vector_store %arg4[%c0_10, %c0_11, %c0_12, %c0_13, %c0_14], %179 {strides = array<i32>} : memref<1x2x2x2x128xbf16, #tpu.memory_space<vmem>>, vector<1x2x2x2x128xbf16>,
    return
  }
  func.func @transform_0(%arg0: i32) -> (i32, i32, i32, i32, i32) {
    %c0_i32 = arith.constant 0 : i32
    %c0_i32_0 = arith.constant 0 : i32
    %c0_i32_1 = arith.constant 0 : i32
    %c0_i32_2 = arith.constant 0 : i32
    %c0_i32_3 = arith.constant 0 : i32
    return %arg0, %c0_i32, %c0_i32_0, %c0_i32_1, %c0_i32_2 : i32, i32, i32, i32, i32
  }
  func.func @transform_1(%arg0: i32) -> (i32, i32) {
    %c0_i32 = arith.constant 0 : i32
    %c0_i32_0 = arith.constant 0 : i32
    %c0_i32_1 = arith.constant 0 : i32
    return %c0_i32, %c0_i32_0 : i32, i32
  }
  func.func @transform_2(%arg0: i32) -> (i32, i32) {
    %c0_i32 = arith.constant 0 : i32
    %c0_i32_0 = arith.constant 0 : i32
    %c0_i32_1 = arith.constant 0 : i32
    return %c0_i32, %c0_i32_0 : i32, i32
  }
  func.func @transform_3(%arg0: i32) -> (i32, i32, i32, i32, i32) {
    %c0_i32 = arith.constant 0 : i32
    %c0_i32_0 = arith.constant 0 : i32
    %c0_i32_1 = arith.constant 0 : i32
    %c0_i32_2 = arith.constant 0 : i32
    %c0_i32_3 = arith.constant 0 : i32
    return %arg0, %c0_i32, %c0_i32_0, %c0_i32_1, %c0_i32_2 : i32, i32, i32, i32, i32
  }
}

module attributes {stable_mosaic.version = 11 : i64} {
  func.func @_mm_kernel(%arg0: i32, %arg1: i32, %arg2: memref<8x128xbf16, #tpu.memory_space<vmem>>, %arg3: memref<128x128xbf16, #tpu.memory_space<vmem>>, %arg4: memref<1x128xf32, #tpu.memory_space<vmem>>, %arg5: memref<8x128xbf16, #tpu.memory_space<vmem>>, %arg6: memref<8x128xbf16, #tpu.memory_space<vmem>>) attributes {dimension_semantics = [#tpu.dimension_semantics<parallel>, #tpu.dimension_semantics<parallel>], iteration_bounds = array<i64: 1, 1>, scalar_prefetch = 0 : i64, scratch_operands = 0 : i64, tpu.core_type = #tpu.core_type<tc>, window_params = [{transform_indices = @transform_0, window_bounds = array<i64: 8, 128>}, {transform_indices = @transform_1, window_bounds = array<i64: 128, 128>}, {transform_indices = @transform_2, window_bounds = array<i64: 1, 128>}, {transform_indices = @transform_3, window_bounds = array<i64: 8, 128>}, {transform_indices = @transform_4, window_bounds = array<i64: 8, 128>}]} {
    %c0 = arith.constant 0 : index
    %c0_0 = arith.constant 0 : index
    %0 = vector.load %arg2[%c0, %c0_0] : memref<8x128xbf16, #tpu.memory_space<vmem>>, vector<8x128xbf16>
    %c0_1 = arith.constant 0 : index
    %c0_2 = arith.constant 0 : index
    %1 = vector.load %arg3[%c0_1, %c0_2] : memref<128x128xbf16, #tpu.memory_space<vmem>>, vector<128x128xbf16>
    %cst = arith.constant dense<0.000000e+00> : vector<8x128xf32>
    %2 = tpu.matmul %0, %1, %cst {dimension_numbers = #tpu.dot_dimension_numbers<[1], [0], [0], [1], [0, 0, 1, 1], [], []>} : vector<8x128xbf16>, vector<128x128xbf16>, vector<8x128xf32> -> vector<8x128xf32>
    %c0_3 = arith.constant 0 : index
    %c0_4 = arith.constant 0 : index
    %3 = vector.load %arg4[%c0_3, %c0_4] : memref<1x128xf32, #tpu.memory_space<vmem>>, vector<1x128xf32>
    %4 = vector.broadcast %3 : vector<1x128xf32> to vector<8x128xf32>
    %5 = arith.addf %2, %4 : vector<8x128xf32>
    %c0_5 = arith.constant 0 : index
    %c0_6 = arith.constant 0 : index
    %6 = vector.load %arg5[%c0_5, %c0_6] : memref<8x128xbf16, #tpu.memory_space<vmem>>, vector<8x128xbf16>
    %7 = arith.extf %6 : vector<8x128xbf16> to vector<8x128xf32>
    %8 = arith.addf %5, %7 : vector<8x128xf32>
    %9 = arith.truncf %8 : vector<8x128xf32> to vector<8x128xbf16>
    %c0_7 = arith.constant 0 : index
    %c0_8 = arith.constant 0 : index
    %10 = vector.load %arg6[%c0_7, %c0_8] : memref<8x128xbf16, #tpu.memory_space<vmem>>, vector<8x128xbf16>
    tpu.vector_store %arg6[%c0_7, %c0_8], %9 {strides = array<i32>} : memref<8x128xbf16, #tpu.memory_space<vmem>>, vector<8x128xbf16>,
    return
  }
  func.func @transform_0(%arg0: i32, %arg1: i32) -> (i32, i32) {
    %c0_i32 = arith.constant 0 : i32
    %c0_i32_0 = arith.constant 0 : i32
    return %arg0, %c0_i32 : i32, i32
  }
  func.func @transform_1(%arg0: i32, %arg1: i32) -> (i32, i32) {
    %c0_i32 = arith.constant 0 : i32
    %c0_i32_0 = arith.constant 0 : i32
    return %c0_i32, %arg1 : i32, i32
  }
  func.func @transform_2(%arg0: i32, %arg1: i32) -> (i32, i32) {
    %c0_i32 = arith.constant 0 : i32
    %c0_i32_0 = arith.constant 0 : i32
    return %c0_i32, %arg1 : i32, i32
  }
  func.func @transform_3(%arg0: i32, %arg1: i32) -> (i32, i32) {
    %c0_i32 = arith.constant 0 : i32
    return %arg0, %arg1 : i32, i32
  }
  func.func @transform_4(%arg0: i32, %arg1: i32) -> (i32, i32) {
    %c0_i32 = arith.constant 0 : i32
    return %arg0, %arg1 : i32, i32
  }
}

module attributes {stable_mosaic.version = 11 : i64} {
  func.func @_mm_kernel(%arg0: i32, %arg1: i32, %arg2: memref<8x128xbf16, #tpu.memory_space<vmem>>, %arg3: memref<128x128xbf16, #tpu.memory_space<vmem>>, %arg4: memref<1x128xf32, #tpu.memory_space<vmem>>, %arg5: memref<8x128xbf16, #tpu.memory_space<vmem>>) attributes {dimension_semantics = [#tpu.dimension_semantics<parallel>, #tpu.dimension_semantics<parallel>], iteration_bounds = array<i64: 1, 2>, scalar_prefetch = 0 : i64, scratch_operands = 0 : i64, tpu.core_type = #tpu.core_type<tc>, window_params = [{transform_indices = @transform_0, window_bounds = array<i64: 8, 128>}, {transform_indices = @transform_1, window_bounds = array<i64: 128, 128>}, {transform_indices = @transform_2, window_bounds = array<i64: 1, 128>}, {transform_indices = @transform_3, window_bounds = array<i64: 8, 128>}]} {
    %c0 = arith.constant 0 : index
    %c0_0 = arith.constant 0 : index
    %0 = vector.load %arg2[%c0, %c0_0] : memref<8x128xbf16, #tpu.memory_space<vmem>>, vector<8x128xbf16>
    %c0_1 = arith.constant 0 : index
    %c0_2 = arith.constant 0 : index
    %1 = vector.load %arg3[%c0_1, %c0_2] : memref<128x128xbf16, #tpu.memory_space<vmem>>, vector<128x128xbf16>
    %cst = arith.constant dense<0.000000e+00> : vector<8x128xf32>
    %2 = tpu.matmul %0, %1, %cst {dimension_numbers = #tpu.dot_dimension_numbers<[1], [0], [0], [1], [0, 0, 1, 1], [], []>} : vector<8x128xbf16>, vector<128x128xbf16>, vector<8x128xf32> -> vector<8x128xf32>
    %c0_3 = arith.constant 0 : index
    %c0_4 = arith.constant 0 : index
    %3 = vector.load %arg4[%c0_3, %c0_4] : memref<1x128xf32, #tpu.memory_space<vmem>>, vector<1x128xf32>
    %4 = vector.broadcast %3 : vector<1x128xf32> to vector<8x128xf32>
    %5 = arith.addf %2, %4 : vector<8x128xf32>
    %cst_5 = arith.constant 0.000000e+00 : f32
    %cst_6 = arith.constant 6.000000e+00 : f32
    %6 = vector.broadcast %cst_5 : f32 to vector<8x128xf32>
    %7 = arith.maximumf %6, %5 : vector<8x128xf32>
    %8 = vector.broadcast %cst_6 : f32 to vector<8x128xf32>
    %9 = arith.minimumf %8, %7 : vector<8x128xf32>
    %10 = arith.truncf %9 : vector<8x128xf32> to vector<8x128xbf16>
    %c0_7 = arith.constant 0 : index
    %c0_8 = arith.constant 0 : index
    %11 = vector.load %arg5[%c0_7, %c0_8] : memref<8x128xbf16, #tpu.memory_space<vmem>>, vector<8x128xbf16>
    tpu.vector_store %arg5[%c0_7, %c0_8], %10 {strides = array<i32>} : memref<8x128xbf16, #tpu.memory_space<vmem>>, vector<8x128xbf16>,
    return
  }
  func.func @transform_0(%arg0: i32, %arg1: i32) -> (i32, i32) {
    %c0_i32 = arith.constant 0 : i32
    %c0_i32_0 = arith.constant 0 : i32
    return %arg0, %c0_i32 : i32, i32
  }
  func.func @transform_1(%arg0: i32, %arg1: i32) -> (i32, i32) {
    %c0_i32 = arith.constant 0 : i32
    %c0_i32_0 = arith.constant 0 : i32
    return %c0_i32, %arg1 : i32, i32
  }
  func.func @transform_2(%arg0: i32, %arg1: i32) -> (i32, i32) {
    %c0_i32 = arith.constant 0 : i32
    %c0_i32_0 = arith.constant 0 : i32
    return %c0_i32, %arg1 : i32, i32
  }
  func.func @transform_3(%arg0: i32, %arg1: i32) -> (i32, i32) {
    %c0_i32 = arith.constant 0 : i32
    return %arg0, %arg1 : i32, i32
  }
}

module attributes {stable_mosaic.version = 11 : i64} {
  func.func @_dw_kernel(%arg0: i32, %arg1: memref<1x4x3x3x128xbf16, #tpu.memory_space<vmem>>, %arg2: memref<27x128xbf16, #tpu.memory_space<vmem>>, %arg3: memref<1x128xf32, #tpu.memory_space<vmem>>, %arg4: memref<1x2x1x1x128xbf16, #tpu.memory_space<vmem>>) attributes {dimension_semantics = [#tpu.dimension_semantics<parallel>], iteration_bounds = array<i64: 1>, scalar_prefetch = 0 : i64, scratch_operands = 0 : i64, tpu.core_type = #tpu.core_type<tc>, window_params = [{transform_indices = @transform_0, window_bounds = array<i64: 1, 4, 3, 3, 128>}, {pipeline_mode = #tpu.pipeline_mode<synchronous>, transform_indices = @transform_1, window_bounds = array<i64: 27, 128>}, {pipeline_mode = #tpu.pipeline_mode<synchronous>, transform_indices = @transform_2, window_bounds = array<i64: 1, 128>}, {transform_indices = @transform_3, window_bounds = array<i64: 1, 2, 1, 1, 128>}]} {
    %c0 = arith.constant 0 : index
    %c0_0 = arith.constant 0 : index
    %c0_1 = arith.constant 0 : index
    %c0_2 = arith.constant 0 : index
    %c0_3 = arith.constant 0 : index
    %0 = vector.load %arg1[%c0, %c0_0, %c0_1, %c0_2, %c0_3] : memref<1x4x3x3x128xbf16, #tpu.memory_space<vmem>>, vector<1x4x3x3x128xbf16>
    %1 = vector.shape_cast %0 : vector<1x4x3x3x128xbf16> to vector<4x3x3x128xbf16>
    %2 = arith.extf %1 : vector<4x3x3x128xbf16> to vector<4x3x3x128xf32>
    %c0_4 = arith.constant 0 : index
    %c0_5 = arith.constant 0 : index
    %3 = vector.load %arg2[%c0_4, %c0_5] : memref<27x128xbf16, #tpu.memory_space<vmem>>, vector<27x128xbf16>
    %4 = arith.extf %3 : vector<27x128xbf16> to vector<27x128xf32>
    %cst = arith.constant 0.000000e+00 : f32
    %5 = vector.broadcast %cst : f32 to vector<2x1x1x128xf32>
    %6 = vector.extract_strided_slice %2 {offsets = [0, 0, 0, 0], sizes = [2, 1, 1, 128], strides = [1, 1, 1, 1]} : vector<4x3x3x128xf32> to vector<2x1x1x128xf32>
    %7 = vector.extract_strided_slice %4 {offsets = [0, 0], sizes = [1, 128], strides = [1, 1]} : vector<27x128xf32> to vector<1x128xf32>
    %8 = vector.shape_cast %7 : vector<1x128xf32> to vector<1x1x1x128xf32>
    %9 = vector.broadcast %8 : vector<1x1x1x128xf32> to vector<2x1x1x128xf32>
    %10 = arith.mulf %6, %9 : vector<2x1x1x128xf32>
    %11 = arith.addf %5, %10 : vector<2x1x1x128xf32>
    %12 = vector.extract_strided_slice %2 {offsets = [0, 0, 1, 0], sizes = [2, 1, 1, 128], strides = [1, 1, 1, 1]} : vector<4x3x3x128xf32> to vector<2x1x1x128xf32>
    %13 = vector.extract_strided_slice %4 {offsets = [1, 0], sizes = [1, 128], strides = [1, 1]} : vector<27x128xf32> to vector<1x128xf32>
    %14 = vector.shape_cast %13 : vector<1x128xf32> to vector<1x1x1x128xf32>
    %15 = vector.broadcast %14 : vector<1x1x1x128xf32> to vector<2x1x1x128xf32>
    %16 = arith.mulf %12, %15 : vector<2x1x1x128xf32>
    %17 = arith.addf %11, %16 : vector<2x1x1x128xf32>
    %18 = vector.extract_strided_slice %2 {offsets = [0, 0, 2, 0], sizes = [2, 1, 1, 128], strides = [1, 1, 1, 1]} : vector<4x3x3x128xf32> to vector<2x1x1x128xf32>
    %19 = vector.extract_strided_slice %4 {offsets = [2, 0], sizes = [1, 128], strides = [1, 1]} : vector<27x128xf32> to vector<1x128xf32>
    %20 = vector.shape_cast %19 : vector<1x128xf32> to vector<1x1x1x128xf32>
    %21 = vector.broadcast %20 : vector<1x1x1x128xf32> to vector<2x1x1x128xf32>
    %22 = arith.mulf %18, %21 : vector<2x1x1x128xf32>
    %23 = arith.addf %17, %22 : vector<2x1x1x128xf32>
    %24 = vector.extract_strided_slice %2 {offsets = [0, 1, 0, 0], sizes = [2, 1, 1, 128], strides = [1, 1, 1, 1]} : vector<4x3x3x128xf32> to vector<2x1x1x128xf32>
    %25 = vector.extract_strided_slice %4 {offsets = [3, 0], sizes = [1, 128], strides = [1, 1]} : vector<27x128xf32> to vector<1x128xf32>
    %26 = vector.shape_cast %25 : vector<1x128xf32> to vector<1x1x1x128xf32>
    %27 = vector.broadcast %26 : vector<1x1x1x128xf32> to vector<2x1x1x128xf32>
    %28 = arith.mulf %24, %27 : vector<2x1x1x128xf32>
    %29 = arith.addf %23, %28 : vector<2x1x1x128xf32>
    %30 = vector.extract_strided_slice %2 {offsets = [0, 1, 1, 0], sizes = [2, 1, 1, 128], strides = [1, 1, 1, 1]} : vector<4x3x3x128xf32> to vector<2x1x1x128xf32>
    %31 = vector.extract_strided_slice %4 {offsets = [4, 0], sizes = [1, 128], strides = [1, 1]} : vector<27x128xf32> to vector<1x128xf32>
    %32 = vector.shape_cast %31 : vector<1x128xf32> to vector<1x1x1x128xf32>
    %33 = vector.broadcast %32 : vector<1x1x1x128xf32> to vector<2x1x1x128xf32>
    %34 = arith.mulf %30, %33 : vector<2x1x1x128xf32>
    %35 = arith.addf %29, %34 : vector<2x1x1x128xf32>
    %36 = vector.extract_strided_slice %2 {offsets = [0, 1, 2, 0], sizes = [2, 1, 1, 128], strides = [1, 1, 1, 1]} : vector<4x3x3x128xf32> to vector<2x1x1x128xf32>
    %37 = vector.extract_strided_slice %4 {offsets = [5, 0], sizes = [1, 128], strides = [1, 1]} : vector<27x128xf32> to vector<1x128xf32>
    %38 = vector.shape_cast %37 : vector<1x128xf32> to vector<1x1x1x128xf32>
    %39 = vector.broadcast %38 : vector<1x1x1x128xf32> to vector<2x1x1x128xf32>
    %40 = arith.mulf %36, %39 : vector<2x1x1x128xf32>
    %41 = arith.addf %35, %40 : vector<2x1x1x128xf32>
    %42 = vector.extract_strided_slice %2 {offsets = [0, 2, 0, 0], sizes = [2, 1, 1, 128], strides = [1, 1, 1, 1]} : vector<4x3x3x128xf32> to vector<2x1x1x128xf32>
    %43 = vector.extract_strided_slice %4 {offsets = [6, 0], sizes = [1, 128], strides = [1, 1]} : vector<27x128xf32> to vector<1x128xf32>
    %44 = vector.shape_cast %43 : vector<1x128xf32> to vector<1x1x1x128xf32>
    %45 = vector.broadcast %44 : vector<1x1x1x128xf32> to vector<2x1x1x128xf32>
    %46 = arith.mulf %42, %45 : vector<2x1x1x128xf32>
    %47 = arith.addf %41, %46 : vector<2x1x1x128xf32>
    %48 = vector.extract_strided_slice %2 {offsets = [0, 2, 1, 0], sizes = [2, 1, 1, 128], strides = [1, 1, 1, 1]} : vector<4x3x3x128xf32> to vector<2x1x1x128xf32>
    %49 = vector.extract_strided_slice %4 {offsets = [7, 0], sizes = [1, 128], strides = [1, 1]} : vector<27x128xf32> to vector<1x128xf32>
    %50 = vector.shape_cast %49 : vector<1x128xf32> to vector<1x1x1x128xf32>
    %51 = vector.broadcast %50 : vector<1x1x1x128xf32> to vector<2x1x1x128xf32>
    %52 = arith.mulf %48, %51 : vector<2x1x1x128xf32>
    %53 = arith.addf %47, %52 : vector<2x1x1x128xf32>
    %54 = vector.extract_strided_slice %2 {offsets = [0, 2, 2, 0], sizes = [2, 1, 1, 128], strides = [1, 1, 1, 1]} : vector<4x3x3x128xf32> to vector<2x1x1x128xf32>
    %55 = vector.extract_strided_slice %4 {offsets = [8, 0], sizes = [1, 128], strides = [1, 1]} : vector<27x128xf32> to vector<1x128xf32>
    %56 = vector.shape_cast %55 : vector<1x128xf32> to vector<1x1x1x128xf32>
    %57 = vector.broadcast %56 : vector<1x1x1x128xf32> to vector<2x1x1x128xf32>
    %58 = arith.mulf %54, %57 : vector<2x1x1x128xf32>
    %59 = arith.addf %53, %58 : vector<2x1x1x128xf32>
    %60 = vector.extract_strided_slice %2 {offsets = [1, 0, 0, 0], sizes = [2, 1, 1, 128], strides = [1, 1, 1, 1]} : vector<4x3x3x128xf32> to vector<2x1x1x128xf32>
    %61 = vector.extract_strided_slice %4 {offsets = [9, 0], sizes = [1, 128], strides = [1, 1]} : vector<27x128xf32> to vector<1x128xf32>
    %62 = vector.shape_cast %61 : vector<1x128xf32> to vector<1x1x1x128xf32>
    %63 = vector.broadcast %62 : vector<1x1x1x128xf32> to vector<2x1x1x128xf32>
    %64 = arith.mulf %60, %63 : vector<2x1x1x128xf32>
    %65 = arith.addf %59, %64 : vector<2x1x1x128xf32>
    %66 = vector.extract_strided_slice %2 {offsets = [1, 0, 1, 0], sizes = [2, 1, 1, 128], strides = [1, 1, 1, 1]} : vector<4x3x3x128xf32> to vector<2x1x1x128xf32>
    %67 = vector.extract_strided_slice %4 {offsets = [10, 0], sizes = [1, 128], strides = [1, 1]} : vector<27x128xf32> to vector<1x128xf32>
    %68 = vector.shape_cast %67 : vector<1x128xf32> to vector<1x1x1x128xf32>
    %69 = vector.broadcast %68 : vector<1x1x1x128xf32> to vector<2x1x1x128xf32>
    %70 = arith.mulf %66, %69 : vector<2x1x1x128xf32>
    %71 = arith.addf %65, %70 : vector<2x1x1x128xf32>
    %72 = vector.extract_strided_slice %2 {offsets = [1, 0, 2, 0], sizes = [2, 1, 1, 128], strides = [1, 1, 1, 1]} : vector<4x3x3x128xf32> to vector<2x1x1x128xf32>
    %73 = vector.extract_strided_slice %4 {offsets = [11, 0], sizes = [1, 128], strides = [1, 1]} : vector<27x128xf32> to vector<1x128xf32>
    %74 = vector.shape_cast %73 : vector<1x128xf32> to vector<1x1x1x128xf32>
    %75 = vector.broadcast %74 : vector<1x1x1x128xf32> to vector<2x1x1x128xf32>
    %76 = arith.mulf %72, %75 : vector<2x1x1x128xf32>
    %77 = arith.addf %71, %76 : vector<2x1x1x128xf32>
    %78 = vector.extract_strided_slice %2 {offsets = [1, 1, 0, 0], sizes = [2, 1, 1, 128], strides = [1, 1, 1, 1]} : vector<4x3x3x128xf32> to vector<2x1x1x128xf32>
    %79 = vector.extract_strided_slice %4 {offsets = [12, 0], sizes = [1, 128], strides = [1, 1]} : vector<27x128xf32> to vector<1x128xf32>
    %80 = vector.shape_cast %79 : vector<1x128xf32> to vector<1x1x1x128xf32>
    %81 = vector.broadcast %80 : vector<1x1x1x128xf32> to vector<2x1x1x128xf32>
    %82 = arith.mulf %78, %81 : vector<2x1x1x128xf32>
    %83 = arith.addf %77, %82 : vector<2x1x1x128xf32>
    %84 = vector.extract_strided_slice %2 {offsets = [1, 1, 1, 0], sizes = [2, 1, 1, 128], strides = [1, 1, 1, 1]} : vector<4x3x3x128xf32> to vector<2x1x1x128xf32>
    %85 = vector.extract_strided_slice %4 {offsets = [13, 0], sizes = [1, 128], strides = [1, 1]} : vector<27x128xf32> to vector<1x128xf32>
    %86 = vector.shape_cast %85 : vector<1x128xf32> to vector<1x1x1x128xf32>
    %87 = vector.broadcast %86 : vector<1x1x1x128xf32> to vector<2x1x1x128xf32>
    %88 = arith.mulf %84, %87 : vector<2x1x1x128xf32>
    %89 = arith.addf %83, %88 : vector<2x1x1x128xf32>
    %90 = vector.extract_strided_slice %2 {offsets = [1, 1, 2, 0], sizes = [2, 1, 1, 128], strides = [1, 1, 1, 1]} : vector<4x3x3x128xf32> to vector<2x1x1x128xf32>
    %91 = vector.extract_strided_slice %4 {offsets = [14, 0], sizes = [1, 128], strides = [1, 1]} : vector<27x128xf32> to vector<1x128xf32>
    %92 = vector.shape_cast %91 : vector<1x128xf32> to vector<1x1x1x128xf32>
    %93 = vector.broadcast %92 : vector<1x1x1x128xf32> to vector<2x1x1x128xf32>
    %94 = arith.mulf %90, %93 : vector<2x1x1x128xf32>
    %95 = arith.addf %89, %94 : vector<2x1x1x128xf32>
    %96 = vector.extract_strided_slice %2 {offsets = [1, 2, 0, 0], sizes = [2, 1, 1, 128], strides = [1, 1, 1, 1]} : vector<4x3x3x128xf32> to vector<2x1x1x128xf32>
    %97 = vector.extract_strided_slice %4 {offsets = [15, 0], sizes = [1, 128], strides = [1, 1]} : vector<27x128xf32> to vector<1x128xf32>
    %98 = vector.shape_cast %97 : vector<1x128xf32> to vector<1x1x1x128xf32>
    %99 = vector.broadcast %98 : vector<1x1x1x128xf32> to vector<2x1x1x128xf32>
    %100 = arith.mulf %96, %99 : vector<2x1x1x128xf32>
    %101 = arith.addf %95, %100 : vector<2x1x1x128xf32>
    %102 = vector.extract_strided_slice %2 {offsets = [1, 2, 1, 0], sizes = [2, 1, 1, 128], strides = [1, 1, 1, 1]} : vector<4x3x3x128xf32> to vector<2x1x1x128xf32>
    %103 = vector.extract_strided_slice %4 {offsets = [16, 0], sizes = [1, 128], strides = [1, 1]} : vector<27x128xf32> to vector<1x128xf32>
    %104 = vector.shape_cast %103 : vector<1x128xf32> to vector<1x1x1x128xf32>
    %105 = vector.broadcast %104 : vector<1x1x1x128xf32> to vector<2x1x1x128xf32>
    %106 = arith.mulf %102, %105 : vector<2x1x1x128xf32>
    %107 = arith.addf %101, %106 : vector<2x1x1x128xf32>
    %108 = vector.extract_strided_slice %2 {offsets = [1, 2, 2, 0], sizes = [2, 1, 1, 128], strides = [1, 1, 1, 1]} : vector<4x3x3x128xf32> to vector<2x1x1x128xf32>
    %109 = vector.extract_strided_slice %4 {offsets = [17, 0], sizes = [1, 128], strides = [1, 1]} : vector<27x128xf32> to vector<1x128xf32>
    %110 = vector.shape_cast %109 : vector<1x128xf32> to vector<1x1x1x128xf32>
    %111 = vector.broadcast %110 : vector<1x1x1x128xf32> to vector<2x1x1x128xf32>
    %112 = arith.mulf %108, %111 : vector<2x1x1x128xf32>
    %113 = arith.addf %107, %112 : vector<2x1x1x128xf32>
    %114 = vector.extract_strided_slice %2 {offsets = [2, 0, 0, 0], sizes = [2, 1, 1, 128], strides = [1, 1, 1, 1]} : vector<4x3x3x128xf32> to vector<2x1x1x128xf32>
    %115 = vector.extract_strided_slice %4 {offsets = [18, 0], sizes = [1, 128], strides = [1, 1]} : vector<27x128xf32> to vector<1x128xf32>
    %116 = vector.shape_cast %115 : vector<1x128xf32> to vector<1x1x1x128xf32>
    %117 = vector.broadcast %116 : vector<1x1x1x128xf32> to vector<2x1x1x128xf32>
    %118 = arith.mulf %114, %117 : vector<2x1x1x128xf32>
    %119 = arith.addf %113, %118 : vector<2x1x1x128xf32>
    %120 = vector.extract_strided_slice %2 {offsets = [2, 0, 1, 0], sizes = [2, 1, 1, 128], strides = [1, 1, 1, 1]} : vector<4x3x3x128xf32> to vector<2x1x1x128xf32>
    %121 = vector.extract_strided_slice %4 {offsets = [19, 0], sizes = [1, 128], strides = [1, 1]} : vector<27x128xf32> to vector<1x128xf32>
    %122 = vector.shape_cast %121 : vector<1x128xf32> to vector<1x1x1x128xf32>
    %123 = vector.broadcast %122 : vector<1x1x1x128xf32> to vector<2x1x1x128xf32>
    %124 = arith.mulf %120, %123 : vector<2x1x1x128xf32>
    %125 = arith.addf %119, %124 : vector<2x1x1x128xf32>
    %126 = vector.extract_strided_slice %2 {offsets = [2, 0, 2, 0], sizes = [2, 1, 1, 128], strides = [1, 1, 1, 1]} : vector<4x3x3x128xf32> to vector<2x1x1x128xf32>
    %127 = vector.extract_strided_slice %4 {offsets = [20, 0], sizes = [1, 128], strides = [1, 1]} : vector<27x128xf32> to vector<1x128xf32>
    %128 = vector.shape_cast %127 : vector<1x128xf32> to vector<1x1x1x128xf32>
    %129 = vector.broadcast %128 : vector<1x1x1x128xf32> to vector<2x1x1x128xf32>
    %130 = arith.mulf %126, %129 : vector<2x1x1x128xf32>
    %131 = arith.addf %125, %130 : vector<2x1x1x128xf32>
    %132 = vector.extract_strided_slice %2 {offsets = [2, 1, 0, 0], sizes = [2, 1, 1, 128], strides = [1, 1, 1, 1]} : vector<4x3x3x128xf32> to vector<2x1x1x128xf32>
    %133 = vector.extract_strided_slice %4 {offsets = [21, 0], sizes = [1, 128], strides = [1, 1]} : vector<27x128xf32> to vector<1x128xf32>
    %134 = vector.shape_cast %133 : vector<1x128xf32> to vector<1x1x1x128xf32>
    %135 = vector.broadcast %134 : vector<1x1x1x128xf32> to vector<2x1x1x128xf32>
    %136 = arith.mulf %132, %135 : vector<2x1x1x128xf32>
    %137 = arith.addf %131, %136 : vector<2x1x1x128xf32>
    %138 = vector.extract_strided_slice %2 {offsets = [2, 1, 1, 0], sizes = [2, 1, 1, 128], strides = [1, 1, 1, 1]} : vector<4x3x3x128xf32> to vector<2x1x1x128xf32>
    %139 = vector.extract_strided_slice %4 {offsets = [22, 0], sizes = [1, 128], strides = [1, 1]} : vector<27x128xf32> to vector<1x128xf32>
    %140 = vector.shape_cast %139 : vector<1x128xf32> to vector<1x1x1x128xf32>
    %141 = vector.broadcast %140 : vector<1x1x1x128xf32> to vector<2x1x1x128xf32>
    %142 = arith.mulf %138, %141 : vector<2x1x1x128xf32>
    %143 = arith.addf %137, %142 : vector<2x1x1x128xf32>
    %144 = vector.extract_strided_slice %2 {offsets = [2, 1, 2, 0], sizes = [2, 1, 1, 128], strides = [1, 1, 1, 1]} : vector<4x3x3x128xf32> to vector<2x1x1x128xf32>
    %145 = vector.extract_strided_slice %4 {offsets = [23, 0], sizes = [1, 128], strides = [1, 1]} : vector<27x128xf32> to vector<1x128xf32>
    %146 = vector.shape_cast %145 : vector<1x128xf32> to vector<1x1x1x128xf32>
    %147 = vector.broadcast %146 : vector<1x1x1x128xf32> to vector<2x1x1x128xf32>
    %148 = arith.mulf %144, %147 : vector<2x1x1x128xf32>
    %149 = arith.addf %143, %148 : vector<2x1x1x128xf32>
    %150 = vector.extract_strided_slice %2 {offsets = [2, 2, 0, 0], sizes = [2, 1, 1, 128], strides = [1, 1, 1, 1]} : vector<4x3x3x128xf32> to vector<2x1x1x128xf32>
    %151 = vector.extract_strided_slice %4 {offsets = [24, 0], sizes = [1, 128], strides = [1, 1]} : vector<27x128xf32> to vector<1x128xf32>
    %152 = vector.shape_cast %151 : vector<1x128xf32> to vector<1x1x1x128xf32>
    %153 = vector.broadcast %152 : vector<1x1x1x128xf32> to vector<2x1x1x128xf32>
    %154 = arith.mulf %150, %153 : vector<2x1x1x128xf32>
    %155 = arith.addf %149, %154 : vector<2x1x1x128xf32>
    %156 = vector.extract_strided_slice %2 {offsets = [2, 2, 1, 0], sizes = [2, 1, 1, 128], strides = [1, 1, 1, 1]} : vector<4x3x3x128xf32> to vector<2x1x1x128xf32>
    %157 = vector.extract_strided_slice %4 {offsets = [25, 0], sizes = [1, 128], strides = [1, 1]} : vector<27x128xf32> to vector<1x128xf32>
    %158 = vector.shape_cast %157 : vector<1x128xf32> to vector<1x1x1x128xf32>
    %159 = vector.broadcast %158 : vector<1x1x1x128xf32> to vector<2x1x1x128xf32>
    %160 = arith.mulf %156, %159 : vector<2x1x1x128xf32>
    %161 = arith.addf %155, %160 : vector<2x1x1x128xf32>
    %162 = vector.extract_strided_slice %2 {offsets = [2, 2, 2, 0], sizes = [2, 1, 1, 128], strides = [1, 1, 1, 1]} : vector<4x3x3x128xf32> to vector<2x1x1x128xf32>
    %163 = vector.extract_strided_slice %4 {offsets = [26, 0], sizes = [1, 128], strides = [1, 1]} : vector<27x128xf32> to vector<1x128xf32>
    %164 = vector.shape_cast %163 : vector<1x128xf32> to vector<1x1x1x128xf32>
    %165 = vector.broadcast %164 : vector<1x1x1x128xf32> to vector<2x1x1x128xf32>
    %166 = arith.mulf %162, %165 : vector<2x1x1x128xf32>
    %167 = arith.addf %161, %166 : vector<2x1x1x128xf32>
    %c0_6 = arith.constant 0 : index
    %c0_7 = arith.constant 0 : index
    %168 = vector.load %arg3[%c0_6, %c0_7] : memref<1x128xf32, #tpu.memory_space<vmem>>, vector<1x128xf32>
    %169 = vector.shape_cast %168 : vector<1x128xf32> to vector<1x1x1x128xf32>
    %170 = vector.broadcast %169 : vector<1x1x1x128xf32> to vector<2x1x1x128xf32>
    %171 = arith.addf %167, %170 : vector<2x1x1x128xf32>
    %cst_8 = arith.constant 0.000000e+00 : f32
    %cst_9 = arith.constant 6.000000e+00 : f32
    %172 = vector.broadcast %cst_8 : f32 to vector<2x1x1x128xf32>
    %173 = arith.maximumf %172, %171 : vector<2x1x1x128xf32>
    %174 = vector.broadcast %cst_9 : f32 to vector<2x1x1x128xf32>
    %175 = arith.minimumf %174, %173 : vector<2x1x1x128xf32>
    %176 = arith.truncf %175 : vector<2x1x1x128xf32> to vector<2x1x1x128xbf16>
    %c0_10 = arith.constant 0 : index
    %c0_11 = arith.constant 0 : index
    %c0_12 = arith.constant 0 : index
    %c0_13 = arith.constant 0 : index
    %c0_14 = arith.constant 0 : index
    %177 = vector.load %arg4[%c0_10, %c0_11, %c0_12, %c0_13, %c0_14] : memref<1x2x1x1x128xbf16, #tpu.memory_space<vmem>>, vector<1x2x1x1x128xbf16>
    %178 = vector.shape_cast %177 : vector<1x2x1x1x128xbf16> to vector<2x1x1x128xbf16>
    %179 = vector.shape_cast %176 : vector<2x1x1x128xbf16> to vector<1x2x1x1x128xbf16>
    tpu.vector_store %arg4[%c0_10, %c0_11, %c0_12, %c0_13, %c0_14], %179 {strides = array<i32>} : memref<1x2x1x1x128xbf16, #tpu.memory_space<vmem>>, vector<1x2x1x1x128xbf16>,
    return
  }
  func.func @transform_0(%arg0: i32) -> (i32, i32, i32, i32, i32) {
    %c0_i32 = arith.constant 0 : i32
    %c0_i32_0 = arith.constant 0 : i32
    %c0_i32_1 = arith.constant 0 : i32
    %c0_i32_2 = arith.constant 0 : i32
    %c0_i32_3 = arith.constant 0 : i32
    return %arg0, %c0_i32, %c0_i32_0, %c0_i32_1, %c0_i32_2 : i32, i32, i32, i32, i32
  }
  func.func @transform_1(%arg0: i32) -> (i32, i32) {
    %c0_i32 = arith.constant 0 : i32
    %c0_i32_0 = arith.constant 0 : i32
    %c0_i32_1 = arith.constant 0 : i32
    return %c0_i32, %c0_i32_0 : i32, i32
  }
  func.func @transform_2(%arg0: i32) -> (i32, i32) {
    %c0_i32 = arith.constant 0 : i32
    %c0_i32_0 = arith.constant 0 : i32
    %c0_i32_1 = arith.constant 0 : i32
    return %c0_i32, %c0_i32_0 : i32, i32
  }
  func.func @transform_3(%arg0: i32) -> (i32, i32, i32, i32, i32) {
    %c0_i32 = arith.constant 0 : i32
    %c0_i32_0 = arith.constant 0 : i32
    %c0_i32_1 = arith.constant 0 : i32
    %c0_i32_2 = arith.constant 0 : i32
    %c0_i32_3 = arith.constant 0 : i32
    return %arg0, %c0_i32, %c0_i32_0, %c0_i32_1, %c0_i32_2 : i32, i32, i32, i32, i32
  }
}

</mosaic_0001>

<bundles_post_ra>
// kernel: _forward.52
= control target key start
LH: loop header
LB: loop body
LE: loop exit
PB: predicated region body
PF: predicated region fallthrough
CT: control target
= control target key end

     0   :  { %vm122_vm0 = vcmask 662528   ;;  %vm147_vm1 = vcmask 1040384   ;;  %v537_v8 = vmov 0   ;;  %s635_s1 = inlined_call_operand.vmem [shape: bf16[81,128], index: 1, kind: input, shape index: {}]   ;;  %s636_s0 = inlined_call_operand.vmem [shape: bf16[128,81], index: 0, kind: input, shape index: {}]   ;;  %s637_s2 = inlined_call_operand.vmem [shape: f32[1,128], index: 2, kind: input, shape index: {}]   ;;  %s638_s3 = inlined_call_operand.vmem [shape: bf16[128,128], index: 3, kind: output, shape index: {}]  }
   0x1   :  { %v523_v0 = vld [vmem:[%s635_s1] sm:$0xff]   ;;  %v524_v1 = vld [vmem:[%s635_s1 + $0x8] sm:$0xff]   ;;  %v525_v2 = vld [vmem:[%s635_s1 + $0x10] sm:$0xff]   ;;  %v149_v9 = vsel %vm147_vm1, 65535, %v537_v8 }
   0x2   :  { %482 = vmatprep.subr.bf16.mxu0 %v523_v0  ;;  %510 = vmatprep.subr.bf16.mxu1 %v523_v0  ;;  %v529_v3 = vld [vmem:[%s636_s0] sm:$0xff]   ;;  %v526_v5 = vld [vmem:[%s635_s1 + $0x18] sm:$0xff]   ;;  %v528_v6 = vld [vmem:[%s635_s1 + $0x28] ss:$0 sps:$4 sm:$0x11]  }
   0x3   :  { %483 = vmatpush3.bf16.msra.mxu0 %v523_v0  ;;  %516 = vmatpush3.bf16.msra.mxu1 %v523_v0  ;;  %v530_v4 = vld [vmem:[%s636_s0 + $0x20] sm:$0xff]   ;;  %v151_v10 = vand.u32 %v528_v6, %v149_v9  ;;  %v531_v11 = vld [vmem:[%s636_s0 + $0x8] sm:$0xff]   ;;  %v533_v13 = vld [vmem:[%s636_s0 + $0x10] sm:$0xff]  }
   0x4   :  { %484 = vmatprep.subr.bf16.mxu0 %v524_v1  ;;  %511 = vmatprep.subr.bf16.mxu1 %v524_v1  ;;  %v527_v7 = vld [vmem:[%s635_s1 + $0x20] sm:$0xff]   ;;  %v532_v12 = vld [vmem:[%s636_s0 + $0x28] sm:$0xff]   ;;  %v534_v14 = vld [vmem:[%s636_s0 + $0x30] sm:$0xff]  }
   0x5   :  { %494 = vmatprep.mubr.msk.bf16.mxu0 %vm122_vm0, %v529_v3  ;;  %502 = vmatprep.mubr.msk.bf16.mxu1 %vm122_vm0, %v530_v4  ;;  %v535_v15 = vld [vmem:[%s636_s0 + $0x18] sm:$0xff]   ;;  %v366_v17 = vld [vmem:[%s637_s2] ss:$0 sm:$0xff] }
   0x6   :  { %v536_v16 = vld [vmem:[%s636_s0 + $0x38] sm:$0xff]  }
   0x7   :  { %485 = vmatpush3.bf16.msra.mxu0 %v524_v1  ;;  %517 = vmatpush3.bf16.msra.mxu1 %v524_v1 }
   0x8   :  { %486 = vmatprep.subr.bf16.mxu0 %v525_v2  ;;  %512 = vmatprep.subr.bf16.mxu1 %v525_v2 }
   0xb   :  { %487 = vmatpush3.bf16.msra.mxu0 %v525_v2  ;;  %518 = vmatpush3.bf16.msra.mxu1 %v525_v2 }
   0xc   :  { %488 = vmatprep.subr.bf16.mxu0 %v526_v5  ;;  %513 = vmatprep.subr.bf16.mxu1 %v526_v5 }
   0xf   :  { %489 = vmatpush3.bf16.msra.mxu0 %v526_v5  ;;  %519 = vmatpush3.bf16.msra.mxu1 %v526_v5 }
  0x10   :  { %490 = vmatprep.subr.bf16.mxu0 %v527_v7  ;;  %514 = vmatprep.subr.bf16.mxu1 %v527_v7 }
  0x13   :  { %491 = vmatpush3.bf16.msra.mxu0 %v527_v7  ;;  %520 = vmatpush3.bf16.msra.mxu1 %v527_v7 }
  0x14   :  { %492 = vmatprep.subr.bf16.mxu0 %v151_v10  ;;  %515 = vmatprep.subr.bf16.mxu1 %v151_v10 }
  0x17   :  { %493 = vmatpush3.bf16.msra.mxu0 %v151_v10  ;;  %521 = vmatpush3.bf16.msra.mxu1 %v151_v10 }
  0x1a   :  { %495 = vmatmul.mubr.msk.bf16.vlgmr.msra.gmra.mrb[0].mxu0 %vm122_vm0, %v531_v11  ;;  %503 = vmatmul.mubr.msk.bf16.vlgmr.msra.gmra.mrb[0].mxu1 %vm122_vm0, %v532_v12 }
  0x1b   :  { %498 = vmatprep.mubr.msk.bf16.mxu0 %vm122_vm0, %v533_v13  ;;  %506 = vmatprep.mubr.msk.bf16.mxu1 %vm122_vm0, %v534_v14 }
  0x22   :  { %499 = vmatmul.mubr.msk.bf16.gmra.mrb[4].mxu0 %vm122_vm0, %v535_v15  ;;  %507 = vmatmul.mubr.msk.bf16.gmra.mrb[4].mxu1 %vm122_vm0, %v536_v16 }
  0xed   :  { %v496_v18 = vpop.f32.mrb[0].mxu0  ;;  %v504_v19 = vpop.f32.mrb[0].mxu1 }
  0xee   :  { %v196_v20 = vadd.f32 %v496_v18, %v366_v17  ;;  %v228_v21 = vadd.f32 %v504_v19, %v366_v17  ;;  %v187_v22 = vpop.f32.mrb[1].mxu0  ;;  %v219_v23 = vpop.f32.mrb[1].mxu1 }
  0xef   :  { %v188_v24 = vadd.f32 %v366_v17, %v187_v22  ;;  %v220_v25 = vadd.f32 %v366_v17, %v219_v23  ;;  %v497_v26 = vpop.f32.mrb[2].mxu0  ;;  %v505_v27 = vpop.f32.mrb[2].mxu1 }
  0xf0   :  { %v252_v28 = vmax.f32 %v196_v20, 0.0  ;;  %v260_v29 = vmax.f32 %v228_v21, 0.0  ;;  %v199_v30 = vadd.f32 %v497_v26, %v366_v17  ;;  %v231_v31 = vadd.f32 %v505_v27, %v366_v17  ;;  %v190_v32 = vpop.f32.mrb[3].mxu0  ;;  %v222_v33 = vpop.f32.mrb[3].mxu1 }
  0xf1   :  { %v250_v34 = vmax.f32 %v188_v24, 0.0  ;;  %v258_v35 = vmax.f32 %v220_v25, 0.0  ;;  %v191_v36 = vadd.f32 %v366_v17, %v190_v32  ;;  %v223_v37 = vadd.f32 %v366_v17, %v222_v33 }
  0xf2   :  { %v253_v38 = vmax.f32 %v199_v30, 0.0  ;;  %v261_v39 = vmax.f32 %v231_v31, 0.0  ;;  %v268_v42 = vmin.f32 %v252_v28, 6.0  ;;  %v276_v43 = vmin.f32 %v260_v29, 6.0 }
  0xf3   :  { %v251_v40 = vmax.f32 %v191_v36, 0.0  ;;  %v259_v41 = vmax.f32 %v223_v37, 0.0  ;;  %v266_v46 = vmin.f32 %v250_v34, 6.0  ;;  %v274_v47 = vmin.f32 %v258_v35, 6.0 }
  0xf4   :  { %v269_v44 = vmin.f32 %v253_v38, 6.0  ;;  %v277_v45 = vmin.f32 %v261_v39, 6.0 }
  0xf5   :  { %v267_v48 = vmin.f32 %v251_v40, 6.0  ;;  %v275_v49 = vmin.f32 %v259_v41, 6.0  ;;  %v500_v50 = vpop.f32.mrb[4].mxu0  ;;  %v508_v51 = vpop.f32.mrb[4].mxu1 }
  0xf6   :  { %v429_v52 = vpack.c.bf16 %v269_v44, %v268_v42  ;;  %v449_v53 = vpack.c.bf16 %v277_v45, %v276_v43  ;;  %v212_v54 = vadd.f32 %v500_v50, %v366_v17  ;;  %v244_v55 = vadd.f32 %v508_v51, %v366_v17  ;;  %v203_v56 = vpop.f32.mrb[5].mxu0  ;;  %v235_v57 = vpop.f32.mrb[5].mxu1 }
  0xf7   :  { %v424_v58 = vpack.c.bf16 %v267_v48, %v266_v46  ;;  %v444_v59 = vpack.c.bf16 %v275_v49, %v274_v47  ;;  %v204_v60 = vadd.f32 %v366_v17, %v203_v56  ;;  %v236_v61 = vadd.f32 %v366_v17, %v235_v57  ;;  %v501_v62 = vpop.f32.mrb[6].mxu0  ;;  %v509_v63 = vpop.f32.mrb[6].mxu1 }
  0xf8   :  { %461 = vst [vmem:[%s638_s3 + $0x8] sm:$0xff] %v429_v52   ;;  %465 = vst [vmem:[%s638_s3 + $0x28] sm:$0xff] %v449_v53   ;;  %v256_v0 = vmax.f32 %v212_v54, 0.0  ;;  %v264_v1 = vmax.f32 %v244_v55, 0.0  ;;  %v215_v2 = vadd.f32 %v501_v62, %v366_v17  ;;  %v247_v3 = vadd.f32 %v509_v63, %v366_v17  ;;  %v206_v4 = vpop.f32.mrb[7].mxu0  ;;  %v238_v5 = vpop.f32.mrb[7].mxu1 }
  0xf9   :  { %425 = vst [vmem:[%s638_s3] sm:$0xff] %v424_v58   ;;  %464 = vst [vmem:[%s638_s3 + $0x20] sm:$0xff] %v444_v59   ;;  %v254_v6 = vmax.f32 %v204_v60, 0.0  ;;  %v262_v7 = vmax.f32 %v236_v61, 0.0  ;;  %v207_v8 = vadd.f32 %v366_v17, %v206_v4  ;;  %v239_v9 = vadd.f32 %v366_v17, %v238_v5 }
  0xfa   :  { %v257_v10 = vmax.f32 %v215_v2, 0.0  ;;  %v265_v11 = vmax.f32 %v247_v3, 0.0  ;;  %v272_v14 = vmin.f32 %v256_v0, 6.0  ;;  %v280_v15 = vmin.f32 %v264_v1, 6.0 }
  0xfb   :  { %v255_v12 = vmax.f32 %v207_v8, 0.0  ;;  %v263_v13 = vmax.f32 %v239_v9, 0.0  ;;  %v270_v19 = vmin.f32 %v254_v6, 6.0  ;;  %v278_v20 = vmin.f32 %v262_v7, 6.0 }
  0xfc   :  { %v273_v16 = vmin.f32 %v257_v10, 6.0  ;;  %v281_v18 = vmin.f32 %v265_v11, 6.0 }
  0xfd   :  { %v271_v21 = vmin.f32 %v255_v12, 6.0  ;;  %v279_v22 = vmin.f32 %v263_v13, 6.0 }
  0xfe   :  { %v439_v23 = vpack.c.bf16 %v273_v16, %v272_v14  ;;  %v459_v24 = vpack.c.bf16 %v281_v18, %v280_v15 }
  0xff   :  { %v434_v25 = vpack.c.bf16 %v271_v21, %v270_v19  ;;  %v454_v26 = vpack.c.bf16 %v279_v22, %v278_v20 }
 0x100   :  { %463 = vst [vmem:[%s638_s3 + $0x18] sm:$0xff] %v439_v23   ;;  %467 = vst [vmem:[%s638_s3 + $0x38] sm:$0xff] %v459_v24  }
 0x101   :  { %462 = vst [vmem:[%s638_s3 + $0x10] sm:$0xff] %v434_v25   ;;  %466 = vst [vmem:[%s638_s3 + $0x30] sm:$0xff] %v454_v26  }

// kernel: _forward.54
= control target key start
LH: loop header
LB: loop body
LE: loop exit
PB: predicated region body
PF: predicated region fallthrough
CT: control target
= control target key end

     0   :  { %s739_s1 = inlined_call_operand.vmem [shape: bf16[128,128], index: 1, kind: input, shape index: {}]   ;;  %s740_s0 = inlined_call_operand.vmem [shape: bf16[128,128], index: 0, kind: input, shape index: {}]   ;;  %s741_s3 = inlined_call_operand.vmem [shape: bf16[128,128], index: 3, kind: input, shape index: {}]   ;;  %s742_s2 = inlined_call_operand.vmem [shape: f32[1,128], index: 2, kind: input, shape index: {}]   ;;  %s743_s4 = inlined_call_operand.vmem [shape: bf16[128,128], index: 4, kind: output, shape index: {}]  }
   0x1   :  { %v581_v0 = vld [vmem:[%s739_s1] sm:$0xff]   ;;  %v582_v1 = vld [vmem:[%s739_s1 + $0x8] sm:$0xff]   ;;  %v583_v2 = vld [vmem:[%s739_s1 + $0x10] sm:$0xff]  }
   0x2   :  { %533 = vmatprep.subr.bf16.mxu0 %v581_v0  ;;  %565 = vmatprep.subr.bf16.mxu1 %v581_v0  ;;  %v584_v3 = vld [vmem:[%s739_s1 + $0x18] sm:$0xff]   ;;  %v589_v4 = vld [vmem:[%s740_s0] sm:$0xff]   ;;  %v586_v7 = vld [vmem:[%s739_s1 + $0x28] sm:$0xff]  }
   0x3   :  { %534 = vmatpush3.bf16.msra.mxu0 %v581_v0  ;;  %573 = vmatpush3.bf16.msra.mxu1 %v581_v0  ;;  %v590_v5 = vld [vmem:[%s740_s0 + $0x20] sm:$0xff]   ;;  %v587_v8 = vld [vmem:[%s739_s1 + $0x30] sm:$0xff]   ;;  %v588_v9 = vld [vmem:[%s739_s1 + $0x38] sm:$0xff]  }
   0x4   :  { %535 = vmatprep.subr.bf16.mxu0 %v582_v1  ;;  %566 = vmatprep.subr.bf16.mxu1 %v582_v1  ;;  %v585_v6 = vld [vmem:[%s739_s1 + $0x20] sm:$0xff]   ;;  %v591_v10 = vld [vmem:[%s740_s0 + $0x8] sm:$0xff]   ;;  %v593_v12 = vld [vmem:[%s740_s0 + $0x10] sm:$0xff]  }
   0x5   :  { %549 = vmatprep.mubr.bf16.mxu0 %v589_v4  ;;  %557 = vmatprep.mubr.bf16.mxu1 %v590_v5  ;;  %v592_v11 = vld [vmem:[%s740_s0 + $0x28] sm:$0xff]   ;;  %v594_v13 = vld [vmem:[%s740_s0 + $0x30] sm:$0xff]   ;;  %v595_v14 = vld [vmem:[%s740_s0 + $0x18] sm:$0xff]  }
   0x6   :  { %v596_v15 = vld [vmem:[%s740_s0 + $0x38] sm:$0xff]   ;;  %v503_v16 = vld [vmem:[%s741_s3 + $0x8] sm:$0xff]   ;;  %v432_v18 = vld [vmem:[%s741_s3] sm:$0xff]  }
   0x7   :  { %536 = vmatpush3.bf16.msra.mxu0 %v582_v1  ;;  %574 = vmatpush3.bf16.msra.mxu1 %v582_v1  ;;  %v507_v17 = vld [vmem:[%s741_s3 + $0x28] sm:$0xff]   ;;  %v506_v19 = vld [vmem:[%s741_s3 + $0x20] sm:$0xff]   ;;  %v437_v22 = vunpack.c.l.bf16 %v503_v16  ;;  %v433_v25 = vunpack.c.l.bf16 %v432_v18  ;;  %v438_v31 = vunpack.c.h.bf16 %v503_v16  ;;  %v434_v37 = vunpack.c.h.bf16 %v432_v18  ;;  %v505_v45 = vld [vmem:[%s741_s3 + $0x18] sm:$0xff]  }
   0x8   :  { %537 = vmatprep.subr.bf16.mxu0 %v583_v2  ;;  %567 = vmatprep.subr.bf16.mxu1 %v583_v2  ;;  %v685_v20 = vld [vmem:[%s742_s2] ss:$0 sm:$0xff]  ;;  %v453_v24 = vunpack.c.l.bf16 %v507_v17  ;;  %v449_v26 = vunpack.c.l.bf16 %v506_v19  ;;  %v454_v32 = vunpack.c.h.bf16 %v507_v17  ;;  %v450_v38 = vunpack.c.h.bf16 %v506_v19  ;;  %v509_v46 = vld [vmem:[%s741_s3 + $0x38] sm:$0xff]   ;;  %v504_v51 = vld [vmem:[%s741_s3 + $0x10] sm:$0xff]  }
   0x9   :  { %v508_v52 = vld [vmem:[%s741_s3 + $0x30] sm:$0xff]   ;;  %v445_v59 = vunpack.c.l.bf16 %v505_v45  ;;  %v461_v60 = vunpack.c.l.bf16 %v509_v46  ;;  %v441_v1 = vunpack.c.l.bf16 %v504_v51 }
   0xb   :  { %538 = vmatpush3.bf16.msra.mxu0 %v583_v2  ;;  %575 = vmatpush3.bf16.msra.mxu1 %v583_v2  ;;  %v457_v2 = vunpack.c.l.bf16 %v508_v52 }
   0xc   :  { %539 = vmatprep.subr.bf16.mxu0 %v584_v3  ;;  %568 = vmatprep.subr.bf16.mxu1 %v584_v3 }
   0xf   :  { %540 = vmatpush3.bf16.msra.mxu0 %v584_v3  ;;  %576 = vmatpush3.bf16.msra.mxu1 %v584_v3 }
  0x10   :  { %541 = vmatprep.subr.bf16.mxu0 %v585_v6  ;;  %569 = vmatprep.subr.bf16.mxu1 %v585_v6 }
  0x13   :  { %542 = vmatpush3.bf16.msra.mxu0 %v585_v6  ;;  %577 = vmatpush3.bf16.msra.mxu1 %v585_v6 }
  0x14   :  { %543 = vmatprep.subr.bf16.mxu0 %v586_v7  ;;  %570 = vmatprep.subr.bf16.mxu1 %v586_v7 }
  0x17   :  { %544 = vmatpush3.bf16.msra.mxu0 %v586_v7  ;;  %578 = vmatpush3.bf16.msra.mxu1 %v586_v7  ;;  %v446_v7 = vunpack.c.h.bf16 %v505_v45 }
  0x18   :  { %545 = vmatprep.subr.bf16.mxu0 %v587_v8  ;;  %571 = vmatprep.subr.bf16.mxu1 %v587_v8 }
  0x1b   :  { %546 = vmatpush3.bf16.msra.mxu0 %v587_v8  ;;  %579 = vmatpush3.bf16.msra.mxu1 %v587_v8  ;;  %v462_v8 = vunpack.c.h.bf16 %v509_v46 }
  0x1c   :  { %547 = vmatprep.subr.bf16.mxu0 %v588_v9  ;;  %572 = vmatprep.subr.bf16.mxu1 %v588_v9 }
  0x1f   :  { %548 = vmatpush3.bf16.msra.mxu0 %v588_v9  ;;  %580 = vmatpush3.bf16.msra.mxu1 %v588_v9 }
  0x22   :  { %550 = vmatmul.mubr.bf16.vlgmr.msra.gmra.mrb[0].mxu0 %v591_v10  ;;  %558 = vmatmul.mubr.bf16.vlgmr.msra.gmra.mrb[0].mxu1 %v592_v11 }
  0x23   :  { %553 = vmatprep.mubr.bf16.mxu0 %v593_v12  ;;  %561 = vmatprep.mubr.bf16.mxu1 %v594_v13  ;;  %v442_v13 = vunpack.c.h.bf16 %v504_v51 }
  0x2a   :  { %554 = vmatmul.mubr.bf16.gmra.mrb[4].mxu0 %v595_v14  ;;  %562 = vmatmul.mubr.bf16.gmra.mrb[4].mxu1 %v596_v15  ;;  %v458_v14 = vunpack.c.h.bf16 %v508_v52 }
  0xf5   :  { %v551_v21 = vpop.f32.mrb[0].mxu0  ;;  %v559_v23 = vpop.f32.mrb[0].mxu1 }
  0xf6   :  { %v196_v27 = vadd.f32 %v551_v21, %v685_v20  ;;  %v228_v28 = vadd.f32 %v559_v23, %v685_v20  ;;  %v187_v29 = vpop.f32.mrb[1].mxu0  ;;  %v219_v30 = vpop.f32.mrb[1].mxu1 }
  0xf7   :  { %v188_v33 = vadd.f32 %v685_v20, %v187_v29  ;;  %v220_v34 = vadd.f32 %v685_v20, %v219_v30  ;;  %v552_v35 = vpop.f32.mrb[2].mxu0  ;;  %v560_v36 = vpop.f32.mrb[2].mxu1 }
  0xf8   :  { %v199_v39 = vadd.f32 %v552_v35, %v685_v20  ;;  %v231_v40 = vadd.f32 %v560_v36, %v685_v20  ;;  %v190_v41 = vpop.f32.mrb[3].mxu0  ;;  %v222_v42 = vpop.f32.mrb[3].mxu1  ;;  %v284_v47 = vadd.f32 %v437_v22, %v196_v27  ;;  %v292_v48 = vadd.f32 %v453_v24, %v228_v28 }
  0xf9   :  { %v191_v43 = vadd.f32 %v685_v20, %v190_v41  ;;  %v223_v44 = vadd.f32 %v685_v20, %v222_v42  ;;  %v282_v53 = vadd.f32 %v433_v25, %v188_v33  ;;  %v290_v54 = vadd.f32 %v449_v26, %v220_v34 }
  0xfa   :  { %v285_v49 = vadd.f32 %v438_v31, %v199_v39  ;;  %v293_v50 = vadd.f32 %v454_v32, %v231_v40 }
  0xfb   :  { %v283_v55 = vadd.f32 %v434_v37, %v191_v43  ;;  %v291_v56 = vadd.f32 %v450_v38, %v223_v44 }
  0xfc   :  { %v471_v57 = vpack.c.bf16 %v285_v49, %v284_v47  ;;  %v491_v58 = vpack.c.bf16 %v293_v50, %v292_v48 }
  0xfd   :  { %v466_v61 = vpack.c.bf16 %v283_v55, %v282_v53  ;;  %v486_v62 = vpack.c.bf16 %v291_v56, %v290_v54  ;;  %v555_v63 = vpop.f32.mrb[4].mxu0  ;;  %v563_v0 = vpop.f32.mrb[4].mxu1 }
  0xfe   :  { %510 = vst [vmem:[%s743_s4 + $0x8] sm:$0xff] %v471_v57   ;;  %514 = vst [vmem:[%s743_s4 + $0x28] sm:$0xff] %v491_v58   ;;  %v212_v3 = vadd.f32 %v555_v63, %v685_v20  ;;  %v244_v4 = vadd.f32 %v563_v0, %v685_v20  ;;  %v203_v5 = vpop.f32.mrb[5].mxu0  ;;  %v235_v6 = vpop.f32.mrb[5].mxu1 }
  0xff   :  { %467 = vst [vmem:[%s743_s4] sm:$0xff] %v466_v61   ;;  %513 = vst [vmem:[%s743_s4 + $0x20] sm:$0xff] %v486_v62   ;;  %v204_v9 = vadd.f32 %v685_v20, %v203_v5  ;;  %v236_v10 = vadd.f32 %v685_v20, %v235_v6  ;;  %v556_v11 = vpop.f32.mrb[6].mxu0  ;;  %v564_v12 = vpop.f32.mrb[6].mxu1 }
 0x100   :  { %v215_v15 = vadd.f32 %v556_v11, %v685_v20  ;;  %v247_v16 = vadd.f32 %v564_v12, %v685_v20  ;;  %v206_v17 = vpop.f32.mrb[7].mxu0  ;;  %v238_v18 = vpop.f32.mrb[7].mxu1  ;;  %v288_v22 = vadd.f32 %v445_v59, %v212_v3  ;;  %v296_v23 = vadd.f32 %v461_v60, %v244_v4 }
 0x101   :  { %v207_v19 = vadd.f32 %v685_v20, %v206_v17  ;;  %v239_v21 = vadd.f32 %v685_v20, %v238_v18  ;;  %v286_v26 = vadd.f32 %v441_v1, %v204_v9  ;;  %v294_v27 = vadd.f32 %v457_v2, %v236_v10 }
 0x102   :  { %v289_v24 = vadd.f32 %v446_v7, %v215_v15  ;;  %v297_v25 = vadd.f32 %v462_v8, %v247_v16 }
 0x103   :  { %v287_v28 = vadd.f32 %v442_v13, %v207_v19  ;;  %v295_v29 = vadd.f32 %v458_v14, %v239_v21 }
 0x104   :  { %v481_v30 = vpack.c.bf16 %v289_v24, %v288_v22  ;;  %v501_v31 = vpack.c.bf16 %v297_v25, %v296_v23 }
 0x105   :  { %v476_v32 = vpack.c.bf16 %v287_v28, %v286_v26  ;;  %v496_v33 = vpack.c.bf16 %v295_v29, %v294_v27 }
 0x106   :  { %512 = vst [vmem:[%s743_s4 + $0x18] sm:$0xff] %v481_v30   ;;  %516 = vst [vmem:[%s743_s4 + $0x38] sm:$0xff] %v501_v31  }
 0x107   :  { %511 = vst [vmem:[%s743_s4 + $0x10] sm:$0xff] %v476_v32   ;;  %515 = vst [vmem:[%s743_s4 + $0x30] sm:$0xff] %v496_v33  }

// kernel: _forward.55
= control target key start
LH: loop header
LB: loop body
LE: loop exit
PB: predicated region body
PF: predicated region fallthrough
CT: control target
= control target key end

     0   :  { %s634_s1 = inlined_call_operand.vmem [shape: bf16[128,128], index: 1, kind: input, shape index: {}]   ;;  %s635_s0 = inlined_call_operand.vmem [shape: bf16[128,128], index: 0, kind: input, shape index: {}]   ;;  %s636_s2 = inlined_call_operand.vmem [shape: f32[1,128], index: 2, kind: input, shape index: {}]   ;;  %s637_s3 = inlined_call_operand.vmem [shape: bf16[128,128], index: 3, kind: output, shape index: {}]  }
   0x1   :  { %v523_v0 = vld [vmem:[%s634_s1] sm:$0xff]   ;;  %v524_v1 = vld [vmem:[%s634_s1 + $0x8] sm:$0xff]   ;;  %v525_v2 = vld [vmem:[%s634_s1 + $0x10] sm:$0xff]  }
   0x2   :  { %475 = vmatprep.subr.bf16.mxu0 %v523_v0  ;;  %507 = vmatprep.subr.bf16.mxu1 %v523_v0  ;;  %v526_v3 = vld [vmem:[%s634_s1 + $0x18] sm:$0xff]   ;;  %v531_v4 = vld [vmem:[%s635_s0] sm:$0xff]   ;;  %v528_v7 = vld [vmem:[%s634_s1 + $0x28] sm:$0xff]  }
   0x3   :  { %476 = vmatpush3.bf16.msra.mxu0 %v523_v0  ;;  %515 = vmatpush3.bf16.msra.mxu1 %v523_v0  ;;  %v532_v5 = vld [vmem:[%s635_s0 + $0x20] sm:$0xff]   ;;  %v529_v8 = vld [vmem:[%s634_s1 + $0x30] sm:$0xff]   ;;  %v530_v9 = vld [vmem:[%s634_s1 + $0x38] sm:$0xff]  }
   0x4   :  { %477 = vmatprep.subr.bf16.mxu0 %v524_v1  ;;  %508 = vmatprep.subr.bf16.mxu1 %v524_v1  ;;  %v527_v6 = vld [vmem:[%s634_s1 + $0x20] sm:$0xff]   ;;  %v533_v10 = vld [vmem:[%s635_s0 + $0x8] sm:$0xff]   ;;  %v535_v12 = vld [vmem:[%s635_s0 + $0x10] sm:$0xff]  }
   0x5   :  { %491 = vmatprep.mubr.bf16.mxu0 %v531_v4  ;;  %499 = vmatprep.mubr.bf16.mxu1 %v532_v5  ;;  %v534_v11 = vld [vmem:[%s635_s0 + $0x28] sm:$0xff]   ;;  %v536_v13 = vld [vmem:[%s635_s0 + $0x30] sm:$0xff]   ;;  %v537_v14 = vld [vmem:[%s635_s0 + $0x18] sm:$0xff]  }
   0x6   :  { %v538_v15 = vld [vmem:[%s635_s0 + $0x38] sm:$0xff]   ;;  %v363_v16 = vld [vmem:[%s636_s2] ss:$0 sm:$0xff] }
   0x7   :  { %478 = vmatpush3.bf16.msra.mxu0 %v524_v1  ;;  %516 = vmatpush3.bf16.msra.mxu1 %v524_v1 }
   0x8   :  { %479 = vmatprep.subr.bf16.mxu0 %v525_v2  ;;  %509 = vmatprep.subr.bf16.mxu1 %v525_v2 }
   0xb   :  { %480 = vmatpush3.bf16.msra.mxu0 %v525_v2  ;;  %517 = vmatpush3.bf16.msra.mxu1 %v525_v2 }
   0xc   :  { %481 = vmatprep.subr.bf16.mxu0 %v526_v3  ;;  %510 = vmatprep.subr.bf16.mxu1 %v526_v3 }
   0xf   :  { %482 = vmatpush3.bf16.msra.mxu0 %v526_v3  ;;  %518 = vmatpush3.bf16.msra.mxu1 %v526_v3 }
  0x10   :  { %483 = vmatprep.subr.bf16.mxu0 %v527_v6  ;;  %511 = vmatprep.subr.bf16.mxu1 %v527_v6 }
  0x13   :  { %484 = vmatpush3.bf16.msra.mxu0 %v527_v6  ;;  %519 = vmatpush3.bf16.msra.mxu1 %v527_v6 }
  0x14   :  { %485 = vmatprep.subr.bf16.mxu0 %v528_v7  ;;  %512 = vmatprep.subr.bf16.mxu1 %v528_v7 }
  0x17   :  { %486 = vmatpush3.bf16.msra.mxu0 %v528_v7  ;;  %520 = vmatpush3.bf16.msra.mxu1 %v528_v7 }
  0x18   :  { %487 = vmatprep.subr.bf16.mxu0 %v529_v8  ;;  %513 = vmatprep.subr.bf16.mxu1 %v529_v8 }
  0x1b   :  { %488 = vmatpush3.bf16.msra.mxu0 %v529_v8  ;;  %521 = vmatpush3.bf16.msra.mxu1 %v529_v8 }
  0x1c   :  { %489 = vmatprep.subr.bf16.mxu0 %v530_v9  ;;  %514 = vmatprep.subr.bf16.mxu1 %v530_v9 }
  0x1f   :  { %490 = vmatpush3.bf16.msra.mxu0 %v530_v9  ;;  %522 = vmatpush3.bf16.msra.mxu1 %v530_v9 }
  0x22   :  { %492 = vmatmul.mubr.bf16.vlgmr.msra.gmra.mrb[0].mxu0 %v533_v10  ;;  %500 = vmatmul.mubr.bf16.vlgmr.msra.gmra.mrb[0].mxu1 %v534_v11 }
  0x23   :  { %495 = vmatprep.mubr.bf16.mxu0 %v535_v12  ;;  %503 = vmatprep.mubr.bf16.mxu1 %v536_v13 }
  0x2a   :  { %496 = vmatmul.mubr.bf16.gmra.mrb[4].mxu0 %v537_v14  ;;  %504 = vmatmul.mubr.bf16.gmra.mrb[4].mxu1 %v538_v15 }
  0xf5   :  { %v493_v17 = vpop.f32.mrb[0].mxu0  ;;  %v501_v18 = vpop.f32.mrb[0].mxu1 }
  0xf6   :  { %v193_v19 = vadd.f32 %v493_v17, %v363_v16  ;;  %v225_v20 = vadd.f32 %v501_v18, %v363_v16  ;;  %v184_v21 = vpop.f32.mrb[1].mxu0  ;;  %v216_v22 = vpop.f32.mrb[1].mxu1 }
  0xf7   :  { %v185_v23 = vadd.f32 %v363_v16, %v184_v21  ;;  %v217_v24 = vadd.f32 %v363_v16, %v216_v22  ;;  %v494_v25 = vpop.f32.mrb[2].mxu0  ;;  %v502_v26 = vpop.f32.mrb[2].mxu1 }
  0xf8   :  { %v249_v27 = vmax.f32 %v193_v19, 0.0  ;;  %v257_v28 = vmax.f32 %v225_v20, 0.0  ;;  %v196_v29 = vadd.f32 %v494_v25, %v363_v16  ;;  %v228_v30 = vadd.f32 %v502_v26, %v363_v16  ;;  %v187_v31 = vpop.f32.mrb[3].mxu0  ;;  %v219_v32 = vpop.f32.mrb[3].mxu1 }
  0xf9   :  { %v247_v33 = vmax.f32 %v185_v23, 0.0  ;;  %v255_v34 = vmax.f32 %v217_v24, 0.0  ;;  %v188_v35 = vadd.f32 %v363_v16, %v187_v31  ;;  %v220_v36 = vadd.f32 %v363_v16, %v219_v32 }
  0xfa   :  { %v250_v37 = vmax.f32 %v196_v29, 0.0  ;;  %v258_v38 = vmax.f32 %v228_v30, 0.0  ;;  %v265_v41 = vmin.f32 %v249_v27, 6.0  ;;  %v273_v42 = vmin.f32 %v257_v28, 6.0 }
  0xfb   :  { %v248_v39 = vmax.f32 %v188_v35, 0.0  ;;  %v256_v40 = vmax.f32 %v220_v36, 0.0  ;;  %v263_v45 = vmin.f32 %v247_v33, 6.0  ;;  %v271_v46 = vmin.f32 %v255_v34, 6.0 }
  0xfc   :  { %v266_v43 = vmin.f32 %v250_v37, 6.0  ;;  %v274_v44 = vmin.f32 %v258_v38, 6.0 }
  0xfd   :  { %v264_v47 = vmin.f32 %v248_v39, 6.0  ;;  %v272_v48 = vmin.f32 %v256_v40, 6.0  ;;  %v497_v49 = vpop.f32.mrb[4].mxu0  ;;  %v505_v50 = vpop.f32.mrb[4].mxu1 }
  0xfe   :  { %v420_v51 = vpack.c.bf16 %v266_v43, %v265_v41  ;;  %v440_v52 = vpack.c.bf16 %v274_v44, %v273_v42  ;;  %v209_v53 = vadd.f32 %v497_v49, %v363_v16  ;;  %v241_v54 = vadd.f32 %v505_v50, %v363_v16  ;;  %v200_v55 = vpop.f32.mrb[5].mxu0  ;;  %v232_v56 = vpop.f32.mrb[5].mxu1 }
  0xff   :  { %v415_v57 = vpack.c.bf16 %v264_v47, %v263_v45  ;;  %v435_v58 = vpack.c.bf16 %v272_v48, %v271_v46  ;;  %v201_v59 = vadd.f32 %v363_v16, %v200_v55  ;;  %v233_v60 = vadd.f32 %v363_v16, %v232_v56  ;;  %v498_v61 = vpop.f32.mrb[6].mxu0  ;;  %v506_v62 = vpop.f32.mrb[6].mxu1 }
 0x100   :  { %452 = vst [vmem:[%s637_s3 + $0x8] sm:$0xff] %v420_v51   ;;  %456 = vst [vmem:[%s637_s3 + $0x28] sm:$0xff] %v440_v52   ;;  %v253_v63 = vmax.f32 %v209_v53, 0.0  ;;  %v261_v0 = vmax.f32 %v241_v54, 0.0  ;;  %v212_v1 = vadd.f32 %v498_v61, %v363_v16  ;;  %v244_v2 = vadd.f32 %v506_v62, %v363_v16  ;;  %v203_v3 = vpop.f32.mrb[7].mxu0  ;;  %v235_v4 = vpop.f32.mrb[7].mxu1 }
 0x101   :  { %416 = vst [vmem:[%s637_s3] sm:$0xff] %v415_v57   ;;  %455 = vst [vmem:[%s637_s3 + $0x20] sm:$0xff] %v435_v58   ;;  %v251_v5 = vmax.f32 %v201_v59, 0.0  ;;  %v259_v6 = vmax.f32 %v233_v60, 0.0  ;;  %v204_v7 = vadd.f32 %v363_v16, %v203_v3  ;;  %v236_v8 = vadd.f32 %v363_v16, %v235_v4 }
 0x102   :  { %v254_v9 = vmax.f32 %v212_v1, 0.0  ;;  %v262_v10 = vmax.f32 %v244_v2, 0.0  ;;  %v269_v13 = vmin.f32 %v253_v63, 6.0  ;;  %v277_v14 = vmin.f32 %v261_v0, 6.0 }
 0x103   :  { %v252_v11 = vmax.f32 %v204_v7, 0.0  ;;  %v260_v12 = vmax.f32 %v236_v8, 0.0  ;;  %v267_v18 = vmin.f32 %v251_v5, 6.0  ;;  %v275_v19 = vmin.f32 %v259_v6, 6.0 }
 0x104   :  { %v270_v15 = vmin.f32 %v254_v9, 6.0  ;;  %v278_v17 = vmin.f32 %v262_v10, 6.0 }
 0x105   :  { %v268_v20 = vmin.f32 %v252_v11, 6.0  ;;  %v276_v21 = vmin.f32 %v260_v12, 6.0 }
 0x106   :  { %v430_v22 = vpack.c.bf16 %v270_v15, %v269_v13  ;;  %v450_v23 = vpack.c.bf16 %v278_v17, %v277_v14 }
 0x107   :  { %v425_v24 = vpack.c.bf16 %v268_v20, %v267_v18  ;;  %v445_v25 = vpack.c.bf16 %v276_v21, %v275_v19 }
 0x108   :  { %454 = vst [vmem:[%s637_s3 + $0x18] sm:$0xff] %v430_v22   ;;  %458 = vst [vmem:[%s637_s3 + $0x38] sm:$0xff] %v450_v23  }
 0x109   :  { %453 = vst [vmem:[%s637_s3 + $0x10] sm:$0xff] %v425_v24   ;;  %457 = vst [vmem:[%s637_s3 + $0x30] sm:$0xff] %v445_v25  }

// kernel: _forward.57
= control target key start
LH: loop header
LB: loop body
LE: loop exit
PB: predicated region body
PF: predicated region fallthrough
CT: control target
= control target key end

     0   :  { %s304_s1 = inlined_call_operand.vmem [shape: bf16[128,128], index: 1, kind: input, shape index: {}]   ;;  %s305_s0 = inlined_call_operand.vmem [shape: bf16[32,128], index: 0, kind: input, shape index: {}]   ;;  %s306_s2 = inlined_call_operand.vmem [shape: f32[1,128], index: 2, kind: input, shape index: {}]   ;;  %s307_s3 = inlined_call_operand.vmem [shape: bf16[32,128], index: 3, kind: output, shape index: {}]  }
   0x1   :  { %v235_v0 = vld [vmem:[%s304_s1] sm:$0xff]   ;;  %v236_v1 = vld [vmem:[%s304_s1 + $0x8] sm:$0xff]   ;;  %v237_v2 = vld [vmem:[%s304_s1 + $0x10] sm:$0xff]  }
   0x2   :  { %215 = vmatprep.subr.bf16.mxu0 %v235_v0  ;;  %v238_v3 = vld [vmem:[%s304_s1 + $0x18] sm:$0xff]   ;;  %v243_v4 = vld [vmem:[%s305_s0] sm:$0xff]   ;;  %v240_v6 = vld [vmem:[%s304_s1 + $0x28] sm:$0xff]  }
   0x3   :  { %216 = vmatpush3.bf16.msra.mxu0 %v235_v0  ;;  %231 = vmatprep.mubr.bf16.mxu0 %v243_v4  ;;  %v239_v5 = vld [vmem:[%s304_s1 + $0x20] sm:$0xff]   ;;  %v241_v7 = vld [vmem:[%s304_s1 + $0x30] sm:$0xff]   ;;  %v242_v8 = vld [vmem:[%s304_s1 + $0x38] sm:$0xff]  }
   0x4   :  { %217 = vmatprep.subr.bf16.mxu0 %v236_v1  ;;  %v244_v9 = vld [vmem:[%s305_s0 + $0x8] sm:$0xff]   ;;  %v175_v11 = vld [vmem:[%s306_s2] ss:$0 sm:$0xff] }
   0x7   :  { %218 = vmatpush3.bf16.msra.mxu0 %v236_v1 }
   0x8   :  { %219 = vmatprep.subr.bf16.mxu0 %v237_v2 }
   0xb   :  { %220 = vmatpush3.bf16.msra.mxu0 %v237_v2 }
   0xc   :  { %221 = vmatprep.subr.bf16.mxu0 %v238_v3 }
   0xf   :  { %222 = vmatpush3.bf16.msra.mxu0 %v238_v3 }
  0x10   :  { %223 = vmatprep.subr.bf16.mxu0 %v239_v5 }
  0x13   :  { %224 = vmatpush3.bf16.msra.mxu0 %v239_v5 }
  0x14   :  { %225 = vmatprep.subr.bf16.mxu0 %v240_v6 }
  0x17   :  { %226 = vmatpush3.bf16.msra.mxu0 %v240_v6 }
  0x18   :  { %227 = vmatprep.subr.bf16.mxu0 %v241_v7 }
  0x1b   :  { %228 = vmatpush3.bf16.msra.mxu0 %v241_v7 }
  0x1c   :  { %229 = vmatprep.subr.bf16.mxu0 %v242_v8 }
  0x1f   :  { %230 = vmatpush3.bf16.msra.mxu0 %v242_v8 }
  0x22   :  { %232 = vmatmul.mubr.bf16.vlgmr.msra.gmra.mrb[0].mxu0 %v244_v9 }
  0xf5   :  { %v233_v10 = vpop.f32.mrb[0].mxu0 }
  0xf6   :  { %v136_v12 = vpop.f32.mrb[1].mxu0  ;;  %v145_v14 = vadd.f32 %v233_v10, %v175_v11 }
  0xf7   :  { %v234_v13 = vpop.f32.mrb[2].mxu0  ;;  %v137_v17 = vadd.f32 %v175_v11, %v136_v12 }
  0xf8   :  { %v148_v15 = vadd.f32 %v234_v13, %v175_v11  ;;  %v139_v16 = vpop.f32.mrb[3].mxu0 }
  0xf9   :  { %v140_v18 = vadd.f32 %v175_v11, %v139_v16 }
  0xfa   :  { %v202_v19 = vpack.c.bf16 %v148_v15, %v145_v14 }
  0xfb   :  { %v197_v20 = vpack.c.bf16 %v140_v18, %v137_v17 }
  0xfc   :  { %204 = vst [vmem:[%s307_s3 + $0x8] sm:$0xff] %v202_v19  }
  0xfd   :  { %198 = vst [vmem:[%s307_s3] sm:$0xff] %v197_v20  }

// kernel: _forward.53
= control target key start
LH: loop header
LB: loop body
LE: loop exit
PB: predicated region body
PF: predicated region fallthrough
CT: control target
= control target key end

     0   :  { %vm286_vm0 = vcmask 1046528   ;;  %vm435_vm1 = vcmask 1045504   ;;  %s6334_s0 = inlined_call_operand.vmem [shape: bf16[1,4,10,10,128], index: 0, kind: input, shape index: {}]   ;;  %s6335_s1 = inlined_call_operand.vmem [shape: bf16[27,128], index: 1, kind: input, shape index: {}]   ;;  %s6336_s2 = inlined_call_operand.vmem [shape: f32[1,128], index: 2, kind: input, shape index: {}]   ;;  %s6337_s3 = inlined_call_operand.vmem [shape: bf16[1,2,8,8,128], index: 3, kind: output, shape index: {}]  }
   0x1   :  { %v14_v0 = vld [vmem:[%s6334_s0] ss:$8 sps:$4 sm:$0xff]   ;;  %v3341_v1 = vld [vmem:[%s6334_s0 + $0x4] sm:$0x1]  ;;  %v17_v2 = vld [vmem:[%s6334_s0 + $0xc] sm:$0x1] }
   0x2   :  { %6622 = vst [vmem:[#allocation2_spill] sm:$0xff] %v3341_v1  ;;  %v18_v3 = vld [vmem:[%s6334_s0 + $0x10] ss:$8 sps:$4 sm:$0xff]   ;;  %v19_v4 = vld [vmem:[%s6334_s0 + $0x14] sm:$0x1]  ;;  %v3373_v13 = vunpack.c.l.bf16 %v14_v0  ;;  %v3376_v15 = vunpack.c.h.bf16 %v14_v0  ;;  %v3378_v16 = vunpack.c.l.bf16 %v17_v2 }
   0x3   :  { %v21_v5 = vld [vmem:[%s6334_s0 + $0x1c] sm:$0x1]  ;;  %v22_v6 = vld [vmem:[%s6334_s0 + $0x20] ss:$8 sps:$4 sm:$0xff]   ;;  %v23_v7 = vld [vmem:[%s6334_s0 + $0x24] sm:$0x1]  ;;  %v3391_v20 = vunpack.c.l.bf16 %v18_v3  ;;  %v3393_v21 = vunpack.c.l.bf16 %v19_v4  ;;  %v3395_v22 = vunpack.c.h.bf16 %v18_v3 }
   0x4   :  { %v25_v8 = vld [vmem:[%s6334_s0 + $0x2c] sm:$0x1]  ;;  %v26_v10 = vld [vmem:[%s6334_s0 + $0x30] ss:$8 sps:$4 sm:$0xff]   ;;  %v27_v11 = vld [vmem:[%s6334_s0 + $0x34] sm:$0x1]  ;;  %v3397_v23 = vunpack.c.l.bf16 %v21_v5  ;;  %v3408_v27 = vunpack.c.l.bf16 %v22_v6  ;;  %v3410_v28 = vunpack.c.l.bf16 %v23_v7  ;;  %v3412_v29 = vunpack.c.h.bf16 %v22_v6 }
   0x5   :  { %v29_v12 = vld [vmem:[%s6334_s0 + $0x3c] sm:$0x1]  ;;  %6623 = vst [vmem:[#allocation3_spill] sm:$0xff] %v3373_v13  ;;  %6624 = vst [vmem:[#allocation4_spill] sm:$0xff] %v3376_v15  ;;  %v30_v17 = vld [vmem:[%s6334_s0 + $0x40] ss:$8 sps:$4 sm:$0xff]   ;;  %v3414_v30 = vunpack.c.l.bf16 %v25_v8  ;;  %v3425_v34 = vunpack.c.l.bf16 %v26_v10  ;;  %v3427_v35 = vunpack.c.l.bf16 %v27_v11  ;;  %v3429_v36 = vunpack.c.h.bf16 %v26_v10 }
   0x6   :  { %6625 = vst [vmem:[#allocation5_spill] sm:$0xff] %v3378_v16  ;;  %v31_v18 = vld [vmem:[%s6334_s0 + $0x44] sm:$0x1]  ;;  %v3389_v19 = vld [vmem:[%s6334_s0 + $0x4c] sm:$0x1]  ;;  %6627 = vst [vmem:[#allocation7_spill] sm:$0xff] %v3391_v20  ;;  %v3431_v37 = vunpack.c.l.bf16 %v29_v12  ;;  %v3442_v41 = vunpack.c.l.bf16 %v30_v17  ;;  %v3446_v43 = vunpack.c.h.bf16 %v30_v17 }
   0x7   :  { %6626 = vst [vmem:[#allocation6_spill] sm:$0xff] %v3389_v19  ;;  %6628 = vst [vmem:[#allocation8_spill] sm:$0xff] %v3393_v21  ;;  %v34_v24 = vld [vmem:[%s6334_s0 + $0x50] ss:$8 sps:$4 sm:$0xff]   ;;  %v35_v25 = vld [vmem:[%s6334_s0 + $0x54] sm:$0x1]  ;;  %v3444_v42 = vunpack.c.l.bf16 %v31_v18  ;;  %v6720_v19 = vunpack.c.l.bf16 %v3341_v1 }
   0x8   :  { %6629 = vst [vmem:[#allocation9_spill] sm:$0xff] %v3395_v22  ;;  %6630 = vst [vmem:[#allocation10_spill] sm:$0xff] %v3397_v23  ;;  %v37_v26 = vld [vmem:[%s6334_s0 + $0x5c] sm:$0x1]  ;;  %v38_v31 = vld [vmem:[%s6334_s0 + $0x60] ss:$8 sps:$4 sm:$0xff]   ;;  %v3458_v48 = vunpack.c.l.bf16 %v34_v24  ;;  %v3460_v49 = vunpack.c.l.bf16 %v35_v25  ;;  %v3462_v50 = vunpack.c.h.bf16 %v34_v24 }
   0x9   :  { %6631 = vst [vmem:[#allocation11_spill] sm:$0xff] %v3408_v27  ;;  %6632 = vst [vmem:[#allocation12_spill] sm:$0xff] %v3410_v28  ;;  %v39_v32 = vld [vmem:[%s6334_s0 + $0x64] sm:$0x1]  ;;  %v41_v33 = vld [vmem:[%s6334_s0 + $0x6c] sm:$0x1]  ;;  %v3464_v51 = vunpack.c.l.bf16 %v37_v26  ;;  %v3475_v55 = vunpack.c.l.bf16 %v38_v31  ;;  %v3479_v57 = vunpack.c.h.bf16 %v38_v31 }
   0xa   :  { %6633 = vst [vmem:[#allocation13_spill] sm:$0xff] %v3412_v29  ;;  %6634 = vst [vmem:[#allocation14_spill] sm:$0xff] %v3414_v30  ;;  %v42_v38 = vld [vmem:[%s6334_s0 + $0x70] ss:$8 sps:$4 sm:$0xff]   ;;  %v43_v39 = vld [vmem:[%s6334_s0 + $0x74] sm:$0x1]  ;;  %v3477_v56 = vunpack.c.l.bf16 %v39_v32  ;;  %v3481_v58 = vunpack.c.l.bf16 %v41_v33 }
   0xb   :  { %6635 = vst [vmem:[#allocation15_spill] sm:$0xff] %v3425_v34  ;;  %6636 = vst [vmem:[#allocation16_spill] sm:$0xff] %v3427_v35  ;;  %v45_v40 = vld [vmem:[%s6334_s0 + $0x7c] sm:$0x1]  ;;  %v46_v45 = vld [vmem:[%s6334_s0 + $0x80] ss:$8 sps:$4 sm:$0xff]   ;;  %v3492_v62 = vunpack.c.l.bf16 %v42_v38  ;;  %v3494_v63 = vunpack.c.l.bf16 %v43_v39  ;;  %v3496_v0 = vunpack.c.h.bf16 %v42_v38 }
   0xc   :  { %6637 = vst [vmem:[#allocation17_spill] sm:$0xff] %v3429_v36  ;;  %6638 = vst [vmem:[#allocation18_spill] sm:$0xff] %v3431_v37  ;;  %v47_v46 = vld [vmem:[%s6334_s0 + $0x84] sm:$0x1]  ;;  %v49_v47 = vld [vmem:[%s6334_s0 + $0x8c] sm:$0x1]  ;;  %v3498_v2 = vunpack.c.l.bf16 %v45_v40  ;;  %v3509_v6 = vunpack.c.l.bf16 %v46_v45  ;;  %v3513_v8 = vunpack.c.h.bf16 %v46_v45 }
   0xd   :  { %6639 = vst [vmem:[#allocation19_spill] sm:$0xff] %v3442_v41  ;;  %6640 = vst [vmem:[#allocation20_spill] sm:$0xff] %v3444_v42  ;;  %v50_v52 = vld [vmem:[%s6334_s0 + $0x90] ss:$8 sps:$4 sm:$0xff]   ;;  %v51_v53 = vld [vmem:[%s6334_s0 + $0x94] sm:$0x1]  ;;  %v3511_v7 = vunpack.c.l.bf16 %v47_v46  ;;  %v3515_v10 = vunpack.c.l.bf16 %v49_v47 }
   0xe   :  { %6641 = vst [vmem:[#allocation21_spill] sm:$0xff] %v3446_v43  ;;  %6642 = vst [vmem:[#allocation22_spill] sm:$0xff] %v3458_v48  ;;  %v53_v54 = vld [vmem:[%s6334_s0 + $0x9c] sm:$0x1]  ;;  %v54_v59 = vld [vmem:[%s6334_s0 + $0xa0] ss:$8 sps:$4 sm:$0xff]   ;;  %v3526_v18 = vunpack.c.l.bf16 %v50_v52  ;;  %v3528_v24 = vunpack.c.l.bf16 %v51_v53  ;;  %v3530_v25 = vunpack.c.h.bf16 %v50_v52 }
   0xf   :  { %6643 = vst [vmem:[#allocation23_spill] sm:$0xff] %v3460_v49  ;;  %6644 = vst [vmem:[#allocation24_spill] sm:$0xff] %v3462_v50  ;;  %v55_v60 = vld [vmem:[%s6334_s0 + $0xa4] sm:$0x1]  ;;  %v57_v61 = vld [vmem:[%s6334_s0 + $0xac] sm:$0x1]  ;;  %v3532_v26 = vunpack.c.l.bf16 %v53_v54  ;;  %v3543_v38 = vunpack.c.l.bf16 %v54_v59  ;;  %v3547_v40 = vunpack.c.h.bf16 %v54_v59 }
  0x10   :  { %6645 = vst [vmem:[#allocation25_spill] sm:$0xff] %v3464_v51  ;;  %6646 = vst [vmem:[#allocation26_spill] sm:$0xff] %v3475_v55  ;;  %v58_v3 = vld [vmem:[%s6334_s0 + $0xb0] ss:$8 sps:$4 sm:$0xff]   ;;  %v59_v4 = vld [vmem:[%s6334_s0 + $0xb4] sm:$0x1]  ;;  %v3545_v39 = vunpack.c.l.bf16 %v55_v60  ;;  %v3549_v45 = vunpack.c.l.bf16 %v57_v61 }
  0x11   :  { %6647 = vst [vmem:[#allocation27_spill] sm:$0xff] %v3477_v56  ;;  %6648 = vst [vmem:[#allocation28_spill] sm:$0xff] %v3479_v57  ;;  %v61_v5 = vld [vmem:[%s6334_s0 + $0xbc] sm:$0x1]  ;;  %v62_v11 = vld [vmem:[%s6334_s0 + $0xc0] ss:$8 sps:$4 sm:$0xff]   ;;  %v3560_v53 = vunpack.c.l.bf16 %v58_v3  ;;  %v3562_v54 = vunpack.c.l.bf16 %v59_v4  ;;  %v3564_v59 = vunpack.c.h.bf16 %v58_v3 }
  0x12   :  { %6649 = vst [vmem:[#allocation29_spill] sm:$0xff] %v3481_v58  ;;  %6650 = vst [vmem:[#allocation30_spill] sm:$0xff] %v3492_v62  ;;  %v63_v12 = vld [vmem:[%s6334_s0 + $0xc4] sm:$0x1]  ;;  %v65_v17 = vld [vmem:[%s6334_s0 + $0xcc] sm:$0x1]  ;;  %v3566_v60 = vunpack.c.l.bf16 %v61_v5  ;;  %v3579_v9 = vunpack.c.l.bf16 %v62_v11  ;;  %v3583_v3 = vunpack.c.h.bf16 %v62_v11 }
  0x13   :  { %6651 = vst [vmem:[#allocation31_spill] sm:$0xff] %v3494_v63  ;;  %6652 = vst [vmem:[#allocation32_spill] sm:$0xff] %v3496_v0  ;;  %v66_v31 = vld [vmem:[%s6334_s0 + $0xd0] ss:$8 sps:$4 sm:$0xff]   ;;  %v67_v32 = vld [vmem:[%s6334_s0 + $0xd4] sm:$0x1]  ;;  %v3581_v4 = vunpack.c.l.bf16 %v63_v12  ;;  %v3585_v5 = vunpack.c.l.bf16 %v65_v17 }
  0x14   :  { %6653 = vst [vmem:[#allocation33_spill] sm:$0xff] %v3498_v2  ;;  %6654 = vst [vmem:[#allocation34_spill] sm:$0xff] %v3509_v6  ;;  %v69_v33 = vld [vmem:[%s6334_s0 + $0xdc] sm:$0x1]  ;;  %v70_v46 = vld [vmem:[%s6334_s0 + $0xe0] ss:$8 sps:$4 sm:$0xff]   ;;  %v3598_v12 = vunpack.c.l.bf16 %v67_v32  ;;  %v3600_v11 = vunpack.c.h.bf16 %v66_v31 }
  0x15   :  { %6655 = vst [vmem:[#allocation35_spill] sm:$0xff] %v3511_v7  ;;  %6656 = vst [vmem:[#allocation36_spill] sm:$0xff] %v3513_v8  ;;  %v71_v47 = vld [vmem:[%s6334_s0 + $0xe4] sm:$0x1]  ;;  %v73_v52 = vld [vmem:[%s6334_s0 + $0xec] sm:$0x1]  ;;  %v3602_v17 = vunpack.c.l.bf16 %v69_v33 }
  0x16   :  { %6657 = vst [vmem:[#allocation37_spill] sm:$0xff] %v3515_v10  ;;  %6658 = vst [vmem:[#allocation38_spill] sm:$0xff] %v3526_v18  ;;  %v74_v61 = vld [vmem:[%s6334_s0 + $0xf0] ss:$8 sps:$4 sm:$0xff]   ;;  %v3574_v44 = vld [vmem:[%s6334_s0 + $0xf4] sm:$0x1]  ;;  %v3615_v32 = vunpack.c.l.bf16 %v71_v47  ;;  %v3619_v33 = vunpack.c.l.bf16 %v73_v52 }
  0x17   :  { %6659 = vst [vmem:[#allocation39_spill] sm:$0xff] %v3528_v24  ;;  %6660 = vst [vmem:[#allocation40_spill] sm:$0xff] %v3530_v25  ;;  %v77_v14 = vld [vmem:[%s6334_s0 + $0xfc] sm:$0x1] }
  0x18   :  { %6661 = vst [vmem:[#allocation41_spill] sm:$0xff] %v3532_v26  ;;  %6662 = vst [vmem:[#allocation42_spill] sm:$0xff] %v3543_v38  ;;  %v3635_v52 = vunpack.c.l.bf16 %v77_v14  ;;  %v3265_v14 = vld [vmem:[%s6335_s1] sm:$0xff]  }
  0x19   :  { %6663 = vst [vmem:[#allocation43_spill] sm:$0xff] %v3545_v39  ;;  %6664 = vst [vmem:[#allocation44_spill] sm:$0xff] %v3547_v40  ;;  %v3596_v39 = vunpack.c.l.bf16 %v66_v31  ;;  %v3617_v31 = vunpack.c.h.bf16 %v70_v46 }
  0x1a   :  { %6665 = vst [vmem:[#allocation45_spill] sm:$0xff] %v3549_v45  ;;  %6666 = vst [vmem:[#allocation46_spill] sm:$0xff] %v3560_v53  ;;  %v81_v45 = vld [vmem:[%s6334_s0 + $0x10c] sm:$0x1] }
  0x1b   :  { %6667 = vst [vmem:[#allocation47_spill] sm:$0xff] %v3562_v54  ;;  %6668 = vst [vmem:[#allocation48_spill] sm:$0xff] %v3564_v59  ;;  %v79_v54 = vld [vmem:[%s6334_s0 + $0x104] sm:$0x1] }
  0x1c   :  { %6669 = vst [vmem:[#allocation49_spill] sm:$0xff] %v3566_v60  ;;  %6670 = vst [vmem:[#allocation50_spill] sm:$0xff] %v3574_v44  ;;  %v78_v60 = vld [vmem:[%s6334_s0 + $0x100] ss:$8 sps:$4 sm:$0xff]  }
  0x1d   :  { %6671 = vst [vmem:[#allocation51_spill] sm:$0xff] %v3579_v9  ;;  %6672 = vst [vmem:[#allocation52_spill] sm:$0xff] %v3581_v4  ;;  %v83_v4 = vld [vmem:[%s6334_s0 + $0x114] sm:$0x1]  ;;  %v3613_v9 = vunpack.c.l.bf16 %v70_v46  ;;  %v3633_v46 = vunpack.c.h.bf16 %v74_v61  ;;  %v3647_v59 = vunpack.c.h.bf16 %v78_v60 }
  0x1e   :  { %6673 = vst [vmem:[#allocation53_spill] sm:$0xff] %v3583_v3  ;;  %6674 = vst [vmem:[#allocation54_spill] sm:$0xff] %v3585_v5  ;;  %v82_v5 = vld [vmem:[%s6334_s0 + $0x110] ss:$8 sps:$4 sm:$0xff]   ;;  %v85_v3 = vld [vmem:[%s6334_s0 + $0x11c] sm:$0x1]  ;;  %v3656_v47 = vunpack.c.l.bf16 %v83_v4 }
  0x1f   :  { %6675 = vst [vmem:[#allocation55_spill] sm:$0xff] %v3596_v39  ;;  %6676 = vst [vmem:[#allocation56_spill] sm:$0xff] %v3598_v12  ;;  %v87_v12 = vld [vmem:[%s6334_s0 + $0x124] sm:$0x1]  ;;  %v3630_v39 = vunpack.c.l.bf16 %v74_v61  ;;  %v3654_v61 = vunpack.c.l.bf16 %v82_v5  ;;  %v3660_v44 = vunpack.c.l.bf16 %v85_v3  ;;  %v3266_v3 = vunpack.c.l.bf16 %v3265_v14 }
  0x20   :  { %6677 = vst [vmem:[#allocation57_spill] sm:$0xff] %v3600_v11  ;;  %6678 = vst [vmem:[#allocation58_spill] sm:$0xff] %v3602_v17  ;;  %v86_v17 = vld [vmem:[%s6334_s0 + $0x120] ss:$8 sps:$4 sm:$0xff]   ;;  %v89_v11 = vld [vmem:[%s6334_s0 + $0x12c] sm:$0x1] }
  0x21   :  { %6679 = vst [vmem:[#allocation59_spill] sm:$0xff] %v3613_v9  ;;  %6680 = vst [vmem:[#allocation60_spill] sm:$0xff] %v3615_v32  ;;  %v3643_v32 = vunpack.c.l.bf16 %v78_v60  ;;  %v3645_v9 = vunpack.c.l.bf16 %v79_v54  ;;  %v3664_v54 = vunpack.c.l.bf16 %v87_v12  ;;  %v3666_v60 = vunpack.c.h.bf16 %v86_v17  ;;  %v176_v12 = vld [vmem:[%s6335_s1 + $0x8] sm:$0xf] }
  0x22   :  { %6681 = vst [vmem:[#allocation61_spill] sm:$0xff] %v3617_v31  ;;  %6682 = vst [vmem:[#allocation62_spill] sm:$0xff] %v3619_v33  ;;  %v90_v33 = vld [vmem:[%s6334_s0 + $0x130] ss:$8 sps:$4 sm:$0xff]   ;;  %v91_v31 = vld [vmem:[%s6334_s0 + $0x134] sm:$0x1] }
  0x23   :  { %6683 = vst [vmem:[#allocation63_spill] sm:$0xff] %v3630_v39  ;;  %6684 = vst [vmem:[#allocation64_spill] sm:$0xff] %v3633_v46  ;;  %v3649_v39 = vunpack.c.l.bf16 %v81_v45  ;;  %v3662_v46 = vunpack.c.l.bf16 %v86_v17  ;;  %v6697_v45 = vlaneseq  ;;  %v3676_v4 = vunpack.c.l.bf16 %v90_v33  ;;  %v177_v17 = vld [vmem:[%s6335_s1 + $0xc] sm:$0x3] }
  0x24   :  { %6685 = vst [vmem:[#allocation65_spill] sm:$0xff] %v3635_v52  ;;  %6686 = vst [vmem:[#allocation66_spill] sm:$0xff] %v3643_v32  ;;  %v3658_v52 = vunpack.c.h.bf16 %v82_v5  ;;  %v3678_v5 = vunpack.c.l.bf16 %v91_v31  ;;  %v3710_v32 = vunpack.c.l.bf16 %v177_v17 }
  0x25   :  { %6687 = vst [vmem:[#allocation67_spill] sm:$0xff] %v3645_v9  ;;  %6688 = vst [vmem:[#allocation68_spill] sm:$0xff] %v3647_v59  ;;  %v3672_v9 = vld [vmem:[%s6334_s0 + $0x13c] sm:$0x1]  ;;  %v3708_v59 = vunpack.c.l.bf16 %v176_v12 }
  0x26   :  { %6689 = vst [vmem:[#allocation69_spill] sm:$0xff] %v3649_v39  ;;  %6690 = vst [vmem:[#allocation70_spill] sm:$0xff] %v3654_v61  ;;  %v183_v39 = vshrl.u32 %v6697_v45, 7  ;;  %v3674_v61 = vunpack.c.l.bf16 %v89_v11 }
  0x27   :  { %6691 = vst [vmem:[#allocation71_spill] sm:$0xff] %v3656_v47  ;;  %6692 = vst [vmem:[#allocation72_spill] sm:$0xff] %v3658_v52  ;;  %v3702_v47 = vunpack.c.h.bf16 %v90_v33 }
  0x28   :  { %6693 = vst [vmem:[#allocation73_spill] sm:$0xff] %v3660_v44  ;;  %6694 = vst [vmem:[#allocation74_spill] sm:$0xff] %v3662_v46  ;;  %v3686_v45 = vsub.s32 0, %v183_v39  ;;  %v3690_v44 = vsub.s32 2, %v183_v39  ;;  %v3692_v11 = vsub.s32 3, %v183_v39  ;;  %v3696_v31 = vsub.s32 5, %v183_v39 }
  0x29   :  { %6695 = vst [vmem:[#allocation75_spill] sm:$0xff] %v3664_v54  ;;  %6696 = vst [vmem:[#allocation76_spill] sm:$0xff] %v3666_v60  ;;  %v3688_v54 = vsub.s32 1, %v183_v39  ;;  %v3705_v46 = vunpack.c.h.bf16 %v3265_v14 }
  0x2a   :  { %6698 = vst [vmem:[#allocation77_spill] sm:$0xff] %v3672_v9  ;;  %6699 = vst [vmem:[#allocation78_spill] sm:$0xff] %v3674_v61  ;;  %v3700_v61 = vsub.s32 7, %v183_v39  ;;  %v185_v52 = vrot.slane %v3266_v3, %v3686_v45  ;;  %v3716_v40 = vrot.slane %v3266_v3, %v3690_v44  ;;  %v3725_v14 = vrot.slane %v3266_v3, %v3696_v31 }
  0x2b   :  { %6700 = vst [vmem:[#allocation79_spill] sm:$0xff] %v3676_v4  ;;  %6701 = vst [vmem:[#allocation80_spill] sm:$0xff] %v3678_v5  ;;  %v3694_v4 = vsub.s32 4, %v183_v39  ;;  %v3698_v5 = vsub.s32 6, %v183_v39  ;;  %v3713_v53 = vrot.slane %v3266_v3, %v3688_v54  ;;  %v3719_v39 = vrot.slane %v3266_v3, %v3692_v11 }
  0x2c   :  { %6702 = vst [vmem:[#allocation81_spill] sm:$0xff] %v3686_v45  ;;  %6703 = vst [vmem:[#allocation82_spill] sm:$0xff] %v3688_v54  ;;  %v3731_v17 = vmul.f32 %v185_v52, %v3373_v13  ;;  %v3734_v60 = vmul.f32 %v185_v52, %v3376_v15  ;;  %v3737_v9 = vmul.f32 %v185_v52, %v3391_v20 }
  0x2d   :  { %6704 = vst [vmem:[#allocation83_spill] sm:$0xff] %v3690_v44  ;;  %6705 = vst [vmem:[#allocation84_spill] sm:$0xff] %v3692_v11  ;;  %v3722_v33 = vrot.slane %v3266_v3, %v3694_v4  ;;  %v3728_v12 = vrot.slane %v3266_v3, %v3698_v5  ;;  %v3749_v38 = vmul.f32 %v185_v52, %v3412_v29 }
  0x2e   :  { %6706 = vst [vmem:[#allocation85_spill] sm:$0xff] %v3694_v4  ;;  %6707 = vst [vmem:[#allocation86_spill] sm:$0xff] %v3696_v31  ;;  %v3755_v31 = vmul.f32 %v185_v52, %v3429_v36  ;;  %v3758_v4 = vmul.f32 %v185_v52, %v3458_v48  ;;  %v3767_v11 = vmul.f32 %v185_v52, %v3479_v57 }
  0x2f   :  { %6708 = vst [vmem:[#allocation87_spill] sm:$0xff] %v3698_v5  ;;  %6709 = vst [vmem:[#allocation88_spill] sm:$0xff] %v3700_v61  ;;  %v3752_v5 = vmul.f32 %v185_v52, %v3425_v34  ;;  %v3770_v44 = vmul.f32 %v185_v52, %v3492_v62  ;;  %v3773_v54 = vmul.f32 %v185_v52, %v3496_v0 }
  0x30   :  { %6710 = vst [vmem:[#allocation89_spill] sm:$0xff] %v3702_v47  ;;  %6711 = vst [vmem:[#allocation90_spill] sm:$0xff] %v3705_v46  ;;  %v3740_v47 = vrot.slane %v3266_v3, %v3700_v61  ;;  %v3761_v3 = vmul.f32 %v185_v52, %v3462_v50  ;;  %v3764_v61 = vmul.f32 %v185_v52, %v3475_v55 }
  0x31   :  { %6712 = vst [vmem:[#allocation91_spill] sm:$0xff] %v3708_v59  ;;  %6713 = vst [vmem:[#allocation92_spill] sm:$0xff] %v3710_v32  ;;  %v3743_v32 = vmul.f32 %v185_v52, %v3395_v22  ;;  %v3746_v59 = vmul.f32 %v185_v52, %v3408_v27  ;;  %v3776_v46 = vmul.f32 %v185_v52, %v3509_v6 }
  0x32   :  { %6714 = vst [vmem:[#allocation93_spill] sm:$0xff] %v3716_v40  ;;  %6715 = vst [vmem:[#allocation94_spill] sm:$0xff] %v3719_v39  ;;  %v3779_v45 = vmul.f32 %v185_v52, %v3513_v8  ;;  %v222_v26 = vmul.f32 %v3713_v53, %v3373_v13  ;;  %v224_v25 = vmul.f32 %v3713_v53, %v3376_v15 }
  0x33   :  { %6716 = vst [vmem:[#allocation95_spill] sm:$0xff] %v3722_v33  ;;  %6717 = vst [vmem:[#allocation96_spill] sm:$0xff] %v3725_v14  ;;  %v225_v43 = vmul.f32 %v3713_v53, %v3378_v16  ;;  %v227_v52 = vmul.f32 %v3713_v53, %v3393_v21  ;;  %v228_v14 = vmul.f32 %v3713_v53, %v3395_v22 }
  0x34   :  { %6718 = vst [vmem:[#allocation97_spill] sm:$0xff] %v3728_v12  ;;  %6719 = vst [vmem:[#allocation98_spill] sm:$0xff] %v3740_v47  ;;  %v223_v47 = vmul.f32 %v3713_v53, %v6720_v19  ;;  %v226_v12 = vmul.f32 %v3713_v53, %v3391_v20  ;;  %v229_v24 = vmul.f32 %v3713_v53, %v3397_v23  ;;  %v287_v22 = vrot.slane %v222_v26, 1 }
  0x35   :  { %v230_v19 = vmul.f32 %v3713_v53, %v3408_v27  ;;  %v231_v42 = vmul.f32 %v3713_v53, %v3410_v28  ;;  %v232_v33 = vmul.f32 %v3713_v53, %v3412_v29  ;;  %v233_v18 = vmul.f32 %v3713_v53, %v3414_v30 }
  0x36   :  { %v234_v41 = vmul.f32 %v3713_v53, %v3425_v34  ;;  %v235_v39 = vmul.f32 %v3713_v53, %v3427_v35  ;;  %v236_v23 = vmul.f32 %v3713_v53, %v3429_v36  ;;  %v237_v27 = vmul.f32 %v3713_v53, %v3431_v37 }
  0x37   :  { %v238_v28 = vmul.f32 %v3713_v53, %v3458_v48  ;;  %v239_v29 = vmul.f32 %v3713_v53, %v3460_v49  ;;  %v240_v30 = vmul.f32 %v3713_v53, %v3462_v50  ;;  %v241_v34 = vmul.f32 %v3713_v53, %v3464_v51 }
  0x38   :  { %v242_v35 = vmul.f32 %v3713_v53, %v3475_v55  ;;  %v243_v36 = vmul.f32 %v3713_v53, %v3477_v56  ;;  %v244_v37 = vmul.f32 %v3713_v53, %v3479_v57  ;;  %v245_v48 = vmul.f32 %v3713_v53, %v3481_v58 }
  0x39   :  { %v246_v49 = vmul.f32 %v3713_v53, %v3492_v62  ;;  %v247_v50 = vmul.f32 %v3713_v53, %v3494_v63  ;;  %v248_v51 = vmul.f32 %v3713_v53, %v3496_v0  ;;  %v288_v55 = vrot.slane %v223_v47, 1 }
  0x3a   :  { %v290_v21 = vrot.slane %v224_v25, 1  ;;  %v291_v20 = vrot.slane %v225_v43, 1  ;;  %v293_v56 = vrot.slane %v226_v12, 1  ;;  %v294_v16 = vrot.slane %v227_v52, 1 }
  0x3b   :  { %v296_v15 = vrot.slane %v228_v14, 1  ;;  %v297_v57 = vrot.slane %v229_v24, 1  ;;  %v249_v58 = vmul.f32 %v3713_v53, %v3498_v2  ;;  %v250_v62 = vmul.f32 %v3713_v53, %v3509_v6 }
  0x3c   :  { %v299_v1 = vrot.slane %v230_v19, 1  ;;  %v300_v40 = vrot.slane %v231_v42, 1  ;;  %v251_v63 = vmul.f32 %v3713_v53, %v3511_v7  ;;  %v252_v26 = vmul.f32 %v3713_v53, %v3513_v8 }
  0x3d   :  { %v253_v43 = vmul.f32 %v3713_v53, %v3515_v10  ;;  %v289_v25 = vsel %vm286_vm0, %v287_v22, %v288_v55  ;;  %v292_v24 = vsel %vm286_vm0, %v290_v21, %v291_v20  ;;  %v295_v47 = vsel %vm286_vm0, %v293_v56, %v294_v16 }
  0x3e   :  { %v298_v14 = vsel %vm286_vm0, %v296_v15, %v297_v57  ;;  %v302_v12 = vrot.slane %v232_v33, 1  ;;  %v301_v42 = vsel %vm286_vm0, %v299_v1, %v300_v40  ;;  %v303_v52 = vrot.slane %v233_v18, 1  ;;  %v6727_v33 = vld [vmem:[#allocation7_spill] sm:$0xff] }
  0x3f   :  { %v305_v19 = vrot.slane %v234_v41, 1  ;;  %v306_v7 = vrot.slane %v235_v39, 1  ;;  %v308_v6 = vrot.slane %v236_v23, 1  ;;  %v309_v2 = vrot.slane %v237_v27, 1  ;;  %v6726_v39 = vld [vmem:[#allocation5_spill] sm:$0xff] }
  0x40   :  { %v311_v8 = vrot.slane %v238_v28, 1  ;;  %v312_v0 = vrot.slane %v239_v29, 1  ;;  %v314_v13 = vrot.slane %v240_v30, 1  ;;  %v315_v53 = vrot.slane %v241_v34, 1 }
  0x41   :  { %v317_v10 = vrot.slane %v242_v35, 1  ;;  %v318_v22 = vrot.slane %v243_v36, 1  ;;  %v320_v55 = vrot.slane %v244_v37, 1  ;;  %v321_v20 = vrot.slane %v245_v48, 1 }
  0x42   :  { %v323_v21 = vrot.slane %v246_v49, 1  ;;  %v324_v16 = vrot.slane %v247_v50, 1  ;;  %v304_v15 = vsel %vm286_vm0, %v302_v12, %v303_v52  ;;  %v326_v56 = vrot.slane %v248_v51, 1 }
  0x43   :  { %v327_v57 = vrot.slane %v249_v58, 1  ;;  %v329_v1 = vrot.slane %v250_v62, 1  ;;  %v307_v41 = vsel %vm286_vm0, %v305_v19, %v306_v7  ;;  %v310_v23 = vsel %vm286_vm0, %v308_v6, %v309_v2  ;;  %v6734_v19 = vld [vmem:[#allocation14_spill] sm:$0xff] }
  0x44   :  { %v330_v27 = vrot.slane %v251_v63, 1  ;;  %v332_v28 = vrot.slane %v252_v26, 1  ;;  %v313_v29 = vsel %vm286_vm0, %v311_v8, %v312_v0  ;;  %v316_v30 = vsel %vm286_vm0, %v314_v13, %v315_v53 }
  0x45   :  { %v319_v34 = vsel %vm286_vm0, %v317_v10, %v318_v22  ;;  %v333_v35 = vrot.slane %v253_v43, 1  ;;  %v322_v36 = vsel %vm286_vm0, %v320_v55, %v321_v20  ;;  %v325_v37 = vsel %vm286_vm0, %v323_v21, %v324_v16  ;;  %v6730_v43 = vld [vmem:[#allocation10_spill] sm:$0xff]  ;;  %v6735_v22 = vld [vmem:[#allocation15_spill] sm:$0xff]  ;;  %v6736_v20 = vld [vmem:[#allocation16_spill] sm:$0xff] }
  0x46   :  { %v328_v48 = vsel %vm286_vm0, %v326_v56, %v327_v57  ;;  %v3861_v49 = vadd.f32 %v289_v25, %v3731_v17  ;;  %v331_v50 = vsel %vm286_vm0, %v329_v1, %v330_v27  ;;  %v3865_v51 = vadd.f32 %v292_v24, %v3734_v60  ;;  %v6722_v60 = vld [vmem:[#allocation93_spill] sm:$0xff]  ;;  %v6728_v17 = vld [vmem:[#allocation8_spill] sm:$0xff]  ;;  %v6731_v24 = vld [vmem:[#allocation11_spill] sm:$0xff] }
  0x47   :  { %v3868_v58 = vadd.f32 %v295_v47, %v3737_v9  ;;  %v3871_v13 = vadd.f32 %v298_v14, %v3743_v32  ;;  %v334_v62 = vsel %vm286_vm0, %v332_v28, %v333_v35  ;;  %v3875_v63 = vadd.f32 %v301_v42, %v3746_v59  ;;  %v6721_v32 = vld [vmem:[#allocation3_spill] sm:$0xff]  ;;  %v6732_v14 = vld [vmem:[#allocation12_spill] sm:$0xff]  ;;  %v6733_v42 = vld [vmem:[#allocation13_spill] sm:$0xff] }
  0x48   :  { %v3878_v0 = vadd.f32 %v304_v15, %v3749_v38  ;;  %v3881_v2 = vadd.f32 %v307_v41, %v3752_v5  ;;  %v3884_v6 = vadd.f32 %v310_v23, %v3755_v31  ;;  %v3887_v9 = vadd.f32 %v313_v29, %v3758_v4  ;;  %v6723_v4 = vld [vmem:[#allocation2_spill] sm:$0xff]  ;;  %v6725_v31 = vld [vmem:[#allocation4_spill] sm:$0xff]  ;;  %v6737_v16 = vld [vmem:[#allocation17_spill] sm:$0xff] }
  0x49   :  { %v3890_v7 = vadd.f32 %v316_v30, %v3761_v3  ;;  %v3893_v8 = vadd.f32 %v319_v34, %v3764_v61  ;;  %v3896_v10 = vadd.f32 %v322_v36, %v3767_v11  ;;  %v3899_v18 = vadd.f32 %v325_v37, %v3770_v44  ;;  %v6729_v3 = vld [vmem:[#allocation9_spill] sm:$0xff]  ;;  %v6738_v56 = vld [vmem:[#allocation18_spill] sm:$0xff]  ;;  %v6740_v23 = vld [vmem:[#allocation23_spill] sm:$0xff] }
  0x4a   :  { %v3902_v38 = vadd.f32 %v328_v48, %v3773_v54  ;;  %v3905_v40 = vadd.f32 %v331_v50, %v3776_v46  ;;  %v3908_v59 = vadd.f32 %v334_v62, %v3779_v45  ;;  %v371_v61 = vmul.f32 %v6722_v60, %v6721_v32  ;;  %v6739_v1 = vld [vmem:[#allocation22_spill] sm:$0xff]  ;;  %v6741_v28 = vld [vmem:[#allocation24_spill] sm:$0xff]  ;;  %v6742_v30 = vld [vmem:[#allocation25_spill] sm:$0xff] }
  0x4b   :  { %v6724_v5 = vunpack.c.l.bf16 %v6723_v4  ;;  %v373_v44 = vmul.f32 %v6722_v60, %v6725_v31  ;;  %v374_v54 = vmul.f32 %v6722_v60, %v6726_v39  ;;  %v375_v46 = vmul.f32 %v6722_v60, %v6727_v33  ;;  %v6743_v35 = vld [vmem:[#allocation26_spill] sm:$0xff]  ;;  %v6744_v37 = vld [vmem:[#allocation27_spill] sm:$0xff]  ;;  %v6745_v50 = vld [vmem:[#allocation28_spill] sm:$0xff] }
  0x4c   :  { %v376_v45 = vmul.f32 %v6722_v60, %v6728_v17  ;;  %v377_v26 = vmul.f32 %v6722_v60, %v6729_v3  ;;  %v378_v25 = vmul.f32 %v6722_v60, %v6730_v43  ;;  %v379_v47 = vmul.f32 %v6722_v60, %v6731_v24  ;;  %v6746_v32 = vld [vmem:[#allocation29_spill] sm:$0xff] }
  0x4d   :  { %v372_v11 = vmul.f32 %v6722_v60, %v6724_v5  ;;  %v380_v12 = vmul.f32 %v6722_v60, %v6732_v14  ;;  %v381_v52 = vmul.f32 %v6722_v60, %v6733_v42  ;;  %v382_v53 = vmul.f32 %v6722_v60, %v6734_v19  ;;  %v6747_v5 = vld [vmem:[#allocation30_spill] sm:$0xff] }
  0x4e   :  { %v383_v55 = vmul.f32 %v6722_v60, %v6735_v22  ;;  %v384_v21 = vmul.f32 %v6722_v60, %v6736_v20  ;;  %v385_v15 = vmul.f32 %v6722_v60, %v6737_v16  ;;  %v386_v57 = vmul.f32 %v6722_v60, %v6738_v56  ;;  %v6749_v20 = vld [vmem:[#allocation32_spill] sm:$0xff]  ;;  %v6751_v16 = vld [vmem:[#allocation34_spill] sm:$0xff] }
  0x4f   :  { %v387_v41 = vmul.f32 %v6722_v60, %v6739_v1  ;;  %v388_v27 = vmul.f32 %v6722_v60, %v6740_v23  ;;  %v389_v29 = vmul.f32 %v6722_v60, %v6741_v28  ;;  %v390_v34 = vmul.f32 %v6722_v60, %v6742_v30  ;;  %v6748_v1 = vld [vmem:[#allocation31_spill] sm:$0xff]  ;;  %v6750_v28 = vld [vmem:[#allocation33_spill] sm:$0xff] }
  0x50   :  { %v391_v36 = vmul.f32 %v6722_v60, %v6743_v35  ;;  %v392_v48 = vmul.f32 %v6722_v60, %v6744_v37  ;;  %v393_v62 = vmul.f32 %v6722_v60, %v6745_v50  ;;  %v394_v4 = vmul.f32 %v6722_v60, %v6746_v32 }
  0x51   :  { %v395_v23 = vmul.f32 %v6722_v60, %v6747_v5  ;;  %v396_v56 = vmul.f32 %v6722_v60, %v6748_v1  ;;  %v397_v30 = vmul.f32 %v6722_v60, %v6749_v20  ;;  %v436_v19 = vrot.slane %v371_v61, 2  ;;  %v6752_v1 = vld [vmem:[#allocation35_spill] sm:$0xff]  ;;  %v6753_v20 = vld [vmem:[#allocation36_spill] sm:$0xff] }
  0x52   :  { %v437_v14 = vrot.slane %v372_v11, 2  ;;  %v439_v43 = vrot.slane %v373_v44, 2  ;;  %v440_v17 = vrot.slane %v374_v54, 2  ;;  %v442_v37 = vrot.slane %v375_v46, 2  ;;  %v6754_v11 = vld [vmem:[#allocation37_spill] sm:$0xff] }
  0x53   :  { %v443_v39 = vrot.slane %v376_v45, 2  ;;  %v445_v35 = vrot.slane %v377_v26, 2  ;;  %v446_v50 = vrot.slane %v378_v25, 2  ;;  %v398_v32 = vmul.f32 %v6722_v60, %v6750_v28 }
  0x54   :  { %v399_v5 = vmul.f32 %v6722_v60, %v6751_v16  ;;  %v448_v22 = vrot.slane %v379_v47, 2  ;;  %v449_v42 = vrot.slane %v380_v12, 2  ;;  %v400_v24 = vmul.f32 %v6722_v60, %v6752_v1 }
  0x55   :  { %v401_v61 = vmul.f32 %v6722_v60, %v6753_v20  ;;  %v402_v44 = vmul.f32 %v6722_v60, %v6754_v11  ;;  %v438_v54 = vsel %vm435_vm1, %v436_v19, %v437_v14  ;;  %v441_v46 = vsel %vm435_vm1, %v439_v43, %v440_v17 }
  0x56   :  { %v444_v45 = vsel %vm435_vm1, %v442_v37, %v443_v39  ;;  %v447_v26 = vsel %vm435_vm1, %v445_v35, %v446_v50  ;;  %v451_v25 = vrot.slane %v381_v52, 2  ;;  %v450_v47 = vsel %vm435_vm1, %v448_v22, %v449_v42  ;;  %v6755_v50 = vld [vmem:[#allocation4_spill] sm:$0xff] }
  0x57   :  { %v452_v12 = vrot.slane %v382_v53, 2  ;;  %v454_v28 = vrot.slane %v383_v55, 2  ;;  %v455_v1 = vrot.slane %v384_v21, 2  ;;  %v457_v16 = vrot.slane %v385_v15, 2 }
  0x58   :  { %v458_v3 = vrot.slane %v386_v57, 2  ;;  %v460_v20 = vrot.slane %v387_v41, 2  ;;  %v461_v33 = vrot.slane %v388_v27, 2  ;;  %v463_v31 = vrot.slane %v389_v29, 2 }
  0x59   :  { %v464_v60 = vrot.slane %v390_v34, 2  ;;  %v466_v11 = vrot.slane %v391_v36, 2  ;;  %v467_v14 = vrot.slane %v392_v48, 2  ;;  %v469_v19 = vrot.slane %v393_v62, 2 }
  0x5a   :  { %v470_v17 = vrot.slane %v394_v4, 2  ;;  %v472_v43 = vrot.slane %v395_v23, 2  ;;  %v473_v39 = vrot.slane %v396_v56, 2  ;;  %v453_v35 = vsel %vm435_vm1, %v451_v25, %v452_v12  ;;  %v6760_v4 = vld [vmem:[#allocation13_spill] sm:$0xff] }
  0x5b   :  { %v475_v52 = vrot.slane %v397_v30, 2  ;;  %v476_v37 = vrot.slane %v398_v32, 2  ;;  %v478_v42 = vrot.slane %v399_v5, 2  ;;  %v456_v53 = vsel %vm435_vm1, %v454_v28, %v455_v1  ;;  %v6758_v32 = vld [vmem:[#allocation9_spill] sm:$0xff] }
  0x5c   :  { %v459_v22 = vsel %vm435_vm1, %v457_v16, %v458_v3  ;;  %v479_v55 = vrot.slane %v400_v24, 2  ;;  %v481_v21 = vrot.slane %v401_v61, 2  ;;  %v462_v15 = vsel %vm435_vm1, %v460_v20, %v461_v33  ;;  %v6762_v5 = vld [vmem:[#allocation17_spill] sm:$0xff]  ;;  %v6763_v61 = vld [vmem:[#allocation19_spill] sm:$0xff] }
  0x5d   :  { %v465_v57 = vsel %vm435_vm1, %v463_v31, %v464_v60  ;;  %v468_v41 = vsel %vm435_vm1, %v466_v11, %v467_v14  ;;  %v482_v27 = vrot.slane %v402_v44, 2  ;;  %v471_v56 = vsel %vm435_vm1, %v469_v19, %v470_v17  ;;  %v6764_v44 = vld [vmem:[#allocation24_spill] sm:$0xff]  ;;  %v6769_v19 = vld [vmem:[#allocation34_spill] sm:$0xff] }
  0x5e   :  { %v474_v23 = vsel %vm435_vm1, %v472_v43, %v473_v39  ;;  %v477_v29 = vsel %vm435_vm1, %v475_v52, %v476_v37  ;;  %v500_v30 = vadd.f32 %v438_v54, %v3861_v49  ;;  %v480_v1 = vsel %vm435_vm1, %v478_v42, %v479_v55  ;;  %v6768_v60 = vld [vmem:[#allocation32_spill] sm:$0xff] }
  0x5f   :  { %v501_v3 = vadd.f32 %v441_v46, %v3865_v51  ;;  %v502_v24 = vadd.f32 %v444_v45, %v3868_v58  ;;  %v503_v33 = vadd.f32 %v447_v26, %v3871_v13  ;;  %v483_v31 = vsel %vm435_vm1, %v481_v21, %v482_v27  ;;  %v6765_v46 = vld [vmem:[#allocation26_spill] sm:$0xff]  ;;  %v6766_v26 = vld [vmem:[#allocation28_spill] sm:$0xff] }
  0x60   :  { %v504_v20 = vadd.f32 %v450_v47, %v3875_v63  ;;  %v505_v16 = vadd.f32 %v453_v35, %v3878_v0  ;;  %v506_v28 = vadd.f32 %v456_v53, %v3881_v2  ;;  %v507_v34 = vadd.f32 %v459_v22, %v3884_v6  ;;  %v6756_v2 = vld [vmem:[#allocation94_spill] sm:$0xff]  ;;  %v6757_v6 = vld [vmem:[#allocation7_spill] sm:$0xff]  ;;  %v6770_v43 = vld [vmem:[#allocation36_spill] sm:$0xff] }
  0x61   :  { %v508_v49 = vadd.f32 %v462_v15, %v3887_v9  ;;  %v509_v36 = vadd.f32 %v465_v57, %v3890_v7  ;;  %v510_v51 = vadd.f32 %v468_v41, %v3893_v8  ;;  %v511_v58 = vadd.f32 %v471_v56, %v3896_v10  ;;  %v6759_v8 = vld [vmem:[#allocation11_spill] sm:$0xff]  ;;  %v6767_v47 = vld [vmem:[#allocation30_spill] sm:$0xff] }
  0x62   :  { %v512_v13 = vadd.f32 %v474_v23, %v3899_v18  ;;  %v513_v48 = vadd.f32 %v477_v29, %v3902_v38  ;;  %v514_v63 = vadd.f32 %v480_v1, %v3905_v40  ;;  %v515_v0 = vadd.f32 %v483_v31, %v3908_v59  ;;  %v6761_v38 = vld [vmem:[#allocation15_spill] sm:$0xff]  ;;  %v6771_v35 = vld [vmem:[#allocation38_spill] sm:$0xff]  ;;  %v6773_v31 = vld [vmem:[#allocation5_spill] sm:$0xff] }
  0x63   :  { %v520_v62 = vmul.f32 %v6756_v2, %v6755_v50  ;;  %v521_v9 = vmul.f32 %v6756_v2, %v6757_v6  ;;  %v522_v7 = vmul.f32 %v6756_v2, %v6758_v32  ;;  %v523_v10 = vmul.f32 %v6756_v2, %v6759_v8 }
  0x64   :  { %v524_v18 = vmul.f32 %v6756_v2, %v6760_v4  ;;  %v525_v40 = vmul.f32 %v6756_v2, %v6761_v38  ;;  %v526_v59 = vmul.f32 %v6756_v2, %v6762_v5  ;;  %v527_v11 = vmul.f32 %v6756_v2, %v6763_v61 }
  0x65   :  { %v528_v54 = vmul.f32 %v6756_v2, %v6764_v44  ;;  %v529_v45 = vmul.f32 %v6756_v2, %v6765_v46  ;;  %v530_v25 = vmul.f32 %v6756_v2, %v6766_v26  ;;  %v531_v12 = vmul.f32 %v6756_v2, %v6767_v47 }
  0x66   :  { %v532_v14 = vmul.f32 %v6756_v2, %v6768_v60  ;;  %v533_v17 = vmul.f32 %v6756_v2, %v6769_v19  ;;  %v534_v39 = vmul.f32 %v6756_v2, %v6770_v43  ;;  %v535_v52 = vmul.f32 %v6756_v2, %v6771_v35 }
  0x67   :  { %v4039_v37 = vadd.f32 %v520_v62, %v500_v30  ;;  %v4041_v42 = vadd.f32 %v521_v9, %v501_v3  ;;  %v4043_v53 = vadd.f32 %v522_v7, %v502_v24  ;;  %v4045_v22 = vadd.f32 %v523_v10, %v503_v33  ;;  %v6772_v24 = vld [vmem:[#allocation95_spill] sm:$0xff]  ;;  %v6778_v9 = vld [vmem:[#allocation16_spill] sm:$0xff] }
  0x68   :  { %v4047_v55 = vadd.f32 %v524_v18, %v504_v20  ;;  %v4049_v21 = vadd.f32 %v525_v40, %v505_v16  ;;  %v4051_v15 = vadd.f32 %v526_v59, %v506_v28  ;;  %v4053_v57 = vadd.f32 %v527_v11, %v507_v34  ;;  %v6774_v28 = vld [vmem:[#allocation8_spill] sm:$0xff]  ;;  %v6779_v18 = vld [vmem:[#allocation18_spill] sm:$0xff] }
  0x69   :  { %v4055_v41 = vadd.f32 %v528_v54, %v508_v49  ;;  %v4057_v27 = vadd.f32 %v529_v45, %v509_v36  ;;  %v4059_v56 = vadd.f32 %v530_v25, %v510_v51  ;;  %v4061_v23 = vadd.f32 %v531_v12, %v511_v58  ;;  %v6775_v36 = vld [vmem:[#allocation10_spill] sm:$0xff]  ;;  %v6780_v11 = vld [vmem:[#allocation20_spill] sm:$0xff]  ;;  %v6781_v25 = vld [vmem:[#allocation25_spill] sm:$0xff] }
  0x6a   :  { %v4063_v29 = vadd.f32 %v532_v14, %v512_v13  ;;  %v4065_v30 = vadd.f32 %v533_v17, %v513_v48  ;;  %v4067_v1 = vadd.f32 %v534_v39, %v514_v63  ;;  %v4069_v3 = vadd.f32 %v535_v52, %v515_v0  ;;  %v6776_v13 = vld [vmem:[#allocation12_spill] sm:$0xff]  ;;  %v6777_v0 = vld [vmem:[#allocation14_spill] sm:$0xff]  ;;  %v6782_v17 = vld [vmem:[#allocation27_spill] sm:$0xff] }
  0x6b   :  { %v556_v33 = vmul.f32 %v6772_v24, %v6755_v50  ;;  %v557_v20 = vmul.f32 %v6772_v24, %v6773_v31  ;;  %v558_v16 = vmul.f32 %v6772_v24, %v6757_v6  ;;  %v559_v34 = vmul.f32 %v6772_v24, %v6774_v28 }
  0x6c   :  { %v560_v49 = vmul.f32 %v6772_v24, %v6758_v32  ;;  %v561_v51 = vmul.f32 %v6772_v24, %v6775_v36  ;;  %v562_v58 = vmul.f32 %v6772_v24, %v6759_v8  ;;  %v563_v48 = vmul.f32 %v6772_v24, %v6776_v13  ;;  %v6786_v36 = vld [vmem:[#allocation35_spill] sm:$0xff] }
  0x6d   :  { %v564_v63 = vmul.f32 %v6772_v24, %v6760_v4  ;;  %v565_v2 = vmul.f32 %v6772_v24, %v6777_v0  ;;  %v566_v62 = vmul.f32 %v6772_v24, %v6761_v38  ;;  %v567_v7 = vmul.f32 %v6772_v24, %v6778_v9  ;;  %v6785_v9 = vld [vmem:[#allocation33_spill] sm:$0xff] }
  0x6e   :  { %v568_v10 = vmul.f32 %v6772_v24, %v6762_v5  ;;  %v569_v40 = vmul.f32 %v6772_v24, %v6779_v18  ;;  %v570_v59 = vmul.f32 %v6772_v24, %v6763_v61  ;;  %v571_v54 = vmul.f32 %v6772_v24, %v6780_v11  ;;  %v6783_v18 = vld [vmem:[#allocation29_spill] sm:$0xff]  ;;  %v6784_v5 = vld [vmem:[#allocation31_spill] sm:$0xff] }
  0x6f   :  { %v572_v45 = vmul.f32 %v6772_v24, %v6764_v44  ;;  %v573_v12 = vmul.f32 %v6772_v24, %v6781_v25  ;;  %v574_v14 = vmul.f32 %v6772_v24, %v6765_v46  ;;  %v575_v39 = vmul.f32 %v6772_v24, %v6782_v17 }
  0x70   :  { %v576_v52 = vmul.f32 %v6772_v24, %v6766_v26  ;;  %v577_v61 = vmul.f32 %v6772_v24, %v6783_v18  ;;  %v578_v11 = vmul.f32 %v6772_v24, %v6767_v47  ;;  %v579_v44 = vmul.f32 %v6772_v24, %v6784_v5 }
  0x71   :  { %v580_v25 = vmul.f32 %v6772_v24, %v6768_v60  ;;  %v581_v46 = vmul.f32 %v6772_v24, %v6785_v9  ;;  %v582_v17 = vmul.f32 %v6772_v24, %v6769_v19  ;;  %v620_v38 = vrot.slane %v556_v33, 1  ;;  %v6787_v9 = vld [vmem:[#allocation37_spill] sm:$0xff] }
  0x72   :  { %v621_v26 = vrot.slane %v557_v20, 1  ;;  %v623_v0 = vrot.slane %v558_v16, 1  ;;  %v624_v4 = vrot.slane %v559_v34, 1  ;;  %v626_v18 = vrot.slane %v560_v49, 1  ;;  %v6788_v20 = vld [vmem:[#allocation39_spill] sm:$0xff] }
  0x73   :  { %v627_v13 = vrot.slane %v561_v51, 1  ;;  %v629_v8 = vrot.slane %v562_v58, 1  ;;  %v630_v47 = vrot.slane %v563_v48, 1  ;;  %v583_v5 = vmul.f32 %v6772_v24, %v6786_v36 }
  0x74   :  { %v584_v60 = vmul.f32 %v6772_v24, %v6770_v43  ;;  %v632_v32 = vrot.slane %v564_v63, 1  ;;  %v633_v28 = vrot.slane %v565_v2, 1  ;;  %v585_v6 = vmul.f32 %v6772_v24, %v6787_v9 }
  0x75   :  { %v586_v33 = vmul.f32 %v6772_v24, %v6771_v35  ;;  %v587_v16 = vmul.f32 %v6772_v24, %v6788_v20  ;;  %v622_v34 = vsel %vm286_vm0, %v620_v38, %v621_v26  ;;  %v625_v49 = vsel %vm286_vm0, %v623_v0, %v624_v4 }
  0x76   :  { %v628_v51 = vsel %vm286_vm0, %v626_v18, %v627_v13  ;;  %v631_v58 = vsel %vm286_vm0, %v629_v8, %v630_v47  ;;  %v635_v48 = vrot.slane %v566_v62, 1  ;;  %v634_v63 = vsel %vm286_vm0, %v632_v32, %v633_v28 }
  0x77   :  { %v636_v2 = vrot.slane %v567_v7, 1  ;;  %v638_v43 = vrot.slane %v568_v10, 1  ;;  %v639_v9 = vrot.slane %v569_v40, 1  ;;  %v641_v36 = vrot.slane %v570_v59, 1 }
  0x78   :  { %v642_v19 = vrot.slane %v571_v54, 1  ;;  %v644_v35 = vrot.slane %v572_v45, 1  ;;  %v645_v31 = vrot.slane %v573_v12, 1  ;;  %v647_v50 = vrot.slane %v574_v14, 1  ;;  %v6790_v54 = vld [vmem:[#allocation96_spill] sm:$0xff] }
  0x79   :  { %v648_v24 = vrot.slane %v575_v39, 1  ;;  %v650_v20 = vrot.slane %v576_v52, 1  ;;  %v651_v38 = vrot.slane %v577_v61, 1  ;;  %v653_v26 = vrot.slane %v578_v11, 1 }
  0x7a   :  { %v654_v4 = vrot.slane %v579_v44, 1  ;;  %v656_v0 = vrot.slane %v580_v25, 1  ;;  %v657_v13 = vrot.slane %v581_v46, 1  ;;  %v637_v8 = vsel %vm286_vm0, %v635_v48, %v636_v2 }
  0x7b   :  { %v659_v47 = vrot.slane %v582_v17, 1  ;;  %v660_v62 = vrot.slane %v583_v5, 1  ;;  %v662_v32 = vrot.slane %v584_v60, 1  ;;  %v640_v28 = vsel %vm286_vm0, %v638_v43, %v639_v9 }
  0x7c   :  { %v643_v7 = vsel %vm286_vm0, %v641_v36, %v642_v19  ;;  %v663_v10 = vrot.slane %v585_v6, 1  ;;  %v665_v18 = vrot.slane %v586_v33, 1  ;;  %v646_v40 = vsel %vm286_vm0, %v644_v35, %v645_v31  ;;  %v6797_v33 = vld [vmem:[#allocation12_spill] sm:$0xff] }
  0x7d   :  { %v649_v59 = vsel %vm286_vm0, %v647_v50, %v648_v24  ;;  %v652_v61 = vsel %vm286_vm0, %v650_v20, %v651_v38  ;;  %v666_v44 = vrot.slane %v587_v16, 1  ;;  %v655_v46 = vsel %vm286_vm0, %v653_v26, %v654_v4  ;;  %v6798_v16 = vld [vmem:[#allocation13_spill] sm:$0xff]  ;;  %v6803_v26 = vld [vmem:[#allocation18_spill] sm:$0xff] }
  0x7e   :  { %v658_v11 = vsel %vm286_vm0, %v656_v0, %v657_v13  ;;  %v661_v5 = vsel %vm286_vm0, %v659_v47, %v660_v62  ;;  %v4150_v60 = vadd.f32 %v622_v34, %v4039_v37  ;;  %v664_v19 = vsel %vm286_vm0, %v662_v32, %v663_v10  ;;  %v6802_v24 = vld [vmem:[#allocation17_spill] sm:$0xff]  ;;  %v6804_v0 = vld [vmem:[#allocation19_spill] sm:$0xff]  ;;  %v6806_v62 = vld [vmem:[#allocation24_spill] sm:$0xff] }
  0x7f   :  { %v4154_v6 = vadd.f32 %v625_v49, %v4041_v42  ;;  %v4157_v43 = vadd.f32 %v628_v51, %v4043_v53  ;;  %v4160_v50 = vadd.f32 %v631_v58, %v4045_v22  ;;  %v667_v35 = vsel %vm286_vm0, %v665_v18, %v666_v44  ;;  %v6799_v49 = vld [vmem:[#allocation14_spill] sm:$0xff]  ;;  %v6800_v58 = vld [vmem:[#allocation15_spill] sm:$0xff] }
  0x80   :  { %v4164_v31 = vadd.f32 %v634_v63, %v4047_v55  ;;  %v4167_v36 = vadd.f32 %v637_v8, %v4049_v21  ;;  %v4170_v37 = vadd.f32 %v640_v28, %v4051_v15  ;;  %v4173_v42 = vadd.f32 %v643_v7, %v4053_v57  ;;  %v6801_v63 = vld [vmem:[#allocation16_spill] sm:$0xff]  ;;  %v6807_v28 = vld [vmem:[#allocation25_spill] sm:$0xff]  ;;  %v6808_v10 = vld [vmem:[#allocation26_spill] sm:$0xff] }
  0x81   :  { %v4176_v53 = vadd.f32 %v646_v40, %v4055_v41  ;;  %v4179_v22 = vadd.f32 %v649_v59, %v4057_v27  ;;  %v4182_v9 = vadd.f32 %v652_v61, %v4059_v56  ;;  %v4185_v55 = vadd.f32 %v655_v46, %v4061_v23  ;;  %v6789_v27 = vld [vmem:[#allocation4_spill] sm:$0xff]  ;;  %v6791_v56 = vld [vmem:[#allocation5_spill] sm:$0xff]  ;;  %v6792_v23 = vld [vmem:[#allocation7_spill] sm:$0xff] }
  0x82   :  { %v4188_v21 = vadd.f32 %v658_v11, %v4063_v29  ;;  %v4191_v15 = vadd.f32 %v661_v5, %v4065_v30  ;;  %v4194_v57 = vadd.f32 %v664_v19, %v4067_v1  ;;  %v4197_v41 = vadd.f32 %v667_v35, %v4069_v3  ;;  %v6793_v29 = vld [vmem:[#allocation8_spill] sm:$0xff]  ;;  %v6794_v30 = vld [vmem:[#allocation9_spill] sm:$0xff]  ;;  %v6795_v1 = vld [vmem:[#allocation10_spill] sm:$0xff] }
  0x83   :  { %v704_v45 = vmul.f32 %v6790_v54, %v6789_v27  ;;  %v705_v25 = vmul.f32 %v6790_v54, %v6791_v56  ;;  %v706_v12 = vmul.f32 %v6790_v54, %v6792_v23  ;;  %v707_v14 = vmul.f32 %v6790_v54, %v6793_v29  ;;  %v6796_v3 = vld [vmem:[#allocation11_spill] sm:$0xff]  ;;  %v6805_v8 = vld [vmem:[#allocation20_spill] sm:$0xff]  ;;  %v6811_v46 = vld [vmem:[#allocation29_spill] sm:$0xff] }
  0x84   :  { %v708_v17 = vmul.f32 %v6790_v54, %v6794_v30  ;;  %v709_v39 = vmul.f32 %v6790_v54, %v6795_v1  ;;  %v710_v52 = vmul.f32 %v6790_v54, %v6796_v3  ;;  %v711_v20 = vmul.f32 %v6790_v54, %v6797_v33  ;;  %v6809_v40 = vld [vmem:[#allocation27_spill] sm:$0xff]  ;;  %v6810_v61 = vld [vmem:[#allocation28_spill] sm:$0xff]  ;;  %v6812_v5 = vld [vmem:[#allocation30_spill] sm:$0xff] }
  0x85   :  { %v712_v34 = vmul.f32 %v6790_v54, %v6798_v16  ;;  %v713_v51 = vmul.f32 %v6790_v54, %v6799_v49  ;;  %v714_v48 = vmul.f32 %v6790_v54, %v6800_v58  ;;  %v715_v2 = vmul.f32 %v6790_v54, %v6801_v63  ;;  %v6813_v35 = vld [vmem:[#allocation31_spill] sm:$0xff]  ;;  %v6814_v56 = vld [vmem:[#allocation32_spill] sm:$0xff] }
  0x86   :  { %v716_v38 = vmul.f32 %v6790_v54, %v6802_v24  ;;  %v717_v4 = vmul.f32 %v6790_v54, %v6803_v26  ;;  %v718_v13 = vmul.f32 %v6790_v54, %v6804_v0  ;;  %v719_v47 = vmul.f32 %v6790_v54, %v6805_v8  ;;  %v6816_v26 = vld [vmem:[#allocation34_spill] sm:$0xff]  ;;  %v6818_v0 = vld [vmem:[#allocation36_spill] sm:$0xff] }
  0x87   :  { %v720_v32 = vmul.f32 %v6790_v54, %v6806_v62  ;;  %v721_v7 = vmul.f32 %v6790_v54, %v6807_v28  ;;  %v722_v18 = vmul.f32 %v6790_v54, %v6808_v10  ;;  %v723_v59 = vmul.f32 %v6790_v54, %v6809_v40  ;;  %v6815_v62 = vld [vmem:[#allocation33_spill] sm:$0xff]  ;;  %v6817_v10 = vld [vmem:[#allocation35_spill] sm:$0xff] }
  0x88   :  { %v724_v44 = vmul.f32 %v6790_v54, %v6810_v61  ;;  %v725_v11 = vmul.f32 %v6790_v54, %v6811_v46  ;;  %v726_v19 = vmul.f32 %v6790_v54, %v6812_v5  ;;  %v727_v27 = vmul.f32 %v6790_v54, %v6813_v35 }
  0x89   :  { %v728_v28 = vmul.f32 %v6790_v54, %v6814_v56  ;;  %v729_v8 = vmul.f32 %v6790_v54, %v6815_v62  ;;  %v730_v40 = vmul.f32 %v6790_v54, %v6816_v26  ;;  %v768_v63 = vrot.slane %v704_v45, 2  ;;  %v6819_v62 = vld [vmem:[#allocation37_spill] sm:$0xff]  ;;  %v6820_v26 = vld [vmem:[#allocation38_spill] sm:$0xff] }
  0x8a   :  { %v769_v49 = vrot.slane %v705_v25, 2  ;;  %v771_v33 = vrot.slane %v706_v12, 2  ;;  %v772_v1 = vrot.slane %v707_v14, 2  ;;  %v774_v46 = vrot.slane %v708_v17, 2  ;;  %v6821_v25 = vld [vmem:[#allocation39_spill] sm:$0xff] }
  0x8b   :  { %v775_v29 = vrot.slane %v709_v39, 2  ;;  %v777_v61 = vrot.slane %v710_v52, 2  ;;  %v778_v5 = vrot.slane %v711_v20, 2  ;;  %v731_v35 = vmul.f32 %v6790_v54, %v6817_v10 }
  0x8c   :  { %v732_v56 = vmul.f32 %v6790_v54, %v6818_v0  ;;  %v780_v24 = vrot.slane %v712_v34, 2  ;;  %v781_v58 = vrot.slane %v713_v51, 2  ;;  %v733_v16 = vmul.f32 %v6790_v54, %v6819_v62 }
  0x8d   :  { %v734_v45 = vmul.f32 %v6790_v54, %v6820_v26  ;;  %v735_v12 = vmul.f32 %v6790_v54, %v6821_v25  ;;  %v770_v14 = vsel %vm435_vm1, %v768_v63, %v769_v49  ;;  %v773_v17 = vsel %vm435_vm1, %v771_v33, %v772_v1 }
  0x8e   :  { %v776_v39 = vsel %vm435_vm1, %v774_v46, %v775_v29  ;;  %v779_v52 = vsel %vm435_vm1, %v777_v61, %v778_v5  ;;  %v783_v20 = vrot.slane %v714_v48, 2  ;;  %v782_v34 = vsel %vm435_vm1, %v780_v24, %v781_v58  ;;  %v6822_v5 = vld [vmem:[#allocation7_spill] sm:$0xff] }
  0x8f   :  { %v784_v51 = vrot.slane %v715_v2, 2  ;;  %v786_v10 = vrot.slane %v716_v38, 2  ;;  %v787_v62 = vrot.slane %v717_v4, 2  ;;  %v789_v0 = vrot.slane %v718_v13, 2 }
  0x90   :  { %v790_v3 = vrot.slane %v719_v47, 2  ;;  %v792_v26 = vrot.slane %v720_v32, 2  ;;  %v793_v30 = vrot.slane %v721_v7, 2  ;;  %v795_v23 = vrot.slane %v722_v18, 2 }
  0x91   :  { %v796_v54 = vrot.slane %v723_v59, 2  ;;  %v798_v25 = vrot.slane %v724_v44, 2  ;;  %v799_v49 = vrot.slane %v725_v11, 2  ;;  %v801_v63 = vrot.slane %v726_v19, 2 }
  0x92   :  { %v802_v1 = vrot.slane %v727_v27, 2  ;;  %v804_v33 = vrot.slane %v728_v28, 2  ;;  %v805_v29 = vrot.slane %v729_v8, 2  ;;  %v785_v61 = vsel %vm435_vm1, %v783_v20, %v784_v51  ;;  %v6827_v27 = vld [vmem:[#allocation15_spill] sm:$0xff] }
  0x93   :  { %v807_v48 = vrot.slane %v730_v40, 2  ;;  %v808_v46 = vrot.slane %v731_v35, 2  ;;  %v810_v58 = vrot.slane %v732_v56, 2  ;;  %v788_v2 = vsel %vm435_vm1, %v786_v10, %v787_v62  ;;  %v6825_v35 = vld [vmem:[#allocation11_spill] sm:$0xff] }
  0x94   :  { %v791_v24 = vsel %vm435_vm1, %v789_v0, %v790_v3  ;;  %v811_v38 = vrot.slane %v733_v16, 2  ;;  %v813_v4 = vrot.slane %v734_v45, 2  ;;  %v794_v13 = vsel %vm435_vm1, %v792_v26, %v793_v30  ;;  %v6829_v56 = vld [vmem:[#allocation19_spill] sm:$0xff]  ;;  %v6830_v45 = vld [vmem:[#allocation21_spill] sm:$0xff] }
  0x95   :  { %v797_v47 = vsel %vm435_vm1, %v795_v23, %v796_v54  ;;  %v800_v32 = vsel %vm435_vm1, %v798_v25, %v799_v49  ;;  %v814_v7 = vrot.slane %v735_v12, 2  ;;  %v803_v8 = vsel %vm435_vm1, %v801_v63, %v802_v1  ;;  %v6831_v12 = vld [vmem:[#allocation26_spill] sm:$0xff]  ;;  %v6836_v63 = vld [vmem:[#allocation36_spill] sm:$0xff] }
  0x96   :  { %v806_v28 = vsel %vm435_vm1, %v804_v33, %v805_v29  ;;  %v809_v18 = vsel %vm435_vm1, %v807_v48, %v808_v46  ;;  %v832_v40 = vadd.f32 %v770_v14, %v4150_v60  ;;  %v812_v62 = vsel %vm435_vm1, %v810_v58, %v811_v38  ;;  %v6835_v54 = vld [vmem:[#allocation34_spill] sm:$0xff] }
  0x97   :  { %v833_v3 = vadd.f32 %v773_v17, %v4154_v6  ;;  %v834_v16 = vadd.f32 %v776_v39, %v4157_v43  ;;  %v835_v30 = vadd.f32 %v779_v52, %v4160_v50  ;;  %v815_v23 = vsel %vm435_vm1, %v813_v4, %v814_v7  ;;  %v6832_v17 = vld [vmem:[#allocation28_spill] sm:$0xff]  ;;  %v6833_v52 = vld [vmem:[#allocation30_spill] sm:$0xff] }
  0x98   :  { %v836_v26 = vadd.f32 %v782_v34, %v4164_v31  ;;  %v837_v0 = vadd.f32 %v785_v61, %v4167_v36  ;;  %v838_v10 = vadd.f32 %v788_v2, %v4170_v37  ;;  %v839_v59 = vadd.f32 %v791_v24, %v4173_v42  ;;  %v6823_v37 = vld [vmem:[#allocation97_spill] sm:$0xff]  ;;  %v6834_v34 = vld [vmem:[#allocation32_spill] sm:$0xff]  ;;  %v6837_v33 = vld [vmem:[#allocation38_spill] sm:$0xff] }
  0x99   :  { %v840_v60 = vadd.f32 %v794_v13, %v4176_v53  ;;  %v841_v44 = vadd.f32 %v797_v47, %v4179_v22  ;;  %v842_v6 = vadd.f32 %v800_v32, %v4182_v9  ;;  %v843_v43 = vadd.f32 %v803_v8, %v4185_v55  ;;  %v6824_v42 = vld [vmem:[#allocation9_spill] sm:$0xff]  ;;  %v6838_v61 = vld [vmem:[#allocation40_spill] sm:$0xff] }
  0x9a   :  { %v844_v50 = vadd.f32 %v806_v28, %v4188_v21  ;;  %v845_v11 = vadd.f32 %v809_v18, %v4191_v15  ;;  %v846_v31 = vadd.f32 %v812_v62, %v4194_v57  ;;  %v847_v36 = vadd.f32 %v815_v23, %v4197_v41  ;;  %v6826_v9 = vld [vmem:[#allocation13_spill] sm:$0xff]  ;;  %v6840_v23 = vld [vmem:[#allocation8_spill] sm:$0xff] }
  0x9b   :  { %v852_v19 = vmul.f32 %v6823_v37, %v6822_v5  ;;  %v853_v53 = vmul.f32 %v6823_v37, %v6824_v42  ;;  %v854_v22 = vmul.f32 %v6823_v37, %v6825_v35  ;;  %v855_v55 = vmul.f32 %v6823_v37, %v6826_v9  ;;  %v6828_v15 = vld [vmem:[#allocation17_spill] sm:$0xff] }
  0x9c   :  { %v856_v21 = vmul.f32 %v6823_v37, %v6827_v27  ;;  %v857_v57 = vmul.f32 %v6823_v37, %v6828_v15  ;;  %v858_v41 = vmul.f32 %v6823_v37, %v6829_v56  ;;  %v859_v25 = vmul.f32 %v6823_v37, %v6830_v45 }
  0x9d   :  { %v860_v14 = vmul.f32 %v6823_v37, %v6831_v12  ;;  %v861_v39 = vmul.f32 %v6823_v37, %v6832_v17  ;;  %v862_v20 = vmul.f32 %v6823_v37, %v6833_v52  ;;  %v863_v51 = vmul.f32 %v6823_v37, %v6834_v34 }
  0x9e   :  { %v864_v49 = vmul.f32 %v6823_v37, %v6835_v54  ;;  %v865_v1 = vmul.f32 %v6823_v37, %v6836_v63  ;;  %v866_v29 = vmul.f32 %v6823_v37, %v6837_v33  ;;  %v867_v48 = vmul.f32 %v6823_v37, %v6838_v61 }
  0x9f   :  { %v4327_v46 = vadd.f32 %v852_v19, %v832_v40  ;;  %v4329_v58 = vadd.f32 %v853_v53, %v833_v3  ;;  %v4331_v2 = vadd.f32 %v854_v22, %v834_v16  ;;  %v4333_v24 = vadd.f32 %v855_v55, %v835_v30  ;;  %v6839_v16 = vld [vmem:[#allocation98_spill] sm:$0xff] }
  0xa0   :  { %v4335_v38 = vadd.f32 %v856_v21, %v836_v26  ;;  %v4337_v4 = vadd.f32 %v857_v57, %v837_v0  ;;  %v4339_v13 = vadd.f32 %v858_v41, %v838_v10  ;;  %v4341_v47 = vadd.f32 %v859_v25, %v839_v59  ;;  %v6841_v10 = vld [vmem:[#allocation10_spill] sm:$0xff]  ;;  %v6846_v21 = vld [vmem:[#allocation20_spill] sm:$0xff] }
  0xa1   :  { %v4343_v32 = vadd.f32 %v860_v14, %v840_v60  ;;  %v4345_v7 = vadd.f32 %v861_v39, %v841_v44  ;;  %v4347_v8 = vadd.f32 %v862_v20, %v842_v6  ;;  %v4349_v28 = vadd.f32 %v863_v51, %v843_v43  ;;  %v6842_v44 = vld [vmem:[#allocation12_spill] sm:$0xff]  ;;  %v6845_v53 = vld [vmem:[#allocation18_spill] sm:$0xff]  ;;  %v6849_v51 = vld [vmem:[#allocation27_spill] sm:$0xff] }
  0xa2   :  { %v4351_v18 = vadd.f32 %v864_v49, %v844_v50  ;;  %v4353_v40 = vadd.f32 %v865_v1, %v845_v11  ;;  %v4355_v62 = vadd.f32 %v866_v29, %v846_v31  ;;  %v4357_v3 = vadd.f32 %v867_v48, %v847_v36  ;;  %v6843_v50 = vld [vmem:[#allocation14_spill] sm:$0xff]  ;;  %v6844_v36 = vld [vmem:[#allocation16_spill] sm:$0xff]  ;;  %v6850_v29 = vld [vmem:[#allocation29_spill] sm:$0xff] }
  0xa3   :  { %v888_v30 = vmul.f32 %v6839_v16, %v6822_v5  ;;  %v889_v26 = vmul.f32 %v6839_v16, %v6840_v23  ;;  %v890_v0 = vmul.f32 %v6839_v16, %v6824_v42  ;;  %v891_v59 = vmul.f32 %v6839_v16, %v6841_v10  ;;  %v6847_v25 = vld [vmem:[#allocation6_spill] sm:$0xff] }
  0xa4   :  { %v892_v60 = vmul.f32 %v6839_v16, %v6825_v35  ;;  %v893_v6 = vmul.f32 %v6839_v16, %v6842_v44  ;;  %v894_v43 = vmul.f32 %v6839_v16, %v6826_v9  ;;  %v895_v11 = vmul.f32 %v6839_v16, %v6843_v50  ;;  %v6854_v44 = vld [vmem:[#allocation37_spill] sm:$0xff] }
  0xa5   :  { %v896_v31 = vmul.f32 %v6839_v16, %v6827_v27  ;;  %v897_v37 = vmul.f32 %v6839_v16, %v6844_v36  ;;  %v898_v19 = vmul.f32 %v6839_v16, %v6828_v15  ;;  %v899_v22 = vmul.f32 %v6839_v16, %v6845_v53  ;;  %v6853_v53 = vld [vmem:[#allocation35_spill] sm:$0xff] }
  0xa6   :  { %v900_v55 = vmul.f32 %v6839_v16, %v6829_v56  ;;  %v901_v57 = vmul.f32 %v6839_v16, %v6846_v21  ;;  %v902_v41 = vmul.f32 %v6839_v16, %v6830_v45  ;;  %v6848_v14 = vunpack.c.l.bf16 %v6847_v25  ;;  %v6851_v45 = vld [vmem:[#allocation31_spill] sm:$0xff]  ;;  %v6852_v56 = vld [vmem:[#allocation33_spill] sm:$0xff] }
  0xa7   :  { %v904_v20 = vmul.f32 %v6839_v16, %v6831_v12  ;;  %v905_v49 = vmul.f32 %v6839_v16, %v6849_v51  ;;  %v906_v1 = vmul.f32 %v6839_v16, %v6832_v17  ;;  %v907_v48 = vmul.f32 %v6839_v16, %v6850_v29 }
  0xa8   :  { %v903_v39 = vmul.f32 %v6839_v16, %v6848_v14  ;;  %v908_v21 = vmul.f32 %v6839_v16, %v6833_v52  ;;  %v909_v25 = vmul.f32 %v6839_v16, %v6851_v45  ;;  %v910_v14 = vmul.f32 %v6839_v16, %v6834_v34 }
  0xa9   :  { %v911_v12 = vmul.f32 %v6839_v16, %v6852_v56  ;;  %v912_v51 = vmul.f32 %v6839_v16, %v6835_v54  ;;  %v913_v17 = vmul.f32 %v6839_v16, %v6853_v53  ;;  %v914_v29 = vmul.f32 %v6839_v16, %v6836_v63  ;;  %v6855_v53 = vld [vmem:[#allocation39_spill] sm:$0xff] }
  0xaa   :  { %v952_v15 = vrot.slane %v888_v30, 1  ;;  %v953_v52 = vrot.slane %v889_v26, 1  ;;  %v955_v36 = vrot.slane %v890_v0, 1  ;;  %v956_v27 = vrot.slane %v891_v59, 1  ;;  %v6856_v26 = vld [vmem:[#allocation41_spill] sm:$0xff] }
  0xab   :  { %v958_v45 = vrot.slane %v892_v60, 1  ;;  %v959_v50 = vrot.slane %v893_v6, 1  ;;  %v961_v9 = vrot.slane %v894_v43, 1  ;;  %v962_v34 = vrot.slane %v895_v11, 1 }
  0xac   :  { %v915_v56 = vmul.f32 %v6839_v16, %v6854_v44  ;;  %v916_v54 = vmul.f32 %v6839_v16, %v6837_v33  ;;  %v964_v35 = vrot.slane %v896_v31, 1  ;;  %v965_v10 = vrot.slane %v897_v37, 1 }
  0xad   :  { %v917_v42 = vmul.f32 %v6839_v16, %v6855_v53  ;;  %v918_v30 = vmul.f32 %v6839_v16, %v6838_v61  ;;  %v919_v0 = vmul.f32 %v6839_v16, %v6856_v26  ;;  %v954_v59 = vsel %vm286_vm0, %v952_v15, %v953_v52 }
  0xae   :  { %v957_v60 = vsel %vm286_vm0, %v955_v36, %v956_v27  ;;  %v960_v6 = vsel %vm286_vm0, %v958_v45, %v959_v50  ;;  %v963_v43 = vsel %vm286_vm0, %v961_v9, %v962_v34  ;;  %v967_v11 = vrot.slane %v898_v19, 1 }
  0xaf   :  { %v966_v31 = vsel %vm286_vm0, %v964_v35, %v965_v10  ;;  %v968_v37 = vrot.slane %v899_v22, 1  ;;  %v970_v33 = vrot.slane %v900_v55, 1  ;;  %v971_v53 = vrot.slane %v901_v57, 1 }
  0xb0   :  { %v973_v44 = vrot.slane %v902_v41, 1  ;;  %v974_v63 = vrot.slane %v903_v39, 1  ;;  %v976_v61 = vrot.slane %v904_v20, 1  ;;  %v977_v23 = vrot.slane %v905_v49, 1  ;;  %v6858_v39 = vld [vmem:[#allocation90_spill] sm:$0xff]  ;;  %v6863_v49 = vld [vmem:[#allocation84_spill] sm:$0xff] }
  0xb1   :  { %v979_v5 = vrot.slane %v906_v1, 1  ;;  %v980_v16 = vrot.slane %v907_v48, 1  ;;  %v982_v26 = vrot.slane %v908_v21, 1  ;;  %v983_v15 = vrot.slane %v909_v25, 1  ;;  %v6865_v1 = vld [vmem:[#allocation85_spill] sm:$0xff]  ;;  %v6869_v48 = vld [vmem:[#allocation87_spill] sm:$0xff] }
  0xb2   :  { %v985_v52 = vrot.slane %v910_v14, 1  ;;  %v986_v27 = vrot.slane %v911_v12, 1  ;;  %v988_v36 = vrot.slane %v912_v51, 1  ;;  %v989_v45 = vrot.slane %v913_v17, 1 }
  0xb3   :  { %v969_v9 = vsel %vm286_vm0, %v967_v11, %v968_v37  ;;  %v991_v34 = vrot.slane %v914_v29, 1  ;;  %v992_v50 = vrot.slane %v915_v56, 1  ;;  %v994_v35 = vrot.slane %v916_v54, 1 }
  0xb4   :  { %v972_v10 = vsel %vm286_vm0, %v970_v33, %v971_v53  ;;  %v975_v19 = vsel %vm286_vm0, %v973_v44, %v974_v63  ;;  %v995_v22 = vrot.slane %v917_v42, 1  ;;  %v997_v55 = vrot.slane %v918_v30, 1  ;;  %v6871_v30 = vld [vmem:[#allocation7_spill] sm:$0xff] }
  0xb5   :  { %v978_v57 = vsel %vm286_vm0, %v976_v61, %v977_v23  ;;  %v981_v21 = vsel %vm286_vm0, %v979_v5, %v980_v16  ;;  %v984_v41 = vsel %vm286_vm0, %v982_v26, %v983_v15  ;;  %v998_v12 = vrot.slane %v919_v0, 1  ;;  %v6872_v0 = vld [vmem:[#allocation8_spill] sm:$0xff] }
  0xb6   :  { %v987_v17 = vsel %vm286_vm0, %v985_v52, %v986_v27  ;;  %v990_v25 = vsel %vm286_vm0, %v988_v36, %v989_v45  ;;  %v993_v56 = vsel %vm286_vm0, %v991_v34, %v992_v50  ;;  %v4439_v54 = vadd.f32 %v954_v59, %v4327_v46  ;;  %v6876_v16 = vld [vmem:[#allocation12_spill] sm:$0xff]  ;;  %v6877_v52 = vld [vmem:[#allocation13_spill] sm:$0xff]  ;;  %v6878_v36 = vld [vmem:[#allocation14_spill] sm:$0xff] }
  0xb7   :  { %v996_v63 = vsel %vm286_vm0, %v994_v35, %v995_v22  ;;  %v4443_v42 = vadd.f32 %v957_v60, %v4329_v58  ;;  %v4446_v33 = vadd.f32 %v960_v6, %v4331_v2  ;;  %v4449_v5 = vadd.f32 %v963_v43, %v4333_v24  ;;  %v6873_v60 = vld [vmem:[#allocation9_spill] sm:$0xff]  ;;  %v6874_v43 = vld [vmem:[#allocation10_spill] sm:$0xff]  ;;  %v6880_v50 = vld [vmem:[#allocation16_spill] sm:$0xff] }
  0xb8   :  { %v999_v61 = vsel %vm286_vm0, %v997_v55, %v998_v12  ;;  %v4453_v23 = vadd.f32 %v966_v31, %v4335_v38  ;;  %v4456_v44 = vadd.f32 %v969_v9, %v4337_v4  ;;  %v4459_v46 = vadd.f32 %v972_v10, %v4339_v13  ;;  %v6875_v31 = vld [vmem:[#allocation11_spill] sm:$0xff]  ;;  %v6881_v10 = vld [vmem:[#allocation17_spill] sm:$0xff]  ;;  %v6882_v22 = vld [vmem:[#allocation18_spill] sm:$0xff] }
  0xb9   :  { %v4462_v58 = vadd.f32 %v975_v19, %v4341_v47  ;;  %v4465_v2 = vadd.f32 %v978_v57, %v4343_v32  ;;  %v4468_v24 = vadd.f32 %v981_v21, %v4345_v7  ;;  %v4471_v53 = vadd.f32 %v984_v41, %v4347_v8  ;;  %v6857_v47 = vld [vmem:[#allocation81_spill] sm:$0xff]  ;;  %v6859_v8 = vld [vmem:[#allocation82_spill] sm:$0xff]  ;;  %v6879_v9 = vld [vmem:[#allocation15_spill] sm:$0xff] }
  0xba   :  { %v4474_v38 = vadd.f32 %v987_v17, %v4349_v28  ;;  %v4477_v4 = vadd.f32 %v990_v25, %v4351_v18  ;;  %v4480_v13 = vadd.f32 %v993_v56, %v4353_v40  ;;  %v1035_v20 = vrot.slane %v6858_v39, %v6857_v47  ;;  %v6861_v28 = vld [vmem:[#allocation83_spill] sm:$0xff]  ;;  %v6884_v41 = vld [vmem:[#allocation20_spill] sm:$0xff]  ;;  %v6885_v17 = vld [vmem:[#allocation21_spill] sm:$0xff] }
  0xbb   :  { %v4485_v32 = vadd.f32 %v996_v63, %v4355_v62  ;;  %v4488_v7 = vadd.f32 %v999_v61, %v4357_v3  ;;  %v4492_v51 = vrot.slane %v6858_v39, %v6859_v8  ;;  %v4496_v18 = vrot.slane %v6858_v39, %v6861_v28  ;;  %v6867_v62 = vld [vmem:[#allocation86_spill] sm:$0xff]  ;;  %v6883_v57 = vld [vmem:[#allocation19_spill] sm:$0xff]  ;;  %v6899_v8 = vld [vmem:[#allocation37_spill] sm:$0xff] }
  0xbc   :  { %v4500_v40 = vrot.slane %v6858_v39, %v6863_v49  ;;  %v4504_v29 = vrot.slane %v6858_v39, %v6865_v1  ;;  %v4508_v3 = vrot.slane %v6858_v39, %v6867_v62  ;;  %v4512_v14 = vrot.slane %v6858_v39, %v6869_v48  ;;  %v6886_v56 = vld [vmem:[#allocation6_spill] sm:$0xff]  ;;  %v6898_v49 = vld [vmem:[#allocation36_spill] sm:$0xff] }
  0xbd   :  { %6860 = vst [vmem:[#allocation3_spill] sm:$0xff] %v4492_v51  ;;  %6862 = vst [vmem:[#allocation93_spill] sm:$0xff] %v4496_v18  ;;  %v1036_v26 = vmul.f32 %v1035_v20, %v6871_v30  ;;  %v1037_v59 = vmul.f32 %v1035_v20, %v6872_v0  ;;  %v1038_v6 = vmul.f32 %v1035_v20, %v6873_v60  ;;  %v6887_v63 = vunpack.c.l.bf16 %v6886_v56  ;;  %v6888_v30 = vld [vmem:[#allocation26_spill] sm:$0xff]  ;;  %v6889_v60 = vld [vmem:[#allocation27_spill] sm:$0xff] }
  0xbe   :  { %6864 = vst [vmem:[#allocation2_spill] sm:$0xff] %v4500_v40  ;;  %6866 = vst [vmem:[#allocation94_spill] sm:$0xff] %v4504_v29  ;;  %v1039_v11 = vmul.f32 %v1035_v20, %v6874_v43  ;;  %v1040_v37 = vmul.f32 %v1035_v20, %v6875_v31  ;;  %v1041_v15 = vmul.f32 %v1035_v20, %v6876_v16  ;;  %v6890_v31 = vld [vmem:[#allocation28_spill] sm:$0xff]  ;;  %v6897_v56 = vld [vmem:[#allocation35_spill] sm:$0xff] }
  0xbf   :  { %6868 = vst [vmem:[#allocation95_spill] sm:$0xff] %v4508_v3  ;;  %6870 = vst [vmem:[#allocation4_spill] sm:$0xff] %v4512_v14  ;;  %v1042_v27 = vmul.f32 %v1035_v20, %v6877_v52  ;;  %v1043_v45 = vmul.f32 %v1035_v20, %v6878_v36  ;;  %v1044_v34 = vmul.f32 %v1035_v20, %v6879_v9  ;;  %v6891_v52 = vld [vmem:[#allocation29_spill] sm:$0xff]  ;;  %v6892_v9 = vld [vmem:[#allocation30_spill] sm:$0xff]  ;;  %v1100_v39 = vrot.slane %v1036_v26, 2 }
  0xc0   :  { %v1045_v35 = vmul.f32 %v1035_v20, %v6880_v50  ;;  %v1046_v19 = vmul.f32 %v1035_v20, %v6881_v10  ;;  %v1047_v55 = vmul.f32 %v1035_v20, %v6882_v22  ;;  %v1048_v21 = vmul.f32 %v1035_v20, %v6883_v57  ;;  %v6893_v10 = vld [vmem:[#allocation31_spill] sm:$0xff]  ;;  %v6894_v57 = vld [vmem:[#allocation32_spill] sm:$0xff]  ;;  %v6900_v18 = vld [vmem:[#allocation38_spill] sm:$0xff] }
  0xc1   :  { %v1049_v12 = vmul.f32 %v1035_v20, %v6884_v41  ;;  %v1050_v25 = vmul.f32 %v1035_v20, %v6885_v17  ;;  %v1051_v61 = vmul.f32 %v1035_v20, %v6887_v63  ;;  %v1052_v0 = vmul.f32 %v1035_v20, %v6888_v30  ;;  %v6895_v41 = vld [vmem:[#allocation33_spill] sm:$0xff]  ;;  %v6896_v17 = vld [vmem:[#allocation34_spill] sm:$0xff]  ;;  %v6902_v30 = vld [vmem:[#allocation40_spill] sm:$0xff] }
  0xc2   :  { %v1053_v43 = vmul.f32 %v1035_v20, %v6889_v60  ;;  %v1054_v16 = vmul.f32 %v1035_v20, %v6890_v31  ;;  %v1055_v36 = vmul.f32 %v1035_v20, %v6891_v52  ;;  %v1056_v50 = vmul.f32 %v1035_v20, %v6892_v9  ;;  %v6901_v9 = vld [vmem:[#allocation39_spill] sm:$0xff]  ;;  %v6903_v51 = vld [vmem:[#allocation41_spill] sm:$0xff] }
  0xc3   :  { %v1057_v22 = vmul.f32 %v1035_v20, %v6893_v10  ;;  %v1058_v48 = vmul.f32 %v1035_v20, %v6894_v57  ;;  %v1059_v62 = vmul.f32 %v1035_v20, %v6895_v41  ;;  %v1060_v1 = vmul.f32 %v1035_v20, %v6896_v17 }
  0xc4   :  { %v1061_v63 = vmul.f32 %v1035_v20, %v6897_v56  ;;  %v1062_v28 = vmul.f32 %v1035_v20, %v6898_v49  ;;  %v1063_v47 = vmul.f32 %v1035_v20, %v6899_v8  ;;  %v1101_v14 = vrot.slane %v1037_v59, 2 }
  0xc5   :  { %v1103_v3 = vrot.slane %v1038_v6, 2  ;;  %v1104_v29 = vrot.slane %v1039_v11, 2  ;;  %v1106_v40 = vrot.slane %v1040_v37, 2  ;;  %v1107_v52 = vrot.slane %v1041_v15, 2 }
  0xc6   :  { %v1109_v60 = vrot.slane %v1042_v27, 2  ;;  %v1110_v10 = vrot.slane %v1043_v45, 2  ;;  %v1064_v57 = vmul.f32 %v1035_v20, %v6900_v18  ;;  %v1065_v41 = vmul.f32 %v1035_v20, %v6901_v9 }
  0xc7   :  { %v1112_v31 = vrot.slane %v1044_v34, 2  ;;  %v1113_v17 = vrot.slane %v1045_v35, 2  ;;  %v1066_v56 = vmul.f32 %v1035_v20, %v6902_v30  ;;  %v1067_v49 = vmul.f32 %v1035_v20, %v6903_v51 }
  0xc8   :  { %v1102_v8 = vsel %vm435_vm1, %v1100_v39, %v1101_v14  ;;  %v1105_v26 = vsel %vm435_vm1, %v1103_v3, %v1104_v29  ;;  %v1108_v59 = vsel %vm435_vm1, %v1106_v40, %v1107_v52  ;;  %v1111_v6 = vsel %vm435_vm1, %v1109_v60, %v1110_v10 }
  0xc9   :  { %v1115_v11 = vrot.slane %v1046_v19, 2  ;;  %v1116_v37 = vrot.slane %v1047_v55, 2  ;;  %v1114_v15 = vsel %vm435_vm1, %v1112_v31, %v1113_v17  ;;  %v1118_v27 = vrot.slane %v1048_v21, 2  ;;  %v6907_v17 = vld [vmem:[#allocation26_spill] sm:$0xff] }
  0xca   :  { %v1119_v45 = vrot.slane %v1049_v12, 2  ;;  %v1121_v34 = vrot.slane %v1050_v25, 2  ;;  %v1122_v35 = vrot.slane %v1051_v61, 2  ;;  %v1124_v9 = vrot.slane %v1052_v0, 2 }
  0xcb   :  { %v1125_v30 = vrot.slane %v1053_v43, 2  ;;  %v1127_v18 = vrot.slane %v1054_v16, 2  ;;  %v1128_v20 = vrot.slane %v1055_v36, 2  ;;  %v1130_v51 = vrot.slane %v1056_v50, 2 }
  0xcc   :  { %v1131_v39 = vrot.slane %v1057_v22, 2  ;;  %v1133_v14 = vrot.slane %v1058_v48, 2  ;;  %v1117_v29 = vsel %vm435_vm1, %v1115_v11, %v1116_v37  ;;  %v1134_v40 = vrot.slane %v1059_v62, 2  ;;  %v6914_v37 = vld [vmem:[#allocation44_spill] sm:$0xff] }
  0xcd   :  { %v1136_v3 = vrot.slane %v1060_v1, 2  ;;  %v1137_v60 = vrot.slane %v1061_v63, 2  ;;  %v1120_v19 = vsel %vm435_vm1, %v1118_v27, %v1119_v45  ;;  %v1139_v55 = vrot.slane %v1062_v28, 2  ;;  %v6911_v63 = vld [vmem:[#allocation34_spill] sm:$0xff] }
  0xce   :  { %v1140_v31 = vrot.slane %v1063_v47, 2  ;;  %v1142_v21 = vrot.slane %v1064_v57, 2  ;;  %v1123_v12 = vsel %vm435_vm1, %v1121_v34, %v1122_v35  ;;  %v1126_v25 = vsel %vm435_vm1, %v1124_v9, %v1125_v30  ;;  %v6904_v57 = vld [vmem:[#allocation22_spill] sm:$0xff]  ;;  %v6916_v34 = vld [vmem:[#allocation48_spill] sm:$0xff] }
  0xcf   :  { %v1143_v61 = vrot.slane %v1065_v41, 2  ;;  %v1145_v0 = vrot.slane %v1066_v56, 2  ;;  %v1129_v43 = vsel %vm435_vm1, %v1127_v18, %v1128_v20  ;;  %v1132_v48 = vsel %vm435_vm1, %v1130_v51, %v1131_v39  ;;  %v6909_v56 = vld [vmem:[#allocation30_spill] sm:$0xff]  ;;  %v6917_v20 = vld [vmem:[#allocation51_spill] sm:$0xff] }
  0xd0   :  { %v1135_v16 = vsel %vm435_vm1, %v1133_v14, %v1134_v40  ;;  %v1146_v62 = vrot.slane %v1067_v49, 2  ;;  %v1138_v1 = vsel %vm435_vm1, %v1136_v3, %v1137_v60  ;;  %v1141_v52 = vsel %vm435_vm1, %v1139_v55, %v1140_v31  ;;  %v6915_v27 = vld [vmem:[#allocation46_spill] sm:$0xff]  ;;  %v6918_v14 = vld [vmem:[#allocation53_spill] sm:$0xff]  ;;  %v6919_v40 = vld [vmem:[#allocation55_spill] sm:$0xff] }
  0xd1   :  { %v1164_v47 = vadd.f32 %v1102_v8, %v4439_v54  ;;  %v1165_v28 = vadd.f32 %v1105_v26, %v4443_v42  ;;  %v1144_v36 = vsel %vm435_vm1, %v1142_v21, %v1143_v61  ;;  %v1166_v9 = vadd.f32 %v1108_v59, %v4446_v33  ;;  %v6912_v26 = vld [vmem:[#allocation36_spill] sm:$0xff]  ;;  %v6920_v60 = vld [vmem:[#allocation57_spill] sm:$0xff] }
  0xd2   :  { %v1147_v30 = vsel %vm435_vm1, %v1145_v0, %v1146_v62  ;;  %v1167_v18 = vadd.f32 %v1111_v6, %v4449_v5  ;;  %v1168_v51 = vadd.f32 %v1114_v15, %v4453_v23  ;;  %v1169_v49 = vadd.f32 %v1117_v29, %v4456_v44  ;;  %v6913_v6 = vld [vmem:[#allocation42_spill] sm:$0xff] }
  0xd3   :  { %v1170_v50 = vadd.f32 %v1120_v19, %v4459_v46  ;;  %v1171_v10 = vadd.f32 %v1123_v12, %v4462_v58  ;;  %v1172_v54 = vadd.f32 %v1126_v25, %v4465_v2  ;;  %v1173_v42 = vadd.f32 %v1129_v43, %v4468_v24  ;;  %v6905_v46 = vld [vmem:[#allocation3_spill] sm:$0xff]  ;;  %v6906_v58 = vld [vmem:[#allocation24_spill] sm:$0xff] }
  0xd4   :  { %v1174_v8 = vadd.f32 %v1132_v48, %v4471_v53  ;;  %v1175_v22 = vadd.f32 %v1135_v16, %v4474_v38  ;;  %v1176_v33 = vadd.f32 %v1138_v1, %v4477_v4  ;;  %v1177_v5 = vadd.f32 %v1141_v52, %v4480_v13  ;;  %v6908_v53 = vld [vmem:[#allocation28_spill] sm:$0xff] }
  0xd5   :  { %v1178_v23 = vadd.f32 %v1144_v36, %v4485_v32  ;;  %v1179_v44 = vadd.f32 %v1147_v30, %v4488_v7  ;;  %v1184_v41 = vmul.f32 %v6905_v46, %v6904_v57  ;;  %v1185_v2 = vmul.f32 %v6905_v46, %v6906_v58  ;;  %v6910_v13 = vld [vmem:[#allocation32_spill] sm:$0xff]  ;;  %v6921_v30 = vld [vmem:[#allocation93_spill] sm:$0xff] }
  0xd6   :  { %v1186_v24 = vmul.f32 %v6905_v46, %v6907_v17  ;;  %v1187_v38 = vmul.f32 %v6905_v46, %v6908_v53  ;;  %v1188_v4 = vmul.f32 %v6905_v46, %v6909_v56  ;;  %v1189_v32 = vmul.f32 %v6905_v46, %v6910_v13 }
  0xd7   :  { %v1190_v7 = vmul.f32 %v6905_v46, %v6911_v63  ;;  %v1191_v59 = vmul.f32 %v6905_v46, %v6912_v26  ;;  %v1192_v11 = vmul.f32 %v6905_v46, %v6913_v6  ;;  %v1193_v15 = vmul.f32 %v6905_v46, %v6914_v37 }
  0xd8   :  { %v1194_v45 = vmul.f32 %v6905_v46, %v6915_v27  ;;  %v1195_v35 = vmul.f32 %v6905_v46, %v6916_v34  ;;  %v1196_v39 = vmul.f32 %v6905_v46, %v6917_v20  ;;  %v1197_v29 = vmul.f32 %v6905_v46, %v6918_v14 }
  0xd9   :  { %v1198_v3 = vmul.f32 %v6905_v46, %v6919_v40  ;;  %v1199_v19 = vmul.f32 %v6905_v46, %v6920_v60  ;;  %v4611_v55 = vadd.f32 %v1184_v41, %v1164_v47  ;;  %v4613_v31 = vadd.f32 %v1185_v2, %v1165_v28  ;;  %v6927_v2 = vld [vmem:[#allocation33_spill] sm:$0xff] }
  0xda   :  { %v4615_v21 = vadd.f32 %v1186_v24, %v1166_v9  ;;  %v4617_v12 = vadd.f32 %v1187_v38, %v1167_v18  ;;  %v4619_v25 = vadd.f32 %v1188_v4, %v1168_v51  ;;  %v4621_v61 = vadd.f32 %v1189_v32, %v1169_v49  ;;  %v6922_v18 = vld [vmem:[#allocation23_spill] sm:$0xff] }
  0xdb   :  { %v4623_v0 = vadd.f32 %v1190_v7, %v1170_v50  ;;  %v4625_v43 = vadd.f32 %v1191_v59, %v1171_v10  ;;  %v4627_v48 = vadd.f32 %v1192_v11, %v1172_v54  ;;  %v4629_v16 = vadd.f32 %v1193_v15, %v1173_v42  ;;  %v6923_v50 = vld [vmem:[#allocation25_spill] sm:$0xff]  ;;  %v6924_v42 = vld [vmem:[#allocation27_spill] sm:$0xff] }
  0xdc   :  { %v4631_v62 = vadd.f32 %v1194_v45, %v1174_v8  ;;  %v4633_v1 = vadd.f32 %v1195_v35, %v1175_v22  ;;  %v4635_v52 = vadd.f32 %v1196_v39, %v1176_v33  ;;  %v4637_v47 = vadd.f32 %v1197_v29, %v1177_v5  ;;  %v6925_v33 = vld [vmem:[#allocation29_spill] sm:$0xff]  ;;  %v6928_v4 = vld [vmem:[#allocation35_spill] sm:$0xff] }
  0xdd   :  { %v4639_v28 = vadd.f32 %v1198_v3, %v1178_v23  ;;  %v4641_v36 = vadd.f32 %v1199_v19, %v1179_v44  ;;  %v1220_v9 = vmul.f32 %v6921_v30, %v6904_v57  ;;  %v1221_v51 = vmul.f32 %v6921_v30, %v6922_v18  ;;  %v6926_v44 = vld [vmem:[#allocation31_spill] sm:$0xff]  ;;  %v6929_v59 = vld [vmem:[#allocation37_spill] sm:$0xff] }
  0xde   :  { %v1222_v49 = vmul.f32 %v6921_v30, %v6906_v58  ;;  %v1223_v10 = vmul.f32 %v6921_v30, %v6923_v50  ;;  %v1224_v54 = vmul.f32 %v6921_v30, %v6907_v17  ;;  %v1225_v8 = vmul.f32 %v6921_v30, %v6924_v42  ;;  %v6930_v45 = vld [vmem:[#allocation43_spill] sm:$0xff]  ;;  %v6931_v29 = vld [vmem:[#allocation45_spill] sm:$0xff]  ;;  %v6936_v17 = vld [vmem:[#allocation56_spill] sm:$0xff] }
  0xdf   :  { %v1226_v22 = vmul.f32 %v6921_v30, %v6908_v53  ;;  %v1227_v5 = vmul.f32 %v6921_v30, %v6925_v33  ;;  %v1228_v23 = vmul.f32 %v6921_v30, %v6909_v56  ;;  %v1229_v46 = vmul.f32 %v6921_v30, %v6926_v44 }
  0xe0   :  { %v1230_v41 = vmul.f32 %v6921_v30, %v6910_v13  ;;  %v1231_v24 = vmul.f32 %v6921_v30, %v6927_v2  ;;  %v1232_v38 = vmul.f32 %v6921_v30, %v6911_v63  ;;  %v1233_v32 = vmul.f32 %v6921_v30, %v6928_v4  ;;  %v6932_v4 = vld [vmem:[#allocation47_spill] sm:$0xff]  ;;  %v6933_v63 = vld [vmem:[#allocation49_spill] sm:$0xff]  ;;  %v6934_v2 = vld [vmem:[#allocation52_spill] sm:$0xff] }
  0xe1   :  { %v1234_v7 = vmul.f32 %v6921_v30, %v6912_v26  ;;  %v1235_v11 = vmul.f32 %v6921_v30, %v6929_v59  ;;  %v1236_v15 = vmul.f32 %v6921_v30, %v6913_v6  ;;  %v1237_v35 = vmul.f32 %v6921_v30, %v6930_v45  ;;  %v6935_v13 = vld [vmem:[#allocation54_spill] sm:$0xff] }
  0xe2   :  { %v1238_v39 = vmul.f32 %v6921_v30, %v6914_v37  ;;  %v1239_v3 = vmul.f32 %v6921_v30, %v6931_v29  ;;  %v1240_v19 = vmul.f32 %v6921_v30, %v6915_v27  ;;  %v1241_v26 = vmul.f32 %v6921_v30, %v6932_v4 }
  0xe3   :  { %v1242_v59 = vmul.f32 %v6921_v30, %v6916_v34  ;;  %v1243_v6 = vmul.f32 %v6921_v30, %v6933_v63  ;;  %v1244_v45 = vmul.f32 %v6921_v30, %v6917_v20  ;;  %v1245_v37 = vmul.f32 %v6921_v30, %v6934_v2 }
  0xe4   :  { %v1246_v29 = vmul.f32 %v6921_v30, %v6918_v14  ;;  %v1247_v27 = vmul.f32 %v6921_v30, %v6935_v13  ;;  %v1284_v44 = vrot.slane %v1220_v9, 1  ;;  %v1285_v4 = vrot.slane %v1221_v51, 1  ;;  %v6937_v13 = vld [vmem:[#allocation58_spill] sm:$0xff] }
  0xe5   :  { %v1287_v56 = vrot.slane %v1222_v49, 1  ;;  %v1288_v33 = vrot.slane %v1223_v10, 1  ;;  %v1290_v34 = vrot.slane %v1224_v54, 1  ;;  %v1291_v53 = vrot.slane %v1225_v8, 1 }
  0xe6   :  { %v1293_v42 = vrot.slane %v1226_v22, 1  ;;  %v1294_v63 = vrot.slane %v1227_v5, 1  ;;  %v1248_v20 = vmul.f32 %v6921_v30, %v6919_v40  ;;  %v1249_v2 = vmul.f32 %v6921_v30, %v6936_v17 }
  0xe7   :  { %v1296_v50 = vrot.slane %v1228_v23, 1  ;;  %v1297_v58 = vrot.slane %v1229_v46, 1  ;;  %v1250_v14 = vmul.f32 %v6921_v30, %v6920_v60  ;;  %v1251_v9 = vmul.f32 %v6921_v30, %v6937_v13 }
  0xe8   :  { %v1286_v51 = vsel %vm286_vm0, %v1284_v44, %v1285_v4  ;;  %v1289_v49 = vsel %vm286_vm0, %v1287_v56, %v1288_v33  ;;  %v1292_v10 = vsel %vm286_vm0, %v1290_v34, %v1291_v53  ;;  %v1295_v54 = vsel %vm286_vm0, %v1293_v42, %v1294_v63 }
  0xe9   :  { %v1299_v8 = vrot.slane %v1230_v41, 1  ;;  %v1300_v22 = vrot.slane %v1231_v24, 1  ;;  %v1298_v5 = vsel %vm286_vm0, %v1296_v50, %v1297_v58  ;;  %v1302_v23 = vrot.slane %v1232_v38, 1 }
  0xea   :  { %v1303_v46 = vrot.slane %v1233_v32, 1  ;;  %v1305_v17 = vrot.slane %v1234_v7, 1  ;;  %v1306_v40 = vrot.slane %v1235_v11, 1  ;;  %v1308_v60 = vrot.slane %v1236_v15, 1 }
  0xeb   :  { %v1309_v18 = vrot.slane %v1237_v35, 1  ;;  %v1311_v57 = vrot.slane %v1238_v39, 1  ;;  %v1312_v30 = vrot.slane %v1239_v3, 1  ;;  %v1314_v13 = vrot.slane %v1240_v19, 1 }
  0xec   :  { %v1315_v44 = vrot.slane %v1241_v26, 1  ;;  %v1317_v4 = vrot.slane %v1242_v59, 1  ;;  %v1301_v56 = vsel %vm286_vm0, %v1299_v8, %v1300_v22  ;;  %v1318_v53 = vrot.slane %v1243_v6, 1  ;;  %v6949_v22 = vld [vmem:[#allocation32_spill] sm:$0xff] }
  0xed   :  { %v1320_v34 = vrot.slane %v1244_v45, 1  ;;  %v1321_v63 = vrot.slane %v1245_v37, 1  ;;  %v1304_v42 = vsel %vm286_vm0, %v1302_v23, %v1303_v46  ;;  %v1323_v33 = vrot.slane %v1246_v29, 1  ;;  %v6950_v23 = vld [vmem:[#allocation33_spill] sm:$0xff] }
  0xee   :  { %v1324_v58 = vrot.slane %v1247_v27, 1  ;;  %v1326_v50 = vrot.slane %v1248_v20, 1  ;;  %v1307_v41 = vsel %vm286_vm0, %v1305_v17, %v1306_v40  ;;  %v1310_v24 = vsel %vm286_vm0, %v1308_v60, %v1309_v18 }
  0xef   :  { %v1327_v38 = vrot.slane %v1249_v2, 1  ;;  %v1329_v32 = vrot.slane %v1250_v14, 1  ;;  %v1313_v7 = vsel %vm286_vm0, %v1311_v57, %v1312_v30  ;;  %v1316_v26 = vsel %vm286_vm0, %v1314_v13, %v1315_v44  ;;  %v6939_v2 = vld [vmem:[#allocation2_spill] sm:$0xff] }
  0xf0   :  { %v1319_v59 = vsel %vm286_vm0, %v1317_v4, %v1318_v53  ;;  %v1330_v6 = vrot.slane %v1251_v9, 1  ;;  %v1322_v37 = vsel %vm286_vm0, %v1320_v34, %v1321_v63  ;;  %v1325_v11 = vsel %vm286_vm0, %v1323_v33, %v1324_v58  ;;  %v6946_v9 = vld [vmem:[#allocation29_spill] sm:$0xff]  ;;  %v6951_v30 = vld [vmem:[#allocation34_spill] sm:$0xff]  ;;  %v6952_v4 = vld [vmem:[#allocation35_spill] sm:$0xff] }
  0xf1   :  { %v4722_v27 = vadd.f32 %v1286_v51, %v4611_v55  ;;  %v4725_v17 = vadd.f32 %v1289_v49, %v4613_v31  ;;  %v1328_v20 = vsel %vm286_vm0, %v1326_v50, %v1327_v38  ;;  %v4730_v57 = vadd.f32 %v1292_v10, %v4615_v21  ;;  %v6947_v49 = vld [vmem:[#allocation30_spill] sm:$0xff]  ;;  %v6953_v53 = vld [vmem:[#allocation36_spill] sm:$0xff]  ;;  %v6954_v63 = vld [vmem:[#allocation37_spill] sm:$0xff] }
  0xf2   :  { %v1331_v14 = vsel %vm286_vm0, %v1329_v32, %v1330_v6  ;;  %v4733_v13 = vadd.f32 %v1295_v54, %v4617_v12  ;;  %v4736_v40 = vadd.f32 %v1298_v5, %v4619_v25  ;;  %v4739_v60 = vadd.f32 %v1301_v56, %v4621_v61  ;;  %v6948_v54 = vld [vmem:[#allocation31_spill] sm:$0xff]  ;;  %v6955_v33 = vld [vmem:[#allocation42_spill] sm:$0xff]  ;;  %v6958_v32 = vld [vmem:[#allocation45_spill] sm:$0xff] }
  0xf3   :  { %v4742_v55 = vadd.f32 %v1304_v42, %v4623_v0  ;;  %v4745_v31 = vadd.f32 %v1307_v41, %v4625_v43  ;;  %v4748_v18 = vadd.f32 %v1310_v24, %v4627_v48  ;;  %v4751_v21 = vadd.f32 %v1313_v7, %v4629_v16  ;;  %v6938_v16 = vld [vmem:[#allocation22_spill] sm:$0xff]  ;;  %v6956_v50 = vld [vmem:[#allocation43_spill] sm:$0xff]  ;;  %v6957_v24 = vld [vmem:[#allocation44_spill] sm:$0xff] }
  0xf4   :  { %v4754_v12 = vadd.f32 %v1316_v26, %v4631_v62  ;;  %v4757_v25 = vadd.f32 %v1319_v59, %v4633_v1  ;;  %v4760_v61 = vadd.f32 %v1322_v37, %v4635_v52  ;;  %v4763_v0 = vadd.f32 %v1325_v11, %v4637_v47  ;;  %v6940_v62 = vld [vmem:[#allocation23_spill] sm:$0xff]  ;;  %v6941_v1 = vld [vmem:[#allocation24_spill] sm:$0xff]  ;;  %v6942_v52 = vld [vmem:[#allocation25_spill] sm:$0xff] }
  0xf5   :  { %v4766_v43 = vadd.f32 %v1328_v20, %v4639_v28  ;;  %v4769_v48 = vadd.f32 %v1331_v14, %v4641_v36  ;;  %v1368_v15 = vmul.f32 %v6939_v2, %v6938_v16  ;;  %v1369_v45 = vmul.f32 %v6939_v2, %v6940_v62  ;;  %v6943_v47 = vld [vmem:[#allocation26_spill] sm:$0xff]  ;;  %v6944_v28 = vld [vmem:[#allocation27_spill] sm:$0xff]  ;;  %v6945_v36 = vld [vmem:[#allocation28_spill] sm:$0xff] }
  0xf6   :  { %v1370_v35 = vmul.f32 %v6939_v2, %v6941_v1  ;;  %v1371_v39 = vmul.f32 %v6939_v2, %v6942_v52  ;;  %v1372_v29 = vmul.f32 %v6939_v2, %v6943_v47  ;;  %v1373_v3 = vmul.f32 %v6939_v2, %v6944_v28  ;;  %v6959_v26 = vld [vmem:[#allocation46_spill] sm:$0xff]  ;;  %v6960_v6 = vld [vmem:[#allocation47_spill] sm:$0xff]  ;;  %v6961_v11 = vld [vmem:[#allocation48_spill] sm:$0xff] }
  0xf7   :  { %v1374_v19 = vmul.f32 %v6939_v2, %v6945_v36  ;;  %v1375_v51 = vmul.f32 %v6939_v2, %v6946_v9  ;;  %v1376_v10 = vmul.f32 %v6939_v2, %v6947_v49  ;;  %v1377_v8 = vmul.f32 %v6939_v2, %v6948_v54  ;;  %v6962_v14 = vld [vmem:[#allocation49_spill] sm:$0xff]  ;;  %v6963_v62 = vld [vmem:[#allocation51_spill] sm:$0xff] }
  0xf8   :  { %v1378_v5 = vmul.f32 %v6939_v2, %v6949_v22  ;;  %v1379_v46 = vmul.f32 %v6939_v2, %v6950_v23  ;;  %v1380_v44 = vmul.f32 %v6939_v2, %v6951_v30  ;;  %v1381_v56 = vmul.f32 %v6939_v2, %v6952_v4  ;;  %v6965_v4 = vld [vmem:[#allocation53_spill] sm:$0xff]  ;;  %v6966_v23 = vld [vmem:[#allocation54_spill] sm:$0xff]  ;;  %v6968_v30 = vld [vmem:[#allocation56_spill] sm:$0xff] }
  0xf9   :  { %v1382_v34 = vmul.f32 %v6939_v2, %v6953_v53  ;;  %v1383_v42 = vmul.f32 %v6939_v2, %v6954_v63  ;;  %v1384_v58 = vmul.f32 %v6939_v2, %v6955_v33  ;;  %v1385_v41 = vmul.f32 %v6939_v2, %v6956_v50  ;;  %v6964_v33 = vld [vmem:[#allocation52_spill] sm:$0xff]  ;;  %v6967_v53 = vld [vmem:[#allocation55_spill] sm:$0xff] }
  0xfa   :  { %v1386_v38 = vmul.f32 %v6939_v2, %v6957_v24  ;;  %v1387_v7 = vmul.f32 %v6939_v2, %v6958_v32  ;;  %v1388_v59 = vmul.f32 %v6939_v2, %v6959_v26  ;;  %v1389_v37 = vmul.f32 %v6939_v2, %v6960_v6 }
  0xfb   :  { %v1390_v20 = vmul.f32 %v6939_v2, %v6961_v11  ;;  %v1391_v16 = vmul.f32 %v6939_v2, %v6962_v14  ;;  %v1392_v50 = vmul.f32 %v6939_v2, %v6963_v62  ;;  %v1393_v63 = vmul.f32 %v6939_v2, %v6964_v33 }
  0xfc   :  { %v1394_v32 = vmul.f32 %v6939_v2, %v6965_v4  ;;  %v1395_v54 = vmul.f32 %v6939_v2, %v6966_v23  ;;  %v1432_v9 = vrot.slane %v1368_v15, 2  ;;  %v1433_v6 = vrot.slane %v1369_v45, 2  ;;  %v6969_v4 = vld [vmem:[#allocation57_spill] sm:$0xff]  ;;  %v6970_v23 = vld [vmem:[#allocation58_spill] sm:$0xff] }
  0xfd   :  { %v1435_v28 = vrot.slane %v1370_v35, 2  ;;  %v1436_v52 = vrot.slane %v1371_v39, 2  ;;  %v1438_v11 = vrot.slane %v1372_v29, 2  ;;  %v1439_v26 = vrot.slane %v1373_v3, 2 }
  0xfe   :  { %v1441_v24 = vrot.slane %v1374_v19, 2  ;;  %v1442_v14 = vrot.slane %v1375_v51, 2  ;;  %v1396_v62 = vmul.f32 %v6939_v2, %v6967_v53  ;;  %v1397_v33 = vmul.f32 %v6939_v2, %v6968_v30 }
  0xff   :  { %v1444_v22 = vrot.slane %v1376_v10, 2  ;;  %v1445_v49 = vrot.slane %v1377_v8, 2  ;;  %v1398_v36 = vmul.f32 %v6939_v2, %v6969_v4  ;;  %v1399_v15 = vmul.f32 %v6939_v2, %v6970_v23 }
 0x100   :  { %v1434_v45 = vsel %vm435_vm1, %v1432_v9, %v1433_v6  ;;  %v1437_v35 = vsel %vm435_vm1, %v1435_v28, %v1436_v52  ;;  %v1440_v39 = vsel %vm435_vm1, %v1438_v11, %v1439_v26  ;;  %v1443_v29 = vsel %vm435_vm1, %v1441_v24, %v1442_v14  ;;  %v6971_v11 = vld [vmem:[#allocation24_spill] sm:$0xff] }
 0x101   :  { %v1447_v3 = vrot.slane %v1378_v5, 2  ;;  %v1448_v19 = vrot.slane %v1379_v46, 2  ;;  %v1446_v51 = vsel %vm435_vm1, %v1444_v22, %v1445_v49  ;;  %v1450_v10 = vrot.slane %v1380_v44, 2  ;;  %v6974_v14 = vld [vmem:[#allocation28_spill] sm:$0xff] }
 0x102   :  { %v1451_v8 = vrot.slane %v1381_v56, 2  ;;  %v1453_v30 = vrot.slane %v1382_v34, 2  ;;  %v1454_v53 = vrot.slane %v1383_v42, 2  ;;  %v1456_v4 = vrot.slane %v1384_v58, 2 }
 0x103   :  { %v1457_v47 = vrot.slane %v1385_v41, 2  ;;  %v1459_v1 = vrot.slane %v1386_v38, 2  ;;  %v1460_v2 = vrot.slane %v1387_v7, 2  ;;  %v1462_v23 = vrot.slane %v1388_v59, 2 }
 0x104   :  { %v1463_v9 = vrot.slane %v1389_v37, 2  ;;  %v1465_v6 = vrot.slane %v1390_v20, 2  ;;  %v1449_v52 = vsel %vm435_vm1, %v1447_v3, %v1448_v19  ;;  %v1466_v28 = vrot.slane %v1391_v16, 2  ;;  %v6976_v16 = vld [vmem:[#allocation32_spill] sm:$0xff] }
 0x105   :  { %v1468_v26 = vrot.slane %v1392_v50, 2  ;;  %v1469_v24 = vrot.slane %v1393_v63, 2  ;;  %v1452_v5 = vsel %vm435_vm1, %v1450_v10, %v1451_v8  ;;  %v1471_v46 = vrot.slane %v1394_v32, 2  ;;  %v6982_v19 = vld [vmem:[#allocation48_spill] sm:$0xff]  ;;  %v6983_v10 = vld [vmem:[#allocation51_spill] sm:$0xff] }
 0x106   :  { %v1472_v49 = vrot.slane %v1395_v54, 2  ;;  %v1474_v22 = vrot.slane %v1396_v62, 2  ;;  %v1455_v44 = vsel %vm435_vm1, %v1453_v30, %v1454_v53  ;;  %v1458_v56 = vsel %vm435_vm1, %v1456_v4, %v1457_v47  ;;  %v6978_v62 = vld [vmem:[#allocation36_spill] sm:$0xff] }
 0x107   :  { %v1475_v34 = vrot.slane %v1397_v33, 2  ;;  %v1477_v42 = vrot.slane %v1398_v36, 2  ;;  %v1461_v58 = vsel %vm435_vm1, %v1459_v1, %v1460_v2  ;;  %v1464_v41 = vsel %vm435_vm1, %v1462_v23, %v1463_v9  ;;  %v6984_v2 = vld [vmem:[#allocation53_spill] sm:$0xff] }
 0x108   :  { %v1467_v38 = vsel %vm435_vm1, %v1465_v6, %v1466_v28  ;;  %v1478_v7 = vrot.slane %v1399_v15, 2  ;;  %v1470_v63 = vsel %vm435_vm1, %v1468_v26, %v1469_v24  ;;  %v1473_v50 = vsel %vm435_vm1, %v1471_v46, %v1472_v49  ;;  %v6979_v15 = vld [vmem:[#allocation38_spill] sm:$0xff]  ;;  %v6985_v6 = vld [vmem:[#allocation55_spill] sm:$0xff]  ;;  %v6986_v28 = vld [vmem:[#allocation57_spill] sm:$0xff] }
 0x109   :  { %v1496_v54 = vadd.f32 %v1434_v45, %v4722_v27  ;;  %v1497_v32 = vadd.f32 %v1437_v35, %v4725_v17  ;;  %v1476_v30 = vsel %vm435_vm1, %v1474_v22, %v1475_v34  ;;  %v1498_v36 = vadd.f32 %v1440_v39, %v4730_v57  ;;  %v6980_v35 = vld [vmem:[#allocation44_spill] sm:$0xff]  ;;  %v6987_v24 = vld [vmem:[#allocation59_spill] sm:$0xff] }
 0x10a   :  { %v1479_v47 = vsel %vm435_vm1, %v1477_v42, %v1478_v7  ;;  %v1499_v1 = vadd.f32 %v1443_v29, %v4733_v13  ;;  %v1500_v23 = vadd.f32 %v1446_v51, %v4736_v40  ;;  %v1501_v4 = vadd.f32 %v1449_v52, %v4739_v60  ;;  %v6981_v29 = vld [vmem:[#allocation46_spill] sm:$0xff] }
 0x10b   :  { %v1502_v53 = vadd.f32 %v1452_v5, %v4742_v55  ;;  %v1503_v33 = vadd.f32 %v1455_v44, %v4745_v31  ;;  %v1504_v27 = vadd.f32 %v1458_v56, %v4748_v18  ;;  %v1505_v17 = vadd.f32 %v1461_v58, %v4751_v21  ;;  %v6972_v55 = vld [vmem:[#allocation94_spill] sm:$0xff] }
 0x10c   :  { %v1506_v59 = vadd.f32 %v1464_v41, %v4754_v12  ;;  %v1507_v37 = vadd.f32 %v1467_v38, %v4757_v25  ;;  %v1508_v57 = vadd.f32 %v1470_v63, %v4760_v61  ;;  %v1509_v13 = vadd.f32 %v1473_v50, %v4763_v0  ;;  %v6973_v31 = vld [vmem:[#allocation26_spill] sm:$0xff] }
 0x10d   :  { %v1510_v40 = vadd.f32 %v1476_v30, %v4766_v43  ;;  %v1511_v60 = vadd.f32 %v1479_v47, %v4769_v48  ;;  %v1516_v20 = vmul.f32 %v6972_v55, %v6971_v11  ;;  %v1517_v18 = vmul.f32 %v6972_v55, %v6973_v31  ;;  %v6975_v12 = vld [vmem:[#allocation30_spill] sm:$0xff]  ;;  %v6988_v47 = vld [vmem:[#allocation95_spill] sm:$0xff] }
 0x10e   :  { %v1518_v21 = vmul.f32 %v6972_v55, %v6974_v14  ;;  %v1519_v25 = vmul.f32 %v6972_v55, %v6975_v12  ;;  %v1520_v61 = vmul.f32 %v6972_v55, %v6976_v16  ;;  %v6977_v0 = vld [vmem:[#allocation34_spill] sm:$0xff]  ;;  %v1522_v48 = vmul.f32 %v6972_v55, %v6978_v62 }
 0x10f   :  { %v1521_v43 = vmul.f32 %v6972_v55, %v6977_v0  ;;  %v1523_v45 = vmul.f32 %v6972_v55, %v6979_v15  ;;  %v1524_v39 = vmul.f32 %v6972_v55, %v6980_v35  ;;  %v1525_v3 = vmul.f32 %v6972_v55, %v6981_v29 }
 0x110   :  { %v1526_v51 = vmul.f32 %v6972_v55, %v6982_v19  ;;  %v1527_v8 = vmul.f32 %v6972_v55, %v6983_v10  ;;  %v1528_v9 = vmul.f32 %v6972_v55, %v6984_v2  ;;  %v1529_v52 = vmul.f32 %v6972_v55, %v6985_v6 }
 0x111   :  { %v1530_v26 = vmul.f32 %v6972_v55, %v6986_v28  ;;  %v1531_v5 = vmul.f32 %v6972_v55, %v6987_v24  ;;  %v4899_v46 = vadd.f32 %v1516_v20, %v1496_v54  ;;  %v4901_v49 = vadd.f32 %v1517_v18, %v1497_v32  ;;  %v6994_v18 = vld [vmem:[#allocation35_spill] sm:$0xff] }
 0x112   :  { %v4903_v22 = vadd.f32 %v1518_v21, %v1498_v36  ;;  %v4905_v44 = vadd.f32 %v1519_v25, %v1499_v1  ;;  %v4907_v56 = vadd.f32 %v1520_v61, %v1500_v23  ;;  %v4909_v34 = vadd.f32 %v1521_v43, %v1501_v4  ;;  %v6989_v1 = vld [vmem:[#allocation25_spill] sm:$0xff] }
 0x113   :  { %v4911_v42 = vadd.f32 %v1522_v48, %v1502_v53  ;;  %v4913_v58 = vadd.f32 %v1523_v45, %v1503_v33  ;;  %v4915_v41 = vadd.f32 %v1524_v39, %v1504_v27  ;;  %v4917_v38 = vadd.f32 %v1525_v3, %v1505_v17  ;;  %v6990_v53 = vld [vmem:[#allocation27_spill] sm:$0xff]  ;;  %v6991_v17 = vld [vmem:[#allocation29_spill] sm:$0xff] }
 0x114   :  { %v4919_v7 = vadd.f32 %v1526_v51, %v1506_v59  ;;  %v4921_v63 = vadd.f32 %v1527_v8, %v1507_v37  ;;  %v4923_v50 = vadd.f32 %v1528_v9, %v1508_v57  ;;  %v4925_v54 = vadd.f32 %v1529_v52, %v1509_v13  ;;  %v6992_v57 = vld [vmem:[#allocation31_spill] sm:$0xff]  ;;  %v6995_v61 = vld [vmem:[#allocation37_spill] sm:$0xff] }
 0x115   :  { %v4927_v32 = vadd.f32 %v1530_v26, %v1510_v40  ;;  %v4929_v30 = vadd.f32 %v1531_v5, %v1511_v60  ;;  %v1552_v36 = vmul.f32 %v6988_v47, %v6971_v11  ;;  %v1553_v23 = vmul.f32 %v6988_v47, %v6989_v1  ;;  %v6993_v60 = vld [vmem:[#allocation33_spill] sm:$0xff]  ;;  %v6996_v45 = vld [vmem:[#allocation39_spill] sm:$0xff] }
 0x116   :  { %v1554_v4 = vmul.f32 %v6988_v47, %v6973_v31  ;;  %v1555_v33 = vmul.f32 %v6988_v47, %v6990_v53  ;;  %v1556_v27 = vmul.f32 %v6988_v47, %v6974_v14  ;;  %v1557_v59 = vmul.f32 %v6988_v47, %v6991_v17  ;;  %v6997_v51 = vld [vmem:[#allocation45_spill] sm:$0xff]  ;;  %v6998_v52 = vld [vmem:[#allocation47_spill] sm:$0xff]  ;;  %v7003_v14 = vld [vmem:[#allocation58_spill] sm:$0xff] }
 0x117   :  { %v1558_v37 = vmul.f32 %v6988_v47, %v6975_v12  ;;  %v1559_v13 = vmul.f32 %v6988_v47, %v6992_v57  ;;  %v1560_v40 = vmul.f32 %v6988_v47, %v6976_v16  ;;  %v1561_v55 = vmul.f32 %v6988_v47, %v6993_v60 }
 0x118   :  { %v1562_v20 = vmul.f32 %v6988_v47, %v6977_v0  ;;  %v1563_v21 = vmul.f32 %v6988_v47, %v6994_v18  ;;  %v1564_v25 = vmul.f32 %v6988_v47, %v6978_v62  ;;  %v1565_v43 = vmul.f32 %v6988_v47, %v6995_v61  ;;  %v6999_v61 = vld [vmem:[#allocation49_spill] sm:$0xff]  ;;  %v7000_v62 = vld [vmem:[#allocation52_spill] sm:$0xff]  ;;  %v7001_v18 = vld [vmem:[#allocation54_spill] sm:$0xff] }
 0x119   :  { %v1566_v48 = vmul.f32 %v6988_v47, %v6979_v15  ;;  %v1567_v39 = vmul.f32 %v6988_v47, %v6996_v45  ;;  %v1568_v3 = vmul.f32 %v6988_v47, %v6980_v35  ;;  %v1569_v8 = vmul.f32 %v6988_v47, %v6997_v51  ;;  %v7002_v0 = vld [vmem:[#allocation56_spill] sm:$0xff] }
 0x11a   :  { %v1570_v9 = vmul.f32 %v6988_v47, %v6981_v29  ;;  %v1571_v26 = vmul.f32 %v6988_v47, %v6998_v52  ;;  %v1572_v5 = vmul.f32 %v6988_v47, %v6982_v19  ;;  %v1573_v15 = vmul.f32 %v6988_v47, %v6999_v61 }
 0x11b   :  { %v1574_v45 = vmul.f32 %v6988_v47, %v6983_v10  ;;  %v1575_v35 = vmul.f32 %v6988_v47, %v7000_v62  ;;  %v1576_v51 = vmul.f32 %v6988_v47, %v6984_v2  ;;  %v1577_v29 = vmul.f32 %v6988_v47, %v7001_v18 }
 0x11c   :  { %v1578_v52 = vmul.f32 %v6988_v47, %v6985_v6  ;;  %v1579_v19 = vmul.f32 %v6988_v47, %v7002_v0  ;;  %v1616_v60 = vrot.slane %v1552_v36, 1  ;;  %v1617_v61 = vrot.slane %v1553_v23, 1  ;;  %v7004_v0 = vld [vmem:[#allocation60_spill] sm:$0xff] }
 0x11d   :  { %v1619_v16 = vrot.slane %v1554_v4, 1  ;;  %v1620_v57 = vrot.slane %v1555_v33, 1  ;;  %v1622_v10 = vrot.slane %v1556_v27, 1  ;;  %v1623_v12 = vrot.slane %v1557_v59, 1 }
 0x11e   :  { %v1625_v17 = vrot.slane %v1558_v37, 1  ;;  %v1626_v62 = vrot.slane %v1559_v13, 1  ;;  %v1580_v2 = vmul.f32 %v6988_v47, %v6986_v28  ;;  %v1581_v18 = vmul.f32 %v6988_v47, %v7003_v14 }
 0x11f   :  { %v1628_v53 = vrot.slane %v1560_v40, 1  ;;  %v1629_v31 = vrot.slane %v1561_v55, 1  ;;  %v1582_v6 = vmul.f32 %v6988_v47, %v6987_v24  ;;  %v1583_v36 = vmul.f32 %v6988_v47, %v7004_v0 }
 0x120   :  { %v1618_v23 = vsel %vm286_vm0, %v1616_v60, %v1617_v61  ;;  %v1621_v4 = vsel %vm286_vm0, %v1619_v16, %v1620_v57  ;;  %v1624_v33 = vsel %vm286_vm0, %v1622_v10, %v1623_v12  ;;  %v1627_v27 = vsel %vm286_vm0, %v1625_v17, %v1626_v62 }
 0x121   :  { %v1631_v59 = vrot.slane %v1562_v20, 1  ;;  %v1632_v37 = vrot.slane %v1563_v21, 1  ;;  %v1630_v13 = vsel %vm286_vm0, %v1628_v53, %v1629_v31  ;;  %v1634_v40 = vrot.slane %v1564_v25, 1 }
 0x122   :  { %v1635_v55 = vrot.slane %v1565_v43, 1  ;;  %v1637_v14 = vrot.slane %v1566_v48, 1  ;;  %v1638_v28 = vrot.slane %v1567_v39, 1  ;;  %v1640_v24 = vrot.slane %v1568_v3, 1 }
 0x123   :  { %v1641_v1 = vrot.slane %v1569_v8, 1  ;;  %v1643_v11 = vrot.slane %v1570_v9, 1  ;;  %v1644_v47 = vrot.slane %v1571_v26, 1  ;;  %v1646_v0 = vrot.slane %v1572_v5, 1 }
 0x124   :  { %v1647_v60 = vrot.slane %v1573_v15, 1  ;;  %v1649_v61 = vrot.slane %v1574_v45, 1  ;;  %v1633_v16 = vsel %vm286_vm0, %v1631_v59, %v1632_v37  ;;  %v1650_v12 = vrot.slane %v1575_v35, 1  ;;  %v7016_v37 = vld [vmem:[#allocation34_spill] sm:$0xff] }
 0x125   :  { %v1652_v10 = vrot.slane %v1576_v51, 1  ;;  %v1653_v62 = vrot.slane %v1577_v29, 1  ;;  %v1636_v17 = vsel %vm286_vm0, %v1634_v40, %v1635_v55  ;;  %v1655_v57 = vrot.slane %v1578_v52, 1  ;;  %v7017_v40 = vld [vmem:[#allocation35_spill] sm:$0xff] }
 0x126   :  { %v1656_v31 = vrot.slane %v1579_v19, 1  ;;  %v1658_v53 = vrot.slane %v1580_v2, 1  ;;  %v1639_v20 = vsel %vm286_vm0, %v1637_v14, %v1638_v28  ;;  %v1642_v21 = vsel %vm286_vm0, %v1640_v24, %v1641_v1 }
 0x127   :  { %v1659_v25 = vrot.slane %v1581_v18, 1  ;;  %v1661_v43 = vrot.slane %v1582_v6, 1  ;;  %v1645_v48 = vsel %vm286_vm0, %v1643_v11, %v1644_v47  ;;  %v1648_v15 = vsel %vm286_vm0, %v1646_v0, %v1647_v60  ;;  %v7006_v18 = vld [vmem:[#allocation4_spill] sm:$0xff] }
 0x128   :  { %v1651_v45 = vsel %vm286_vm0, %v1649_v61, %v1650_v12  ;;  %v1662_v35 = vrot.slane %v1583_v36, 1  ;;  %v1654_v29 = vsel %vm286_vm0, %v1652_v10, %v1653_v62  ;;  %v1657_v39 = vsel %vm286_vm0, %v1655_v57, %v1656_v31  ;;  %v7013_v36 = vld [vmem:[#allocation31_spill] sm:$0xff]  ;;  %v7018_v47 = vld [vmem:[#allocation36_spill] sm:$0xff]  ;;  %v7019_v61 = vld [vmem:[#allocation37_spill] sm:$0xff] }
 0x129   :  { %v5010_v19 = vadd.f32 %v1618_v23, %v4899_v46  ;;  %v5013_v14 = vadd.f32 %v1621_v4, %v4901_v49  ;;  %v1660_v2 = vsel %vm286_vm0, %v1658_v53, %v1659_v25  ;;  %v5018_v11 = vadd.f32 %v1624_v33, %v4903_v22  ;;  %v7014_v4 = vld [vmem:[#allocation32_spill] sm:$0xff]  ;;  %v7020_v12 = vld [vmem:[#allocation38_spill] sm:$0xff]  ;;  %v7021_v62 = vld [vmem:[#allocation39_spill] sm:$0xff] }
 0x12a   :  { %v1663_v6 = vsel %vm286_vm0, %v1661_v43, %v1662_v35  ;;  %v5021_v0 = vadd.f32 %v1627_v27, %v4905_v44  ;;  %v5024_v28 = vadd.f32 %v1630_v13, %v4907_v56  ;;  %v5027_v24 = vadd.f32 %v1633_v16, %v4909_v34  ;;  %v7015_v27 = vld [vmem:[#allocation33_spill] sm:$0xff]  ;;  %v7022_v57 = vld [vmem:[#allocation44_spill] sm:$0xff]  ;;  %v7025_v43 = vld [vmem:[#allocation47_spill] sm:$0xff] }
 0x12b   :  { %v5030_v46 = vadd.f32 %v1636_v17, %v4911_v42  ;;  %v5033_v49 = vadd.f32 %v1639_v20, %v4913_v58  ;;  %v5036_v1 = vadd.f32 %v1642_v21, %v4915_v41  ;;  %v5039_v22 = vadd.f32 %v1645_v48, %v4917_v38  ;;  %v7005_v38 = vld [vmem:[#allocation24_spill] sm:$0xff]  ;;  %v7023_v53 = vld [vmem:[#allocation45_spill] sm:$0xff]  ;;  %v7024_v21 = vld [vmem:[#allocation46_spill] sm:$0xff] }
 0x12c   :  { %v5042_v44 = vadd.f32 %v1648_v15, %v4919_v7  ;;  %v5045_v56 = vadd.f32 %v1651_v45, %v4921_v63  ;;  %v5048_v34 = vadd.f32 %v1654_v29, %v4923_v50  ;;  %v5051_v42 = vadd.f32 %v1657_v39, %v4925_v54  ;;  %v7007_v7 = vld [vmem:[#allocation25_spill] sm:$0xff]  ;;  %v7008_v63 = vld [vmem:[#allocation26_spill] sm:$0xff]  ;;  %v7009_v50 = vld [vmem:[#allocation27_spill] sm:$0xff] }
 0x12d   :  { %v5054_v58 = vadd.f32 %v1660_v2, %v4927_v32  ;;  %v5057_v41 = vadd.f32 %v1663_v6, %v4929_v30  ;;  %v1700_v3 = vmul.f32 %v7006_v18, %v7005_v38  ;;  %v1701_v51 = vmul.f32 %v7006_v18, %v7007_v7  ;;  %v7010_v54 = vld [vmem:[#allocation28_spill] sm:$0xff]  ;;  %v7011_v32 = vld [vmem:[#allocation29_spill] sm:$0xff]  ;;  %v7012_v30 = vld [vmem:[#allocation30_spill] sm:$0xff] }
 0x12e   :  { %v1702_v8 = vmul.f32 %v7006_v18, %v7008_v63  ;;  %v1703_v9 = vmul.f32 %v7006_v18, %v7009_v50  ;;  %v1704_v52 = vmul.f32 %v7006_v18, %v7010_v54  ;;  %v1705_v26 = vmul.f32 %v7006_v18, %v7011_v32  ;;  %v7026_v15 = vld [vmem:[#allocation48_spill] sm:$0xff]  ;;  %v7027_v35 = vld [vmem:[#allocation49_spill] sm:$0xff]  ;;  %v7028_v39 = vld [vmem:[#allocation51_spill] sm:$0xff] }
 0x12f   :  { %v1706_v5 = vmul.f32 %v7006_v18, %v7012_v30  ;;  %v1707_v23 = vmul.f32 %v7006_v18, %v7013_v36  ;;  %v1708_v33 = vmul.f32 %v7006_v18, %v7014_v4  ;;  %v1709_v59 = vmul.f32 %v7006_v18, %v7015_v27  ;;  %v7029_v6 = vld [vmem:[#allocation52_spill] sm:$0xff]  ;;  %v7030_v7 = vld [vmem:[#allocation53_spill] sm:$0xff] }
 0x130   :  { %v1710_v13 = vmul.f32 %v7006_v18, %v7016_v37  ;;  %v1711_v55 = vmul.f32 %v7006_v18, %v7017_v40  ;;  %v1712_v60 = vmul.f32 %v7006_v18, %v7018_v47  ;;  %v1713_v16 = vmul.f32 %v7006_v18, %v7019_v61  ;;  %v7032_v61 = vld [vmem:[#allocation55_spill] sm:$0xff]  ;;  %v7033_v40 = vld [vmem:[#allocation56_spill] sm:$0xff]  ;;  %v7035_v47 = vld [vmem:[#allocation58_spill] sm:$0xff] }
 0x131   :  { %v1714_v10 = vmul.f32 %v7006_v18, %v7020_v12  ;;  %v1715_v17 = vmul.f32 %v7006_v18, %v7021_v62  ;;  %v1716_v31 = vmul.f32 %v7006_v18, %v7022_v57  ;;  %v1717_v20 = vmul.f32 %v7006_v18, %v7023_v53  ;;  %v7031_v57 = vld [vmem:[#allocation54_spill] sm:$0xff]  ;;  %v7034_v12 = vld [vmem:[#allocation57_spill] sm:$0xff] }
 0x132   :  { %v1718_v25 = vmul.f32 %v7006_v18, %v7024_v21  ;;  %v1719_v48 = vmul.f32 %v7006_v18, %v7025_v43  ;;  %v1720_v45 = vmul.f32 %v7006_v18, %v7026_v15  ;;  %v1721_v29 = vmul.f32 %v7006_v18, %v7027_v35 }
 0x133   :  { %v1722_v2 = vmul.f32 %v7006_v18, %v7028_v39  ;;  %v1723_v38 = vmul.f32 %v7006_v18, %v7029_v6  ;;  %v1724_v53 = vmul.f32 %v7006_v18, %v7030_v7  ;;  %v1725_v62 = vmul.f32 %v7006_v18, %v7031_v57 }
 0x134   :  { %v1726_v43 = vmul.f32 %v7006_v18, %v7032_v61  ;;  %v1727_v27 = vmul.f32 %v7006_v18, %v7033_v40  ;;  %v1764_v36 = vrot.slane %v1700_v3, 2  ;;  %v1765_v35 = vrot.slane %v1701_v51, 2  ;;  %v7036_v61 = vld [vmem:[#allocation59_spill] sm:$0xff]  ;;  %v7037_v40 = vld [vmem:[#allocation60_spill] sm:$0xff] }
 0x135   :  { %v1767_v32 = vrot.slane %v1702_v8, 2  ;;  %v1768_v50 = vrot.slane %v1703_v9, 2  ;;  %v1770_v39 = vrot.slane %v1704_v52, 2  ;;  %v1771_v15 = vrot.slane %v1705_v26, 2 }
 0x136   :  { %v1773_v21 = vrot.slane %v1706_v5, 2  ;;  %v1774_v6 = vrot.slane %v1707_v23, 2  ;;  %v1728_v7 = vmul.f32 %v7006_v18, %v7034_v12  ;;  %v1729_v57 = vmul.f32 %v7006_v18, %v7035_v47 }
 0x137   :  { %v1776_v37 = vrot.slane %v1708_v33, 2  ;;  %v1777_v4 = vrot.slane %v1709_v59, 2  ;;  %v1730_v30 = vmul.f32 %v7006_v18, %v7036_v61  ;;  %v1731_v3 = vmul.f32 %v7006_v18, %v7037_v40 }
 0x138   :  { %v1766_v51 = vsel %vm435_vm1, %v1764_v36, %v1765_v35  ;;  %v1769_v8 = vsel %vm435_vm1, %v1767_v32, %v1768_v50  ;;  %v1772_v9 = vsel %vm435_vm1, %v1770_v39, %v1771_v15  ;;  %v1775_v52 = vsel %vm435_vm1, %v1773_v21, %v1774_v6  ;;  %v7038_v39 = vld [vmem:[#allocation88_spill] sm:$0xff]  ;;  %v7041_v6 = vld [vmem:[#allocation91_spill] sm:$0xff] }
 0x139   :  { %v1779_v26 = vrot.slane %v1710_v13, 2  ;;  %v1780_v5 = vrot.slane %v1711_v55, 2  ;;  %v1778_v23 = vsel %vm435_vm1, %v1776_v37, %v1777_v4  ;;  %v1782_v33 = vrot.slane %v1712_v60, 2 }
 0x13a   :  { %v1783_v59 = vrot.slane %v1713_v16, 2  ;;  %v1785_v47 = vrot.slane %v1714_v10, 2  ;;  %v1786_v12 = vrot.slane %v1715_v17, 2  ;;  %v1788_v61 = vrot.slane %v1716_v31, 2 }
 0x13b   :  { %v1789_v54 = vrot.slane %v1717_v20, 2  ;;  %v1791_v63 = vrot.slane %v1718_v25, 2  ;;  %v1792_v18 = vrot.slane %v1719_v48, 2  ;;  %v1794_v40 = vrot.slane %v1720_v45, 2 }
 0x13c   :  { %v1795_v36 = vrot.slane %v1721_v29, 2  ;;  %v1797_v35 = vrot.slane %v1722_v2, 2  ;;  %v1781_v50 = vsel %vm435_vm1, %v1779_v26, %v1780_v5  ;;  %v1798_v32 = vrot.slane %v1723_v38, 2  ;;  %v7048_v38 = vld [vmem:[#allocation85_spill] sm:$0xff]  ;;  %v7055_v26 = vld [vmem:[#allocation28_spill] sm:$0xff] }
 0x13d   :  { %v1800_v15 = vrot.slane %v1724_v53, 2  ;;  %v1801_v21 = vrot.slane %v1725_v62, 2  ;;  %v1784_v13 = vsel %vm435_vm1, %v1782_v33, %v1783_v59  ;;  %v1803_v55 = vrot.slane %v1726_v43, 2  ;;  %v7057_v59 = vld [vmem:[#allocation32_spill] sm:$0xff] }
 0x13e   :  { %v1804_v4 = vrot.slane %v1727_v27, 2  ;;  %v1806_v37 = vrot.slane %v1728_v7, 2  ;;  %v1787_v60 = vsel %vm435_vm1, %v1785_v47, %v1786_v12  ;;  %v1790_v16 = vsel %vm435_vm1, %v1788_v61, %v1789_v54 }
 0x13f   :  { %v1807_v10 = vrot.slane %v1729_v57, 2  ;;  %v1809_v17 = vrot.slane %v1730_v30, 2  ;;  %v1793_v31 = vsel %vm435_vm1, %v1791_v63, %v1792_v18  ;;  %v1796_v20 = vsel %vm435_vm1, %v1794_v40, %v1795_v36  ;;  %v7058_v36 = vld [vmem:[#allocation34_spill] sm:$0xff] }
 0x140   :  { %v1799_v25 = vsel %vm435_vm1, %v1797_v35, %v1798_v32  ;;  %v1810_v48 = vrot.slane %v1731_v3, 2  ;;  %v1802_v62 = vsel %vm435_vm1, %v1800_v15, %v1801_v21  ;;  %v1805_v53 = vsel %vm435_vm1, %v1803_v55, %v1804_v4  ;;  %v7060_v15 = vld [vmem:[#allocation38_spill] sm:$0xff] }
 0x141   :  { %v1828_v27 = vadd.f32 %v1766_v51, %v5010_v19  ;;  %v1829_v43 = vadd.f32 %v1769_v8, %v5013_v14  ;;  %v1808_v47 = vsel %vm435_vm1, %v1806_v37, %v1807_v10  ;;  %v1830_v54 = vadd.f32 %v1772_v9, %v5018_v11  ;;  %v7052_v51 = vld [vmem:[#allocation87_spill] sm:$0xff]  ;;  %v7054_v9 = vld [vmem:[#allocation26_spill] sm:$0xff] }
 0x142   :  { %v1831_v30 = vadd.f32 %v1775_v52, %v5021_v0  ;;  %v1832_v63 = vadd.f32 %v1778_v23, %v5024_v28  ;;  %v1811_v40 = vsel %vm435_vm1, %v1809_v17, %v1810_v48  ;;  %v1833_v61 = vadd.f32 %v1781_v50, %v5027_v24  ;;  %v7039_v24 = vld [vmem:[#allocation90_spill] sm:$0xff]  ;;  %v7059_v50 = vld [vmem:[#allocation36_spill] sm:$0xff]  ;;  %v7064_v10 = vld [vmem:[#allocation51_spill] sm:$0xff] }
 0x143   :  { %v1834_v12 = vadd.f32 %v1784_v13, %v5030_v46  ;;  %v1835_v57 = vadd.f32 %v1787_v60, %v5033_v49  ;;  %v1836_v19 = vadd.f32 %v1790_v16, %v5036_v1  ;;  %v1837_v14 = vadd.f32 %v1793_v31, %v5039_v22  ;;  %v7040_v49 = vld [vmem:[#allocation81_spill] sm:$0xff]  ;;  %v7042_v22 = vld [vmem:[#allocation82_spill] sm:$0xff]  ;;  %v7061_v13 = vld [vmem:[#allocation40_spill] sm:$0xff] }
 0x144   :  { %v1838_v45 = vadd.f32 %v1796_v20, %v5042_v44  ;;  %v1839_v11 = vadd.f32 %v1799_v25, %v5045_v56  ;;  %v1840_v0 = vadd.f32 %v1802_v62, %v5048_v34  ;;  %v1841_v28 = vadd.f32 %v1805_v53, %v5051_v42  ;;  %v7044_v56 = vld [vmem:[#allocation83_spill] sm:$0xff]  ;;  %v7046_v42 = vld [vmem:[#allocation84_spill] sm:$0xff]  ;;  %v7056_v23 = vld [vmem:[#allocation30_spill] sm:$0xff] }
 0x145   :  { %v1842_v29 = vadd.f32 %v1808_v47, %v5054_v58  ;;  %v1847_v2 = vrot.slane %v7039_v24, %v7038_v39  ;;  %v1843_v46 = vadd.f32 %v1811_v40, %v5057_v41  ;;  %v5159_v1 = vrot.slane %v7041_v6, %v7040_v49  ;;  %v7050_v41 = vld [vmem:[#allocation86_spill] sm:$0xff]  ;;  %v7063_v60 = vld [vmem:[#allocation48_spill] sm:$0xff]  ;;  %v7065_v31 = vld [vmem:[#allocation53_spill] sm:$0xff] }
 0x146   :  { %v5163_v44 = vrot.slane %v7041_v6, %v7042_v22  ;;  %v5167_v34 = vrot.slane %v7041_v6, %v7044_v56  ;;  %v5171_v58 = vrot.slane %v7041_v6, %v7046_v42  ;;  %v5175_v7 = vrot.slane %v7041_v6, %v7048_v38  ;;  %v7062_v4 = vld [vmem:[#allocation46_spill] sm:$0xff]  ;;  %v7066_v25 = vld [vmem:[#allocation55_spill] sm:$0xff]  ;;  %v7067_v62 = vld [vmem:[#allocation57_spill] sm:$0xff] }
 0x147   :  { %v5179_v3 = vrot.slane %v7041_v6, %v7050_v41  ;;  %v5183_v8 = vrot.slane %v7041_v6, %v7052_v51  ;;  %v1848_v52 = vmul.f32 %v1847_v2, %v7054_v9  ;;  %v1849_v5 = vmul.f32 %v1847_v2, %v7055_v26  ;;  %v7068_v47 = vld [vmem:[#allocation59_spill] sm:$0xff]  ;;  %v7069_v24 = vld [vmem:[#allocation61_spill] sm:$0xff] }
 0x148   :  { %7043 = vst [vmem:[#allocation96_spill] sm:$0xff] %v5163_v44  ;;  %7045 = vst [vmem:[#allocation5_spill] sm:$0xff] %v5167_v34  ;;  %v1850_v33 = vmul.f32 %v1847_v2, %v7056_v23  ;;  %v1851_v18 = vmul.f32 %v1847_v2, %v7057_v59  ;;  %v1852_v35 = vmul.f32 %v1847_v2, %v7058_v36 }
 0x149   :  { %7047 = vst [vmem:[#allocation97_spill] sm:$0xff] %v5171_v58  ;;  %7049 = vst [vmem:[#allocation98_spill] sm:$0xff] %v5175_v7  ;;  %v1853_v32 = vmul.f32 %v1847_v2, %v7059_v50  ;;  %v1854_v21 = vmul.f32 %v1847_v2, %v7060_v15  ;;  %v1855_v55 = vmul.f32 %v1847_v2, %v7061_v13  ;;  %v7079_v58 = vld [vmem:[#allocation49_spill] sm:$0xff] }
 0x14a   :  { %7051 = vst [vmem:[#allocation7_spill] sm:$0xff] %v5179_v3  ;;  %7053 = vst [vmem:[#allocation8_spill] sm:$0xff] %v5183_v8  ;;  %v1856_v37 = vmul.f32 %v1847_v2, %v7062_v4  ;;  %v1857_v16 = vmul.f32 %v1847_v2, %v7063_v60  ;;  %v1858_v17 = vmul.f32 %v1847_v2, %v7064_v10 }
 0x14b   :  { %v1859_v20 = vmul.f32 %v1847_v2, %v7065_v31  ;;  %v1860_v48 = vmul.f32 %v1847_v2, %v7066_v25  ;;  %v1861_v53 = vmul.f32 %v1847_v2, %v7067_v62  ;;  %v1862_v40 = vmul.f32 %v1847_v2, %v7068_v47 }
 0x14c   :  { %v1863_v42 = vmul.f32 %v1847_v2, %v7069_v24  ;;  %v5201_v38 = vadd.f32 %v1848_v52, %v1828_v27  ;;  %v5203_v41 = vadd.f32 %v1849_v5, %v1829_v43  ;;  %v5205_v51 = vadd.f32 %v1850_v33, %v1830_v54  ;;  %v7074_v33 = vld [vmem:[#allocation35_spill] sm:$0xff] }
 0x14d   :  { %v5207_v56 = vadd.f32 %v1851_v18, %v1831_v30  ;;  %v5209_v22 = vadd.f32 %v1852_v35, %v1832_v63  ;;  %v5211_v49 = vadd.f32 %v1853_v32, %v1833_v61  ;;  %v5213_v6 = vadd.f32 %v1854_v21, %v1834_v12  ;;  %v7075_v32 = vld [vmem:[#allocation37_spill] sm:$0xff] }
 0x14e   :  { %v5215_v39 = vadd.f32 %v1855_v55, %v1835_v57  ;;  %v5217_v8 = vadd.f32 %v1856_v37, %v1836_v19  ;;  %v5219_v3 = vadd.f32 %v1857_v16, %v1837_v14  ;;  %v5221_v27 = vadd.f32 %v1858_v17, %v1838_v45  ;;  %v7070_v57 = vld [vmem:[#allocation27_spill] sm:$0xff]  ;;  %v7071_v45 = vld [vmem:[#allocation29_spill] sm:$0xff] }
 0x14f   :  { %v5223_v43 = vadd.f32 %v1859_v20, %v1839_v11  ;;  %v5225_v54 = vadd.f32 %v1860_v48, %v1840_v0  ;;  %v5227_v30 = vadd.f32 %v1861_v53, %v1841_v28  ;;  %v5229_v63 = vadd.f32 %v1862_v40, %v1842_v29  ;;  %v7072_v28 = vld [vmem:[#allocation31_spill] sm:$0xff]  ;;  %v7077_v20 = vld [vmem:[#allocation41_spill] sm:$0xff] }
 0x150   :  { %v5231_v61 = vadd.f32 %v1863_v42, %v1843_v46  ;;  %v1884_v12 = vmul.f32 %v5159_v1, %v7054_v9  ;;  %v1885_v19 = vmul.f32 %v5159_v1, %v7070_v57  ;;  %v1886_v14 = vmul.f32 %v5159_v1, %v7055_v26  ;;  %v7073_v46 = vld [vmem:[#allocation33_spill] sm:$0xff]  ;;  %v7076_v37 = vld [vmem:[#allocation39_spill] sm:$0xff] }
 0x151   :  { %v1887_v11 = vmul.f32 %v5159_v1, %v7071_v45  ;;  %v1888_v0 = vmul.f32 %v5159_v1, %v7056_v23  ;;  %v1889_v29 = vmul.f32 %v5159_v1, %v7072_v28  ;;  %v1890_v2 = vmul.f32 %v5159_v1, %v7057_v59  ;;  %v7078_v40 = vld [vmem:[#allocation47_spill] sm:$0xff]  ;;  %v7084_v45 = vld [vmem:[#allocation60_spill] sm:$0xff] }
 0x152   :  { %v1891_v52 = vmul.f32 %v5159_v1, %v7073_v46  ;;  %v1892_v5 = vmul.f32 %v5159_v1, %v7058_v36  ;;  %v1893_v18 = vmul.f32 %v5159_v1, %v7074_v33  ;;  %v1894_v35 = vmul.f32 %v5159_v1, %v7059_v50  ;;  %v7082_v50 = vld [vmem:[#allocation56_spill] sm:$0xff]  ;;  %v7083_v33 = vld [vmem:[#allocation58_spill] sm:$0xff] }
 0x153   :  { %v1895_v21 = vmul.f32 %v5159_v1, %v7075_v32  ;;  %v1896_v55 = vmul.f32 %v5159_v1, %v7060_v15  ;;  %v1897_v16 = vmul.f32 %v5159_v1, %v7076_v37  ;;  %v1898_v17 = vmul.f32 %v5159_v1, %v7061_v13  ;;  %v7080_v15 = vld [vmem:[#allocation52_spill] sm:$0xff]  ;;  %v7081_v32 = vld [vmem:[#allocation54_spill] sm:$0xff] }
 0x154   :  { %v1899_v48 = vmul.f32 %v5159_v1, %v7077_v20  ;;  %v1900_v53 = vmul.f32 %v5159_v1, %v7062_v4  ;;  %v1901_v42 = vmul.f32 %v5159_v1, %v7078_v40  ;;  %v1902_v7 = vmul.f32 %v5159_v1, %v7063_v60 }
 0x155   :  { %v1903_v34 = vmul.f32 %v5159_v1, %v7079_v58  ;;  %v1904_v37 = vmul.f32 %v5159_v1, %v7064_v10  ;;  %v1905_v13 = vmul.f32 %v5159_v1, %v7080_v15  ;;  %v1906_v20 = vmul.f32 %v5159_v1, %v7065_v31 }
 0x156   :  { %v1907_v4 = vmul.f32 %v5159_v1, %v7081_v32  ;;  %v1908_v40 = vmul.f32 %v5159_v1, %v7066_v25  ;;  %v1909_v60 = vmul.f32 %v5159_v1, %v7082_v50  ;;  %v1910_v58 = vmul.f32 %v5159_v1, %v7067_v62 }
 0x157   :  { %v1911_v10 = vmul.f32 %v5159_v1, %v7083_v33  ;;  %v1948_v36 = vrot.slane %v1884_v12, 1  ;;  %v1949_v15 = vrot.slane %v1885_v19, 1  ;;  %v1951_v46 = vrot.slane %v1886_v14, 1  ;;  %v7085_v33 = vld [vmem:[#allocation62_spill] sm:$0xff] }
 0x158   :  { %v1952_v59 = vrot.slane %v1887_v11, 1  ;;  %v1954_v31 = vrot.slane %v1888_v0, 1  ;;  %v1955_v28 = vrot.slane %v1889_v29, 1  ;;  %v1957_v23 = vrot.slane %v1890_v2, 1 }
 0x159   :  { %v1958_v32 = vrot.slane %v1891_v52, 1  ;;  %v1912_v25 = vmul.f32 %v5159_v1, %v7068_v47  ;;  %v1913_v50 = vmul.f32 %v5159_v1, %v7084_v45  ;;  %v1960_v26 = vrot.slane %v1892_v5, 1 }
 0x15a   :  { %v1961_v57 = vrot.slane %v1893_v18, 1  ;;  %v1914_v62 = vmul.f32 %v5159_v1, %v7069_v24  ;;  %v1915_v12 = vmul.f32 %v5159_v1, %v7085_v33  ;;  %v1950_v19 = vsel %vm286_vm0, %v1948_v36, %v1949_v15 }
 0x15b   :  { %v1953_v14 = vsel %vm286_vm0, %v1951_v46, %v1952_v59  ;;  %v1956_v11 = vsel %vm286_vm0, %v1954_v31, %v1955_v28  ;;  %v1959_v0 = vsel %vm286_vm0, %v1957_v23, %v1958_v32  ;;  %v1963_v29 = vrot.slane %v1894_v35, 1 }
 0x15c   :  { %v1964_v2 = vrot.slane %v1895_v21, 1  ;;  %v1962_v52 = vsel %vm286_vm0, %v1960_v26, %v1961_v57  ;;  %v1966_v5 = vrot.slane %v1896_v55, 1  ;;  %v1967_v18 = vrot.slane %v1897_v16, 1 }
 0x15d   :  { %v1969_v45 = vrot.slane %v1898_v17, 1  ;;  %v1970_v47 = vrot.slane %v1899_v48, 1  ;;  %v1972_v24 = vrot.slane %v1900_v53, 1  ;;  %v1973_v44 = vrot.slane %v1901_v42, 1 }
 0x15e   :  { %v1975_v9 = vrot.slane %v1902_v7, 1  ;;  %v1976_v1 = vrot.slane %v1903_v34, 1  ;;  %v1978_v33 = vrot.slane %v1904_v37, 1  ;;  %v1979_v36 = vrot.slane %v1905_v13, 1 }
 0x15f   :  { %v1981_v15 = vrot.slane %v1906_v20, 1  ;;  %v1965_v59 = vsel %vm286_vm0, %v1963_v29, %v1964_v2  ;;  %v1982_v31 = vrot.slane %v1907_v4, 1  ;;  %v1984_v28 = vrot.slane %v1908_v40, 1  ;;  %v7097_v2 = vld [vmem:[#allocation36_spill] sm:$0xff] }
 0x160   :  { %v1985_v23 = vrot.slane %v1909_v60, 1  ;;  %v1968_v46 = vsel %vm286_vm0, %v1966_v5, %v1967_v18  ;;  %v1987_v35 = vrot.slane %v1910_v58, 1  ;;  %v1988_v26 = vrot.slane %v1911_v10, 1  ;;  %v7098_v5 = vld [vmem:[#allocation37_spill] sm:$0xff] }
 0x161   :  { %v1990_v57 = vrot.slane %v1912_v25, 1  ;;  %v1971_v32 = vsel %vm286_vm0, %v1969_v45, %v1970_v47  ;;  %v1974_v21 = vsel %vm286_vm0, %v1972_v24, %v1973_v44  ;;  %v1991_v55 = vrot.slane %v1913_v50, 1  ;;  %v7087_v45 = vld [vmem:[#allocation96_spill] sm:$0xff] }
 0x162   :  { %v1993_v7 = vrot.slane %v1914_v62, 1  ;;  %v1977_v34 = vsel %vm286_vm0, %v1975_v9, %v1976_v1  ;;  %v1980_v13 = vsel %vm286_vm0, %v1978_v33, %v1979_v36  ;;  %v1983_v37 = vsel %vm286_vm0, %v1981_v15, %v1982_v31  ;;  %v7099_v1 = vld [vmem:[#allocation38_spill] sm:$0xff]  ;;  %v7100_v15 = vld [vmem:[#allocation39_spill] sm:$0xff]  ;;  %v7101_v31 = vld [vmem:[#allocation40_spill] sm:$0xff] }
 0x163   :  { %v1994_v4 = vrot.slane %v1915_v12, 1  ;;  %v1986_v60 = vsel %vm286_vm0, %v1984_v28, %v1985_v23  ;;  %v1989_v16 = vsel %vm286_vm0, %v1987_v35, %v1988_v26  ;;  %v5312_v58 = vadd.f32 %v1950_v19, %v5201_v38  ;;  %v7094_v12 = vld [vmem:[#allocation33_spill] sm:$0xff]  ;;  %v7103_v35 = vld [vmem:[#allocation46_spill] sm:$0xff] }
 0x164   :  { %v5315_v10 = vadd.f32 %v1953_v14, %v5203_v41  ;;  %v1992_v44 = vsel %vm286_vm0, %v1990_v57, %v1991_v55  ;;  %v5320_v9 = vadd.f32 %v1956_v11, %v5205_v51  ;;  %v5323_v25 = vadd.f32 %v1959_v0, %v5207_v56  ;;  %v7095_v14 = vld [vmem:[#allocation34_spill] sm:$0xff]  ;;  %v7096_v0 = vld [vmem:[#allocation35_spill] sm:$0xff]  ;;  %v7102_v23 = vld [vmem:[#allocation41_spill] sm:$0xff] }
 0x165   :  { %v1995_v50 = vsel %vm286_vm0, %v1993_v7, %v1994_v4  ;;  %v5326_v62 = vadd.f32 %v1962_v52, %v5209_v22  ;;  %v5329_v47 = vadd.f32 %v1965_v59, %v5211_v49  ;;  %v5332_v24 = vadd.f32 %v1968_v46, %v5213_v6  ;;  %v7104_v57 = vld [vmem:[#allocation47_spill] sm:$0xff]  ;;  %v7106_v7 = vld [vmem:[#allocation49_spill] sm:$0xff]  ;;  %v7108_v4 = vld [vmem:[#allocation52_spill] sm:$0xff] }
 0x166   :  { %v5335_v38 = vadd.f32 %v1971_v32, %v5215_v39  ;;  %v5338_v41 = vadd.f32 %v1974_v21, %v5217_v8  ;;  %v5341_v51 = vadd.f32 %v1977_v34, %v5219_v3  ;;  %v5344_v56 = vadd.f32 %v1980_v13, %v5221_v27  ;;  %v7086_v3 = vld [vmem:[#allocation26_spill] sm:$0xff]  ;;  %v7088_v27 = vld [vmem:[#allocation27_spill] sm:$0xff]  ;;  %v7105_v21 = vld [vmem:[#allocation48_spill] sm:$0xff] }
 0x167   :  { %v5347_v22 = vadd.f32 %v1983_v37, %v5223_v43  ;;  %v5350_v49 = vadd.f32 %v1986_v60, %v5225_v54  ;;  %v5353_v6 = vadd.f32 %v1989_v16, %v5227_v30  ;;  %v5356_v39 = vadd.f32 %v1992_v44, %v5229_v63  ;;  %v7089_v43 = vld [vmem:[#allocation28_spill] sm:$0xff]  ;;  %v7090_v54 = vld [vmem:[#allocation29_spill] sm:$0xff]  ;;  %v7091_v30 = vld [vmem:[#allocation30_spill] sm:$0xff] }
 0x168   :  { %v5359_v8 = vadd.f32 %v1995_v50, %v5231_v61  ;;  %v2032_v33 = vmul.f32 %v7087_v45, %v7086_v3  ;;  %v2033_v17 = vmul.f32 %v7087_v45, %v7088_v27  ;;  %v2034_v20 = vmul.f32 %v7087_v45, %v7089_v43  ;;  %v7092_v63 = vld [vmem:[#allocation31_spill] sm:$0xff]  ;;  %v7093_v61 = vld [vmem:[#allocation32_spill] sm:$0xff]  ;;  %v7109_v16 = vld [vmem:[#allocation53_spill] sm:$0xff] }
 0x169   :  { %v2035_v48 = vmul.f32 %v7087_v45, %v7090_v54  ;;  %v2036_v53 = vmul.f32 %v7087_v45, %v7091_v30  ;;  %v2037_v40 = vmul.f32 %v7087_v45, %v7092_v63  ;;  %v2038_v42 = vmul.f32 %v7087_v45, %v7093_v61  ;;  %v7107_v13 = vld [vmem:[#allocation51_spill] sm:$0xff]  ;;  %v7110_v50 = vld [vmem:[#allocation54_spill] sm:$0xff]  ;;  %v7112_v54 = vld [vmem:[#allocation56_spill] sm:$0xff] }
 0x16a   :  { %v2039_v19 = vmul.f32 %v7087_v45, %v7094_v12  ;;  %v2040_v11 = vmul.f32 %v7087_v45, %v7095_v14  ;;  %v2041_v29 = vmul.f32 %v7087_v45, %v7096_v0  ;;  %v2042_v52 = vmul.f32 %v7087_v45, %v7097_v2  ;;  %v7111_v27 = vld [vmem:[#allocation55_spill] sm:$0xff]  ;;  %v7113_v63 = vld [vmem:[#allocation57_spill] sm:$0xff]  ;;  %v7114_v12 = vld [vmem:[#allocation58_spill] sm:$0xff] }
 0x16b   :  { %v2043_v18 = vmul.f32 %v7087_v45, %v7098_v5  ;;  %v2044_v36 = vmul.f32 %v7087_v45, %v7099_v1  ;;  %v2045_v59 = vmul.f32 %v7087_v45, %v7100_v15  ;;  %v2046_v28 = vmul.f32 %v7087_v45, %v7101_v31 }
 0x16c   :  { %v2047_v46 = vmul.f32 %v7087_v45, %v7102_v23  ;;  %v2048_v26 = vmul.f32 %v7087_v45, %v7103_v35  ;;  %v2049_v32 = vmul.f32 %v7087_v45, %v7104_v57  ;;  %v2050_v55 = vmul.f32 %v7087_v45, %v7105_v21  ;;  %v7116_v57 = vld [vmem:[#allocation60_spill] sm:$0xff] }
 0x16d   :  { %v2051_v34 = vmul.f32 %v7087_v45, %v7106_v7  ;;  %v2052_v37 = vmul.f32 %v7087_v45, %v7107_v13  ;;  %v2053_v60 = vmul.f32 %v7087_v45, %v7108_v4  ;;  %v2054_v44 = vmul.f32 %v7087_v45, %v7109_v16  ;;  %v7115_v4 = vld [vmem:[#allocation59_spill] sm:$0xff] }
 0x16e   :  { %v2055_v3 = vmul.f32 %v7087_v45, %v7110_v50  ;;  %v2056_v43 = vmul.f32 %v7087_v45, %v7111_v27  ;;  %v2057_v30 = vmul.f32 %v7087_v45, %v7112_v54  ;;  %v2058_v61 = vmul.f32 %v7087_v45, %v7113_v63  ;;  %v7117_v63 = vld [vmem:[#allocation61_spill] sm:$0xff] }
 0x16f   :  { %v2059_v14 = vmul.f32 %v7087_v45, %v7114_v12  ;;  %v2096_v0 = vrot.slane %v2032_v33, 2  ;;  %v2097_v2 = vrot.slane %v2033_v17, 2  ;;  %v2099_v5 = vrot.slane %v2034_v20, 2  ;;  %v7118_v12 = vld [vmem:[#allocation62_spill] sm:$0xff] }
 0x170   :  { %v2100_v1 = vrot.slane %v2035_v48, 2  ;;  %v2102_v15 = vrot.slane %v2036_v53, 2  ;;  %v2103_v31 = vrot.slane %v2037_v40, 2  ;;  %v2105_v23 = vrot.slane %v2038_v42, 2 }
 0x171   :  { %v2106_v50 = vrot.slane %v2039_v19, 2  ;;  %v2060_v7 = vmul.f32 %v7087_v45, %v7115_v4  ;;  %v2061_v54 = vmul.f32 %v7087_v45, %v7116_v57  ;;  %v2108_v27 = vrot.slane %v2040_v11, 2 }
 0x172   :  { %v2109_v16 = vrot.slane %v2041_v29, 2  ;;  %v2062_v13 = vmul.f32 %v7087_v45, %v7117_v63  ;;  %v2063_v33 = vmul.f32 %v7087_v45, %v7118_v12  ;;  %v2098_v17 = vsel %vm435_vm1, %v2096_v0, %v2097_v2 }
 0x173   :  { %v2101_v20 = vsel %vm435_vm1, %v2099_v5, %v2100_v1  ;;  %v2104_v48 = vsel %vm435_vm1, %v2102_v15, %v2103_v31  ;;  %v2107_v53 = vsel %vm435_vm1, %v2105_v23, %v2106_v50  ;;  %v2111_v40 = vrot.slane %v2042_v52, 2  ;;  %v7124_v31 = vld [vmem:[#allocation51_spill] sm:$0xff] }
 0x174   :  { %v2112_v42 = vrot.slane %v2043_v18, 2  ;;  %v2110_v19 = vsel %vm435_vm1, %v2108_v27, %v2109_v16  ;;  %v2114_v11 = vrot.slane %v2044_v36, 2  ;;  %v2115_v29 = vrot.slane %v2045_v59, 2  ;;  %v7126_v23 = vld [vmem:[#allocation55_spill] sm:$0xff] }
 0x175   :  { %v2117_v57 = vrot.slane %v2046_v28, 2  ;;  %v2118_v4 = vrot.slane %v2047_v46, 2  ;;  %v2120_v63 = vrot.slane %v2048_v26, 2  ;;  %v2121_v21 = vrot.slane %v2049_v32, 2 }
 0x176   :  { %v2123_v35 = vrot.slane %v2050_v55, 2  ;;  %v2124_v45 = vrot.slane %v2051_v34, 2  ;;  %v2126_v12 = vrot.slane %v2052_v37, 2  ;;  %v2127_v0 = vrot.slane %v2053_v60, 2 }
 0x177   :  { %v2129_v2 = vrot.slane %v2054_v44, 2  ;;  %v2113_v5 = vsel %vm435_vm1, %v2111_v40, %v2112_v42  ;;  %v2130_v1 = vrot.slane %v2055_v3, 2  ;;  %v2132_v15 = vrot.slane %v2056_v43, 2  ;;  %v7130_v42 = vld [vmem:[#allocation66_spill] sm:$0xff] }
 0x178   :  { %v2133_v50 = vrot.slane %v2057_v30, 2  ;;  %v2116_v52 = vsel %vm435_vm1, %v2114_v11, %v2115_v29  ;;  %v2135_v18 = vrot.slane %v2058_v61, 2  ;;  %v2136_v16 = vrot.slane %v2059_v14, 2  ;;  %v7119_v61 = vld [vmem:[#allocation42_spill] sm:$0xff]  ;;  %v7131_v11 = vld [vmem:[#allocation68_spill] sm:$0xff] }
 0x179   :  { %v2138_v36 = vrot.slane %v2060_v7, 2  ;;  %v2119_v59 = vsel %vm435_vm1, %v2117_v57, %v2118_v4  ;;  %v2122_v28 = vsel %vm435_vm1, %v2120_v63, %v2121_v21  ;;  %v2139_v46 = vrot.slane %v2061_v54, 2  ;;  %v7122_v14 = vld [vmem:[#allocation46_spill] sm:$0xff] }
 0x17a   :  { %v2141_v26 = vrot.slane %v2062_v13, 2  ;;  %v2125_v32 = vsel %vm435_vm1, %v2123_v35, %v2124_v45  ;;  %v2128_v55 = vsel %vm435_vm1, %v2126_v12, %v2127_v0  ;;  %v2131_v34 = vsel %vm435_vm1, %v2129_v2, %v2130_v1  ;;  %v7132_v45 = vld [vmem:[#allocation70_spill] sm:$0xff]  ;;  %v7133_v2 = vld [vmem:[#allocation72_spill] sm:$0xff] }
 0x17b   :  { %v2142_v37 = vrot.slane %v2063_v33, 2  ;;  %v2134_v60 = vsel %vm435_vm1, %v2132_v15, %v2133_v50  ;;  %v2137_v44 = vsel %vm435_vm1, %v2135_v18, %v2136_v16  ;;  %v2160_v3 = vadd.f32 %v2098_v17, %v5312_v58  ;;  %v7127_v33 = vld [vmem:[#allocation57_spill] sm:$0xff]  ;;  %v7134_v1 = vld [vmem:[#allocation74_spill] sm:$0xff]  ;;  %v7135_v50 = vld [vmem:[#allocation76_spill] sm:$0xff] }
 0x17c   :  { %v2161_v7 = vadd.f32 %v2101_v20, %v5315_v10  ;;  %v2140_v57 = vsel %vm435_vm1, %v2138_v36, %v2139_v46  ;;  %v2162_v13 = vadd.f32 %v2104_v48, %v5320_v9  ;;  %v2163_v35 = vadd.f32 %v2107_v53, %v5323_v25  ;;  %v7128_v20 = vld [vmem:[#allocation63_spill] sm:$0xff]  ;;  %v7129_v53 = vld [vmem:[#allocation64_spill] sm:$0xff] }
 0x17d   :  { %v2143_v21 = vsel %vm435_vm1, %v2141_v26, %v2142_v37  ;;  %v2164_v4 = vadd.f32 %v2110_v19, %v5326_v62  ;;  %v2165_v27 = vadd.f32 %v2113_v5, %v5329_v47  ;;  %v2166_v43 = vadd.f32 %v2116_v52, %v5332_v24  ;;  %v7120_v24 = vld [vmem:[#allocation5_spill] sm:$0xff] }
 0x17e   :  { %v2167_v54 = vadd.f32 %v2119_v59, %v5335_v38  ;;  %v2168_v58 = vadd.f32 %v2122_v28, %v5338_v41  ;;  %v2169_v10 = vadd.f32 %v2125_v32, %v5341_v51  ;;  %v2170_v30 = vadd.f32 %v2128_v55, %v5344_v56  ;;  %v7121_v38 = vld [vmem:[#allocation44_spill] sm:$0xff] }
 0x17f   :  { %v2171_v63 = vadd.f32 %v2131_v34, %v5347_v22  ;;  %v2172_v9 = vadd.f32 %v2134_v60, %v5350_v49  ;;  %v2173_v25 = vadd.f32 %v2137_v44, %v5353_v6  ;;  %v2174_v62 = vadd.f32 %v2140_v57, %v5356_v39  ;;  %v7123_v56 = vld [vmem:[#allocation48_spill] sm:$0xff]  ;;  %v7125_v6 = vld [vmem:[#allocation53_spill] sm:$0xff] }
 0x180   :  { %v2175_v47 = vadd.f32 %v2143_v21, %v5359_v8  ;;  %v2180_v12 = vmul.f32 %v7120_v24, %v7119_v61  ;;  %v2181_v41 = vmul.f32 %v7120_v24, %v7121_v38  ;;  %v2182_v51 = vmul.f32 %v7120_v24, %v7122_v14  ;;  %v7136_v21 = vld [vmem:[#allocation97_spill] sm:$0xff] }
 0x181   :  { %v2183_v22 = vmul.f32 %v7120_v24, %v7123_v56  ;;  %v2184_v49 = vmul.f32 %v7120_v24, %v7124_v31  ;;  %v2185_v39 = vmul.f32 %v7120_v24, %v7125_v6  ;;  %v2186_v8 = vmul.f32 %v7120_v24, %v7126_v23 }
 0x182   :  { %v2187_v17 = vmul.f32 %v7120_v24, %v7127_v33  ;;  %v2188_v48 = vmul.f32 %v7120_v24, %v7128_v20  ;;  %v2189_v40 = vmul.f32 %v7120_v24, %v7129_v53  ;;  %v2190_v19 = vmul.f32 %v7120_v24, %v7130_v42 }
 0x183   :  { %v2191_v29 = vmul.f32 %v7120_v24, %v7131_v11  ;;  %v2192_v0 = vmul.f32 %v7120_v24, %v7132_v45  ;;  %v2193_v5 = vmul.f32 %v7120_v24, %v7133_v2  ;;  %v2194_v15 = vmul.f32 %v7120_v24, %v7134_v1 }
 0x184   :  { %v2195_v52 = vmul.f32 %v7120_v24, %v7135_v50  ;;  %v5489_v18 = vadd.f32 %v2180_v12, %v2160_v3  ;;  %v5491_v16 = vadd.f32 %v2181_v41, %v2161_v7  ;;  %v5493_v36 = vadd.f32 %v2182_v51, %v2162_v13  ;;  %v7142_v41 = vld [vmem:[#allocation54_spill] sm:$0xff] }
 0x185   :  { %v5495_v59 = vadd.f32 %v2183_v22, %v2163_v35  ;;  %v5497_v28 = vadd.f32 %v2184_v49, %v2164_v4  ;;  %v5499_v46 = vadd.f32 %v2185_v39, %v2165_v27  ;;  %v5501_v26 = vadd.f32 %v2186_v8, %v2166_v43  ;;  %v7137_v35 = vld [vmem:[#allocation43_spill] sm:$0xff]  ;;  %v7138_v43 = vld [vmem:[#allocation45_spill] sm:$0xff]  ;;  %v7143_v49 = vld [vmem:[#allocation56_spill] sm:$0xff] }
 0x186   :  { %v5503_v32 = vadd.f32 %v2187_v17, %v2167_v54  ;;  %v5505_v55 = vadd.f32 %v2188_v48, %v2168_v58  ;;  %v5507_v34 = vadd.f32 %v2189_v40, %v2169_v10  ;;  %v5509_v37 = vadd.f32 %v2190_v19, %v2170_v30  ;;  %v7139_v10 = vld [vmem:[#allocation47_spill] sm:$0xff]  ;;  %v7144_v17 = vld [vmem:[#allocation58_spill] sm:$0xff] }
 0x187   :  { %v5511_v60 = vadd.f32 %v2191_v29, %v2171_v63  ;;  %v5513_v44 = vadd.f32 %v2192_v0, %v2172_v9  ;;  %v5515_v3 = vadd.f32 %v2193_v5, %v2173_v25  ;;  %v5517_v7 = vadd.f32 %v2194_v15, %v2174_v62  ;;  %v7140_v9 = vld [vmem:[#allocation49_spill] sm:$0xff]  ;;  %v7145_v19 = vld [vmem:[#allocation50_spill] sm:$0xff] }
 0x188   :  { %v5519_v57 = vadd.f32 %v2195_v52, %v2175_v47  ;;  %v2216_v13 = vmul.f32 %v7136_v21, %v7119_v61  ;;  %v2217_v4 = vmul.f32 %v7136_v21, %v7137_v35  ;;  %v2218_v27 = vmul.f32 %v7136_v21, %v7121_v38  ;;  %v7141_v47 = vld [vmem:[#allocation52_spill] sm:$0xff]  ;;  %v7147_v15 = vld [vmem:[#allocation65_spill] sm:$0xff] }
 0x189   :  { %v2219_v54 = vmul.f32 %v7136_v21, %v7138_v43  ;;  %v2220_v58 = vmul.f32 %v7136_v21, %v7122_v14  ;;  %v2221_v30 = vmul.f32 %v7136_v21, %v7139_v10  ;;  %v2222_v63 = vmul.f32 %v7136_v21, %v7123_v56  ;;  %v7152_v14 = vld [vmem:[#allocation75_spill] sm:$0xff] }
 0x18a   :  { %v2223_v25 = vmul.f32 %v7136_v21, %v7140_v9  ;;  %v2224_v62 = vmul.f32 %v7136_v21, %v7124_v31  ;;  %v2225_v24 = vmul.f32 %v7136_v21, %v7141_v47  ;;  %v2226_v12 = vmul.f32 %v7136_v21, %v7125_v6  ;;  %v7151_v6 = vld [vmem:[#allocation73_spill] sm:$0xff] }
 0x18b   :  { %v2227_v51 = vmul.f32 %v7136_v21, %v7142_v41  ;;  %v2228_v22 = vmul.f32 %v7136_v21, %v7126_v23  ;;  %v2229_v39 = vmul.f32 %v7136_v21, %v7143_v49  ;;  %v2230_v8 = vmul.f32 %v7136_v21, %v7127_v33  ;;  %v7148_v33 = vld [vmem:[#allocation67_spill] sm:$0xff] }
 0x18c   :  { %v2231_v48 = vmul.f32 %v7136_v21, %v7144_v17  ;;  %v2232_v40 = vmul.f32 %v7136_v21, %v7128_v20  ;;  %v7146_v29 = vunpack.c.l.bf16 %v7145_v19  ;;  %v2234_v5 = vmul.f32 %v7136_v21, %v7129_v53  ;;  %v7149_v20 = vld [vmem:[#allocation69_spill] sm:$0xff]  ;;  %v7150_v41 = vld [vmem:[#allocation71_spill] sm:$0xff] }
 0x18d   :  { %v2235_v52 = vmul.f32 %v7136_v21, %v7147_v15  ;;  %v2236_v49 = vmul.f32 %v7136_v21, %v7130_v42  ;;  %v2237_v23 = vmul.f32 %v7136_v21, %v7148_v33  ;;  %v2238_v17 = vmul.f32 %v7136_v21, %v7131_v11 }
 0x18e   :  { %v2233_v0 = vmul.f32 %v7136_v21, %v7146_v29  ;;  %v2239_v19 = vmul.f32 %v7136_v21, %v7149_v20  ;;  %v2240_v29 = vmul.f32 %v7136_v21, %v7132_v45  ;;  %v2241_v53 = vmul.f32 %v7136_v21, %v7150_v41 }
 0x18f   :  { %v2242_v15 = vmul.f32 %v7136_v21, %v7133_v2  ;;  %v2243_v42 = vmul.f32 %v7136_v21, %v7151_v6  ;;  %v2280_v47 = vrot.slane %v2216_v13, 1  ;;  %v2281_v33 = vrot.slane %v2217_v4, 1  ;;  %v7153_v6 = vld [vmem:[#allocation78_spill] sm:$0xff] }
 0x190   :  { %v2283_v31 = vrot.slane %v2218_v27, 1  ;;  %v2284_v9 = vrot.slane %v2219_v54, 1  ;;  %v2286_v11 = vrot.slane %v2220_v58, 1  ;;  %v2287_v56 = vrot.slane %v2221_v30, 1 }
 0x191   :  { %v2289_v10 = vrot.slane %v2222_v63, 1  ;;  %v2290_v20 = vrot.slane %v2223_v25, 1  ;;  %v2244_v45 = vmul.f32 %v7136_v21, %v7134_v1  ;;  %v2245_v41 = vmul.f32 %v7136_v21, %v7152_v14 }
 0x192   :  { %v2292_v43 = vrot.slane %v2224_v62, 1  ;;  %v2293_v38 = vrot.slane %v2225_v24, 1  ;;  %v2246_v2 = vmul.f32 %v7136_v21, %v7135_v50  ;;  %v2247_v13 = vmul.f32 %v7136_v21, %v7153_v6 }
 0x193   :  { %v2282_v4 = vsel %vm286_vm0, %v2280_v47, %v2281_v33  ;;  %v2285_v27 = vsel %vm286_vm0, %v2283_v31, %v2284_v9  ;;  %v2288_v54 = vsel %vm286_vm0, %v2286_v11, %v2287_v56  ;;  %v2291_v58 = vsel %vm286_vm0, %v2289_v10, %v2290_v20 }
 0x194   :  { %v2295_v30 = vrot.slane %v2226_v12, 1  ;;  %v2296_v63 = vrot.slane %v2227_v51, 1  ;;  %v2294_v25 = vsel %vm286_vm0, %v2292_v43, %v2293_v38  ;;  %v2298_v62 = vrot.slane %v2228_v22, 1 }
 0x195   :  { %v2299_v24 = vrot.slane %v2229_v39, 1  ;;  %v2301_v14 = vrot.slane %v2230_v8, 1  ;;  %v2302_v1 = vrot.slane %v2231_v48, 1  ;;  %v2304_v50 = vrot.slane %v2232_v40, 1 }
 0x196   :  { %v2305_v35 = vrot.slane %v2233_v0, 1  ;;  %v2307_v61 = vrot.slane %v2234_v5, 1  ;;  %v2308_v21 = vrot.slane %v2235_v52, 1  ;;  %v2310_v6 = vrot.slane %v2236_v49, 1 }
 0x197   :  { %v2311_v33 = vrot.slane %v2237_v23, 1  ;;  %v2313_v47 = vrot.slane %v2238_v17, 1  ;;  %v2297_v31 = vsel %vm286_vm0, %v2295_v30, %v2296_v63  ;;  %v2314_v56 = vrot.slane %v2239_v19, 1  ;;  %v7165_v63 = vld [vmem:[#allocation53_spill] sm:$0xff] }
 0x198   :  { %v2316_v11 = vrot.slane %v2240_v29, 1  ;;  %v2317_v20 = vrot.slane %v2241_v53, 1  ;;  %v2300_v10 = vsel %vm286_vm0, %v2298_v62, %v2299_v24  ;;  %v2319_v9 = vrot.slane %v2242_v15, 1  ;;  %v7166_v62 = vld [vmem:[#allocation54_spill] sm:$0xff] }
 0x199   :  { %v2320_v38 = vrot.slane %v2243_v42, 1  ;;  %v2322_v43 = vrot.slane %v2244_v45, 1  ;;  %v2303_v12 = vsel %vm286_vm0, %v2301_v14, %v2302_v1  ;;  %v2306_v51 = vsel %vm286_vm0, %v2304_v50, %v2305_v35 }
 0x19a   :  { %v2323_v22 = vrot.slane %v2245_v41, 1  ;;  %v2325_v39 = vrot.slane %v2246_v2, 1  ;;  %v2309_v49 = vsel %vm286_vm0, %v2307_v61, %v2308_v21  ;;  %v2312_v23 = vsel %vm286_vm0, %v2310_v6, %v2311_v33  ;;  %v7155_v41 = vld [vmem:[#allocation98_spill] sm:$0xff]  ;;  %v7167_v21 = vld [vmem:[#allocation55_spill] sm:$0xff] }
 0x19b   :  { %v2315_v8 = vsel %vm286_vm0, %v2313_v47, %v2314_v56  ;;  %v2326_v17 = vrot.slane %v2247_v13, 1  ;;  %v2318_v53 = vsel %vm286_vm0, %v2316_v11, %v2317_v20  ;;  %v2321_v48 = vsel %vm286_vm0, %v2319_v9, %v2320_v38  ;;  %v7162_v13 = vld [vmem:[#allocation49_spill] sm:$0xff]  ;;  %v7168_v47 = vld [vmem:[#allocation56_spill] sm:$0xff]  ;;  %v7170_v20 = vld [vmem:[#allocation58_spill] sm:$0xff] }
 0x19c   :  { %v5601_v42 = vadd.f32 %v2282_v4, %v5489_v18  ;;  %v5604_v14 = vadd.f32 %v2285_v27, %v5491_v16  ;;  %v2324_v45 = vsel %vm286_vm0, %v2322_v43, %v2323_v22  ;;  %v5609_v61 = vadd.f32 %v2288_v54, %v5493_v36  ;;  %v7163_v27 = vld [vmem:[#allocation51_spill] sm:$0xff]  ;;  %v7169_v56 = vld [vmem:[#allocation57_spill] sm:$0xff]  ;;  %v7172_v43 = vld [vmem:[#allocation50_spill] sm:$0xff] }
 0x19d   :  { %v2327_v2 = vsel %vm286_vm0, %v2325_v39, %v2326_v17  ;;  %v5612_v6 = vadd.f32 %v2291_v58, %v5495_v59  ;;  %v5615_v1 = vadd.f32 %v2294_v25, %v5497_v28  ;;  %v5618_v50 = vadd.f32 %v2297_v31, %v5499_v46  ;;  %v7164_v58 = vld [vmem:[#allocation52_spill] sm:$0xff]  ;;  %v7171_v9 = vld [vmem:[#allocation63_spill] sm:$0xff] }
 0x19e   :  { %v5621_v18 = vadd.f32 %v2300_v10, %v5501_v26  ;;  %v5624_v16 = vadd.f32 %v2303_v12, %v5503_v32  ;;  %v5627_v35 = vadd.f32 %v2306_v51, %v5505_v55  ;;  %v5630_v36 = vadd.f32 %v2309_v49, %v5507_v34  ;;  %v7154_v34 = vld [vmem:[#allocation42_spill] sm:$0xff]  ;;  %v7174_v22 = vld [vmem:[#allocation64_spill] sm:$0xff]  ;;  %v7175_v49 = vld [vmem:[#allocation65_spill] sm:$0xff] }
 0x19f   :  { %v5633_v59 = vadd.f32 %v2312_v23, %v5509_v37  ;;  %v5636_v28 = vadd.f32 %v2315_v8, %v5511_v60  ;;  %v5639_v46 = vadd.f32 %v2318_v53, %v5513_v44  ;;  %v5642_v26 = vadd.f32 %v2321_v48, %v5515_v3  ;;  %v7156_v37 = vld [vmem:[#allocation43_spill] sm:$0xff]  ;;  %v7157_v60 = vld [vmem:[#allocation44_spill] sm:$0xff]  ;;  %v7158_v44 = vld [vmem:[#allocation45_spill] sm:$0xff] }
 0x1a0   :  { %v5645_v32 = vadd.f32 %v2324_v45, %v5517_v7  ;;  %v5648_v55 = vadd.f32 %v2327_v2, %v5519_v57  ;;  %v2364_v40 = vmul.f32 %v7155_v41, %v7154_v34  ;;  %v2365_v19 = vmul.f32 %v7155_v41, %v7156_v37  ;;  %v7159_v3 = vld [vmem:[#allocation46_spill] sm:$0xff]  ;;  %v7160_v7 = vld [vmem:[#allocation47_spill] sm:$0xff]  ;;  %v7161_v57 = vld [vmem:[#allocation48_spill] sm:$0xff] }
 0x1a1   :  { %v2366_v0 = vmul.f32 %v7155_v41, %v7157_v60  ;;  %v2367_v5 = vmul.f32 %v7155_v41, %v7158_v44  ;;  %v2368_v15 = vmul.f32 %v7155_v41, %v7159_v3  ;;  %v2369_v52 = vmul.f32 %v7155_v41, %v7160_v7  ;;  %v7176_v8 = vld [vmem:[#allocation66_spill] sm:$0xff]  ;;  %v7177_v53 = vld [vmem:[#allocation67_spill] sm:$0xff]  ;;  %v7178_v45 = vld [vmem:[#allocation68_spill] sm:$0xff] }
 0x1a2   :  { %v2370_v29 = vmul.f32 %v7155_v41, %v7161_v57  ;;  %v2371_v4 = vmul.f32 %v7155_v41, %v7162_v13  ;;  %v2372_v54 = vmul.f32 %v7155_v41, %v7163_v27  ;;  %v2373_v30 = vmul.f32 %v7155_v41, %v7164_v58  ;;  %v7179_v34 = vld [vmem:[#allocation69_spill] sm:$0xff] }
 0x1a3   :  { %v2374_v25 = vmul.f32 %v7155_v41, %v7165_v63  ;;  %v2375_v24 = vmul.f32 %v7155_v41, %v7166_v62  ;;  %v2376_v33 = vmul.f32 %v7155_v41, %v7167_v21  ;;  %v2377_v31 = vmul.f32 %v7155_v41, %v7168_v47  ;;  %v7182_v47 = vld [vmem:[#allocation72_spill] sm:$0xff]  ;;  %v7183_v62 = vld [vmem:[#allocation73_spill] sm:$0xff]  ;;  %v7185_v21 = vld [vmem:[#allocation75_spill] sm:$0xff] }
 0x1a4   :  { %v2378_v11 = vmul.f32 %v7155_v41, %v7169_v56  ;;  %v2379_v10 = vmul.f32 %v7155_v41, %v7170_v20  ;;  %v2380_v38 = vmul.f32 %v7155_v41, %v7171_v9  ;;  %v7173_v12 = vunpack.c.l.bf16 %v7172_v43  ;;  %v7180_v9 = vld [vmem:[#allocation70_spill] sm:$0xff] }
 0x1a5   :  { %v2382_v39 = vmul.f32 %v7155_v41, %v7174_v22  ;;  %v2383_v23 = vmul.f32 %v7155_v41, %v7175_v49  ;;  %v2384_v17 = vmul.f32 %v7155_v41, %v7176_v8  ;;  %v2385_v48 = vmul.f32 %v7155_v41, %v7177_v53  ;;  %v7184_v56 = vld [vmem:[#allocation74_spill] sm:$0xff] }
 0x1a6   :  { %v2381_v51 = vmul.f32 %v7155_v41, %v7173_v12  ;;  %v2386_v2 = vmul.f32 %v7155_v41, %v7178_v45  ;;  %v2387_v37 = vmul.f32 %v7155_v41, %v7179_v34  ;;  %v2388_v43 = vmul.f32 %v7155_v41, %v7180_v9  ;;  %v7181_v12 = vld [vmem:[#allocation71_spill] sm:$0xff] }
 0x1a7   :  { %v2389_v20 = vmul.f32 %v7155_v41, %v7181_v12  ;;  %v2390_v49 = vmul.f32 %v7155_v41, %v7182_v47  ;;  %v2391_v58 = vmul.f32 %v7155_v41, %v7183_v62  ;;  %v2428_v13 = vrot.slane %v2364_v40, 2  ;;  %v7186_v47 = vld [vmem:[#allocation76_spill] sm:$0xff]  ;;  %v7187_v62 = vld [vmem:[#allocation78_spill] sm:$0xff] }
 0x1a8   :  { %v2429_v53 = vrot.slane %v2365_v19, 2  ;;  %v2431_v7 = vrot.slane %v2366_v0, 2  ;;  %v2432_v44 = vrot.slane %v2367_v5, 2  ;;  %v2434_v45 = vrot.slane %v2368_v15, 2 }
 0x1a9   :  { %v2435_v8 = vrot.slane %v2369_v52, 2  ;;  %v2437_v22 = vrot.slane %v2370_v29, 2  ;;  %v2438_v34 = vrot.slane %v2371_v4, 2  ;;  %v2392_v9 = vmul.f32 %v7155_v41, %v7184_v56 }
 0x1aa   :  { %v2393_v12 = vmul.f32 %v7155_v41, %v7185_v21  ;;  %v2440_v63 = vrot.slane %v2372_v54, 2  ;;  %v2441_v27 = vrot.slane %v2373_v30, 2  ;;  %v2394_v57 = vmul.f32 %v7155_v41, %v7186_v47 }
 0x1ab   :  { %v2395_v40 = vmul.f32 %v7155_v41, %v7187_v62  ;;  %v2430_v19 = vsel %vm435_vm1, %v2428_v13, %v2429_v53  ;;  %v2433_v0 = vsel %vm435_vm1, %v2431_v7, %v2432_v44  ;;  %v2436_v5 = vsel %vm435_vm1, %v2434_v45, %v2435_v8 }
 0x1ac   :  { %v2439_v15 = vsel %vm435_vm1, %v2437_v22, %v2438_v34  ;;  %v2443_v52 = vrot.slane %v2374_v25, 2  ;;  %v2444_v29 = vrot.slane %v2375_v24, 2  ;;  %v2442_v4 = vsel %vm435_vm1, %v2440_v63, %v2441_v27  ;;  %v7188_v34 = vld [vmem:[#allocation44_spill] sm:$0xff] }
 0x1ad   :  { %v2446_v54 = vrot.slane %v2376_v33, 2  ;;  %v2447_v30 = vrot.slane %v2377_v31, 2  ;;  %v2449_v21 = vrot.slane %v2378_v11, 2  ;;  %v2450_v56 = vrot.slane %v2379_v10, 2 }
 0x1ae   :  { %v2452_v47 = vrot.slane %v2380_v38, 2  ;;  %v2453_v3 = vrot.slane %v2381_v51, 2  ;;  %v2455_v60 = vrot.slane %v2382_v39, 2  ;;  %v2456_v41 = vrot.slane %v2383_v23, 2 }
 0x1af   :  { %v2458_v62 = vrot.slane %v2384_v17, 2  ;;  %v2459_v13 = vrot.slane %v2385_v48, 2  ;;  %v2461_v53 = vrot.slane %v2386_v2, 2  ;;  %v2445_v44 = vsel %vm435_vm1, %v2443_v52, %v2444_v29  ;;  %v7199_v29 = vld [vmem:[#allocation68_spill] sm:$0xff] }
 0x1b0   :  { %v2462_v7 = vrot.slane %v2387_v37, 2  ;;  %v2464_v8 = vrot.slane %v2388_v43, 2  ;;  %v2465_v22 = vrot.slane %v2389_v20, 2  ;;  %v2448_v25 = vsel %vm435_vm1, %v2446_v54, %v2447_v30  ;;  %v7193_v43 = vld [vmem:[#allocation53_spill] sm:$0xff]  ;;  %v7200_v54 = vld [vmem:[#allocation70_spill] sm:$0xff] }
 0x1b1   :  { %v2467_v24 = vrot.slane %v2390_v49, 2  ;;  %v2468_v27 = vrot.slane %v2391_v58, 2  ;;  %v2470_v63 = vrot.slane %v2392_v9, 2  ;;  %v2451_v33 = vsel %vm435_vm1, %v2449_v21, %v2450_v56  ;;  %v7191_v9 = vld [vmem:[#allocation48_spill] sm:$0xff] }
 0x1b2   :  { %v2454_v31 = vsel %vm435_vm1, %v2452_v47, %v2453_v3  ;;  %v2471_v11 = vrot.slane %v2393_v12, 2  ;;  %v2473_v10 = vrot.slane %v2394_v57, 2  ;;  %v2457_v38 = vsel %vm435_vm1, %v2455_v60, %v2456_v41  ;;  %v7195_v12 = vld [vmem:[#allocation57_spill] sm:$0xff]  ;;  %v7201_v41 = vld [vmem:[#allocation72_spill] sm:$0xff] }
 0x1b3   :  { %v2460_v51 = vsel %vm435_vm1, %v2458_v62, %v2459_v13  ;;  %v2463_v39 = vsel %vm435_vm1, %v2461_v53, %v2462_v7  ;;  %v2474_v23 = vrot.slane %v2395_v40, 2  ;;  %v2466_v20 = vsel %vm435_vm1, %v2464_v8, %v2465_v22  ;;  %v7196_v40 = vld [vmem:[#allocation59_spill] sm:$0xff]  ;;  %v7202_v53 = vld [vmem:[#allocation74_spill] sm:$0xff]  ;;  %v7203_v7 = vld [vmem:[#allocation76_spill] sm:$0xff] }
 0x1b4   :  { %v2469_v17 = vsel %vm435_vm1, %v2467_v24, %v2468_v27  ;;  %v2492_v58 = vadd.f32 %v2430_v19, %v5601_v42  ;;  %v2493_v49 = vadd.f32 %v2433_v0, %v5604_v14  ;;  %v2472_v21 = vsel %vm435_vm1, %v2470_v63, %v2471_v11  ;;  %v7197_v0 = vld [vmem:[#allocation64_spill] sm:$0xff]  ;;  %v7204_v22 = vld [vmem:[#allocation79_spill] sm:$0xff] }
 0x1b5   :  { %v2475_v3 = vsel %vm435_vm1, %v2473_v10, %v2474_v23  ;;  %v2494_v57 = vadd.f32 %v2436_v5, %v5609_v61  ;;  %v2495_v60 = vadd.f32 %v2439_v15, %v5612_v6  ;;  %v2496_v62 = vadd.f32 %v2442_v4, %v5615_v1  ;;  %v7198_v15 = vld [vmem:[#allocation66_spill] sm:$0xff] }
 0x1b6   :  { %v2497_v47 = vadd.f32 %v2445_v44, %v5618_v50  ;;  %v2498_v56 = vadd.f32 %v2448_v25, %v5621_v18  ;;  %v2499_v48 = vadd.f32 %v2451_v33, %v5624_v16  ;;  %v2500_v42 = vadd.f32 %v2454_v31, %v5627_v35  ;;  %v7189_v18 = vld [vmem:[#allocation7_spill] sm:$0xff]  ;;  %v7190_v16 = vld [vmem:[#allocation46_spill] sm:$0xff] }
 0x1b7   :  { %v2501_v14 = vadd.f32 %v2457_v38, %v5630_v36  ;;  %v2502_v45 = vadd.f32 %v2460_v51, %v5633_v59  ;;  %v2503_v2 = vadd.f32 %v2463_v39, %v5636_v28  ;;  %v2504_v61 = vadd.f32 %v2466_v20, %v5639_v46  ;;  %v7192_v59 = vld [vmem:[#allocation51_spill] sm:$0xff] }
 0x1b8   :  { %v2505_v6 = vadd.f32 %v2469_v17, %v5642_v26  ;;  %v2506_v1 = vadd.f32 %v2472_v21, %v5645_v32  ;;  %v2507_v50 = vadd.f32 %v2475_v3, %v5648_v55  ;;  %v2512_v37 = vmul.f32 %v7189_v18, %v7188_v34  ;;  %v7194_v26 = vld [vmem:[#allocation55_spill] sm:$0xff]  ;;  %v7205_v3 = vld [vmem:[#allocation8_spill] sm:$0xff] }
 0x1b9   :  { %v2513_v35 = vmul.f32 %v7189_v18, %v7190_v16  ;;  %v2514_v36 = vmul.f32 %v7189_v18, %v7191_v9  ;;  %v2515_v28 = vmul.f32 %v7189_v18, %v7192_v59  ;;  %v2516_v46 = vmul.f32 %v7189_v18, %v7193_v43 }
 0x1ba   :  { %v2517_v32 = vmul.f32 %v7189_v18, %v7194_v26  ;;  %v2518_v55 = vmul.f32 %v7189_v18, %v7195_v12  ;;  %v2519_v19 = vmul.f32 %v7189_v18, %v7196_v40  ;;  %v2520_v5 = vmul.f32 %v7189_v18, %v7197_v0 }
 0x1bb   :  { %v2521_v52 = vmul.f32 %v7189_v18, %v7198_v15  ;;  %v2522_v4 = vmul.f32 %v7189_v18, %v7199_v29  ;;  %v2523_v30 = vmul.f32 %v7189_v18, %v7200_v54  ;;  %v2524_v13 = vmul.f32 %v7189_v18, %v7201_v41 }
 0x1bc   :  { %v2525_v44 = vmul.f32 %v7189_v18, %v7202_v53  ;;  %v2526_v8 = vmul.f32 %v7189_v18, %v7203_v7  ;;  %v2527_v25 = vmul.f32 %v7189_v18, %v7204_v22  ;;  %v5779_v24 = vadd.f32 %v2512_v37, %v2492_v58 }
 0x1bd   :  { %v5781_v27 = vadd.f32 %v2513_v35, %v2493_v49  ;;  %v5783_v63 = vadd.f32 %v2514_v36, %v2494_v57  ;;  %v5785_v33 = vadd.f32 %v2515_v28, %v2495_v60  ;;  %v5787_v31 = vadd.f32 %v2516_v46, %v2496_v62  ;;  %v7206_v60 = vld [vmem:[#allocation45_spill] sm:$0xff]  ;;  %v7211_v35 = vld [vmem:[#allocation56_spill] sm:$0xff]  ;;  %v7212_v46 = vld [vmem:[#allocation58_spill] sm:$0xff] }
 0x1be   :  { %v5789_v11 = vadd.f32 %v2517_v32, %v2497_v47  ;;  %v5791_v10 = vadd.f32 %v2518_v55, %v2498_v56  ;;  %v5793_v38 = vadd.f32 %v2519_v19, %v2499_v48  ;;  %v5795_v51 = vadd.f32 %v2520_v5, %v2500_v42  ;;  %v7207_v56 = vld [vmem:[#allocation47_spill] sm:$0xff]  ;;  %v7213_v19 = vld [vmem:[#allocation60_spill] sm:$0xff] }
 0x1bf   :  { %v5797_v39 = vadd.f32 %v2521_v52, %v2501_v14  ;;  %v5799_v23 = vadd.f32 %v2522_v4, %v2502_v45  ;;  %v5801_v20 = vadd.f32 %v2523_v30, %v2503_v2  ;;  %v5803_v17 = vadd.f32 %v2524_v13, %v2504_v61  ;;  %v7208_v14 = vld [vmem:[#allocation49_spill] sm:$0xff]  ;;  %v7209_v61 = vld [vmem:[#allocation52_spill] sm:$0xff] }
 0x1c0   :  { %v5805_v58 = vadd.f32 %v2525_v44, %v2505_v6  ;;  %v5807_v49 = vadd.f32 %v2526_v8, %v2506_v1  ;;  %v5809_v21 = vadd.f32 %v2527_v25, %v2507_v50  ;;  %v2548_v57 = vmul.f32 %v7205_v3, %v7188_v34  ;;  %v7210_v50 = vld [vmem:[#allocation54_spill] sm:$0xff]  ;;  %v7214_v4 = vld [vmem:[#allocation65_spill] sm:$0xff]  ;;  %v7215_v44 = vld [vmem:[#allocation67_spill] sm:$0xff] }
 0x1c1   :  { %v2549_v62 = vmul.f32 %v7205_v3, %v7206_v60  ;;  %v2550_v47 = vmul.f32 %v7205_v3, %v7190_v16  ;;  %v2551_v48 = vmul.f32 %v7205_v3, %v7207_v56  ;;  %v2552_v42 = vmul.f32 %v7205_v3, %v7191_v9  ;;  %v7220_v9 = vld [vmem:[#allocation78_spill] sm:$0xff] }
 0x1c2   :  { %v2553_v45 = vmul.f32 %v7205_v3, %v7208_v14  ;;  %v2554_v2 = vmul.f32 %v7205_v3, %v7192_v59  ;;  %v2555_v6 = vmul.f32 %v7205_v3, %v7209_v61  ;;  %v2556_v1 = vmul.f32 %v7205_v3, %v7193_v43 }
 0x1c3   :  { %v2557_v18 = vmul.f32 %v7205_v3, %v7210_v50  ;;  %v2558_v37 = vmul.f32 %v7205_v3, %v7194_v26  ;;  %v2559_v36 = vmul.f32 %v7205_v3, %v7211_v35  ;;  %v2560_v28 = vmul.f32 %v7205_v3, %v7195_v12  ;;  %v7217_v12 = vld [vmem:[#allocation71_spill] sm:$0xff]  ;;  %v7218_v35 = vld [vmem:[#allocation73_spill] sm:$0xff] }
 0x1c4   :  { %v2561_v32 = vmul.f32 %v7205_v3, %v7212_v46  ;;  %v2562_v55 = vmul.f32 %v7205_v3, %v7196_v40  ;;  %v2563_v5 = vmul.f32 %v7205_v3, %v7213_v19  ;;  %v2564_v52 = vmul.f32 %v7205_v3, %v7197_v0  ;;  %v7216_v46 = vld [vmem:[#allocation69_spill] sm:$0xff]  ;;  %v7219_v26 = vld [vmem:[#allocation75_spill] sm:$0xff] }
 0x1c5   :  { %v2565_v30 = vmul.f32 %v7205_v3, %v7214_v4  ;;  %v2566_v13 = vmul.f32 %v7205_v3, %v7198_v15  ;;  %v2567_v8 = vmul.f32 %v7205_v3, %v7215_v44  ;;  %v2568_v25 = vmul.f32 %v7205_v3, %v7199_v29 }
 0x1c6   :  { %v2569_v40 = vmul.f32 %v7205_v3, %v7216_v46  ;;  %v2570_v19 = vmul.f32 %v7205_v3, %v7200_v54  ;;  %v2571_v0 = vmul.f32 %v7205_v3, %v7217_v12  ;;  %v2572_v4 = vmul.f32 %v7205_v3, %v7201_v41 }
 0x1c7   :  { %v2573_v15 = vmul.f32 %v7205_v3, %v7218_v35  ;;  %v2574_v44 = vmul.f32 %v7205_v3, %v7202_v53  ;;  %v2575_v29 = vmul.f32 %v7205_v3, %v7219_v26  ;;  %v2612_v50 = vrot.slane %v2548_v57, 1  ;;  %v7221_v26 = vld [vmem:[#allocation80_spill] sm:$0xff] }
 0x1c8   :  { %v2613_v46 = vrot.slane %v2549_v62, 1  ;;  %v2615_v43 = vrot.slane %v2550_v47, 1  ;;  %v2616_v61 = vrot.slane %v2551_v48, 1  ;;  %v2618_v54 = vrot.slane %v2552_v42, 1 }
 0x1c9   :  { %v2619_v59 = vrot.slane %v2553_v45, 1  ;;  %v2621_v14 = vrot.slane %v2554_v2, 1  ;;  %v2622_v12 = vrot.slane %v2555_v6, 1  ;;  %v2576_v41 = vmul.f32 %v7205_v3, %v7203_v7 }
 0x1ca   :  { %v2577_v35 = vmul.f32 %v7205_v3, %v7220_v9  ;;  %v2624_v56 = vrot.slane %v2556_v1, 1  ;;  %v2625_v16 = vrot.slane %v2557_v18, 1  ;;  %v2578_v53 = vmul.f32 %v7205_v3, %v7204_v22 }
 0x1cb   :  { %v2579_v57 = vmul.f32 %v7205_v3, %v7221_v26  ;;  %v2614_v62 = vsel %vm286_vm0, %v2612_v50, %v2613_v46  ;;  %v2617_v47 = vsel %vm286_vm0, %v2615_v43, %v2616_v61  ;;  %v2620_v48 = vsel %vm286_vm0, %v2618_v54, %v2619_v59 }
 0x1cc   :  { %v2623_v42 = vsel %vm286_vm0, %v2621_v14, %v2622_v12  ;;  %v2627_v45 = vrot.slane %v2558_v37, 1  ;;  %v2628_v2 = vrot.slane %v2559_v36, 1  ;;  %v2626_v6 = vsel %vm286_vm0, %v2624_v56, %v2625_v16 }
 0x1cd   :  { %v2630_v1 = vrot.slane %v2560_v28, 1  ;;  %v2631_v18 = vrot.slane %v2561_v32, 1  ;;  %v2633_v9 = vrot.slane %v2562_v55, 1  ;;  %v2634_v7 = vrot.slane %v2563_v5, 1 }
 0x1ce   :  { %v2636_v22 = vrot.slane %v2564_v52, 1  ;;  %v2637_v60 = vrot.slane %v2565_v30, 1  ;;  %v2639_v34 = vrot.slane %v2566_v13, 1  ;;  %v2640_v3 = vrot.slane %v2567_v8, 1  ;;  %v7230_v13 = vld [vmem:[#allocation83_spill] sm:$0xff]  ;;  %v7233_v8 = vld [vmem:[#allocation45_spill] sm:$0xff] }
 0x1cf   :  { %v2642_v26 = vrot.slane %v2568_v25, 1  ;;  %v2643_v50 = vrot.slane %v2569_v40, 1  ;;  %v2645_v46 = vrot.slane %v2570_v19, 1  ;;  %v2629_v43 = vsel %vm286_vm0, %v2627_v45, %v2628_v2  ;;  %v7237_v45 = vld [vmem:[#allocation49_spill] sm:$0xff] }
 0x1d0   :  { %v2646_v59 = vrot.slane %v2571_v0, 1  ;;  %v2648_v54 = vrot.slane %v2572_v4, 1  ;;  %v2649_v12 = vrot.slane %v2573_v15, 1  ;;  %v2632_v14 = vsel %vm286_vm0, %v2630_v1, %v2631_v18  ;;  %v7226_v4 = vld [vmem:[#allocation92_spill] sm:$0xff] }
 0x1d1   :  { %v2651_v61 = vrot.slane %v2574_v44, 1  ;;  %v2652_v16 = vrot.slane %v2575_v29, 1  ;;  %v2654_v56 = vrot.slane %v2576_v41, 1  ;;  %v2635_v37 = vsel %vm286_vm0, %v2633_v9, %v2634_v7  ;;  %v7239_v18 = vld [vmem:[#allocation52_spill] sm:$0xff] }
 0x1d2   :  { %v2638_v36 = vsel %vm286_vm0, %v2636_v22, %v2637_v60  ;;  %v2655_v28 = vrot.slane %v2577_v35, 1  ;;  %v2657_v32 = vrot.slane %v2578_v53, 1  ;;  %v2641_v55 = vsel %vm286_vm0, %v2639_v34, %v2640_v3  ;;  %v7223_v35 = vld [vmem:[#allocation91_spill] sm:$0xff] }
 0x1d3   :  { %v2644_v40 = vsel %vm286_vm0, %v2642_v26, %v2643_v50  ;;  %v2647_v19 = vsel %vm286_vm0, %v2645_v46, %v2646_v59  ;;  %v2658_v0 = vrot.slane %v2579_v57, 1  ;;  %v2650_v15 = vsel %vm286_vm0, %v2648_v54, %v2649_v12  ;;  %v7234_v57 = vld [vmem:[#allocation46_spill] sm:$0xff]  ;;  %v7240_v50 = vld [vmem:[#allocation53_spill] sm:$0xff]  ;;  %v7242_v54 = vld [vmem:[#allocation55_spill] sm:$0xff] }
 0x1d4   :  { %v2653_v5 = vsel %vm286_vm0, %v2651_v61, %v2652_v16  ;;  %v5890_v29 = vadd.f32 %v2614_v62, %v5779_v24  ;;  %v5893_v9 = vadd.f32 %v2617_v47, %v5781_v27  ;;  %v2656_v41 = vsel %vm286_vm0, %v2654_v56, %v2655_v28  ;;  %v7244_v16 = vld [vmem:[#allocation57_spill] sm:$0xff]  ;;  %v7246_v28 = vld [vmem:[#allocation59_spill] sm:$0xff] }
 0x1d5   :  { %v5897_v53 = vadd.f32 %v2620_v48, %v5783_v63  ;;  %v5900_v34 = vadd.f32 %v2623_v42, %v5785_v33  ;;  %v5903_v26 = vadd.f32 %v2626_v6, %v5787_v31  ;;  %v2659_v7 = vsel %vm286_vm0, %v2657_v32, %v2658_v0  ;;  %v7236_v48 = vld [vmem:[#allocation48_spill] sm:$0xff]  ;;  %v7238_v6 = vld [vmem:[#allocation51_spill] sm:$0xff] }
 0x1d6   :  { %v5907_v22 = vadd.f32 %v2629_v43, %v5789_v11  ;;  %v5910_v24 = vadd.f32 %v2632_v14, %v5791_v10  ;;  %v5913_v27 = vadd.f32 %v2635_v37, %v5793_v38  ;;  %v5916_v63 = vadd.f32 %v2638_v36, %v5795_v51  ;;  %v7222_v51 = vld [vmem:[#allocation88_spill] sm:$0xff]  ;;  %v7241_v43 = vld [vmem:[#allocation54_spill] sm:$0xff] }
 0x1d7   :  { %v5919_v33 = vadd.f32 %v2641_v55, %v5797_v39  ;;  %v5922_v31 = vadd.f32 %v2644_v40, %v5799_v23  ;;  %v5925_v60 = vadd.f32 %v2647_v19, %v5801_v20  ;;  %v5928_v11 = vadd.f32 %v2650_v15, %v5803_v17  ;;  %v7225_v23 = vld [vmem:[#allocation81_spill] sm:$0xff]  ;;  %v7228_v20 = vld [vmem:[#allocation82_spill] sm:$0xff]  ;;  %v7243_v14 = vld [vmem:[#allocation56_spill] sm:$0xff] }
 0x1d8   :  { %v5931_v10 = vadd.f32 %v2653_v5, %v5805_v58  ;;  %v5934_v38 = vadd.f32 %v2656_v41, %v5807_v49  ;;  %v2695_v52 = vrot.slane %v7223_v35, %v7222_v51  ;;  %v5939_v39 = vadd.f32 %v2659_v7, %v5809_v21  ;;  %v7232_v49 = vld [vmem:[#allocation44_spill] sm:$0xff]  ;;  %v7235_v21 = vld [vmem:[#allocation47_spill] sm:$0xff]  ;;  %v7245_v37 = vld [vmem:[#allocation58_spill] sm:$0xff] }
 0x1d9   :  { %v5943_v30 = vrot.slane %v7226_v4, %v7225_v23  ;;  %v5947_v17 = vrot.slane %v7226_v4, %v7228_v20  ;;  %v5951_v58 = vrot.slane %v7226_v4, %v7230_v13  ;;  %v7247_v55 = vld [vmem:[#allocation60_spill] sm:$0xff]  ;;  %v7249_v15 = vld [vmem:[#allocation65_spill] sm:$0xff]  ;;  %v7250_v41 = vld [vmem:[#allocation66_spill] sm:$0xff] }
 0x1da   :  { %7224 = vst [vmem:[#allocation9_spill] sm:$0xff] %v5939_v39  ;;  %v2696_v44 = vmul.f32 %v2695_v52, %v7232_v49  ;;  %v2697_v25 = vmul.f32 %v2695_v52, %v7233_v8  ;;  %v2698_v62 = vmul.f32 %v2695_v52, %v7234_v57  ;;  %v2699_v47 = vmul.f32 %v2695_v52, %v7235_v21  ;;  %v7248_v19 = vld [vmem:[#allocation64_spill] sm:$0xff]  ;;  %v7251_v51 = vld [vmem:[#allocation67_spill] sm:$0xff]  ;;  %v7253_v20 = vld [vmem:[#allocation69_spill] sm:$0xff] }
 0x1db   :  { %7227 = vst [vmem:[#allocation10_spill] sm:$0xff] %v5943_v30  ;;  %7229 = vst [vmem:[#allocation11_spill] sm:$0xff] %v5947_v17  ;;  %v2700_v42 = vmul.f32 %v2695_v52, %v7236_v48  ;;  %v2701_v2 = vmul.f32 %v2695_v52, %v7237_v45  ;;  %v2702_v1 = vmul.f32 %v2695_v52, %v7238_v6  ;;  %v7252_v23 = vld [vmem:[#allocation68_spill] sm:$0xff]  ;;  %v7254_v49 = vld [vmem:[#allocation70_spill] sm:$0xff] }
 0x1dc   :  { %7231 = vst [vmem:[#allocation12_spill] sm:$0xff] %v5951_v58  ;;  %v2703_v3 = vmul.f32 %v2695_v52, %v7239_v18  ;;  %v2704_v46 = vmul.f32 %v2695_v52, %v7240_v50  ;;  %v2705_v59 = vmul.f32 %v2695_v52, %v7241_v43  ;;  %v2706_v12 = vmul.f32 %v2695_v52, %v7242_v54  ;;  %v7255_v58 = vld [vmem:[#allocation71_spill] sm:$0xff]  ;;  %v7257_v18 = vld [vmem:[#allocation73_spill] sm:$0xff]  ;;  %v7258_v45 = vld [vmem:[#allocation74_spill] sm:$0xff] }
 0x1dd   :  { %v2707_v61 = vmul.f32 %v2695_v52, %v7243_v14  ;;  %v2708_v56 = vmul.f32 %v2695_v52, %v7244_v16  ;;  %v2709_v36 = vmul.f32 %v2695_v52, %v7245_v37  ;;  %v2710_v32 = vmul.f32 %v2695_v52, %v7246_v28  ;;  %v7256_v14 = vld [vmem:[#allocation72_spill] sm:$0xff]  ;;  %v7259_v21 = vld [vmem:[#allocation75_spill] sm:$0xff]  ;;  %v7261_v28 = vld [vmem:[#allocation78_spill] sm:$0xff] }
 0x1de   :  { %v2711_v40 = vmul.f32 %v2695_v52, %v7247_v55  ;;  %v2712_v0 = vmul.f32 %v2695_v52, %v7248_v19  ;;  %v2713_v5 = vmul.f32 %v2695_v52, %v7249_v15  ;;  %v2714_v7 = vmul.f32 %v2695_v52, %v7250_v41  ;;  %v7260_v17 = vld [vmem:[#allocation76_spill] sm:$0xff]  ;;  %v7262_v16 = vld [vmem:[#allocation79_spill] sm:$0xff] }
 0x1df   :  { %v2715_v35 = vmul.f32 %v2695_v52, %v7251_v51  ;;  %v2716_v4 = vmul.f32 %v2695_v52, %v7252_v23  ;;  %v2717_v13 = vmul.f32 %v2695_v52, %v7253_v20  ;;  %v2718_v8 = vmul.f32 %v2695_v52, %v7254_v49  ;;  %v7263_v54 = vld [vmem:[#allocation80_spill] sm:$0xff] }
 0x1e0   :  { %v2719_v37 = vmul.f32 %v2695_v52, %v7255_v58  ;;  %v2720_v43 = vmul.f32 %v2695_v52, %v7256_v14  ;;  %v2721_v55 = vmul.f32 %v2695_v52, %v7257_v18  ;;  %v2722_v19 = vmul.f32 %v2695_v52, %v7258_v45 }
 0x1e1   :  { %v2723_v15 = vmul.f32 %v2695_v52, %v7259_v21  ;;  %v2724_v41 = vmul.f32 %v2695_v52, %v7260_v17  ;;  %v2725_v51 = vmul.f32 %v2695_v52, %v7261_v28  ;;  %v2726_v23 = vmul.f32 %v2695_v52, %v7262_v16 }
 0x1e2   :  { %v2727_v20 = vmul.f32 %v2695_v52, %v7263_v54  ;;  %v2760_v50 = vrot.slane %v2696_v44, 2  ;;  %v2761_v49 = vrot.slane %v2697_v25, 2  ;;  %v2763_v6 = vrot.slane %v2698_v62, 2 }
 0x1e3   :  { %v2764_v58 = vrot.slane %v2699_v47, 2  ;;  %v2766_v48 = vrot.slane %v2700_v42, 2  ;;  %v2767_v14 = vrot.slane %v2701_v2, 2  ;;  %v2769_v30 = vrot.slane %v2702_v1, 2 }
 0x1e4   :  { %v2770_v18 = vrot.slane %v2703_v3, 2  ;;  %v2762_v45 = vsel %vm435_vm1, %v2760_v50, %v2761_v49  ;;  %v2772_v57 = vrot.slane %v2704_v46, 2  ;;  %v2773_v17 = vrot.slane %v2705_v59, 2 }
 0x1e5   :  { %v2765_v21 = vsel %vm435_vm1, %v2763_v6, %v2764_v58  ;;  %v2768_v28 = vsel %vm435_vm1, %v2766_v48, %v2767_v14  ;;  %v2775_v39 = vrot.slane %v2706_v12, 2  ;;  %v2776_v52 = vrot.slane %v2707_v61, 2 }
 0x1e6   :  { %v2771_v16 = vsel %vm435_vm1, %v2769_v30, %v2770_v18  ;;  %v2774_v44 = vsel %vm435_vm1, %v2772_v57, %v2773_v17  ;;  %v2778_v25 = vrot.slane %v2708_v56, 2  ;;  %v2779_v62 = vrot.slane %v2709_v36, 2 }
 0x1e7   :  { %v2781_v47 = vrot.slane %v2710_v32, 2  ;;  %v2777_v42 = vsel %vm435_vm1, %v2775_v39, %v2776_v52  ;;  %v2782_v2 = vrot.slane %v2711_v40, 2  ;;  %v2784_v1 = vrot.slane %v2712_v0, 2  ;;  %v7272_v52 = vld [vmem:[#allocation59_spill] sm:$0xff] }
 0x1e8   :  { %v2785_v3 = vrot.slane %v2713_v5, 2  ;;  %v2780_v58 = vsel %vm435_vm1, %v2778_v25, %v2779_v62  ;;  %v2787_v6 = vrot.slane %v2714_v7, 2  ;;  %v2788_v50 = vrot.slane %v2715_v35, 2  ;;  %v7273_v25 = vld [vmem:[#allocation61_spill] sm:$0xff] }
 0x1e9   :  { %v2790_v46 = vrot.slane %v2716_v4, 2  ;;  %v2783_v48 = vsel %vm435_vm1, %v2781_v47, %v2782_v2  ;;  %v2791_v18 = vrot.slane %v2717_v13, 2  ;;  %v2793_v59 = vrot.slane %v2718_v8, 2  ;;  %v7274_v47 = vld [vmem:[#allocation66_spill] sm:$0xff]  ;;  %v7275_v2 = vld [vmem:[#allocation68_spill] sm:$0xff] }
 0x1ea   :  { %v2786_v30 = vsel %vm435_vm1, %v2784_v1, %v2785_v3  ;;  %v2789_v17 = vsel %vm435_vm1, %v2787_v6, %v2788_v50  ;;  %v2794_v57 = vrot.slane %v2719_v37, 2  ;;  %v2796_v12 = vrot.slane %v2720_v43, 2  ;;  %v7276_v3 = vld [vmem:[#allocation70_spill] sm:$0xff]  ;;  %v7277_v6 = vld [vmem:[#allocation72_spill] sm:$0xff] }
 0x1eb   :  { %v2797_v14 = vrot.slane %v2721_v55, 2  ;;  %v2792_v39 = vsel %vm435_vm1, %v2790_v46, %v2791_v18  ;;  %v2799_v61 = vrot.slane %v2722_v19, 2  ;;  %v2800_v56 = vrot.slane %v2723_v15, 2  ;;  %v7268_v19 = vld [vmem:[#allocation51_spill] sm:$0xff]  ;;  %v7278_v46 = vld [vmem:[#allocation74_spill] sm:$0xff] }
 0x1ec   :  { %v2802_v36 = vrot.slane %v2724_v41, 2  ;;  %v2795_v32 = vsel %vm435_vm1, %v2793_v59, %v2794_v57  ;;  %v2803_v0 = vrot.slane %v2725_v51, 2  ;;  %v2805_v5 = vrot.slane %v2726_v23, 2  ;;  %v7270_v15 = vld [vmem:[#allocation55_spill] sm:$0xff]  ;;  %v7281_v57 = vld [vmem:[#allocation89_spill] sm:$0xff] }
 0x1ed   :  { %v2798_v40 = vsel %vm435_vm1, %v2796_v12, %v2797_v14  ;;  %v2801_v7 = vsel %vm435_vm1, %v2799_v61, %v2800_v56  ;;  %v2806_v35 = vrot.slane %v2727_v20, 2  ;;  %v2824_v4 = vadd.f32 %v2762_v45, %v5890_v29  ;;  %v7280_v59 = vld [vmem:[#allocation79_spill] sm:$0xff] }
 0x1ee   :  { %v2825_v37 = vadd.f32 %v2765_v21, %v5893_v9  ;;  %v2804_v43 = vsel %vm435_vm1, %v2802_v36, %v2803_v0  ;;  %v2826_v55 = vadd.f32 %v2768_v28, %v5897_v53  ;;  %v2827_v13 = vadd.f32 %v2771_v16, %v5900_v34  ;;  %v7264_v16 = vld [vmem:[#allocation9_spill] sm:$0xff]  ;;  %v7265_v28 = vld [vmem:[#allocation46_spill] sm:$0xff] }
 0x1ef   :  { %v2828_v41 = vadd.f32 %v2774_v44, %v5903_v26  ;;  %v2807_v49 = vsel %vm435_vm1, %v2805_v5, %v2806_v35  ;;  %v2829_v51 = vadd.f32 %v2777_v42, %v5907_v22  ;;  %v2830_v23 = vadd.f32 %v2780_v58, %v5910_v24  ;;  %v7266_v24 = vld [vmem:[#allocation10_spill] sm:$0xff] }
 0x1f0   :  { %v2831_v20 = vadd.f32 %v2783_v48, %v5913_v27  ;;  %v2832_v29 = vadd.f32 %v2786_v30, %v5916_v63  ;;  %v2833_v9 = vadd.f32 %v2789_v17, %v5919_v33  ;;  %v2834_v21 = vadd.f32 %v2792_v39, %v5922_v31  ;;  %v7267_v27 = vld [vmem:[#allocation48_spill] sm:$0xff]  ;;  %v7269_v31 = vld [vmem:[#allocation53_spill] sm:$0xff] }
 0x1f1   :  { %v2835_v53 = vadd.f32 %v2795_v32, %v5925_v60  ;;  %v2836_v34 = vadd.f32 %v2798_v40, %v5928_v11  ;;  %v2837_v26 = vadd.f32 %v2801_v7, %v5931_v10  ;;  %v2838_v45 = vadd.f32 %v2804_v43, %v5934_v38  ;;  %v7271_v10 = vld [vmem:[#allocation57_spill] sm:$0xff]  ;;  %v7279_v30 = vld [vmem:[#allocation76_spill] sm:$0xff] }
 0x1f2   :  { %v2839_v22 = vadd.f32 %v2807_v49, %v7264_v16  ;;  %v2844_v8 = vmul.f32 %v7266_v24, %v7265_v28  ;;  %v2845_v63 = vmul.f32 %v7266_v24, %v7267_v27  ;;  %v2846_v33 = vmul.f32 %v7266_v24, %v7268_v19 }
 0x1f3   :  { %v2847_v60 = vmul.f32 %v7266_v24, %v7269_v31  ;;  %v2848_v11 = vmul.f32 %v7266_v24, %v7270_v15  ;;  %v2849_v38 = vmul.f32 %v7266_v24, %v7271_v10  ;;  %v2850_v44 = vmul.f32 %v7266_v24, %v7272_v52 }
 0x1f4   :  { %v2851_v62 = vmul.f32 %v7266_v24, %v7273_v25  ;;  %v2852_v42 = vmul.f32 %v7266_v24, %v7274_v47  ;;  %v2853_v1 = vmul.f32 %v7266_v24, %v7275_v2  ;;  %v2854_v58 = vmul.f32 %v7266_v24, %v7276_v3 }
 0x1f5   :  { %v2855_v50 = vmul.f32 %v7266_v24, %v7277_v6  ;;  %v2856_v48 = vmul.f32 %v7266_v24, %v7278_v46  ;;  %v2857_v18 = vmul.f32 %v7266_v24, %v7279_v30  ;;  %v2858_v17 = vmul.f32 %v7266_v24, %v7280_v59 }
 0x1f6   :  { %v2859_v12 = vmul.f32 %v7266_v24, %v7281_v57  ;;  %v6049_v14 = vadd.f32 %v2844_v8, %v2824_v4  ;;  %v6051_v39 = vadd.f32 %v2845_v63, %v2825_v37  ;;  %v6053_v61 = vadd.f32 %v2846_v33, %v2826_v55  ;;  %v7288_v24 = vld [vmem:[#allocation56_spill] sm:$0xff]  ;;  %v7289_v33 = vld [vmem:[#allocation58_spill] sm:$0xff] }
 0x1f7   :  { %v6055_v56 = vadd.f32 %v2847_v60, %v2827_v13  ;;  %v6057_v36 = vadd.f32 %v2848_v11, %v2828_v41  ;;  %v6059_v32 = vadd.f32 %v2849_v38, %v2829_v51  ;;  %v6061_v40 = vadd.f32 %v2850_v44, %v2830_v23  ;;  %v7283_v41 = vld [vmem:[#allocation11_spill] sm:$0xff]  ;;  %v7290_v38 = vld [vmem:[#allocation60_spill] sm:$0xff] }
 0x1f8   :  { %v6063_v0 = vadd.f32 %v2851_v62, %v2831_v20  ;;  %v6065_v5 = vadd.f32 %v2852_v42, %v2832_v29  ;;  %v6067_v7 = vadd.f32 %v2853_v1, %v2833_v9  ;;  %v6069_v35 = vadd.f32 %v2854_v58, %v2834_v21  ;;  %v7284_v51 = vld [vmem:[#allocation47_spill] sm:$0xff]  ;;  %v7285_v29 = vld [vmem:[#allocation49_spill] sm:$0xff]  ;;  %v7291_v42 = vld [vmem:[#allocation62_spill] sm:$0xff] }
 0x1f9   :  { %v6071_v4 = vadd.f32 %v2855_v50, %v2835_v53  ;;  %v6073_v37 = vadd.f32 %v2856_v48, %v2836_v34  ;;  %v6075_v43 = vadd.f32 %v2857_v18, %v2837_v26  ;;  %v6077_v55 = vadd.f32 %v2858_v17, %v2838_v45  ;;  %v7286_v53 = vld [vmem:[#allocation52_spill] sm:$0xff]  ;;  %v7287_v45 = vld [vmem:[#allocation54_spill] sm:$0xff]  ;;  %v7292_v50 = vld [vmem:[#allocation67_spill] sm:$0xff] }
 0x1fa   :  { %v6079_v13 = vadd.f32 %v2859_v12, %v2839_v22  ;;  %v2880_v49 = vmul.f32 %v7283_v41, %v7265_v28  ;;  %v2881_v23 = vmul.f32 %v7283_v41, %v7284_v51  ;;  %v2882_v20 = vmul.f32 %v7283_v41, %v7267_v27  ;;  %v7293_v17 = vld [vmem:[#allocation69_spill] sm:$0xff] }
 0x1fb   :  { %v2883_v9 = vmul.f32 %v7283_v41, %v7285_v29  ;;  %v2884_v21 = vmul.f32 %v7283_v41, %v7268_v19  ;;  %v2885_v34 = vmul.f32 %v7283_v41, %v7286_v53  ;;  %v2886_v26 = vmul.f32 %v7283_v41, %v7269_v31 }
 0x1fc   :  { %7282 = vst [vmem:[#allocation13_spill] sm:$0xff] %v6079_v13  ;;  %v2887_v16 = vmul.f32 %v7283_v41, %v7287_v45  ;;  %v2888_v22 = vmul.f32 %v7283_v41, %v7270_v15  ;;  %v2889_v8 = vmul.f32 %v7283_v41, %v7288_v24  ;;  %v2890_v63 = vmul.f32 %v7283_v41, %v7271_v10  ;;  %v7296_v10 = vld [vmem:[#allocation75_spill] sm:$0xff]  ;;  %v7297_v24 = vld [vmem:[#allocation78_spill] sm:$0xff]  ;;  %v7298_v15 = vld [vmem:[#allocation77_spill] sm:$0xff] }
 0x1fd   :  { %v2891_v60 = vmul.f32 %v7283_v41, %v7289_v33  ;;  %v2892_v11 = vmul.f32 %v7283_v41, %v7272_v52  ;;  %v2893_v44 = vmul.f32 %v7283_v41, %v7290_v38  ;;  %v2894_v62 = vmul.f32 %v7283_v41, %v7273_v25  ;;  %v7294_v52 = vld [vmem:[#allocation71_spill] sm:$0xff]  ;;  %v7295_v33 = vld [vmem:[#allocation73_spill] sm:$0xff] }
 0x1fe   :  { %v2895_v1 = vmul.f32 %v7283_v41, %v7291_v42  ;;  %v2896_v58 = vmul.f32 %v7283_v41, %v7274_v47  ;;  %v2897_v48 = vmul.f32 %v7283_v41, %v7292_v50  ;;  %v2898_v18 = vmul.f32 %v7283_v41, %v7275_v2 }
 0x1ff   :  { %v2899_v12 = vmul.f32 %v7283_v41, %v7293_v17  ;;  %v2900_v38 = vmul.f32 %v7283_v41, %v7276_v3  ;;  %v2901_v25 = vmul.f32 %v7283_v41, %v7294_v52  ;;  %v2902_v42 = vmul.f32 %v7283_v41, %v7277_v6 }
 0x200   :  { %v2903_v47 = vmul.f32 %v7283_v41, %v7295_v33  ;;  %v2904_v50 = vmul.f32 %v7283_v41, %v7278_v46  ;;  %v2905_v2 = vmul.f32 %v7283_v41, %v7296_v10  ;;  %v2906_v17 = vmul.f32 %v7283_v41, %v7279_v30 }
 0x201   :  { %v2907_v3 = vmul.f32 %v7283_v41, %v7297_v24  ;;  %v2908_v52 = vmul.f32 %v7283_v41, %v7280_v59  ;;  %v2909_v6 = vmul.f32 %v7283_v41, %v7263_v54  ;;  %v2910_v33 = vmul.f32 %v7283_v41, %v7281_v57 }
 0x202   :  { %v7299_v46 = vunpack.c.l.bf16 %v7298_v15  ;;  %v2944_v10 = vrot.slane %v2880_v49, 1  ;;  %v2945_v31 = vrot.slane %v2881_v23, 1  ;;  %v2947_v53 = vrot.slane %v2882_v20, 1 }
 0x203   :  { %v2948_v30 = vrot.slane %v2883_v9, 1  ;;  %v2950_v19 = vrot.slane %v2884_v21, 1  ;;  %v2951_v29 = vrot.slane %v2885_v34, 1  ;;  %v2953_v24 = vrot.slane %v2886_v26, 1 }
 0x204   :  { %v2911_v45 = vmul.f32 %v7283_v41, %v7299_v46  ;;  %v2954_v27 = vrot.slane %v2887_v16, 1  ;;  %v2946_v59 = vsel %vm286_vm0, %v2944_v10, %v2945_v31  ;;  %v2956_v54 = vrot.slane %v2888_v22, 1 }
 0x205   :  { %v2949_v51 = vsel %vm286_vm0, %v2947_v53, %v2948_v30  ;;  %v2957_v28 = vrot.slane %v2889_v8, 1  ;;  %v2952_v57 = vsel %vm286_vm0, %v2950_v19, %v2951_v29  ;;  %v2959_v13 = vrot.slane %v2890_v63, 1 }
 0x206   :  { %v2955_v15 = vsel %vm286_vm0, %v2953_v24, %v2954_v27  ;;  %v2960_v46 = vrot.slane %v2891_v60, 1  ;;  %v2962_v49 = vrot.slane %v2892_v11, 1  ;;  %v2963_v23 = vrot.slane %v2893_v44, 1 }
 0x207   :  { %v2958_v41 = vsel %vm286_vm0, %v2956_v54, %v2957_v28  ;;  %v2965_v20 = vrot.slane %v2894_v62, 1  ;;  %v2966_v21 = vrot.slane %v2895_v1, 1  ;;  %v2968_v34 = vrot.slane %v2896_v58, 1 }
 0x208   :  { %v2961_v9 = vsel %vm286_vm0, %v2959_v13, %v2960_v46  ;;  %v2969_v31 = vrot.slane %v2897_v48, 1  ;;  %v2964_v10 = vsel %vm286_vm0, %v2962_v49, %v2963_v23  ;;  %v2971_v30 = vrot.slane %v2898_v18, 1  ;;  %v7311_v23 = vld [vmem:[#allocation55_spill] sm:$0xff] }
 0x209   :  { %v2972_v53 = vrot.slane %v2899_v12, 1  ;;  %v2974_v26 = vrot.slane %v2900_v38, 1  ;;  %v2967_v19 = vsel %vm286_vm0, %v2965_v20, %v2966_v21  ;;  %v2975_v29 = vrot.slane %v2901_v25, 1  ;;  %v7309_v12 = vld [vmem:[#allocation53_spill] sm:$0xff] }
 0x20a   :  { %v2970_v27 = vsel %vm286_vm0, %v2968_v34, %v2969_v31  ;;  %v2977_v16 = vrot.slane %v2902_v42, 1  ;;  %v2978_v28 = vrot.slane %v2903_v47, 1  ;;  %v2980_v22 = vrot.slane %v2904_v50, 1  ;;  %v7313_v34 = vld [vmem:[#allocation57_spill] sm:$0xff] }
 0x20b   :  { %v2973_v54 = vsel %vm286_vm0, %v2971_v30, %v2972_v53  ;;  %v2981_v24 = vrot.slane %v2905_v2, 1  ;;  %v2976_v13 = vsel %vm286_vm0, %v2974_v26, %v2975_v29  ;;  %v2983_v8 = vrot.slane %v2906_v17, 1  ;;  %v7315_v53 = vld [vmem:[#allocation59_spill] sm:$0xff]  ;;  %v7317_v29 = vld [vmem:[#allocation61_spill] sm:$0xff] }
 0x20c   :  { %v2984_v63 = vrot.slane %v2907_v3, 1  ;;  %v2986_v60 = vrot.slane %v2908_v52, 1  ;;  %v2979_v11 = vsel %vm286_vm0, %v2977_v16, %v2978_v28  ;;  %v2987_v44 = vrot.slane %v2909_v6, 1 }
 0x20d   :  { %v2982_v38 = vsel %vm286_vm0, %v2980_v22, %v2981_v24  ;;  %v2989_v62 = vrot.slane %v2910_v33, 1  ;;  %v2990_v25 = vrot.slane %v2911_v45, 1  ;;  %v6161_v42 = vadd.f32 %v2946_v59, %v6049_v14  ;;  %v7319_v22 = vld [vmem:[#allocation66_spill] sm:$0xff] }
 0x20e   :  { %v2985_v1 = vsel %vm286_vm0, %v2983_v8, %v2984_v63  ;;  %v6164_v47 = vadd.f32 %v2949_v51, %v6051_v39  ;;  %v2988_v2 = vsel %vm286_vm0, %v2986_v60, %v2987_v44  ;;  %v6168_v3 = vadd.f32 %v2952_v57, %v6053_v61  ;;  %v7321_v63 = vld [vmem:[#allocation68_spill] sm:$0xff]  ;;  %v7323_v44 = vld [vmem:[#allocation70_spill] sm:$0xff] }
 0x20f   :  { %v6171_v52 = vadd.f32 %v2955_v15, %v6055_v56  ;;  %v6174_v6 = vadd.f32 %v2958_v41, %v6057_v36  ;;  %v2991_v33 = vsel %vm286_vm0, %v2989_v62, %v2990_v25  ;;  %v6178_v45 = vadd.f32 %v2961_v9, %v6059_v32  ;;  %v7310_v41 = vld [vmem:[#allocation54_spill] sm:$0xff]  ;;  %v7312_v9 = vld [vmem:[#allocation56_spill] sm:$0xff] }
 0x210   :  { %v6181_v59 = vadd.f32 %v2964_v10, %v6061_v40  ;;  %v6184_v14 = vadd.f32 %v2967_v19, %v6063_v0  ;;  %v6187_v57 = vadd.f32 %v2970_v27, %v6065_v5  ;;  %v6190_v15 = vadd.f32 %v2973_v54, %v6067_v7  ;;  %v7300_v40 = vld [vmem:[#allocation13_spill] sm:$0xff]  ;;  %v7302_v5 = vld [vmem:[#allocation46_spill] sm:$0xff]  ;;  %v7303_v7 = vld [vmem:[#allocation12_spill] sm:$0xff] }
 0x211   :  { %v6193_v39 = vadd.f32 %v2976_v13, %v6069_v35  ;;  %v6196_v61 = vadd.f32 %v2979_v11, %v6071_v4  ;;  %v6199_v56 = vadd.f32 %v2982_v38, %v6073_v37  ;;  %v6202_v36 = vadd.f32 %v2985_v1, %v6075_v43  ;;  %v7304_v35 = vld [vmem:[#allocation47_spill] sm:$0xff]  ;;  %v7305_v4 = vld [vmem:[#allocation48_spill] sm:$0xff]  ;;  %v7306_v37 = vld [vmem:[#allocation49_spill] sm:$0xff] }
 0x212   :  { %v6205_v32 = vadd.f32 %v2988_v2, %v6077_v55  ;;  %v6208_v0 = vadd.f32 %v2991_v33, %v7300_v40  ;;  %v3028_v51 = vmul.f32 %v7303_v7, %v7302_v5  ;;  %v3029_v58 = vmul.f32 %v7303_v7, %v7304_v35  ;;  %v7307_v43 = vld [vmem:[#allocation51_spill] sm:$0xff]  ;;  %v7308_v55 = vld [vmem:[#allocation52_spill] sm:$0xff]  ;;  %v7314_v10 = vld [vmem:[#allocation58_spill] sm:$0xff] }
 0x213   :  { %v3030_v50 = vmul.f32 %v7303_v7, %v7305_v4  ;;  %v3031_v48 = vmul.f32 %v7303_v7, %v7306_v37  ;;  %v3032_v18 = vmul.f32 %v7303_v7, %v7307_v43  ;;  %v3033_v17 = vmul.f32 %v7303_v7, %v7308_v55  ;;  %v7316_v19 = vld [vmem:[#allocation60_spill] sm:$0xff]  ;;  %v7318_v54 = vld [vmem:[#allocation62_spill] sm:$0xff]  ;;  %v7320_v13 = vld [vmem:[#allocation67_spill] sm:$0xff] }
 0x214   :  { %7301 = vst [vmem:[#allocation14_spill] sm:$0xff] %v6208_v0  ;;  %v3034_v46 = vmul.f32 %v7303_v7, %v7309_v12  ;;  %v3035_v49 = vmul.f32 %v7303_v7, %v7310_v41  ;;  %v3036_v20 = vmul.f32 %v7303_v7, %v7311_v23  ;;  %v3037_v21 = vmul.f32 %v7303_v7, %v7312_v9  ;;  %v7322_v11 = vld [vmem:[#allocation69_spill] sm:$0xff]  ;;  %v7324_v1 = vld [vmem:[#allocation71_spill] sm:$0xff]  ;;  %v7325_v2 = vld [vmem:[#allocation72_spill] sm:$0xff] }
 0x215   :  { %v3038_v31 = vmul.f32 %v7303_v7, %v7313_v34  ;;  %v3039_v30 = vmul.f32 %v7303_v7, %v7314_v10  ;;  %v3040_v26 = vmul.f32 %v7303_v7, %v7315_v53  ;;  %v3041_v27 = vmul.f32 %v7303_v7, %v7316_v19  ;;  %v7326_v40 = vld [vmem:[#allocation73_spill] sm:$0xff]  ;;  %v7327_v35 = vld [vmem:[#allocation74_spill] sm:$0xff]  ;;  %v7328_v37 = vld [vmem:[#allocation75_spill] sm:$0xff] }
 0x216   :  { %v3042_v16 = vmul.f32 %v7303_v7, %v7317_v29  ;;  %v3043_v28 = vmul.f32 %v7303_v7, %v7318_v54  ;;  %v3044_v24 = vmul.f32 %v7303_v7, %v7319_v22  ;;  %v3045_v8 = vmul.f32 %v7303_v7, %v7320_v13  ;;  %v7329_v55 = vld [vmem:[#allocation76_spill] sm:$0xff]  ;;  %v7330_v41 = vld [vmem:[#allocation78_spill] sm:$0xff]  ;;  %v7331_v9 = vld [vmem:[#allocation79_spill] sm:$0xff] }
 0x217   :  { %v3046_v60 = vmul.f32 %v7303_v7, %v7321_v63  ;;  %v3047_v38 = vmul.f32 %v7303_v7, %v7322_v11  ;;  %v3048_v62 = vmul.f32 %v7303_v7, %v7323_v44  ;;  %v3049_v25 = vmul.f32 %v7303_v7, %v7324_v1  ;;  %v7332_v10 = vld [vmem:[#allocation80_spill] sm:$0xff]  ;;  %v7333_v19 = vld [vmem:[#allocation89_spill] sm:$0xff] }
 0x218   :  { %v3050_v33 = vmul.f32 %v7303_v7, %v7325_v2  ;;  %v3051_v5 = vmul.f32 %v7303_v7, %v7326_v40  ;;  %v3052_v4 = vmul.f32 %v7303_v7, %v7327_v35  ;;  %v3053_v43 = vmul.f32 %v7303_v7, %v7328_v37  ;;  %v7334_v54 = vld [vmem:[#allocation77_spill] sm:$0xff] }
 0x219   :  { %v3054_v12 = vmul.f32 %v7303_v7, %v7329_v55  ;;  %v3055_v23 = vmul.f32 %v7303_v7, %v7330_v41  ;;  %v3056_v34 = vmul.f32 %v7303_v7, %v7331_v9  ;;  %v3057_v53 = vmul.f32 %v7303_v7, %v7332_v10 }
 0x21a   :  { %v3058_v29 = vmul.f32 %v7303_v7, %v7333_v19  ;;  %v7335_v22 = vunpack.c.l.bf16 %v7334_v54  ;;  %v3092_v63 = vrot.slane %v3028_v51, 2  ;;  %v3093_v11 = vrot.slane %v3029_v58, 2 }
 0x21b   :  { %v3095_v44 = vrot.slane %v3030_v50, 2  ;;  %v3096_v1 = vrot.slane %v3031_v48, 2  ;;  %v3098_v2 = vrot.slane %v3032_v18, 2  ;;  %v3099_v40 = vrot.slane %v3033_v17, 2 }
 0x21c   :  { %v3059_v13 = vmul.f32 %v7303_v7, %v7335_v22  ;;  %v3101_v35 = vrot.slane %v3034_v46, 2  ;;  %v3102_v37 = vrot.slane %v3035_v49, 2  ;;  %v3094_v55 = vsel %vm435_vm1, %v3092_v63, %v3093_v11 }
 0x21d   :  { %v3097_v41 = vsel %vm435_vm1, %v3095_v44, %v3096_v1  ;;  %v3104_v9 = vrot.slane %v3036_v20, 2  ;;  %v3105_v10 = vrot.slane %v3037_v21, 2  ;;  %v3100_v19 = vsel %vm435_vm1, %v3098_v2, %v3099_v40 }
 0x21e   :  { %v3103_v54 = vsel %vm435_vm1, %v3101_v35, %v3102_v37  ;;  %v3107_v0 = vrot.slane %v3038_v31, 2  ;;  %v3108_v7 = vrot.slane %v3039_v30, 2  ;;  %v3110_v58 = vrot.slane %v3040_v26, 2  ;;  %v7336_v37 = vld [vmem:[#allocation14_spill] sm:$0xff] }
 0x21f   :  { %v3106_v51 = vsel %vm435_vm1, %v3104_v9, %v3105_v10  ;;  %v3111_v50 = vrot.slane %v3041_v27, 2  ;;  %v3113_v48 = vrot.slane %v3042_v16, 2  ;;  %v3114_v17 = vrot.slane %v3043_v28, 2 }
 0x220   :  { %v3109_v18 = vsel %vm435_vm1, %v3107_v0, %v3108_v7  ;;  %v3116_v46 = vrot.slane %v3044_v24, 2  ;;  %v3117_v49 = vrot.slane %v3045_v8, 2  ;;  %v3119_v20 = vrot.slane %v3046_v60, 2 }
 0x221   :  { %v3112_v22 = vsel %vm435_vm1, %v3110_v58, %v3111_v50  ;;  %v3120_v21 = vrot.slane %v3047_v38, 2  ;;  %v3122_v63 = vrot.slane %v3048_v62, 2  ;;  %v3115_v11 = vsel %vm435_vm1, %v3113_v48, %v3114_v17 }
 0x222   :  { %v3118_v31 = vsel %vm435_vm1, %v3116_v46, %v3117_v49  ;;  %v3123_v30 = vrot.slane %v3049_v25, 2  ;;  %v3125_v44 = vrot.slane %v3050_v33, 2  ;;  %v3126_v27 = vrot.slane %v3051_v5, 2 }
 0x223   :  { %v3121_v26 = vsel %vm435_vm1, %v3119_v20, %v3120_v21  ;;  %v3128_v16 = vrot.slane %v3052_v4, 2  ;;  %v3129_v1 = vrot.slane %v3053_v43, 2  ;;  %v3131_v28 = vrot.slane %v3054_v12, 2 }
 0x224   :  { %v3124_v0 = vsel %vm435_vm1, %v3122_v63, %v3123_v30  ;;  %v3132_v24 = vrot.slane %v3055_v23, 2  ;;  %v3134_v8 = vrot.slane %v3056_v34, 2  ;;  %v3127_v60 = vsel %vm435_vm1, %v3125_v44, %v3126_v27 }
 0x225   :  { %v3130_v38 = vsel %vm435_vm1, %v3128_v16, %v3129_v1  ;;  %v3135_v62 = vrot.slane %v3057_v53, 2  ;;  %v3137_v2 = vrot.slane %v3058_v29, 2  ;;  %v3138_v25 = vrot.slane %v3059_v13, 2 }
 0x226   :  { %v3133_v40 = vsel %vm435_vm1, %v3131_v28, %v3132_v24  ;;  %v3156_v33 = vadd.f32 %v3094_v55, %v6161_v42  ;;  %v3157_v5 = vadd.f32 %v3097_v41, %v6164_v47  ;;  %v3158_v43 = vadd.f32 %v3100_v19, %v6168_v3  ;;  %v3263_v42 = vld [vmem:[%s6336_s2] ss:$0 sm:$0xff] }
 0x227   :  { %v3136_v4 = vsel %vm435_vm1, %v3134_v8, %v3135_v62  ;;  %v3159_v12 = vadd.f32 %v3103_v54, %v6171_v52  ;;  %v3160_v23 = vadd.f32 %v3106_v51, %v6174_v6  ;;  %v3139_v34 = vsel %vm435_vm1, %v3137_v2, %v3138_v25 }
 0x228   :  { %v3161_v53 = vadd.f32 %v3109_v18, %v6178_v45  ;;  %v3162_v29 = vadd.f32 %v3112_v22, %v6181_v59  ;;  %v3163_v13 = vadd.f32 %v3115_v11, %v6184_v14  ;;  %v3164_v47 = vadd.f32 %v3118_v31, %v6187_v57 }
 0x229   :  { %v3165_v3 = vadd.f32 %v3121_v26, %v6190_v15  ;;  %v3166_v52 = vadd.f32 %v3124_v0, %v6193_v39  ;;  %v3167_v6 = vadd.f32 %v3127_v60, %v6196_v61  ;;  %v3168_v35 = vadd.f32 %v3130_v38, %v6199_v56 }
 0x22a   :  { %v3169_v45 = vadd.f32 %v3133_v40, %v6202_v36  ;;  %v3170_v59 = vadd.f32 %v3136_v4, %v6205_v32  ;;  %v3171_v14 = vadd.f32 %v3139_v34, %v7336_v37  ;;  %v3179_v55 = vadd.f32 %v3263_v42, %v3156_v33 }
 0x22b   :  { %v3180_v41 = vadd.f32 %v3263_v42, %v3157_v5  ;;  %v3181_v9 = vadd.f32 %v3263_v42, %v3158_v43  ;;  %v3182_v10 = vadd.f32 %v3263_v42, %v3159_v12  ;;  %v3183_v19 = vadd.f32 %v3263_v42, %v3160_v23 }
 0x22c   :  { %v3184_v57 = vadd.f32 %v3263_v42, %v3161_v53  ;;  %v3185_v54 = vadd.f32 %v3263_v42, %v3162_v29  ;;  %v3186_v15 = vadd.f32 %v3263_v42, %v3163_v13  ;;  %v3187_v7 = vadd.f32 %v3263_v42, %v3164_v47 }
 0x22d   :  { %v3188_v39 = vadd.f32 %v3263_v42, %v3165_v3  ;;  %v3189_v51 = vadd.f32 %v3263_v42, %v3166_v52  ;;  %v3190_v61 = vadd.f32 %v3263_v42, %v3167_v6  ;;  %v3191_v58 = vadd.f32 %v3263_v42, %v3168_v35 }
 0x22e   :  { %v3192_v56 = vadd.f32 %v3263_v42, %v3169_v45  ;;  %v3193_v50 = vadd.f32 %v3263_v42, %v3170_v59  ;;  %v3194_v36 = vadd.f32 %v3263_v42, %v3171_v14  ;;  %v3195_v48 = vmax.f32 %v3179_v55, 0.0 }
 0x22f   :  { %v3196_v32 = vmax.f32 %v3180_v41, 0.0  ;;  %v3197_v18 = vmax.f32 %v3181_v9, 0.0  ;;  %v3198_v17 = vmax.f32 %v3182_v10, 0.0  ;;  %v3199_v46 = vmax.f32 %v3183_v19, 0.0 }
 0x230   :  { %v3200_v49 = vmax.f32 %v3184_v57, 0.0  ;;  %v3201_v22 = vmax.f32 %v3185_v54, 0.0  ;;  %v3202_v20 = vmax.f32 %v3186_v15, 0.0  ;;  %v3203_v21 = vmax.f32 %v3187_v7, 0.0 }
 0x231   :  { %v3204_v63 = vmax.f32 %v3188_v39, 0.0  ;;  %v3205_v11 = vmax.f32 %v3189_v51, 0.0  ;;  %v3206_v31 = vmax.f32 %v3190_v61, 0.0  ;;  %v3207_v30 = vmax.f32 %v3191_v58, 0.0 }
 0x232   :  { %v3208_v44 = vmax.f32 %v3192_v56, 0.0  ;;  %v3209_v26 = vmax.f32 %v3193_v50, 0.0  ;;  %v3210_v27 = vmax.f32 %v3194_v36, 0.0  ;;  %v3211_v16 = vmin.f32 %v3195_v48, 6.0 }
 0x233   :  { %v3212_v1 = vmin.f32 %v3196_v32, 6.0  ;;  %v3213_v0 = vmin.f32 %v3197_v18, 6.0  ;;  %v3214_v28 = vmin.f32 %v3198_v17, 6.0  ;;  %v3215_v24 = vmin.f32 %v3199_v46, 6.0 }
 0x234   :  { %v3216_v8 = vmin.f32 %v3200_v49, 6.0  ;;  %v3217_v60 = vmin.f32 %v3201_v22, 6.0  ;;  %v3218_v38 = vmin.f32 %v3202_v20, 6.0  ;;  %v3219_v62 = vmin.f32 %v3203_v21, 6.0 }
 0x235   :  { %v3220_v2 = vmin.f32 %v3204_v63, 6.0  ;;  %v3221_v40 = vmin.f32 %v3205_v11, 6.0  ;;  %v3222_v25 = vmin.f32 %v3206_v31, 6.0  ;;  %v3223_v33 = vmin.f32 %v3207_v30, 6.0 }
 0x236   :  { %v3224_v5 = vmin.f32 %v3208_v44, 6.0  ;;  %v3225_v4 = vmin.f32 %v3209_v26, 6.0  ;;  %v3226_v43 = vmin.f32 %v3210_v27, 6.0  ;;  %v3271_v12 = vpack.c.bf16 %v3212_v1, %v3211_v16 }
 0x237   :  { %v3276_v23 = vpack.c.bf16 %v3214_v28, %v3213_v0  ;;  %v3281_v34 = vpack.c.bf16 %v3216_v8, %v3215_v24  ;;  %v3286_v53 = vpack.c.bf16 %v3218_v38, %v3217_v60  ;;  %v3291_v29 = vpack.c.bf16 %v3220_v2, %v3219_v62 }
 0x238   :  { %v3296_v13 = vpack.c.bf16 %v3222_v25, %v3221_v40  ;;  %v3301_v42 = vpack.c.bf16 %v3224_v5, %v3223_v33  ;;  %v3306_v47 = vpack.c.bf16 %v3226_v43, %v3225_v4  ;;  %3272 = vst [vmem:[%s6337_s3] sm:$0xff] %v3271_v12  }
 0x239   :  { %3308 = vst [vmem:[%s6337_s3 + $0x8] sm:$0xff] %v3276_v23   ;;  %3309 = vst [vmem:[%s6337_s3 + $0x10] sm:$0xff] %v3281_v34  }
 0x23a   :  { %3310 = vst [vmem:[%s6337_s3 + $0x18] sm:$0xff] %v3286_v53   ;;  %3311 = vst [vmem:[%s6337_s3 + $0x20] sm:$0xff] %v3291_v29  }
 0x23b   :  { %3312 = vst [vmem:[%s6337_s3 + $0x28] sm:$0xff] %v3296_v13   ;;  %3313 = vst [vmem:[%s6337_s3 + $0x30] sm:$0xff] %v3301_v42  }
 0x23c   :  { %3314 = vst [vmem:[%s6337_s3 + $0x38] sm:$0xff] %v3306_v47  }

// kernel: _forward.58
= control target key start
LH: loop header
LB: loop body
LE: loop exit
PB: predicated region body
PF: predicated region fallthrough
CT: control target
= control target key end

     0   :  { %s312_s1 = inlined_call_operand.vmem [shape: bf16[128,128], index: 1, kind: input, shape index: {}]   ;;  %s313_s0 = inlined_call_operand.vmem [shape: bf16[32,128], index: 0, kind: input, shape index: {}]   ;;  %s314_s2 = inlined_call_operand.vmem [shape: f32[1,128], index: 2, kind: input, shape index: {}]   ;;  %s315_s3 = inlined_call_operand.vmem [shape: bf16[32,128], index: 3, kind: output, shape index: {}]  }
   0x1   :  { %v243_v0 = vld [vmem:[%s312_s1] sm:$0xff]   ;;  %v244_v1 = vld [vmem:[%s312_s1 + $0x8] sm:$0xff]   ;;  %v245_v2 = vld [vmem:[%s312_s1 + $0x10] sm:$0xff]  }
   0x2   :  { %223 = vmatprep.subr.bf16.mxu0 %v243_v0  ;;  %v246_v3 = vld [vmem:[%s312_s1 + $0x18] sm:$0xff]   ;;  %v251_v4 = vld [vmem:[%s313_s0] sm:$0xff]   ;;  %v248_v6 = vld [vmem:[%s312_s1 + $0x28] sm:$0xff]  }
   0x3   :  { %224 = vmatpush3.bf16.msra.mxu0 %v243_v0  ;;  %239 = vmatprep.mubr.bf16.mxu0 %v251_v4  ;;  %v247_v5 = vld [vmem:[%s312_s1 + $0x20] sm:$0xff]   ;;  %v249_v7 = vld [vmem:[%s312_s1 + $0x30] sm:$0xff]   ;;  %v250_v8 = vld [vmem:[%s312_s1 + $0x38] sm:$0xff]  }
   0x4   :  { %225 = vmatprep.subr.bf16.mxu0 %v244_v1  ;;  %v252_v9 = vld [vmem:[%s313_s0 + $0x8] sm:$0xff]   ;;  %v183_v10 = vld [vmem:[%s314_s2] ss:$0 sm:$0xff] }
   0x7   :  { %226 = vmatpush3.bf16.msra.mxu0 %v244_v1 }
   0x8   :  { %227 = vmatprep.subr.bf16.mxu0 %v245_v2 }
   0xb   :  { %228 = vmatpush3.bf16.msra.mxu0 %v245_v2 }
   0xc   :  { %229 = vmatprep.subr.bf16.mxu0 %v246_v3 }
   0xf   :  { %230 = vmatpush3.bf16.msra.mxu0 %v246_v3 }
  0x10   :  { %231 = vmatprep.subr.bf16.mxu0 %v247_v5 }
  0x13   :  { %232 = vmatpush3.bf16.msra.mxu0 %v247_v5 }
  0x14   :  { %233 = vmatprep.subr.bf16.mxu0 %v248_v6 }
  0x17   :  { %234 = vmatpush3.bf16.msra.mxu0 %v248_v6 }
  0x18   :  { %235 = vmatprep.subr.bf16.mxu0 %v249_v7 }
  0x1b   :  { %236 = vmatpush3.bf16.msra.mxu0 %v249_v7 }
  0x1c   :  { %237 = vmatprep.subr.bf16.mxu0 %v250_v8 }
  0x1f   :  { %238 = vmatpush3.bf16.msra.mxu0 %v250_v8 }
  0x22   :  { %240 = vmatmul.mubr.bf16.vlgmr.msra.gmra.mrb[0].mxu0 %v252_v9 }
  0xf5   :  { %v241_v11 = vpop.f32.mrb[0].mxu0 }
  0xf6   :  { %v145_v12 = vadd.f32 %v241_v11, %v183_v10  ;;  %v136_v13 = vpop.f32.mrb[1].mxu0 }
  0xf7   :  { %v137_v14 = vadd.f32 %v183_v10, %v136_v13  ;;  %v242_v15 = vpop.f32.mrb[2].mxu0 }
  0xf8   :  { %v153_v16 = vmax.f32 %v145_v12, 0.0  ;;  %v148_v17 = vadd.f32 %v242_v15, %v183_v10  ;;  %v139_v18 = vpop.f32.mrb[3].mxu0 }
  0xf9   :  { %v151_v19 = vmax.f32 %v137_v14, 0.0  ;;  %v140_v20 = vadd.f32 %v183_v10, %v139_v18 }
  0xfa   :  { %v154_v21 = vmax.f32 %v148_v17, 0.0  ;;  %v157_v23 = vmin.f32 %v153_v16, 6.0 }
  0xfb   :  { %v152_v22 = vmax.f32 %v140_v20, 0.0  ;;  %v155_v25 = vmin.f32 %v151_v19, 6.0 }
  0xfc   :  { %v158_v24 = vmin.f32 %v154_v21, 6.0 }
  0xfd   :  { %v156_v26 = vmin.f32 %v152_v22, 6.0 }
  0xfe   :  { %v210_v27 = vpack.c.bf16 %v158_v24, %v157_v23 }
  0xff   :  { %v205_v28 = vpack.c.bf16 %v156_v26, %v155_v25 }
 0x100   :  { %212 = vst [vmem:[%s315_s3 + $0x8] sm:$0xff] %v210_v27  }
 0x101   :  { %206 = vst [vmem:[%s315_s3] sm:$0xff] %v205_v28  }

// kernel: _forward.59
= control target key start
LH: loop header
LB: loop body
LE: loop exit
PB: predicated region body
PF: predicated region fallthrough
CT: control target
= control target key end

     0   :  { %v70_v9 = vlaneseq  ;;  %s1703_s0 = inlined_call_operand.vmem [shape: bf16[1,4,6,6,128], index: 0, kind: input, shape index: {}]   ;;  %s1704_s1 = inlined_call_operand.vmem [shape: bf16[27,128], index: 1, kind: input, shape index: {}]   ;;  %s1705_s2 = inlined_call_operand.vmem [shape: f32[1,128], index: 2, kind: input, shape index: {}]   ;;  %s1706_s3 = inlined_call_operand.vmem [shape: bf16[1,2,4,4,128], index: 3, kind: output, shape index: {}]  }
   0x1   :  { %v14_v0 = vld [vmem:[%s1703_s0] sm:$0x7]  ;;  %v15_v1 = vld [vmem:[%s1703_s0 + $0x4] sm:$0x7]  ;;  %v16_v2 = vld [vmem:[%s1703_s0 + $0x8] sm:$0x7] }
   0x2   :  { %v17_v3 = vld [vmem:[%s1703_s0 + $0xc] sm:$0x7]  ;;  %v18_v4 = vld [vmem:[%s1703_s0 + $0x10] sm:$0x7]  ;;  %v19_v5 = vld [vmem:[%s1703_s0 + $0x14] sm:$0x7]  ;;  %v1154_v13 = vunpack.c.l.bf16 %v14_v0  ;;  %v1156_v14 = vunpack.c.l.bf16 %v15_v1  ;;  %v1158_v15 = vunpack.c.l.bf16 %v16_v2 }
   0x3   :  { %v20_v6 = vld [vmem:[%s1703_s0 + $0x18] sm:$0x7]  ;;  %v21_v7 = vld [vmem:[%s1703_s0 + $0x1c] sm:$0x7]  ;;  %v22_v8 = vld [vmem:[%s1703_s0 + $0x20] sm:$0x7]  ;;  %v1160_v16 = vunpack.c.l.bf16 %v17_v3  ;;  %v1171_v20 = vunpack.c.l.bf16 %v18_v4  ;;  %v1173_v21 = vunpack.c.l.bf16 %v19_v5 }
   0x4   :  { %v23_v10 = vld [vmem:[%s1703_s0 + $0x24] sm:$0x7]  ;;  %v24_v11 = vld [vmem:[%s1703_s0 + $0x28] sm:$0x7]  ;;  %v25_v12 = vld [vmem:[%s1703_s0 + $0x2c] sm:$0x7]  ;;  %v1175_v22 = vunpack.c.l.bf16 %v20_v6  ;;  %v1177_v23 = vunpack.c.l.bf16 %v21_v7  ;;  %v1188_v27 = vunpack.c.l.bf16 %v22_v8 }
   0x5   :  { %v26_v17 = vld [vmem:[%s1703_s0 + $0x30] sm:$0x7]  ;;  %v27_v18 = vld [vmem:[%s1703_s0 + $0x34] sm:$0x7]  ;;  %v28_v19 = vld [vmem:[%s1703_s0 + $0x38] sm:$0x7]  ;;  %v1190_v28 = vunpack.c.l.bf16 %v23_v10  ;;  %v1192_v29 = vunpack.c.l.bf16 %v24_v11  ;;  %v1194_v30 = vunpack.c.l.bf16 %v25_v12 }
   0x6   :  { %v29_v24 = vld [vmem:[%s1703_s0 + $0x3c] sm:$0x7]  ;;  %v30_v25 = vld [vmem:[%s1703_s0 + $0x40] sm:$0x7]  ;;  %v31_v26 = vld [vmem:[%s1703_s0 + $0x44] sm:$0x7]  ;;  %v1205_v34 = vunpack.c.l.bf16 %v26_v17  ;;  %v1207_v35 = vunpack.c.l.bf16 %v27_v18  ;;  %v1209_v36 = vunpack.c.l.bf16 %v28_v19 }
   0x7   :  { %v32_v31 = vld [vmem:[%s1703_s0 + $0x48] sm:$0x7]  ;;  %v33_v32 = vld [vmem:[%s1703_s0 + $0x4c] sm:$0x7]  ;;  %v34_v33 = vld [vmem:[%s1703_s0 + $0x50] sm:$0x7]  ;;  %v1211_v37 = vunpack.c.l.bf16 %v29_v24  ;;  %v1219_v40 = vunpack.c.l.bf16 %v30_v25  ;;  %v1221_v41 = vunpack.c.l.bf16 %v31_v26 }
   0x8   :  { %v35_v38 = vld [vmem:[%s1703_s0 + $0x54] sm:$0x7]  ;;  %v36_v39 = vld [vmem:[%s1703_s0 + $0x58] sm:$0x7]  ;;  %v1223_v42 = vunpack.c.l.bf16 %v32_v31  ;;  %v1225_v43 = vunpack.c.l.bf16 %v33_v32  ;;  %v1227_v44 = vunpack.c.l.bf16 %v34_v33  ;;  %v1095_v47 = vld [vmem:[%s1704_s1] sm:$0xff]   ;;  %v71_v50 = vshrl.u32 %v70_v9, 7 }
   0x9   :  { %1717 = vst [vmem:[#allocation2_spill] sm:$0xff] %v1211_v37  ;;  %1718 = vst [vmem:[#allocation3_spill] sm:$0xff] %v1219_v40  ;;  %v1229_v45 = vunpack.c.l.bf16 %v35_v38  ;;  %v1231_v46 = vunpack.c.l.bf16 %v36_v39  ;;  %v64_v48 = vld [vmem:[%s1704_s1 + $0x8] sm:$0xf]  ;;  %v65_v49 = vld [vmem:[%s1704_s1 + $0xc] sm:$0x3]  ;;  %v1096_v51 = vunpack.c.l.bf16 %v1095_v47  ;;  %v1242_v52 = vunpack.c.h.bf16 %v1095_v47 }
   0xa   :  { %1719 = vst [vmem:[#allocation4_spill] sm:$0xff] %v1221_v41  ;;  %1720 = vst [vmem:[#allocation5_spill] sm:$0xff] %v1223_v42  ;;  %v1244_v53 = vunpack.c.l.bf16 %v64_v48  ;;  %v1246_v54 = vunpack.c.l.bf16 %v65_v49  ;;  %v1248_v55 = vsub.s32 0, %v71_v50  ;;  %v1250_v56 = vsub.s32 1, %v71_v50 }
   0xb   :  { %1721 = vst [vmem:[#allocation6_spill] sm:$0xff] %v1225_v43  ;;  %1722 = vst [vmem:[#allocation7_spill] sm:$0xff] %v1227_v44  ;;  %v1252_v57 = vsub.s32 2, %v71_v50  ;;  %v1254_v58 = vsub.s32 3, %v71_v50  ;;  %v1256_v59 = vsub.s32 4, %v71_v50  ;;  %v1258_v60 = vsub.s32 5, %v71_v50 }
   0xc   :  { %1723 = vst [vmem:[#allocation8_spill] sm:$0xff] %v1229_v45  ;;  %1724 = vst [vmem:[#allocation9_spill] sm:$0xff] %v1231_v46  ;;  %v1260_v61 = vsub.s32 6, %v71_v50  ;;  %v1262_v62 = vsub.s32 7, %v71_v50  ;;  %v73_v63 = vrot.slane %v1096_v51, %v1248_v55  ;;  %v93_v0 = vrot.slane %v1096_v51, %v1250_v56 }
   0xd   :  { %1725 = vst [vmem:[#allocation10_spill] sm:$0xff] %v1244_v53  ;;  %1726 = vst [vmem:[#allocation11_spill] sm:$0xff] %v1246_v54  ;;  %v137_v1 = vrot.slane %v1096_v51, %v1252_v57  ;;  %v1268_v2 = vrot.slane %v1096_v51, %v1254_v58  ;;  %v1271_v3 = vrot.slane %v1096_v51, %v1256_v59 }
   0xe   :  { %v1274_v4 = vrot.slane %v1096_v51, %v1258_v60  ;;  %v1277_v5 = vrot.slane %v1096_v51, %v1260_v61  ;;  %v1280_v6 = vrot.slane %v1096_v51, %v1262_v62  ;;  %v74_v7 = vmul.f32 %v73_v63, %v1154_v13 }
   0xf   :  { %v75_v8 = vmul.f32 %v73_v63, %v1156_v14  ;;  %v76_v9 = vmul.f32 %v73_v63, %v1158_v15  ;;  %v77_v10 = vmul.f32 %v73_v63, %v1160_v16  ;;  %v78_v11 = vmul.f32 %v73_v63, %v1175_v22 }
  0x10   :  { %v79_v12 = vmul.f32 %v73_v63, %v1177_v23  ;;  %v80_v17 = vmul.f32 %v73_v63, %v1188_v27  ;;  %v81_v18 = vmul.f32 %v73_v63, %v1190_v28  ;;  %v94_v19 = vmul.f32 %v93_v0, %v1154_v13 }
  0x11   :  { %v95_v24 = vmul.f32 %v93_v0, %v1156_v14  ;;  %v96_v25 = vmul.f32 %v93_v0, %v1158_v15  ;;  %v97_v26 = vmul.f32 %v93_v0, %v1160_v16  ;;  %v98_v31 = vmul.f32 %v93_v0, %v1175_v22 }
  0x12   :  { %v99_v32 = vmul.f32 %v93_v0, %v1177_v23  ;;  %v100_v33 = vmul.f32 %v93_v0, %v1188_v27  ;;  %v101_v38 = vmul.f32 %v93_v0, %v1190_v28  ;;  %v110_v39 = vrot.slane %v94_v19, 1 }
  0x13   :  { %v111_v47 = vrot.slane %v95_v24, 1  ;;  %v112_v48 = vrot.slane %v96_v25, 1  ;;  %v113_v49 = vrot.slane %v97_v26, 1  ;;  %v114_v50 = vrot.slane %v98_v31, 1 }
  0x14   :  { %v115_v51 = vrot.slane %v99_v32, 1  ;;  %v116_v63 = vrot.slane %v100_v33, 1  ;;  %v117_v54 = vrot.slane %v101_v38, 1  ;;  %v126_v46 = vadd.f32 %v110_v39, %v74_v7 }
  0x15   :  { %v127_v45 = vadd.f32 %v111_v47, %v75_v8  ;;  %v128_v44 = vadd.f32 %v112_v48, %v76_v9  ;;  %v129_v43 = vadd.f32 %v113_v49, %v77_v10  ;;  %v130_v42 = vadd.f32 %v114_v50, %v78_v11 }
  0x16   :  { %v131_v53 = vadd.f32 %v115_v51, %v79_v12  ;;  %v132_v41 = vadd.f32 %v116_v63, %v80_v17  ;;  %v133_v40 = vadd.f32 %v117_v54, %v81_v18  ;;  %v138_v37 = vmul.f32 %v137_v1, %v1154_v13 }
  0x17   :  { %v139_v0 = vmul.f32 %v137_v1, %v1156_v14  ;;  %v140_v19 = vmul.f32 %v137_v1, %v1158_v15  ;;  %v141_v24 = vmul.f32 %v137_v1, %v1160_v16  ;;  %v142_v25 = vmul.f32 %v137_v1, %v1175_v22 }
  0x18   :  { %v143_v26 = vmul.f32 %v137_v1, %v1177_v23  ;;  %v144_v7 = vmul.f32 %v137_v1, %v1188_v27  ;;  %v145_v8 = vmul.f32 %v137_v1, %v1190_v28  ;;  %v154_v9 = vrot.slane %v138_v37, 2 }
  0x19   :  { %v155_v10 = vrot.slane %v139_v0, 2  ;;  %v156_v11 = vrot.slane %v140_v19, 2  ;;  %v157_v54 = vrot.slane %v141_v24, 2  ;;  %v158_v12 = vrot.slane %v142_v25, 2 }
  0x1a   :  { %v159_v13 = vrot.slane %v143_v26, 2  ;;  %v160_v17 = vrot.slane %v144_v7, 2  ;;  %v161_v18 = vrot.slane %v145_v8, 2  ;;  %v170_v31 = vadd.f32 %v154_v9, %v126_v46 }
  0x1b   :  { %v171_v32 = vadd.f32 %v155_v10, %v127_v45  ;;  %v172_v33 = vadd.f32 %v156_v11, %v128_v44  ;;  %v173_v38 = vadd.f32 %v157_v54, %v129_v43  ;;  %v174_v39 = vadd.f32 %v158_v12, %v130_v42 }
  0x1c   :  { %v175_v47 = vadd.f32 %v159_v13, %v131_v53  ;;  %v176_v48 = vadd.f32 %v160_v17, %v132_v41  ;;  %v177_v49 = vadd.f32 %v161_v18, %v133_v40  ;;  %v182_v50 = vmul.f32 %v1268_v2, %v1156_v14 }
  0x1d   :  { %v183_v37 = vmul.f32 %v1268_v2, %v1158_v15  ;;  %v184_v1 = vmul.f32 %v1268_v2, %v1160_v16  ;;  %v185_v51 = vmul.f32 %v1268_v2, %v1171_v20  ;;  %v186_v44 = vmul.f32 %v1268_v2, %v1177_v23 }
  0x1e   :  { %v187_v42 = vmul.f32 %v1268_v2, %v1188_v27  ;;  %v188_v40 = vmul.f32 %v1268_v2, %v1190_v28  ;;  %v189_v41 = vmul.f32 %v1268_v2, %v1192_v29  ;;  %v190_v43 = vadd.f32 %v182_v50, %v170_v31 }
  0x1f   :  { %v191_v45 = vadd.f32 %v183_v37, %v171_v32  ;;  %v192_v46 = vadd.f32 %v184_v1, %v172_v33  ;;  %v193_v53 = vadd.f32 %v185_v51, %v173_v38  ;;  %v194_v63 = vadd.f32 %v186_v44, %v174_v39 }
  0x20   :  { %v195_v0 = vadd.f32 %v187_v42, %v175_v47  ;;  %v196_v19 = vadd.f32 %v188_v40, %v176_v48  ;;  %v197_v24 = vadd.f32 %v189_v41, %v177_v49  ;;  %v202_v25 = vmul.f32 %v1271_v3, %v1156_v14 }
  0x21   :  { %v203_v26 = vmul.f32 %v1271_v3, %v1158_v15  ;;  %v204_v7 = vmul.f32 %v1271_v3, %v1160_v16  ;;  %v205_v2 = vmul.f32 %v1271_v3, %v1171_v20  ;;  %v206_v8 = vmul.f32 %v1271_v3, %v1177_v23 }
  0x22   :  { %v207_v9 = vmul.f32 %v1271_v3, %v1188_v27  ;;  %v208_v10 = vmul.f32 %v1271_v3, %v1190_v28  ;;  %v209_v11 = vmul.f32 %v1271_v3, %v1192_v29  ;;  %v218_v54 = vrot.slane %v202_v25, 1 }
  0x23   :  { %v219_v12 = vrot.slane %v203_v26, 1  ;;  %v220_v13 = vrot.slane %v204_v7, 1  ;;  %v221_v17 = vrot.slane %v205_v2, 1  ;;  %v222_v18 = vrot.slane %v206_v8, 1 }
  0x24   :  { %v223_v31 = vrot.slane %v207_v9, 1  ;;  %v224_v32 = vrot.slane %v208_v10, 1  ;;  %v225_v33 = vrot.slane %v209_v11, 1  ;;  %v234_v38 = vadd.f32 %v218_v54, %v190_v43 }
  0x25   :  { %v235_v39 = vadd.f32 %v219_v12, %v191_v45  ;;  %v236_v47 = vadd.f32 %v220_v13, %v192_v46  ;;  %v237_v48 = vadd.f32 %v221_v17, %v193_v53  ;;  %v238_v49 = vadd.f32 %v222_v18, %v194_v63 }
  0x26   :  { %v239_v50 = vadd.f32 %v223_v31, %v195_v0  ;;  %v240_v37 = vadd.f32 %v224_v32, %v196_v19  ;;  %v241_v1 = vadd.f32 %v225_v33, %v197_v24  ;;  %v246_v51 = vmul.f32 %v1274_v4, %v1156_v14 }
  0x27   :  { %v247_v3 = vmul.f32 %v1274_v4, %v1158_v15  ;;  %v248_v44 = vmul.f32 %v1274_v4, %v1160_v16  ;;  %v249_v42 = vmul.f32 %v1274_v4, %v1171_v20  ;;  %v250_v40 = vmul.f32 %v1274_v4, %v1177_v23 }
  0x28   :  { %v251_v41 = vmul.f32 %v1274_v4, %v1188_v27  ;;  %v252_v43 = vmul.f32 %v1274_v4, %v1190_v28  ;;  %v253_v14 = vmul.f32 %v1274_v4, %v1192_v29  ;;  %v262_v45 = vrot.slane %v246_v51, 2 }
  0x29   :  { %v263_v46 = vrot.slane %v247_v3, 2  ;;  %v264_v53 = vrot.slane %v248_v44, 2  ;;  %v265_v63 = vrot.slane %v249_v42, 2  ;;  %v266_v0 = vrot.slane %v250_v40, 2 }
  0x2a   :  { %v267_v19 = vrot.slane %v251_v41, 2  ;;  %v268_v24 = vrot.slane %v252_v43, 2  ;;  %v269_v25 = vrot.slane %v253_v14, 2  ;;  %v278_v26 = vadd.f32 %v262_v45, %v234_v38 }
  0x2b   :  { %v279_v7 = vadd.f32 %v263_v46, %v235_v39  ;;  %v280_v2 = vadd.f32 %v264_v53, %v236_v47  ;;  %v281_v8 = vadd.f32 %v265_v63, %v237_v48  ;;  %v282_v9 = vadd.f32 %v266_v0, %v238_v49 }
  0x2c   :  { %v283_v10 = vadd.f32 %v267_v19, %v239_v50  ;;  %v284_v11 = vadd.f32 %v268_v24, %v240_v37  ;;  %v285_v54 = vadd.f32 %v269_v25, %v241_v1  ;;  %v290_v12 = vmul.f32 %v1277_v5, %v1158_v15 }
  0x2d   :  { %v291_v4 = vmul.f32 %v1277_v5, %v1160_v16  ;;  %v292_v13 = vmul.f32 %v1277_v5, %v1171_v20  ;;  %v293_v17 = vmul.f32 %v1277_v5, %v1173_v21  ;;  %v294_v18 = vmul.f32 %v1277_v5, %v1188_v27 }
  0x2e   :  { %v295_v31 = vmul.f32 %v1277_v5, %v1190_v28  ;;  %v296_v32 = vmul.f32 %v1277_v5, %v1192_v29  ;;  %v297_v33 = vmul.f32 %v1277_v5, %v1194_v30  ;;  %v298_v38 = vadd.f32 %v290_v12, %v278_v26 }
  0x2f   :  { %v299_v39 = vadd.f32 %v291_v4, %v279_v7  ;;  %v300_v47 = vadd.f32 %v292_v13, %v280_v2  ;;  %v301_v48 = vadd.f32 %v293_v17, %v281_v8  ;;  %v302_v49 = vadd.f32 %v294_v18, %v282_v9 }
  0x30   :  { %v303_v50 = vadd.f32 %v295_v31, %v283_v10  ;;  %v304_v37 = vadd.f32 %v296_v32, %v284_v11  ;;  %v305_v1 = vadd.f32 %v297_v33, %v285_v54  ;;  %v310_v51 = vmul.f32 %v1280_v6, %v1158_v15 }
  0x31   :  { %v311_v3 = vmul.f32 %v1280_v6, %v1160_v16  ;;  %v312_v44 = vmul.f32 %v1280_v6, %v1171_v20  ;;  %v313_v5 = vmul.f32 %v1280_v6, %v1173_v21  ;;  %v314_v42 = vmul.f32 %v1280_v6, %v1188_v27 }
  0x32   :  { %v315_v40 = vmul.f32 %v1280_v6, %v1190_v28  ;;  %v316_v41 = vmul.f32 %v1280_v6, %v1192_v29  ;;  %v317_v43 = vmul.f32 %v1280_v6, %v1194_v30  ;;  %v326_v14 = vrot.slane %v310_v51, 1 }
  0x33   :  { %v327_v45 = vrot.slane %v311_v3, 1  ;;  %v328_v46 = vrot.slane %v312_v44, 1  ;;  %v329_v53 = vrot.slane %v313_v5, 1  ;;  %v330_v63 = vrot.slane %v314_v42, 1 }
  0x34   :  { %v331_v0 = vrot.slane %v315_v40, 1  ;;  %v332_v19 = vrot.slane %v316_v41, 1  ;;  %v333_v24 = vrot.slane %v317_v43, 1  ;;  %v342_v25 = vadd.f32 %v326_v14, %v298_v38 }
  0x35   :  { %v343_v26 = vadd.f32 %v327_v45, %v299_v39  ;;  %v344_v7 = vadd.f32 %v328_v46, %v300_v47  ;;  %v345_v2 = vadd.f32 %v329_v53, %v301_v48  ;;  %v346_v8 = vadd.f32 %v330_v63, %v302_v49 }
  0x36   :  { %v347_v9 = vadd.f32 %v331_v0, %v303_v50  ;;  %v348_v10 = vadd.f32 %v332_v19, %v304_v37  ;;  %v349_v11 = vadd.f32 %v333_v24, %v305_v1  ;;  %v353_v54 = vrot.slane %v1242_v52, %v1248_v55 }
  0x37   :  { %v397_v6 = vrot.slane %v1242_v52, %v1250_v56  ;;  %v417_v12 = vrot.slane %v1242_v52, %v1252_v57  ;;  %v1394_v4 = vrot.slane %v1242_v52, %v1254_v58  ;;  %v1398_v13 = vrot.slane %v1242_v52, %v1256_v59 }
  0x38   :  { %v1402_v17 = vrot.slane %v1242_v52, %v1258_v60  ;;  %v1406_v18 = vrot.slane %v1242_v52, %v1260_v61  ;;  %v1410_v31 = vrot.slane %v1242_v52, %v1262_v62  ;;  %v354_v32 = vmul.f32 %v353_v54, %v1158_v15 }
  0x39   :  { %v355_v33 = vmul.f32 %v353_v54, %v1160_v16  ;;  %v356_v38 = vmul.f32 %v353_v54, %v1171_v20  ;;  %v357_v39 = vmul.f32 %v353_v54, %v1173_v21  ;;  %v358_v47 = vmul.f32 %v353_v54, %v1188_v27 }
  0x3a   :  { %v359_v48 = vmul.f32 %v353_v54, %v1190_v28  ;;  %v360_v49 = vmul.f32 %v353_v54, %v1192_v29  ;;  %v361_v50 = vmul.f32 %v353_v54, %v1194_v30  ;;  %v370_v37 = vrot.slane %v354_v32, 2 }
  0x3b   :  { %v371_v1 = vrot.slane %v355_v33, 2  ;;  %v372_v52 = vrot.slane %v356_v38, 2  ;;  %v373_v51 = vrot.slane %v357_v39, 2  ;;  %v374_v3 = vrot.slane %v358_v47, 2 }
  0x3c   :  { %v375_v15 = vrot.slane %v359_v48, 2  ;;  %v376_v44 = vrot.slane %v360_v49, 2  ;;  %v377_v16 = vrot.slane %v361_v50, 2  ;;  %v386_v5 = vadd.f32 %v370_v37, %v342_v25  ;;  %v1727_v25 = vld [vmem:[#allocation2_spill] sm:$0xff] }
  0x3d   :  { %v387_v20 = vadd.f32 %v371_v1, %v343_v26  ;;  %v388_v42 = vadd.f32 %v372_v52, %v344_v7  ;;  %v389_v21 = vadd.f32 %v373_v51, %v345_v2  ;;  %v390_v40 = vadd.f32 %v374_v3, %v346_v8 }
  0x3e   :  { %v391_v41 = vadd.f32 %v375_v15, %v347_v9  ;;  %v392_v43 = vadd.f32 %v376_v44, %v348_v10  ;;  %v393_v14 = vadd.f32 %v377_v16, %v349_v11  ;;  %v398_v45 = vmul.f32 %v397_v6, %v1175_v22 }
  0x3f   :  { %v399_v46 = vmul.f32 %v397_v6, %v1177_v23  ;;  %v400_v53 = vmul.f32 %v397_v6, %v1188_v27  ;;  %v401_v63 = vmul.f32 %v397_v6, %v1190_v28  ;;  %v402_v0 = vmul.f32 %v397_v6, %v1205_v34 }
  0x40   :  { %v403_v19 = vmul.f32 %v397_v6, %v1207_v35  ;;  %v404_v24 = vmul.f32 %v397_v6, %v1209_v36  ;;  %v405_v26 = vmul.f32 %v397_v6, %v1727_v25  ;;  %v406_v7 = vadd.f32 %v398_v45, %v386_v5 }
  0x41   :  { %v407_v2 = vadd.f32 %v399_v46, %v387_v20  ;;  %v408_v8 = vadd.f32 %v400_v53, %v388_v42  ;;  %v409_v9 = vadd.f32 %v401_v63, %v389_v21  ;;  %v410_v10 = vadd.f32 %v402_v0, %v390_v40 }
  0x42   :  { %v411_v11 = vadd.f32 %v403_v19, %v391_v41  ;;  %v412_v54 = vadd.f32 %v404_v24, %v392_v43  ;;  %v413_v32 = vadd.f32 %v405_v26, %v393_v14  ;;  %v418_v33 = vmul.f32 %v417_v12, %v1175_v22 }
  0x43   :  { %v419_v38 = vmul.f32 %v417_v12, %v1177_v23  ;;  %v420_v39 = vmul.f32 %v417_v12, %v1188_v27  ;;  %v421_v47 = vmul.f32 %v417_v12, %v1190_v28  ;;  %v422_v48 = vmul.f32 %v417_v12, %v1205_v34 }
  0x44   :  { %v423_v6 = vmul.f32 %v417_v12, %v1207_v35  ;;  %v424_v49 = vmul.f32 %v417_v12, %v1209_v36  ;;  %v425_v50 = vmul.f32 %v417_v12, %v1727_v25  ;;  %v434_v37 = vrot.slane %v418_v33, 1 }
  0x45   :  { %v435_v1 = vrot.slane %v419_v38, 1  ;;  %v436_v52 = vrot.slane %v420_v39, 1  ;;  %v437_v51 = vrot.slane %v421_v47, 1  ;;  %v438_v3 = vrot.slane %v422_v48, 1 }
  0x46   :  { %v439_v15 = vrot.slane %v423_v6, 1  ;;  %v440_v44 = vrot.slane %v424_v49, 1  ;;  %v441_v16 = vrot.slane %v425_v50, 1  ;;  %v450_v5 = vadd.f32 %v434_v37, %v406_v7 }
  0x47   :  { %v451_v20 = vadd.f32 %v435_v1, %v407_v2  ;;  %v452_v42 = vadd.f32 %v436_v52, %v408_v8  ;;  %v453_v21 = vadd.f32 %v437_v51, %v409_v9  ;;  %v454_v40 = vadd.f32 %v438_v3, %v410_v10  ;;  %v1728_v3 = vld [vmem:[#allocation3_spill] sm:$0xff] }
  0x48   :  { %v455_v41 = vadd.f32 %v439_v15, %v411_v11  ;;  %v456_v43 = vadd.f32 %v440_v44, %v412_v54  ;;  %v457_v14 = vadd.f32 %v441_v16, %v413_v32  ;;  %v462_v45 = vmul.f32 %v1394_v4, %v1175_v22 }
  0x49   :  { %v463_v12 = vmul.f32 %v1394_v4, %v1177_v23  ;;  %v464_v46 = vmul.f32 %v1394_v4, %v1188_v27  ;;  %v465_v53 = vmul.f32 %v1394_v4, %v1190_v28  ;;  %v466_v63 = vmul.f32 %v1394_v4, %v1205_v34 }
  0x4a   :  { %v467_v0 = vmul.f32 %v1394_v4, %v1207_v35  ;;  %v468_v19 = vmul.f32 %v1394_v4, %v1209_v36  ;;  %v469_v22 = vmul.f32 %v1394_v4, %v1727_v25  ;;  %v478_v24 = vrot.slane %v462_v45, 2 }
  0x4b   :  { %v479_v26 = vrot.slane %v463_v12, 2  ;;  %v480_v7 = vrot.slane %v464_v46, 2  ;;  %v481_v2 = vrot.slane %v465_v53, 2  ;;  %v482_v8 = vrot.slane %v466_v63, 2 }
  0x4c   :  { %v483_v9 = vrot.slane %v467_v0, 2  ;;  %v484_v10 = vrot.slane %v468_v19, 2  ;;  %v485_v11 = vrot.slane %v469_v22, 2  ;;  %v494_v54 = vadd.f32 %v478_v24, %v450_v5 }
  0x4d   :  { %v495_v32 = vadd.f32 %v479_v26, %v451_v20  ;;  %v496_v33 = vadd.f32 %v480_v7, %v452_v42  ;;  %v497_v38 = vadd.f32 %v481_v2, %v453_v21  ;;  %v498_v39 = vadd.f32 %v482_v8, %v454_v40 }
  0x4e   :  { %v499_v47 = vadd.f32 %v483_v9, %v455_v41  ;;  %v500_v48 = vadd.f32 %v484_v10, %v456_v43  ;;  %v501_v6 = vadd.f32 %v485_v11, %v457_v14  ;;  %v506_v49 = vmul.f32 %v1398_v13, %v1177_v23 }
  0x4f   :  { %v507_v4 = vmul.f32 %v1398_v13, %v1188_v27  ;;  %v508_v50 = vmul.f32 %v1398_v13, %v1190_v28  ;;  %v509_v37 = vmul.f32 %v1398_v13, %v1192_v29  ;;  %v510_v1 = vmul.f32 %v1398_v13, %v1207_v35 }
  0x50   :  { %v511_v52 = vmul.f32 %v1398_v13, %v1209_v36  ;;  %v512_v51 = vmul.f32 %v1398_v13, %v1727_v25  ;;  %v513_v15 = vmul.f32 %v1398_v13, %v1728_v3  ;;  %v514_v44 = vadd.f32 %v506_v49, %v494_v54 }
  0x51   :  { %v515_v16 = vadd.f32 %v507_v4, %v495_v32  ;;  %v516_v5 = vadd.f32 %v508_v50, %v496_v33  ;;  %v517_v20 = vadd.f32 %v509_v37, %v497_v38  ;;  %v518_v42 = vadd.f32 %v510_v1, %v498_v39 }
  0x52   :  { %v519_v21 = vadd.f32 %v511_v52, %v499_v47  ;;  %v520_v40 = vadd.f32 %v512_v51, %v500_v48  ;;  %v521_v41 = vadd.f32 %v513_v15, %v501_v6  ;;  %v526_v43 = vmul.f32 %v1402_v17, %v1177_v23 }
  0x53   :  { %v527_v14 = vmul.f32 %v1402_v17, %v1188_v27  ;;  %v528_v45 = vmul.f32 %v1402_v17, %v1190_v28  ;;  %v529_v13 = vmul.f32 %v1402_v17, %v1192_v29  ;;  %v530_v12 = vmul.f32 %v1402_v17, %v1207_v35 }
  0x54   :  { %v531_v46 = vmul.f32 %v1402_v17, %v1209_v36  ;;  %v532_v53 = vmul.f32 %v1402_v17, %v1727_v25  ;;  %v533_v63 = vmul.f32 %v1402_v17, %v1728_v3  ;;  %v542_v0 = vrot.slane %v526_v43, 1 }
  0x55   :  { %v543_v19 = vrot.slane %v527_v14, 1  ;;  %v544_v22 = vrot.slane %v528_v45, 1  ;;  %v545_v24 = vrot.slane %v529_v13, 1  ;;  %v546_v26 = vrot.slane %v530_v12, 1 }
  0x56   :  { %v547_v7 = vrot.slane %v531_v46, 1  ;;  %v548_v2 = vrot.slane %v532_v53, 1  ;;  %v549_v8 = vrot.slane %v533_v63, 1  ;;  %v558_v9 = vadd.f32 %v542_v0, %v514_v44 }
  0x57   :  { %v559_v10 = vadd.f32 %v543_v19, %v515_v16  ;;  %v560_v11 = vadd.f32 %v544_v22, %v516_v5  ;;  %v561_v54 = vadd.f32 %v545_v24, %v517_v20  ;;  %v562_v32 = vadd.f32 %v546_v26, %v518_v42  ;;  %v1729_v19 = vld [vmem:[#allocation4_spill] sm:$0xff] }
  0x58   :  { %v563_v33 = vadd.f32 %v547_v7, %v519_v21  ;;  %v564_v38 = vadd.f32 %v548_v2, %v520_v40  ;;  %v565_v39 = vadd.f32 %v549_v8, %v521_v41  ;;  %v570_v47 = vmul.f32 %v1406_v18, %v1177_v23 }
  0x59   :  { %v571_v17 = vmul.f32 %v1406_v18, %v1188_v27  ;;  %v572_v48 = vmul.f32 %v1406_v18, %v1190_v28  ;;  %v573_v6 = vmul.f32 %v1406_v18, %v1192_v29  ;;  %v574_v49 = vmul.f32 %v1406_v18, %v1207_v35 }
  0x5a   :  { %v575_v4 = vmul.f32 %v1406_v18, %v1209_v36  ;;  %v576_v50 = vmul.f32 %v1406_v18, %v1727_v25  ;;  %v577_v23 = vmul.f32 %v1406_v18, %v1728_v3  ;;  %v586_v37 = vrot.slane %v570_v47, 2 }
  0x5b   :  { %v587_v1 = vrot.slane %v571_v17, 2  ;;  %v588_v52 = vrot.slane %v572_v48, 2  ;;  %v589_v51 = vrot.slane %v573_v6, 2  ;;  %v590_v15 = vrot.slane %v574_v49, 2 }
  0x5c   :  { %v591_v44 = vrot.slane %v575_v4, 2  ;;  %v592_v16 = vrot.slane %v576_v50, 2  ;;  %v593_v5 = vrot.slane %v577_v23, 2  ;;  %v602_v20 = vadd.f32 %v586_v37, %v558_v9 }
  0x5d   :  { %v603_v42 = vadd.f32 %v587_v1, %v559_v10  ;;  %v604_v21 = vadd.f32 %v588_v52, %v560_v11  ;;  %v605_v40 = vadd.f32 %v589_v51, %v561_v54  ;;  %v606_v41 = vadd.f32 %v590_v15, %v562_v32  ;;  %v1730_v54 = vld [vmem:[#allocation10_spill] sm:$0xff] }
  0x5e   :  { %v607_v43 = vadd.f32 %v591_v44, %v563_v33  ;;  %v608_v14 = vadd.f32 %v592_v16, %v564_v38  ;;  %v609_v45 = vadd.f32 %v593_v5, %v565_v39  ;;  %v614_v13 = vmul.f32 %v1410_v31, %v1188_v27 }
  0x5f   :  { %v615_v18 = vmul.f32 %v1410_v31, %v1190_v28  ;;  %v616_v12 = vmul.f32 %v1410_v31, %v1192_v29  ;;  %v617_v46 = vmul.f32 %v1410_v31, %v1194_v30  ;;  %v618_v53 = vmul.f32 %v1410_v31, %v1209_v36 }
  0x60   :  { %v619_v63 = vmul.f32 %v1410_v31, %v1727_v25  ;;  %v620_v0 = vmul.f32 %v1410_v31, %v1728_v3  ;;  %v621_v22 = vmul.f32 %v1410_v31, %v1729_v19  ;;  %v622_v24 = vadd.f32 %v614_v13, %v602_v20 }
  0x61   :  { %v623_v26 = vadd.f32 %v615_v18, %v603_v42  ;;  %v624_v7 = vadd.f32 %v616_v12, %v604_v21  ;;  %v625_v2 = vadd.f32 %v617_v46, %v605_v40  ;;  %v626_v8 = vadd.f32 %v618_v53, %v606_v41 }
  0x62   :  { %v627_v9 = vadd.f32 %v619_v63, %v607_v43  ;;  %v628_v10 = vadd.f32 %v620_v0, %v608_v14  ;;  %v629_v11 = vadd.f32 %v621_v22, %v609_v45  ;;  %v633_v32 = vrot.slane %v1730_v54, %v1248_v55 }
  0x63   :  { %v677_v33 = vrot.slane %v1730_v54, %v1250_v56  ;;  %v721_v38 = vrot.slane %v1730_v54, %v1252_v57  ;;  %v1524_v31 = vrot.slane %v1730_v54, %v1254_v58  ;;  %v1528_v39 = vrot.slane %v1730_v54, %v1256_v59 }
  0x64   :  { %v1532_v47 = vrot.slane %v1730_v54, %v1258_v60  ;;  %v1536_v17 = vrot.slane %v1730_v54, %v1260_v61  ;;  %v1540_v48 = vrot.slane %v1730_v54, %v1262_v62  ;;  %v634_v6 = vmul.f32 %v633_v32, %v1188_v27 }
  0x65   :  { %v635_v58 = vmul.f32 %v633_v32, %v1190_v28  ;;  %v636_v49 = vmul.f32 %v633_v32, %v1192_v29  ;;  %v637_v59 = vmul.f32 %v633_v32, %v1194_v30  ;;  %v638_v4 = vmul.f32 %v633_v32, %v1209_v36 }
  0x66   :  { %v639_v60 = vmul.f32 %v633_v32, %v1727_v25  ;;  %v640_v50 = vmul.f32 %v633_v32, %v1728_v3  ;;  %v641_v61 = vmul.f32 %v633_v32, %v1729_v19  ;;  %v650_v23 = vrot.slane %v634_v6, 1 }
  0x67   :  { %v651_v37 = vrot.slane %v635_v58, 1  ;;  %v652_v62 = vrot.slane %v636_v49, 1  ;;  %v653_v1 = vrot.slane %v637_v59, 1  ;;  %v654_v52 = vrot.slane %v638_v4, 1  ;;  %v1731_v59 = vld [vmem:[#allocation5_spill] sm:$0xff] }
  0x68   :  { %v655_v51 = vrot.slane %v639_v60, 1  ;;  %v656_v15 = vrot.slane %v640_v50, 1  ;;  %v657_v44 = vrot.slane %v641_v61, 1  ;;  %v666_v16 = vadd.f32 %v650_v23, %v622_v24  ;;  %v1732_v60 = vld [vmem:[#allocation6_spill] sm:$0xff]  ;;  %v1733_v61 = vld [vmem:[#allocation7_spill] sm:$0xff] }
  0x69   :  { %v667_v5 = vadd.f32 %v651_v37, %v623_v26  ;;  %v668_v20 = vadd.f32 %v652_v62, %v624_v7  ;;  %v669_v42 = vadd.f32 %v653_v1, %v625_v2  ;;  %v670_v21 = vadd.f32 %v654_v52, %v626_v8  ;;  %v1734_v37 = vld [vmem:[#allocation8_spill] sm:$0xff] }
  0x6a   :  { %v671_v40 = vadd.f32 %v655_v51, %v627_v9  ;;  %v672_v41 = vadd.f32 %v656_v15, %v628_v10  ;;  %v673_v43 = vadd.f32 %v657_v44, %v629_v11  ;;  %v678_v14 = vmul.f32 %v677_v33, %v1188_v27 }
  0x6b   :  { %v679_v45 = vmul.f32 %v677_v33, %v1190_v28  ;;  %v680_v13 = vmul.f32 %v677_v33, %v1192_v29  ;;  %v681_v18 = vmul.f32 %v677_v33, %v1194_v30  ;;  %v682_v12 = vmul.f32 %v677_v33, %v1209_v36 }
  0x6c   :  { %v683_v46 = vmul.f32 %v677_v33, %v1727_v25  ;;  %v684_v53 = vmul.f32 %v677_v33, %v1728_v3  ;;  %v685_v63 = vmul.f32 %v677_v33, %v1729_v19  ;;  %v694_v0 = vrot.slane %v678_v14, 2 }
  0x6d   :  { %v695_v22 = vrot.slane %v679_v45, 2  ;;  %v696_v24 = vrot.slane %v680_v13, 2  ;;  %v697_v26 = vrot.slane %v681_v18, 2  ;;  %v698_v7 = vrot.slane %v682_v12, 2 }
  0x6e   :  { %v699_v27 = vrot.slane %v683_v46, 2  ;;  %v700_v2 = vrot.slane %v684_v53, 2  ;;  %v701_v28 = vrot.slane %v685_v63, 2  ;;  %v710_v8 = vadd.f32 %v694_v0, %v666_v16 }
  0x6f   :  { %v711_v29 = vadd.f32 %v695_v22, %v667_v5  ;;  %v712_v9 = vadd.f32 %v696_v24, %v668_v20  ;;  %v713_v30 = vadd.f32 %v697_v26, %v669_v42  ;;  %v714_v10 = vadd.f32 %v698_v7, %v670_v21 }
  0x70   :  { %v715_v11 = vadd.f32 %v699_v27, %v671_v40  ;;  %v716_v54 = vadd.f32 %v700_v2, %v672_v41  ;;  %v717_v32 = vadd.f32 %v701_v28, %v673_v43  ;;  %v722_v6 = vmul.f32 %v721_v38, %v1205_v34 }
  0x71   :  { %v723_v33 = vmul.f32 %v721_v38, %v1207_v35  ;;  %v724_v58 = vmul.f32 %v721_v38, %v1209_v36  ;;  %v725_v49 = vmul.f32 %v721_v38, %v1727_v25  ;;  %v726_v4 = vmul.f32 %v721_v38, %v1731_v59 }
  0x72   :  { %v727_v50 = vmul.f32 %v721_v38, %v1732_v60  ;;  %v728_v23 = vmul.f32 %v721_v38, %v1733_v61  ;;  %v729_v62 = vmul.f32 %v721_v38, %v1734_v37  ;;  %v730_v1 = vadd.f32 %v722_v6, %v710_v8 }
  0x73   :  { %v731_v52 = vadd.f32 %v723_v33, %v711_v29  ;;  %v732_v51 = vadd.f32 %v724_v58, %v712_v9  ;;  %v733_v15 = vadd.f32 %v725_v49, %v713_v30  ;;  %v734_v44 = vadd.f32 %v726_v4, %v714_v10 }
  0x74   :  { %v735_v16 = vadd.f32 %v727_v50, %v715_v11  ;;  %v736_v5 = vadd.f32 %v728_v23, %v716_v54  ;;  %v737_v20 = vadd.f32 %v729_v62, %v717_v32  ;;  %v742_v42 = vmul.f32 %v1524_v31, %v1205_v34 }
  0x75   :  { %v743_v21 = vmul.f32 %v1524_v31, %v1207_v35  ;;  %v744_v40 = vmul.f32 %v1524_v31, %v1209_v36  ;;  %v745_v38 = vmul.f32 %v1524_v31, %v1727_v25  ;;  %v746_v41 = vmul.f32 %v1524_v31, %v1731_v59 }
  0x76   :  { %v747_v43 = vmul.f32 %v1524_v31, %v1732_v60  ;;  %v748_v14 = vmul.f32 %v1524_v31, %v1733_v61  ;;  %v749_v45 = vmul.f32 %v1524_v31, %v1734_v37  ;;  %v758_v13 = vrot.slane %v742_v42, 1 }
  0x77   :  { %v759_v18 = vrot.slane %v743_v21, 1  ;;  %v760_v12 = vrot.slane %v744_v40, 1  ;;  %v761_v46 = vrot.slane %v745_v38, 1  ;;  %v762_v53 = vrot.slane %v746_v41, 1 }
  0x78   :  { %v763_v63 = vrot.slane %v747_v43, 1  ;;  %v764_v0 = vrot.slane %v748_v14, 1  ;;  %v765_v22 = vrot.slane %v749_v45, 1  ;;  %v774_v24 = vadd.f32 %v758_v13, %v730_v1  ;;  %v1735_v43 = vld [vmem:[#allocation9_spill] sm:$0xff] }
  0x79   :  { %v775_v26 = vadd.f32 %v759_v18, %v731_v52  ;;  %v776_v7 = vadd.f32 %v760_v12, %v732_v51  ;;  %v777_v27 = vadd.f32 %v761_v46, %v733_v15  ;;  %v778_v2 = vadd.f32 %v762_v53, %v734_v44 }
  0x7a   :  { %v779_v28 = vadd.f32 %v763_v63, %v735_v16  ;;  %v780_v8 = vadd.f32 %v764_v0, %v736_v5  ;;  %v781_v29 = vadd.f32 %v765_v22, %v737_v20  ;;  %v786_v9 = vmul.f32 %v1528_v39, %v1205_v34 }
  0x7b   :  { %v787_v31 = vmul.f32 %v1528_v39, %v1207_v35  ;;  %v788_v30 = vmul.f32 %v1528_v39, %v1209_v36  ;;  %v789_v10 = vmul.f32 %v1528_v39, %v1727_v25  ;;  %v790_v11 = vmul.f32 %v1528_v39, %v1731_v59 }
  0x7c   :  { %v791_v54 = vmul.f32 %v1528_v39, %v1732_v60  ;;  %v792_v32 = vmul.f32 %v1528_v39, %v1733_v61  ;;  %v793_v34 = vmul.f32 %v1528_v39, %v1734_v37  ;;  %v802_v6 = vrot.slane %v786_v9, 2 }
  0x7d   :  { %v803_v33 = vrot.slane %v787_v31, 2  ;;  %v804_v58 = vrot.slane %v788_v30, 2  ;;  %v805_v49 = vrot.slane %v789_v10, 2  ;;  %v806_v4 = vrot.slane %v790_v11, 2 }
  0x7e   :  { %v807_v50 = vrot.slane %v791_v54, 2  ;;  %v808_v23 = vrot.slane %v792_v32, 2  ;;  %v809_v62 = vrot.slane %v793_v34, 2  ;;  %v818_v1 = vadd.f32 %v802_v6, %v774_v24 }
  0x7f   :  { %v819_v52 = vadd.f32 %v803_v33, %v775_v26  ;;  %v820_v59 = vadd.f32 %v804_v58, %v776_v7  ;;  %v821_v51 = vadd.f32 %v805_v49, %v777_v27  ;;  %v822_v15 = vadd.f32 %v806_v4, %v778_v2 }
  0x80   :  { %v823_v44 = vadd.f32 %v807_v50, %v779_v28  ;;  %v824_v16 = vadd.f32 %v808_v23, %v780_v8  ;;  %v825_v5 = vadd.f32 %v809_v62, %v781_v29  ;;  %v830_v20 = vmul.f32 %v1532_v47, %v1207_v35 }
  0x81   :  { %v831_v39 = vmul.f32 %v1532_v47, %v1209_v36  ;;  %v832_v42 = vmul.f32 %v1532_v47, %v1727_v25  ;;  %v833_v21 = vmul.f32 %v1532_v47, %v1728_v3  ;;  %v834_v40 = vmul.f32 %v1532_v47, %v1732_v60 }
  0x82   :  { %v835_v38 = vmul.f32 %v1532_v47, %v1733_v61  ;;  %v836_v41 = vmul.f32 %v1532_v47, %v1734_v37  ;;  %v837_v14 = vmul.f32 %v1532_v47, %v1735_v43  ;;  %v838_v45 = vadd.f32 %v830_v20, %v818_v1 }
  0x83   :  { %v839_v13 = vadd.f32 %v831_v39, %v819_v52  ;;  %v840_v18 = vadd.f32 %v832_v42, %v820_v59  ;;  %v841_v12 = vadd.f32 %v833_v21, %v821_v51  ;;  %v842_v46 = vadd.f32 %v834_v40, %v822_v15  ;;  %v37_v15 = vld [vmem:[%s1703_s0 + $0x5c] sm:$0x7] }
  0x84   :  { %v843_v53 = vadd.f32 %v835_v38, %v823_v44  ;;  %v844_v63 = vadd.f32 %v836_v41, %v824_v16  ;;  %v845_v0 = vadd.f32 %v837_v14, %v825_v5  ;;  %v850_v22 = vmul.f32 %v1536_v17, %v1207_v35 }
  0x85   :  { %v851_v24 = vmul.f32 %v1536_v17, %v1209_v36  ;;  %v852_v26 = vmul.f32 %v1536_v17, %v1727_v25  ;;  %v853_v47 = vmul.f32 %v1536_v17, %v1728_v3  ;;  %v854_v7 = vmul.f32 %v1536_v17, %v1732_v60 }
  0x86   :  { %v855_v27 = vmul.f32 %v1536_v17, %v1733_v61  ;;  %v856_v2 = vmul.f32 %v1536_v17, %v1734_v37  ;;  %v857_v28 = vmul.f32 %v1536_v17, %v1735_v43  ;;  %v866_v8 = vrot.slane %v850_v22, 1 }
  0x87   :  { %v867_v29 = vrot.slane %v851_v24, 1  ;;  %v868_v9 = vrot.slane %v852_v26, 1  ;;  %v869_v31 = vrot.slane %v853_v47, 1  ;;  %v870_v30 = vrot.slane %v854_v7, 1 }
  0x88   :  { %v871_v10 = vrot.slane %v855_v27, 1  ;;  %v872_v11 = vrot.slane %v856_v2, 1  ;;  %v873_v54 = vrot.slane %v857_v28, 1  ;;  %v882_v32 = vadd.f32 %v866_v8, %v838_v45 }
  0x89   :  { %v883_v34 = vadd.f32 %v867_v29, %v839_v13  ;;  %v884_v6 = vadd.f32 %v868_v9, %v840_v18  ;;  %v885_v33 = vadd.f32 %v869_v31, %v841_v12  ;;  %v886_v58 = vadd.f32 %v870_v30, %v842_v46 }
  0x8a   :  { %v887_v49 = vadd.f32 %v871_v10, %v843_v53  ;;  %v888_v4 = vadd.f32 %v872_v11, %v844_v63  ;;  %v889_v50 = vadd.f32 %v873_v54, %v845_v0  ;;  %v894_v23 = vmul.f32 %v1540_v48, %v1207_v35 }
  0x8b   :  { %v895_v17 = vmul.f32 %v1540_v48, %v1209_v36  ;;  %v896_v62 = vmul.f32 %v1540_v48, %v1727_v25  ;;  %v897_v1 = vmul.f32 %v1540_v48, %v1728_v3  ;;  %v898_v52 = vmul.f32 %v1540_v48, %v1732_v60 }
  0x8c   :  { %v899_v59 = vmul.f32 %v1540_v48, %v1733_v61  ;;  %v900_v51 = vmul.f32 %v1540_v48, %v1734_v37  ;;  %v901_v35 = vmul.f32 %v1540_v48, %v1735_v43  ;;  %v910_v44 = vrot.slane %v894_v23, 2  ;;  %v1736_v48 = vld [vmem:[#allocation11_spill] sm:$0xff] }
  0x8d   :  { %v911_v16 = vrot.slane %v895_v17, 2  ;;  %v912_v5 = vrot.slane %v896_v62, 2  ;;  %v913_v20 = vrot.slane %v897_v1, 2  ;;  %v914_v39 = vrot.slane %v898_v52, 2 }
  0x8e   :  { %v915_v42 = vrot.slane %v899_v59, 2  ;;  %v916_v60 = vrot.slane %v900_v51, 2  ;;  %v917_v21 = vrot.slane %v901_v35, 2  ;;  %v61_v40 = vunpack.c.l.bf16 %v37_v15 }
  0x8f   :  { %v926_v38 = vadd.f32 %v910_v44, %v882_v32  ;;  %v927_v41 = vadd.f32 %v911_v16, %v883_v34  ;;  %v928_v14 = vadd.f32 %v912_v5, %v884_v6  ;;  %v929_v45 = vadd.f32 %v913_v20, %v885_v33 }
  0x90   :  { %v930_v13 = vadd.f32 %v914_v39, %v886_v58  ;;  %v931_v18 = vadd.f32 %v915_v42, %v887_v49  ;;  %v937_v12 = vrot.slane %v1736_v48, %v1248_v55  ;;  %v932_v46 = vadd.f32 %v916_v60, %v888_v4 }
  0x91   :  { %v933_v53 = vadd.f32 %v917_v21, %v889_v50  ;;  %v957_v63 = vrot.slane %v1736_v48, %v1250_v56  ;;  %v1001_v0 = vrot.slane %v1736_v48, %v1252_v57 }
  0x92   :  { %v938_v22 = vmul.f32 %v937_v12, %v1209_v36  ;;  %v939_v24 = vmul.f32 %v937_v12, %v1727_v25  ;;  %v940_v26 = vmul.f32 %v937_v12, %v1728_v3  ;;  %v941_v47 = vmul.f32 %v937_v12, %v1729_v19 }
  0x93   :  { %v942_v7 = vmul.f32 %v937_v12, %v1733_v61  ;;  %v943_v55 = vmul.f32 %v937_v12, %v1734_v37  ;;  %v944_v27 = vmul.f32 %v937_v12, %v1735_v43  ;;  %v945_v2 = vmul.f32 %v937_v12, %v61_v40 }
  0x94   :  { %v946_v28 = vadd.f32 %v938_v22, %v926_v38  ;;  %v947_v56 = vadd.f32 %v939_v24, %v927_v41  ;;  %v948_v8 = vadd.f32 %v940_v26, %v928_v14  ;;  %v949_v29 = vadd.f32 %v941_v47, %v929_v45 }
  0x95   :  { %v950_v57 = vadd.f32 %v942_v7, %v930_v13  ;;  %v951_v9 = vadd.f32 %v943_v55, %v931_v18  ;;  %v952_v31 = vadd.f32 %v944_v27, %v932_v46  ;;  %v953_v30 = vadd.f32 %v945_v2, %v933_v53 }
  0x96   :  { %v958_v10 = vmul.f32 %v957_v63, %v1209_v36  ;;  %v959_v11 = vmul.f32 %v957_v63, %v1727_v25  ;;  %v960_v54 = vmul.f32 %v957_v63, %v1728_v3  ;;  %v961_v32 = vmul.f32 %v957_v63, %v1729_v19 }
  0x97   :  { %v962_v34 = vmul.f32 %v957_v63, %v1733_v61  ;;  %v963_v6 = vmul.f32 %v957_v63, %v1734_v37  ;;  %v964_v33 = vmul.f32 %v957_v63, %v1735_v43  ;;  %v965_v58 = vmul.f32 %v957_v63, %v61_v40 }
  0x98   :  { %v974_v49 = vrot.slane %v958_v10, 1  ;;  %v975_v4 = vrot.slane %v959_v11, 1  ;;  %v976_v50 = vrot.slane %v960_v54, 1  ;;  %v977_v23 = vrot.slane %v961_v32, 1 }
  0x99   :  { %v978_v17 = vrot.slane %v962_v34, 1  ;;  %v979_v62 = vrot.slane %v963_v6, 1  ;;  %v980_v1 = vrot.slane %v964_v33, 1  ;;  %v981_v52 = vrot.slane %v965_v58, 1 }
  0x9a   :  { %v990_v59 = vadd.f32 %v974_v49, %v946_v28  ;;  %v991_v51 = vadd.f32 %v975_v4, %v947_v56  ;;  %v992_v35 = vadd.f32 %v976_v50, %v948_v8  ;;  %v993_v15 = vadd.f32 %v977_v23, %v949_v29 }
  0x9b   :  { %v994_v44 = vadd.f32 %v978_v17, %v950_v57  ;;  %v995_v16 = vadd.f32 %v979_v62, %v951_v9  ;;  %v996_v5 = vadd.f32 %v980_v1, %v952_v31  ;;  %v997_v20 = vadd.f32 %v981_v52, %v953_v30 }
  0x9c   :  { %v1002_v39 = vmul.f32 %v1001_v0, %v1209_v36  ;;  %v1003_v42 = vmul.f32 %v1001_v0, %v1727_v25  ;;  %v1004_v60 = vmul.f32 %v1001_v0, %v1728_v3  ;;  %v1005_v21 = vmul.f32 %v1001_v0, %v1729_v19  ;;  %v1093_v25 = vld [vmem:[%s1705_s2] ss:$0 sm:$0xff] }
  0x9d   :  { %v1006_v38 = vmul.f32 %v1001_v0, %v1733_v61  ;;  %v1007_v41 = vmul.f32 %v1001_v0, %v1734_v37  ;;  %v1008_v14 = vmul.f32 %v1001_v0, %v1735_v43  ;;  %v1009_v45 = vmul.f32 %v1001_v0, %v61_v40 }
  0x9e   :  { %v1018_v13 = vrot.slane %v1002_v39, 2  ;;  %v1019_v18 = vrot.slane %v1003_v42, 2  ;;  %v1020_v48 = vrot.slane %v1004_v60, 2  ;;  %v1021_v12 = vrot.slane %v1005_v21, 2 }
  0x9f   :  { %v1022_v46 = vrot.slane %v1006_v38, 2  ;;  %v1023_v53 = vrot.slane %v1007_v41, 2  ;;  %v1024_v36 = vrot.slane %v1008_v14, 2  ;;  %v1025_v63 = vrot.slane %v1009_v45, 2 }
  0xa0   :  { %v1034_v3 = vadd.f32 %v1018_v13, %v990_v59  ;;  %v1035_v19 = vadd.f32 %v1019_v18, %v991_v51  ;;  %v1036_v61 = vadd.f32 %v1020_v48, %v992_v35  ;;  %v1037_v22 = vadd.f32 %v1021_v12, %v993_v15 }
  0xa1   :  { %v1038_v37 = vadd.f32 %v1022_v46, %v994_v44  ;;  %v1039_v24 = vadd.f32 %v1023_v53, %v995_v16  ;;  %v1040_v43 = vadd.f32 %v1024_v36, %v996_v5  ;;  %v1041_v40 = vadd.f32 %v1025_v63, %v997_v20 }
  0xa2   :  { %v1049_v0 = vadd.f32 %v1093_v25, %v1034_v3  ;;  %v1050_v26 = vadd.f32 %v1093_v25, %v1035_v19  ;;  %v1051_v47 = vadd.f32 %v1093_v25, %v1036_v61  ;;  %v1052_v7 = vadd.f32 %v1093_v25, %v1037_v22 }
  0xa3   :  { %v1053_v55 = vadd.f32 %v1093_v25, %v1038_v37  ;;  %v1054_v27 = vadd.f32 %v1093_v25, %v1039_v24  ;;  %v1055_v2 = vadd.f32 %v1093_v25, %v1040_v43  ;;  %v1056_v28 = vadd.f32 %v1093_v25, %v1041_v40 }
  0xa4   :  { %v1057_v56 = vmax.f32 %v1049_v0, 0.0  ;;  %v1058_v8 = vmax.f32 %v1050_v26, 0.0  ;;  %v1059_v29 = vmax.f32 %v1051_v47, 0.0  ;;  %v1060_v57 = vmax.f32 %v1052_v7, 0.0 }
  0xa5   :  { %v1061_v9 = vmax.f32 %v1053_v55, 0.0  ;;  %v1062_v31 = vmax.f32 %v1054_v27, 0.0  ;;  %v1063_v30 = vmax.f32 %v1055_v2, 0.0  ;;  %v1064_v10 = vmax.f32 %v1056_v28, 0.0 }
  0xa6   :  { %v1065_v11 = vmin.f32 %v1057_v56, 6.0  ;;  %v1066_v54 = vmin.f32 %v1058_v8, 6.0  ;;  %v1067_v32 = vmin.f32 %v1059_v29, 6.0  ;;  %v1068_v34 = vmin.f32 %v1060_v57, 6.0 }
  0xa7   :  { %v1069_v6 = vmin.f32 %v1061_v9, 6.0  ;;  %v1070_v33 = vmin.f32 %v1062_v31, 6.0  ;;  %v1071_v58 = vmin.f32 %v1063_v30, 6.0  ;;  %v1072_v49 = vmin.f32 %v1064_v10, 6.0 }
  0xa8   :  { %v1073_v4 = vpack.c.bf16 %v1065_v11, %v1065_v11  ;;  %v1074_v50 = vpack.c.bf16 %v1066_v54, %v1066_v54  ;;  %v1075_v23 = vpack.c.bf16 %v1067_v32, %v1067_v32  ;;  %v1076_v17 = vpack.c.bf16 %v1068_v34, %v1068_v34 }
  0xa9   :  { %v1077_v62 = vpack.c.bf16 %v1069_v6, %v1069_v6  ;;  %v1078_v1 = vpack.c.bf16 %v1070_v33, %v1070_v33  ;;  %v1079_v52 = vpack.c.bf16 %v1071_v58, %v1071_v58  ;;  %v1080_v59 = vpack.c.bf16 %v1072_v49, %v1072_v49 }
  0xaa   :  { %1081 = vst [vmem:[%s1706_s3] sm:$0x3] %v1073_v4  ;;  %1082 = vst [vmem:[%s1706_s3 + $0x2] sm:$0x3] %v1074_v50 }
  0xab   :  { %1083 = vst [vmem:[%s1706_s3 + $0x4] sm:$0x3] %v1075_v23  ;;  %1084 = vst [vmem:[%s1706_s3 + $0x6] sm:$0x3] %v1076_v17 }
  0xac   :  { %1085 = vst [vmem:[%s1706_s3 + $0x8] sm:$0x3] %v1077_v62  ;;  %1086 = vst [vmem:[%s1706_s3 + $0xa] sm:$0x3] %v1078_v1 }
  0xad   :  { %1087 = vst [vmem:[%s1706_s3 + $0xc] sm:$0x3] %v1079_v52  ;;  %1088 = vst [vmem:[%s1706_s3 + $0xe] sm:$0x3] %v1080_v59 }

// kernel: _forward.60
= control target key start
LH: loop header
LB: loop body
LE: loop exit
PB: predicated region body
PF: predicated region fallthrough
CT: control target
= control target key end

     0   :  { %s339_s1 = inlined_call_operand.vmem [shape: bf16[128,128], index: 1, kind: input, shape index: {}]   ;;  %s340_s0 = inlined_call_operand.vmem [shape: bf16[32,128], index: 0, kind: input, shape index: {}]   ;;  %s341_s2 = inlined_call_operand.vmem [shape: f32[1,128], index: 2, kind: input, shape index: {}]   ;;  %s342_s3 = inlined_call_operand.vmem [shape: bf16[32,128], index: 3, kind: input, shape index: {}]   ;;  %s343_s4 = inlined_call_operand.vmem [shape: bf16[32,128], index: 4, kind: output, shape index: {}]  }
   0x1   :  { %v259_v0 = vld [vmem:[%s339_s1] sm:$0xff]   ;;  %v260_v1 = vld [vmem:[%s339_s1 + $0x8] sm:$0xff]   ;;  %v261_v2 = vld [vmem:[%s339_s1 + $0x10] sm:$0xff]  }
   0x2   :  { %239 = vmatprep.subr.bf16.mxu0 %v259_v0  ;;  %v262_v3 = vld [vmem:[%s339_s1 + $0x18] sm:$0xff]   ;;  %v267_v4 = vld [vmem:[%s340_s0] sm:$0xff]   ;;  %v264_v6 = vld [vmem:[%s339_s1 + $0x28] sm:$0xff]  }
   0x3   :  { %240 = vmatpush3.bf16.msra.mxu0 %v259_v0  ;;  %255 = vmatprep.mubr.bf16.mxu0 %v267_v4  ;;  %v263_v5 = vld [vmem:[%s339_s1 + $0x20] sm:$0xff]   ;;  %v265_v7 = vld [vmem:[%s339_s1 + $0x30] sm:$0xff]   ;;  %v266_v8 = vld [vmem:[%s339_s1 + $0x38] sm:$0xff]  }
   0x4   :  { %241 = vmatprep.subr.bf16.mxu0 %v260_v1  ;;  %v268_v9 = vld [vmem:[%s340_s0 + $0x8] sm:$0xff]   ;;  %v190_v10 = vld [vmem:[%s341_s2] ss:$0 sm:$0xff] }
   0x5   :  { %v227_v11 = vld [vmem:[%s342_s3 + $0x8] sm:$0xff]   ;;  %v210_v12 = vld [vmem:[%s342_s3] sm:$0xff]  }
   0x6   :  { %v215_v15 = vunpack.c.l.bf16 %v227_v11  ;;  %v216_v17 = vunpack.c.h.bf16 %v227_v11  ;;  %v211_v19 = vunpack.c.l.bf16 %v210_v12  ;;  %v212_v21 = vunpack.c.h.bf16 %v210_v12 }
   0x7   :  { %242 = vmatpush3.bf16.msra.mxu0 %v260_v1 }
   0x8   :  { %243 = vmatprep.subr.bf16.mxu0 %v261_v2 }
   0xb   :  { %244 = vmatpush3.bf16.msra.mxu0 %v261_v2 }
   0xc   :  { %245 = vmatprep.subr.bf16.mxu0 %v262_v3 }
   0xf   :  { %246 = vmatpush3.bf16.msra.mxu0 %v262_v3 }
  0x10   :  { %247 = vmatprep.subr.bf16.mxu0 %v263_v5 }
  0x13   :  { %248 = vmatpush3.bf16.msra.mxu0 %v263_v5 }
  0x14   :  { %249 = vmatprep.subr.bf16.mxu0 %v264_v6 }
  0x17   :  { %250 = vmatpush3.bf16.msra.mxu0 %v264_v6 }
  0x18   :  { %251 = vmatprep.subr.bf16.mxu0 %v265_v7 }
  0x1b   :  { %252 = vmatpush3.bf16.msra.mxu0 %v265_v7 }
  0x1c   :  { %253 = vmatprep.subr.bf16.mxu0 %v266_v8 }
  0x1f   :  { %254 = vmatpush3.bf16.msra.mxu0 %v266_v8 }
  0x22   :  { %256 = vmatmul.mubr.bf16.vlgmr.msra.gmra.mrb[0].mxu0 %v268_v9 }
  0xf5   :  { %v257_v13 = vpop.f32.mrb[0].mxu0 }
  0xf6   :  { %v148_v14 = vadd.f32 %v257_v13, %v190_v10  ;;  %v139_v16 = vpop.f32.mrb[1].mxu0 }
  0xf7   :  { %v140_v18 = vadd.f32 %v190_v10, %v139_v16  ;;  %v258_v20 = vpop.f32.mrb[2].mxu0 }
  0xf8   :  { %v151_v22 = vadd.f32 %v258_v20, %v190_v10  ;;  %v142_v23 = vpop.f32.mrb[3].mxu0  ;;  %v164_v25 = vadd.f32 %v215_v15, %v148_v14 }
  0xf9   :  { %v143_v24 = vadd.f32 %v190_v10, %v142_v23  ;;  %v162_v27 = vadd.f32 %v211_v19, %v140_v18 }
  0xfa   :  { %v165_v26 = vadd.f32 %v216_v17, %v151_v22 }
  0xfb   :  { %v163_v28 = vadd.f32 %v212_v21, %v143_v24 }
  0xfc   :  { %v225_v29 = vpack.c.bf16 %v165_v26, %v164_v25 }
  0xfd   :  { %v220_v30 = vpack.c.bf16 %v163_v28, %v162_v27 }
  0xfe   :  { %228 = vst [vmem:[%s343_s4 + $0x8] sm:$0xff] %v225_v29  }
  0xff   :  { %221 = vst [vmem:[%s343_s4] sm:$0xff] %v220_v30  }

// kernel: _forward.64
= control target key start
LH: loop header
LB: loop body
LE: loop exit
PB: predicated region body
PF: predicated region fallthrough
CT: control target
= control target key end

     0   :  { %v183_v0 = vmov 0.0   ;;  %vm184_vm0 = vmmov 0   ;;  %s238_s1 = inlined_call_operand.vmem [shape: bf16[128,128], index: 1, kind: input, shape index: {}]   ;;  %s239_s0 = inlined_call_operand.vmem [shape: bf16[8,128], index: 0, kind: input, shape index: {}]   ;;  %s240_s2 = inlined_call_operand.vmem [shape: f32[1,128], index: 2, kind: input, shape index: {}]   ;;  %s241_s3 = inlined_call_operand.vmem [shape: bf16[8,128], index: 3, kind: output, shape index: {}]  }
   0x1   :  { %153 = vmatprep.subr.bf16.mxu0 %v183_v0  ;;  %v175_v1 = vld [vmem:[%s238_s1] sm:$0xff]   ;;  %169 = vmatprep.mubr.msk.bf16.mxu0 %vm184_vm0, %v183_v0  ;;  %v176_v2 = vld [vmem:[%s238_s1 + $0x8] sm:$0xff]   ;;  %v177_v3 = vld [vmem:[%s238_s1 + $0x10] sm:$0xff]  }
   0x2   :  { %154 = vmatpush3.bf16.msra.mxu0 %v175_v1  ;;  %v178_v4 = vld [vmem:[%s238_s1 + $0x18] sm:$0xff]   ;;  %v179_v5 = vld [vmem:[%s238_s1 + $0x20] sm:$0xff]   ;;  %v180_v6 = vld [vmem:[%s238_s1 + $0x28] sm:$0xff]  }
   0x3   :  { %155 = vmatprep.subr.bf16.mxu0 %v183_v0  ;;  %v181_v7 = vld [vmem:[%s238_s1 + $0x30] sm:$0xff]   ;;  %v182_v8 = vld [vmem:[%s238_s1 + $0x38] sm:$0xff]   ;;  %v15_v9 = vld [vmem:[%s239_s0] sm:$0xf] }
   0x4   :  { %v135_v10 = vld [vmem:[%s240_s2] ss:$0 sm:$0xff] }
   0x6   :  { %156 = vmatpush3.bf16.msra.mxu0 %v176_v2 }
   0x7   :  { %157 = vmatprep.subr.bf16.mxu0 %v183_v0 }
   0xa   :  { %158 = vmatpush3.bf16.msra.mxu0 %v177_v3 }
   0xb   :  { %159 = vmatprep.subr.bf16.mxu0 %v183_v0 }
   0xe   :  { %160 = vmatpush3.bf16.msra.mxu0 %v178_v4 }
   0xf   :  { %161 = vmatprep.subr.bf16.mxu0 %v183_v0 }
  0x12   :  { %162 = vmatpush3.bf16.msra.mxu0 %v179_v5 }
  0x13   :  { %163 = vmatprep.subr.bf16.mxu0 %v183_v0 }
  0x16   :  { %164 = vmatpush3.bf16.msra.mxu0 %v180_v6 }
  0x17   :  { %165 = vmatprep.subr.bf16.mxu0 %v183_v0 }
  0x1a   :  { %166 = vmatpush3.bf16.msra.mxu0 %v181_v7 }
  0x1b   :  { %167 = vmatprep.subr.bf16.mxu0 %v183_v0 }
  0x1e   :  { %168 = vmatpush3.bf16.msra.mxu0 %v182_v8 }
  0x21   :  { %170 = vmatmul.mubr.bf16.vlgmr.msra.gmra.mrb[0].mxu0 %v15_v9 }
  0xf4   :  { %v121_v11 = vpop.f32.mrb[0].mxu0 }
  0xf5   :  { %v122_v12 = vadd.f32 %v135_v10, %v121_v11  ;;  %v171_v13 = vpop.f32.mrb[1].mxu0 }
  0xf6   :  { %v124_v14 = vpop.f32.mrb[2].mxu0 }
  0xf7   :  { %v127_v15 = vmax.f32 %v122_v12, 0.0  ;;  %v172_v16 = vpop.f32.mrb[3].mxu0 }
  0xf9   :  { %v128_v17 = vmin.f32 %v127_v15, 6.0 }
  0xfb   :  { %v129_v18 = vpack.c.bf16 %v128_v17, %v128_v17 }
  0xfd   :  { %130 = vst [vmem:[%s241_s3] sm:$0xf] %v129_v18 }

// kernel: _forward.63
= control target key start
LH: loop header
LB: loop body
LE: loop exit
PB: predicated region body
PF: predicated region fallthrough
CT: control target
= control target key end

     0   :  { %v181_v0 = vmov 0.0   ;;  %vm182_vm0 = vmmov 0   ;;  %s236_s1 = inlined_call_operand.vmem [shape: bf16[128,128], index: 1, kind: input, shape index: {}]   ;;  %s237_s0 = inlined_call_operand.vmem [shape: bf16[8,128], index: 0, kind: input, shape index: {}]   ;;  %s238_s2 = inlined_call_operand.vmem [shape: f32[1,128], index: 2, kind: input, shape index: {}]   ;;  %s239_s3 = inlined_call_operand.vmem [shape: bf16[8,128], index: 3, kind: output, shape index: {}]  }
   0x1   :  { %151 = vmatprep.subr.bf16.mxu0 %v181_v0  ;;  %v173_v1 = vld [vmem:[%s236_s1] sm:$0xff]   ;;  %167 = vmatprep.mubr.msk.bf16.mxu0 %vm182_vm0, %v181_v0  ;;  %v174_v2 = vld [vmem:[%s236_s1 + $0x8] sm:$0xff]   ;;  %v175_v3 = vld [vmem:[%s236_s1 + $0x10] sm:$0xff]  }
   0x2   :  { %152 = vmatpush3.bf16.msra.mxu0 %v173_v1  ;;  %v176_v4 = vld [vmem:[%s236_s1 + $0x18] sm:$0xff]   ;;  %v177_v5 = vld [vmem:[%s236_s1 + $0x20] sm:$0xff]   ;;  %v178_v6 = vld [vmem:[%s236_s1 + $0x28] sm:$0xff]  }
   0x3   :  { %153 = vmatprep.subr.bf16.mxu0 %v181_v0  ;;  %v179_v7 = vld [vmem:[%s236_s1 + $0x30] sm:$0xff]   ;;  %v180_v8 = vld [vmem:[%s236_s1 + $0x38] sm:$0xff]   ;;  %v15_v9 = vld [vmem:[%s237_s0] sm:$0xf] }
   0x4   :  { %v133_v10 = vld [vmem:[%s238_s2] ss:$0 sm:$0xff] }
   0x6   :  { %154 = vmatpush3.bf16.msra.mxu0 %v174_v2 }
   0x7   :  { %155 = vmatprep.subr.bf16.mxu0 %v181_v0 }
   0xa   :  { %156 = vmatpush3.bf16.msra.mxu0 %v175_v3 }
   0xb   :  { %157 = vmatprep.subr.bf16.mxu0 %v181_v0 }
   0xe   :  { %158 = vmatpush3.bf16.msra.mxu0 %v176_v4 }
   0xf   :  { %159 = vmatprep.subr.bf16.mxu0 %v181_v0 }
  0x12   :  { %160 = vmatpush3.bf16.msra.mxu0 %v177_v5 }
  0x13   :  { %161 = vmatprep.subr.bf16.mxu0 %v181_v0 }
  0x16   :  { %162 = vmatpush3.bf16.msra.mxu0 %v178_v6 }
  0x17   :  { %163 = vmatprep.subr.bf16.mxu0 %v181_v0 }
  0x1a   :  { %164 = vmatpush3.bf16.msra.mxu0 %v179_v7 }
  0x1b   :  { %165 = vmatprep.subr.bf16.mxu0 %v181_v0 }
  0x1e   :  { %166 = vmatpush3.bf16.msra.mxu0 %v180_v8 }
  0x21   :  { %168 = vmatmul.mubr.bf16.vlgmr.msra.gmra.mrb[0].mxu0 %v15_v9 }
  0xf4   :  { %v121_v11 = vpop.f32.mrb[0].mxu0 }
  0xf5   :  { %v122_v12 = vadd.f32 %v133_v10, %v121_v11  ;;  %v169_v13 = vpop.f32.mrb[1].mxu0 }
  0xf6   :  { %v124_v14 = vpop.f32.mrb[2].mxu0 }
  0xf7   :  { %v127_v15 = vpack.c.bf16 %v122_v12, %v122_v12  ;;  %v170_v16 = vpop.f32.mrb[3].mxu0 }
  0xf9   :  { %128 = vst [vmem:[%s239_s3] sm:$0xf] %v127_v15 }

// kernel: _forward.66
= control target key start
LH: loop header
LB: loop body
LE: loop exit
PB: predicated region body
PF: predicated region fallthrough
CT: control target
= control target key end

     0   :  { %v187_v0 = vmov 0.0   ;;  %vm188_vm0 = vmmov 0   ;;  %s250_s1 = inlined_call_operand.vmem [shape: bf16[128,128], index: 1, kind: input, shape index: {}]   ;;  %s251_s0 = inlined_call_operand.vmem [shape: bf16[8,128], index: 0, kind: input, shape index: {}]   ;;  %s252_s3 = inlined_call_operand.vmem [shape: bf16[8,128], index: 3, kind: input, shape index: {}]   ;;  %s253_s2 = inlined_call_operand.vmem [shape: f32[1,128], index: 2, kind: input, shape index: {}]   ;;  %s254_s4 = inlined_call_operand.vmem [shape: bf16[8,128], index: 4, kind: output, shape index: {}]  }
   0x1   :  { %157 = vmatprep.subr.bf16.mxu0 %v187_v0  ;;  %v179_v1 = vld [vmem:[%s250_s1] sm:$0xff]   ;;  %173 = vmatprep.mubr.msk.bf16.mxu0 %vm188_vm0, %v187_v0  ;;  %v180_v2 = vld [vmem:[%s250_s1 + $0x8] sm:$0xff]   ;;  %v181_v3 = vld [vmem:[%s250_s1 + $0x10] sm:$0xff]  }
   0x2   :  { %158 = vmatpush3.bf16.msra.mxu0 %v179_v1  ;;  %v182_v4 = vld [vmem:[%s250_s1 + $0x18] sm:$0xff]   ;;  %v183_v5 = vld [vmem:[%s250_s1 + $0x20] sm:$0xff]   ;;  %v184_v6 = vld [vmem:[%s250_s1 + $0x28] sm:$0xff]  }
   0x3   :  { %159 = vmatprep.subr.bf16.mxu0 %v187_v0  ;;  %v185_v7 = vld [vmem:[%s250_s1 + $0x30] sm:$0xff]   ;;  %v186_v8 = vld [vmem:[%s250_s1 + $0x38] sm:$0xff]   ;;  %v18_v9 = vld [vmem:[%s251_s0] sm:$0xf] }
   0x4   :  { %v130_v10 = vld [vmem:[%s252_s3] sm:$0xf] }
   0x5   :  { %v139_v11 = vld [vmem:[%s253_s2] ss:$0 sm:$0xff]  ;;  %v131_v12 = vunpack.c.l.bf16 %v130_v10 }
   0x6   :  { %160 = vmatpush3.bf16.msra.mxu0 %v180_v2 }
   0x7   :  { %161 = vmatprep.subr.bf16.mxu0 %v187_v0 }
   0xa   :  { %162 = vmatpush3.bf16.msra.mxu0 %v181_v3 }
   0xb   :  { %163 = vmatprep.subr.bf16.mxu0 %v187_v0 }
   0xe   :  { %164 = vmatpush3.bf16.msra.mxu0 %v182_v4 }
   0xf   :  { %165 = vmatprep.subr.bf16.mxu0 %v187_v0 }
  0x12   :  { %166 = vmatpush3.bf16.msra.mxu0 %v183_v5 }
  0x13   :  { %167 = vmatprep.subr.bf16.mxu0 %v187_v0 }
  0x16   :  { %168 = vmatpush3.bf16.msra.mxu0 %v184_v6 }
  0x17   :  { %169 = vmatprep.subr.bf16.mxu0 %v187_v0 }
  0x1a   :  { %170 = vmatpush3.bf16.msra.mxu0 %v185_v7 }
  0x1b   :  { %171 = vmatprep.subr.bf16.mxu0 %v187_v0 }
  0x1e   :  { %172 = vmatpush3.bf16.msra.mxu0 %v186_v8 }
  0x21   :  { %174 = vmatmul.mubr.bf16.vlgmr.msra.gmra.mrb[0].mxu0 %v18_v9 }
  0xf4   :  { %v124_v13 = vpop.f32.mrb[0].mxu0 }
  0xf5   :  { %v125_v14 = vadd.f32 %v139_v11, %v124_v13  ;;  %v175_v15 = vpop.f32.mrb[1].mxu0 }
  0xf6   :  { %v127_v16 = vpop.f32.mrb[2].mxu0 }
  0xf7   :  { %v132_v17 = vadd.f32 %v131_v12, %v125_v14  ;;  %v176_v18 = vpop.f32.mrb[3].mxu0 }
  0xf9   :  { %v133_v19 = vpack.c.bf16 %v132_v17, %v132_v17 }
  0xfb   :  { %134 = vst [vmem:[%s254_s4] sm:$0xf] %v133_v19 }

// kernel: _forward.65
= control target key start
LH: loop header
LB: loop body
LE: loop exit
PB: predicated region body
PF: predicated region fallthrough
CT: control target
= control target key end

     0   :  { %v54_v6 = vlaneseq  ;;  %s1079_s0 = inlined_call_operand.vmem [shape: bf16[1,4,4,4,128], index: 0, kind: input, shape index: {}]   ;;  %s1080_s1 = inlined_call_operand.vmem [shape: bf16[27,128], index: 1, kind: input, shape index: {}]   ;;  %s1081_s2 = inlined_call_operand.vmem [shape: f32[1,128], index: 2, kind: input, shape index: {}]   ;;  %s1082_s3 = inlined_call_operand.vmem [shape: bf16[1,2,2,2,128], index: 3, kind: output, shape index: {}]  }
   0x1   :  { %v14_v0 = vld [vmem:[%s1079_s0] sm:$0x3]  ;;  %v15_v1 = vld [vmem:[%s1079_s0 + $0x2] sm:$0x3]  ;;  %v16_v2 = vld [vmem:[%s1079_s0 + $0x4] sm:$0x3] }
   0x2   :  { %v17_v3 = vld [vmem:[%s1079_s0 + $0x6] sm:$0x3]  ;;  %v18_v4 = vld [vmem:[%s1079_s0 + $0x8] sm:$0x3]  ;;  %v19_v5 = vld [vmem:[%s1079_s0 + $0xa] sm:$0x3]  ;;  %v30_v10 = vunpack.c.l.bf16 %v14_v0  ;;  %v821_v11 = vunpack.c.l.bf16 %v15_v1  ;;  %v823_v12 = vunpack.c.l.bf16 %v16_v2 }
   0x3   :  { %v20_v7 = vld [vmem:[%s1079_s0 + $0xc] sm:$0x3]  ;;  %v21_v8 = vld [vmem:[%s1079_s0 + $0xe] sm:$0x3]  ;;  %v22_v9 = vld [vmem:[%s1079_s0 + $0x10] sm:$0x3]  ;;  %v825_v13 = vunpack.c.l.bf16 %v17_v3  ;;  %v836_v17 = vunpack.c.l.bf16 %v18_v4  ;;  %v838_v18 = vunpack.c.l.bf16 %v19_v5 }
   0x4   :  { %v23_v14 = vld [vmem:[%s1079_s0 + $0x12] sm:$0x3]  ;;  %v24_v15 = vld [vmem:[%s1079_s0 + $0x14] sm:$0x3]  ;;  %v25_v16 = vld [vmem:[%s1079_s0 + $0x16] sm:$0x3]  ;;  %v840_v19 = vunpack.c.l.bf16 %v20_v7  ;;  %v842_v20 = vunpack.c.l.bf16 %v21_v8  ;;  %v853_v24 = vunpack.c.l.bf16 %v22_v9 }
   0x5   :  { %v26_v21 = vld [vmem:[%s1079_s0 + $0x18] sm:$0x3]  ;;  %v27_v22 = vld [vmem:[%s1079_s0 + $0x1a] sm:$0x3]  ;;  %v28_v23 = vld [vmem:[%s1079_s0 + $0x1c] sm:$0x3]  ;;  %v855_v25 = vunpack.c.l.bf16 %v23_v14  ;;  %v857_v26 = vunpack.c.l.bf16 %v24_v15  ;;  %v859_v27 = vunpack.c.l.bf16 %v25_v16 }
   0x6   :  { %v29_v28 = vld [vmem:[%s1079_s0 + $0x1e] sm:$0x3]  ;;  %v864_v29 = vunpack.c.l.bf16 %v26_v21  ;;  %v866_v30 = vunpack.c.l.bf16 %v27_v22  ;;  %v868_v31 = vunpack.c.l.bf16 %v28_v23  ;;  %v771_v32 = vld [vmem:[%s1080_s1] sm:$0xff]   ;;  %v48_v33 = vld [vmem:[%s1080_s1 + $0x8] sm:$0xf]  ;;  %v55_v34 = vshrl.u32 %v54_v6, 7 }
   0x7   :  { %v876_v35 = vunpack.c.l.bf16 %v29_v28  ;;  %v878_v36 = vunpack.c.l.bf16 %v771_v32  ;;  %v880_v37 = vunpack.c.h.bf16 %v771_v32  ;;  %v49_v38 = vld [vmem:[%s1080_s1 + $0xc] sm:$0x3]  ;;  %v885_v39 = vunpack.c.l.bf16 %v48_v33 }
   0x8   :  { %v887_v40 = vunpack.c.l.bf16 %v49_v38  ;;  %v889_v41 = vsub.s32 0, %v55_v34  ;;  %v891_v42 = vsub.s32 1, %v55_v34  ;;  %v893_v43 = vsub.s32 2, %v55_v34 }
   0x9   :  { %v895_v44 = vsub.s32 3, %v55_v34  ;;  %v897_v45 = vsub.s32 4, %v55_v34  ;;  %v899_v46 = vsub.s32 5, %v55_v34  ;;  %v901_v47 = vsub.s32 6, %v55_v34 }
   0xa   :  { %v57_v48 = vrot.slane %v878_v36, %v889_v41  ;;  %v69_v49 = vrot.slane %v878_v36, %v891_v42  ;;  %v97_v50 = vrot.slane %v878_v36, %v893_v43  ;;  %v909_v51 = vsub.s32 7, %v55_v34 }
   0xb   :  { %v125_v52 = vrot.slane %v878_v36, %v895_v44  ;;  %v137_v53 = vrot.slane %v878_v36, %v897_v45  ;;  %v165_v54 = vrot.slane %v878_v36, %v899_v46  ;;  %v193_v55 = vrot.slane %v878_v36, %v901_v47 }
   0xc   :  { %v58_v56 = vmul.f32 %v57_v48, %v30_v10  ;;  %v59_v57 = vmul.f32 %v57_v48, %v821_v11  ;;  %v60_v58 = vmul.f32 %v57_v48, %v836_v17  ;;  %v61_v59 = vmul.f32 %v57_v48, %v838_v18 }
   0xd   :  { %v70_v60 = vmul.f32 %v69_v49, %v30_v10  ;;  %v71_v61 = vmul.f32 %v69_v49, %v821_v11  ;;  %v72_v62 = vmul.f32 %v69_v49, %v836_v17  ;;  %v73_v63 = vmul.f32 %v69_v49, %v838_v18 }
   0xe   :  { %v98_v0 = vmul.f32 %v97_v50, %v30_v10  ;;  %v99_v1 = vmul.f32 %v97_v50, %v821_v11  ;;  %v100_v2 = vmul.f32 %v97_v50, %v836_v17  ;;  %v101_v3 = vmul.f32 %v97_v50, %v838_v18 }
   0xf   :  { %v697_v4 = vrot.slane %v70_v60, 9  ;;  %v698_v5 = vrot.slane %v71_v61, 9  ;;  %v699_v6 = vrot.slane %v72_v62, 9  ;;  %v700_v7 = vrot.slane %v73_v63, 9 }
  0x10   :  { %v701_v8 = vrot.slane %v98_v0, 10  ;;  %v702_v9 = vrot.slane %v99_v1, 10  ;;  %v703_v14 = vrot.slane %v100_v2, 10  ;;  %v704_v15 = vrot.slane %v101_v3, 10 }
  0x11   :  { %v90_v16 = vadd.f32 %v697_v4, %v58_v56  ;;  %v91_v21 = vadd.f32 %v698_v5, %v59_v57  ;;  %v92_v22 = vadd.f32 %v699_v6, %v60_v58  ;;  %v93_v23 = vadd.f32 %v700_v7, %v61_v59 }
  0x12   :  { %v126_v10 = vmul.f32 %v125_v52, %v821_v11  ;;  %v127_v28 = vmul.f32 %v125_v52, %v823_v12  ;;  %v128_v32 = vmul.f32 %v125_v52, %v838_v18  ;;  %v129_v33 = vmul.f32 %v125_v52, %v840_v19 }
  0x13   :  { %v118_v34 = vadd.f32 %v701_v8, %v90_v16  ;;  %v119_v38 = vadd.f32 %v702_v9, %v91_v21  ;;  %v120_v48 = vadd.f32 %v703_v14, %v92_v22  ;;  %v121_v49 = vadd.f32 %v704_v15, %v93_v23 }
  0x14   :  { %v138_v50 = vmul.f32 %v137_v53, %v821_v11  ;;  %v139_v60 = vmul.f32 %v137_v53, %v823_v12  ;;  %v140_v56 = vmul.f32 %v137_v53, %v838_v18  ;;  %v141_v57 = vmul.f32 %v137_v53, %v840_v19 }
  0x15   :  { %v130_v58 = vadd.f32 %v126_v10, %v118_v34  ;;  %v131_v59 = vadd.f32 %v127_v28, %v119_v38  ;;  %v132_v61 = vadd.f32 %v128_v32, %v120_v48  ;;  %v133_v62 = vadd.f32 %v129_v33, %v121_v49 }
  0x16   :  { %v705_v63 = vrot.slane %v138_v50, 9  ;;  %v706_v0 = vrot.slane %v139_v60, 9  ;;  %v707_v1 = vrot.slane %v140_v56, 9  ;;  %v708_v52 = vrot.slane %v141_v57, 9 }
  0x17   :  { %v166_v2 = vmul.f32 %v165_v54, %v821_v11  ;;  %v167_v3 = vmul.f32 %v165_v54, %v823_v12  ;;  %v168_v4 = vmul.f32 %v165_v54, %v838_v18  ;;  %v169_v5 = vmul.f32 %v165_v54, %v840_v19 }
  0x18   :  { %v158_v6 = vadd.f32 %v705_v63, %v130_v58  ;;  %v159_v7 = vadd.f32 %v706_v0, %v131_v59  ;;  %v160_v8 = vadd.f32 %v707_v1, %v132_v61  ;;  %v161_v53 = vadd.f32 %v708_v52, %v133_v62 }
  0x19   :  { %v709_v9 = vrot.slane %v166_v2, 10  ;;  %v710_v14 = vrot.slane %v167_v3, 10  ;;  %v711_v15 = vrot.slane %v168_v4, 10  ;;  %v712_v16 = vrot.slane %v169_v5, 10 }
  0x1a   :  { %v194_v21 = vmul.f32 %v193_v55, %v823_v12  ;;  %v195_v22 = vmul.f32 %v193_v55, %v825_v13  ;;  %v196_v11 = vmul.f32 %v193_v55, %v840_v19  ;;  %v197_v23 = vmul.f32 %v193_v55, %v842_v20 }
  0x1b   :  { %v186_v10 = vadd.f32 %v709_v9, %v158_v6  ;;  %v187_v28 = vadd.f32 %v710_v14, %v159_v7  ;;  %v188_v32 = vadd.f32 %v711_v15, %v160_v8  ;;  %v189_v54 = vadd.f32 %v712_v16, %v161_v53 }
  0x1c   :  { %v205_v33 = vrot.slane %v878_v36, %v909_v51  ;;  %v233_v34 = vrot.slane %v880_v37, %v889_v41  ;;  %v261_v38 = vrot.slane %v880_v37, %v891_v42  ;;  %v273_v48 = vrot.slane %v880_v37, %v893_v43 }
  0x1d   :  { %v198_v49 = vadd.f32 %v194_v21, %v186_v10  ;;  %v199_v50 = vadd.f32 %v195_v22, %v187_v28  ;;  %v200_v60 = vadd.f32 %v196_v11, %v188_v32  ;;  %v201_v55 = vadd.f32 %v197_v23, %v189_v54 }
  0x1e   :  { %v206_v56 = vmul.f32 %v205_v33, %v823_v12  ;;  %v207_v57 = vmul.f32 %v205_v33, %v825_v13  ;;  %v208_v58 = vmul.f32 %v205_v33, %v840_v19  ;;  %v209_v36 = vmul.f32 %v205_v33, %v842_v20 }
  0x1f   :  { %v234_v59 = vmul.f32 %v233_v34, %v823_v12  ;;  %v235_v61 = vmul.f32 %v233_v34, %v825_v13  ;;  %v236_v62 = vmul.f32 %v233_v34, %v840_v19  ;;  %v237_v63 = vmul.f32 %v233_v34, %v842_v20 }
  0x20   :  { %v713_v0 = vrot.slane %v206_v56, 9  ;;  %v714_v1 = vrot.slane %v207_v57, 9  ;;  %v715_v52 = vrot.slane %v208_v58, 9  ;;  %v716_v2 = vrot.slane %v209_v36, 9 }
  0x21   :  { %v717_v3 = vrot.slane %v234_v59, 10  ;;  %v718_v4 = vrot.slane %v235_v61, 10  ;;  %v719_v5 = vrot.slane %v236_v62, 10  ;;  %v720_v6 = vrot.slane %v237_v63, 10 }
  0x22   :  { %v226_v7 = vadd.f32 %v713_v0, %v198_v49  ;;  %v227_v8 = vadd.f32 %v714_v1, %v199_v50  ;;  %v228_v53 = vadd.f32 %v715_v52, %v200_v60  ;;  %v229_v9 = vadd.f32 %v716_v2, %v201_v55 }
  0x23   :  { %v262_v12 = vmul.f32 %v261_v38, %v836_v17  ;;  %v263_v13 = vmul.f32 %v261_v38, %v838_v18  ;;  %v264_v14 = vmul.f32 %v261_v38, %v853_v24  ;;  %v265_v15 = vmul.f32 %v261_v38, %v855_v25 }
  0x24   :  { %v254_v16 = vadd.f32 %v717_v3, %v226_v7  ;;  %v255_v21 = vadd.f32 %v718_v4, %v227_v8  ;;  %v256_v22 = vadd.f32 %v719_v5, %v228_v53  ;;  %v257_v11 = vadd.f32 %v720_v6, %v229_v9 }
  0x25   :  { %v274_v23 = vmul.f32 %v273_v48, %v836_v17  ;;  %v275_v10 = vmul.f32 %v273_v48, %v838_v18  ;;  %v276_v28 = vmul.f32 %v273_v48, %v853_v24  ;;  %v277_v32 = vmul.f32 %v273_v48, %v855_v25 }
  0x26   :  { %v266_v54 = vadd.f32 %v262_v12, %v254_v16  ;;  %v267_v33 = vadd.f32 %v263_v13, %v255_v21  ;;  %v268_v34 = vadd.f32 %v264_v14, %v256_v22  ;;  %v269_v49 = vadd.f32 %v265_v15, %v257_v11 }
  0x27   :  { %v721_v50 = vrot.slane %v274_v23, 9  ;;  %v722_v60 = vrot.slane %v275_v10, 9  ;;  %v723_v55 = vrot.slane %v276_v28, 9  ;;  %v724_v38 = vrot.slane %v277_v32, 9 }
  0x28   :  { %v301_v56 = vrot.slane %v880_v37, %v895_v44  ;;  %v329_v57 = vrot.slane %v880_v37, %v897_v45  ;;  %v341_v58 = vrot.slane %v880_v37, %v899_v46  ;;  %v369_v48 = vrot.slane %v880_v37, %v901_v47 }
  0x29   :  { %v294_v36 = vadd.f32 %v721_v50, %v266_v54  ;;  %v295_v59 = vadd.f32 %v722_v60, %v267_v33  ;;  %v296_v61 = vadd.f32 %v723_v55, %v268_v34  ;;  %v297_v62 = vadd.f32 %v724_v38, %v269_v49 }
  0x2a   :  { %v302_v63 = vmul.f32 %v301_v56, %v836_v17  ;;  %v303_v0 = vmul.f32 %v301_v56, %v838_v18  ;;  %v304_v1 = vmul.f32 %v301_v56, %v853_v24  ;;  %v305_v52 = vmul.f32 %v301_v56, %v855_v25 }
  0x2b   :  { %v330_v2 = vmul.f32 %v329_v57, %v838_v18  ;;  %v331_v3 = vmul.f32 %v329_v57, %v840_v19  ;;  %v332_v4 = vmul.f32 %v329_v57, %v855_v25  ;;  %v333_v5 = vmul.f32 %v329_v57, %v857_v26 }
  0x2c   :  { %v725_v6 = vrot.slane %v302_v63, 10  ;;  %v726_v7 = vrot.slane %v303_v0, 10  ;;  %v727_v8 = vrot.slane %v304_v1, 10  ;;  %v728_v53 = vrot.slane %v305_v52, 10 }
  0x2d   :  { %v342_v17 = vmul.f32 %v341_v58, %v838_v18  ;;  %v343_v9 = vmul.f32 %v341_v58, %v840_v19  ;;  %v344_v12 = vmul.f32 %v341_v58, %v855_v25  ;;  %v345_v13 = vmul.f32 %v341_v58, %v857_v26 }
  0x2e   :  { %v322_v14 = vadd.f32 %v725_v6, %v294_v36  ;;  %v323_v15 = vadd.f32 %v726_v7, %v295_v59  ;;  %v324_v16 = vadd.f32 %v727_v8, %v296_v61  ;;  %v325_v21 = vadd.f32 %v728_v53, %v297_v62 }
  0x2f   :  { %v729_v22 = vrot.slane %v342_v17, 9  ;;  %v730_v11 = vrot.slane %v343_v9, 9  ;;  %v731_v23 = vrot.slane %v344_v12, 9  ;;  %v732_v10 = vrot.slane %v345_v13, 9 }
  0x30   :  { %v334_v28 = vadd.f32 %v330_v2, %v322_v14  ;;  %v335_v32 = vadd.f32 %v331_v3, %v323_v15  ;;  %v336_v54 = vadd.f32 %v332_v4, %v324_v16  ;;  %v337_v33 = vadd.f32 %v333_v5, %v325_v21 }
  0x31   :  { %v370_v34 = vmul.f32 %v369_v48, %v838_v18  ;;  %v371_v49 = vmul.f32 %v369_v48, %v840_v19  ;;  %v372_v50 = vmul.f32 %v369_v48, %v855_v25  ;;  %v373_v60 = vmul.f32 %v369_v48, %v857_v26 }
  0x32   :  { %v362_v55 = vadd.f32 %v729_v22, %v334_v28  ;;  %v363_v38 = vadd.f32 %v730_v11, %v335_v32  ;;  %v364_v56 = vadd.f32 %v731_v23, %v336_v54  ;;  %v365_v57 = vadd.f32 %v732_v10, %v337_v33 }
  0x33   :  { %v733_v58 = vrot.slane %v370_v34, 10  ;;  %v734_v36 = vrot.slane %v371_v49, 10  ;;  %v735_v59 = vrot.slane %v372_v50, 10  ;;  %v736_v61 = vrot.slane %v373_v60, 10 }
  0x34   :  { %v397_v62 = vrot.slane %v880_v37, %v909_v51  ;;  %v409_v18 = vrot.slane %v885_v39, %v889_v41  ;;  %v437_v63 = vrot.slane %v885_v39, %v891_v42  ;;  %v465_v48 = vrot.slane %v885_v39, %v893_v43 }
  0x35   :  { %v390_v0 = vadd.f32 %v733_v58, %v362_v55  ;;  %v391_v1 = vadd.f32 %v734_v36, %v363_v38  ;;  %v392_v52 = vadd.f32 %v735_v59, %v364_v56  ;;  %v393_v2 = vadd.f32 %v736_v61, %v365_v57 }
  0x36   :  { %v398_v3 = vmul.f32 %v397_v62, %v840_v19  ;;  %v399_v4 = vmul.f32 %v397_v62, %v842_v20  ;;  %v400_v5 = vmul.f32 %v397_v62, %v857_v26  ;;  %v401_v37 = vmul.f32 %v397_v62, %v859_v27 }
  0x37   :  { %v410_v6 = vmul.f32 %v409_v18, %v840_v19  ;;  %v411_v7 = vmul.f32 %v409_v18, %v842_v20  ;;  %v412_v8 = vmul.f32 %v409_v18, %v857_v26  ;;  %v413_v53 = vmul.f32 %v409_v18, %v859_v27 }
  0x38   :  { %v402_v17 = vadd.f32 %v398_v3, %v390_v0  ;;  %v403_v9 = vadd.f32 %v399_v4, %v391_v1  ;;  %v404_v12 = vadd.f32 %v400_v5, %v392_v52  ;;  %v405_v13 = vadd.f32 %v401_v37, %v393_v2 }
  0x39   :  { %v737_v14 = vrot.slane %v410_v6, 9  ;;  %v738_v15 = vrot.slane %v411_v7, 9  ;;  %v739_v16 = vrot.slane %v412_v8, 9  ;;  %v740_v21 = vrot.slane %v413_v53, 9 }
  0x3a   :  { %v438_v22 = vmul.f32 %v437_v63, %v840_v19  ;;  %v439_v11 = vmul.f32 %v437_v63, %v842_v20  ;;  %v440_v23 = vmul.f32 %v437_v63, %v857_v26  ;;  %v441_v10 = vmul.f32 %v437_v63, %v859_v27 }
  0x3b   :  { %v430_v28 = vadd.f32 %v737_v14, %v402_v17  ;;  %v431_v32 = vadd.f32 %v738_v15, %v403_v9  ;;  %v432_v54 = vadd.f32 %v739_v16, %v404_v12  ;;  %v433_v33 = vadd.f32 %v740_v21, %v405_v13 }
  0x3c   :  { %v741_v34 = vrot.slane %v438_v22, 10  ;;  %v742_v49 = vrot.slane %v439_v11, 10  ;;  %v743_v50 = vrot.slane %v440_v23, 10  ;;  %v744_v60 = vrot.slane %v441_v10, 10 }
  0x3d   :  { %v466_v55 = vmul.f32 %v465_v48, %v853_v24  ;;  %v467_v38 = vmul.f32 %v465_v48, %v855_v25  ;;  %v468_v19 = vmul.f32 %v465_v48, %v864_v29  ;;  %v469_v20 = vmul.f32 %v465_v48, %v866_v30 }
  0x3e   :  { %v458_v56 = vadd.f32 %v741_v34, %v430_v28  ;;  %v459_v57 = vadd.f32 %v742_v49, %v431_v32  ;;  %v460_v58 = vadd.f32 %v743_v50, %v432_v54  ;;  %v461_v36 = vadd.f32 %v744_v60, %v433_v33 }
  0x3f   :  { %v477_v59 = vrot.slane %v885_v39, %v895_v44  ;;  %v505_v61 = vrot.slane %v885_v39, %v897_v45  ;;  %v533_v62 = vrot.slane %v885_v39, %v899_v46  ;;  %v545_v18 = vrot.slane %v885_v39, %v901_v47 }
  0x40   :  { %v470_v63 = vadd.f32 %v466_v55, %v458_v56  ;;  %v471_v0 = vadd.f32 %v467_v38, %v459_v57  ;;  %v472_v1 = vadd.f32 %v468_v19, %v460_v58  ;;  %v473_v48 = vadd.f32 %v469_v20, %v461_v36 }
  0x41   :  { %v478_v52 = vmul.f32 %v477_v59, %v853_v24  ;;  %v479_v2 = vmul.f32 %v477_v59, %v855_v25  ;;  %v480_v3 = vmul.f32 %v477_v59, %v864_v29  ;;  %v481_v44 = vmul.f32 %v477_v59, %v866_v30 }
  0x42   :  { %v506_v45 = vmul.f32 %v505_v61, %v853_v24  ;;  %v507_v4 = vmul.f32 %v505_v61, %v855_v25  ;;  %v508_v46 = vmul.f32 %v505_v61, %v864_v29  ;;  %v509_v47 = vmul.f32 %v505_v61, %v866_v30 }
  0x43   :  { %v745_v5 = vrot.slane %v478_v52, 9  ;;  %v746_v37 = vrot.slane %v479_v2, 9  ;;  %v747_v6 = vrot.slane %v480_v3, 9  ;;  %v748_v7 = vrot.slane %v481_v44, 9 }
  0x44   :  { %v749_v8 = vrot.slane %v506_v45, 10  ;;  %v750_v53 = vrot.slane %v507_v4, 10  ;;  %v751_v17 = vrot.slane %v508_v46, 10  ;;  %v752_v9 = vrot.slane %v509_v47, 10 }
  0x45   :  { %v498_v12 = vadd.f32 %v745_v5, %v470_v63  ;;  %v499_v13 = vadd.f32 %v746_v37, %v471_v0  ;;  %v500_v14 = vadd.f32 %v747_v6, %v472_v1  ;;  %v501_v15 = vadd.f32 %v748_v7, %v473_v48 }
  0x46   :  { %v534_v24 = vmul.f32 %v533_v62, %v855_v25  ;;  %v535_v16 = vmul.f32 %v533_v62, %v857_v26  ;;  %v536_v29 = vmul.f32 %v533_v62, %v866_v30  ;;  %v537_v21 = vmul.f32 %v533_v62, %v868_v31 }
  0x47   :  { %v526_v22 = vadd.f32 %v749_v8, %v498_v12  ;;  %v527_v11 = vadd.f32 %v750_v53, %v499_v13  ;;  %v528_v23 = vadd.f32 %v751_v17, %v500_v14  ;;  %v529_v10 = vadd.f32 %v752_v9, %v501_v15 }
  0x48   :  { %v546_v28 = vmul.f32 %v545_v18, %v855_v25  ;;  %v547_v32 = vmul.f32 %v545_v18, %v857_v26  ;;  %v548_v54 = vmul.f32 %v545_v18, %v866_v30  ;;  %v549_v33 = vmul.f32 %v545_v18, %v868_v31 }
  0x49   :  { %v538_v34 = vadd.f32 %v534_v24, %v526_v22  ;;  %v539_v49 = vadd.f32 %v535_v16, %v527_v11  ;;  %v540_v50 = vadd.f32 %v536_v29, %v528_v23  ;;  %v541_v60 = vadd.f32 %v537_v21, %v529_v10 }
  0x4a   :  { %v753_v55 = vrot.slane %v546_v28, 9  ;;  %v754_v38 = vrot.slane %v547_v32, 9  ;;  %v755_v19 = vrot.slane %v548_v54, 9  ;;  %v756_v20 = vrot.slane %v549_v33, 9  ;;  %v769_v28 = vld [vmem:[%s1081_s2] ss:$0 sm:$0xff] }
  0x4b   :  { %v573_v56 = vrot.slane %v885_v39, %v909_v51  ;;  %v601_v57 = vrot.slane %v887_v40, %v889_v41  ;;  %v613_v58 = vrot.slane %v887_v40, %v891_v42  ;;  %v641_v36 = vrot.slane %v887_v40, %v893_v43 }
  0x4c   :  { %v566_v59 = vadd.f32 %v753_v55, %v538_v34  ;;  %v567_v61 = vadd.f32 %v754_v38, %v539_v49  ;;  %v568_v62 = vadd.f32 %v755_v19, %v540_v50  ;;  %v569_v18 = vadd.f32 %v756_v20, %v541_v60 }
  0x4d   :  { %v574_v63 = vmul.f32 %v573_v56, %v855_v25  ;;  %v575_v0 = vmul.f32 %v573_v56, %v857_v26  ;;  %v576_v1 = vmul.f32 %v573_v56, %v866_v30  ;;  %v577_v39 = vmul.f32 %v573_v56, %v868_v31 }
  0x4e   :  { %v602_v41 = vmul.f32 %v601_v57, %v857_v26  ;;  %v603_v51 = vmul.f32 %v601_v57, %v859_v27  ;;  %v604_v42 = vmul.f32 %v601_v57, %v868_v31  ;;  %v605_v40 = vmul.f32 %v601_v57, %v876_v35 }
  0x4f   :  { %v757_v43 = vrot.slane %v574_v63, 10  ;;  %v758_v48 = vrot.slane %v575_v0, 10  ;;  %v759_v52 = vrot.slane %v576_v1, 10  ;;  %v760_v2 = vrot.slane %v577_v39, 10 }
  0x50   :  { %v614_v25 = vmul.f32 %v613_v58, %v857_v26  ;;  %v615_v3 = vmul.f32 %v613_v58, %v859_v27  ;;  %v616_v30 = vmul.f32 %v613_v58, %v868_v31  ;;  %v617_v44 = vmul.f32 %v613_v58, %v876_v35 }
  0x51   :  { %v594_v45 = vadd.f32 %v757_v43, %v566_v59  ;;  %v595_v4 = vadd.f32 %v758_v48, %v567_v61  ;;  %v596_v46 = vadd.f32 %v759_v52, %v568_v62  ;;  %v597_v47 = vadd.f32 %v760_v2, %v569_v18 }
  0x52   :  { %v761_v5 = vrot.slane %v614_v25, 9  ;;  %v762_v37 = vrot.slane %v615_v3, 9  ;;  %v763_v6 = vrot.slane %v616_v30, 9  ;;  %v764_v7 = vrot.slane %v617_v44, 9 }
  0x53   :  { %v606_v8 = vadd.f32 %v602_v41, %v594_v45  ;;  %v607_v53 = vadd.f32 %v603_v51, %v595_v4  ;;  %v608_v17 = vadd.f32 %v604_v42, %v596_v46  ;;  %v609_v9 = vadd.f32 %v605_v40, %v597_v47 }
  0x54   :  { %v642_v12 = vmul.f32 %v641_v36, %v857_v26  ;;  %v643_v13 = vmul.f32 %v641_v36, %v859_v27  ;;  %v644_v14 = vmul.f32 %v641_v36, %v868_v31  ;;  %v645_v15 = vmul.f32 %v641_v36, %v876_v35 }
  0x55   :  { %v634_v24 = vadd.f32 %v761_v5, %v606_v8  ;;  %v635_v16 = vadd.f32 %v762_v37, %v607_v53  ;;  %v636_v29 = vadd.f32 %v763_v6, %v608_v17  ;;  %v637_v21 = vadd.f32 %v764_v7, %v609_v9 }
  0x56   :  { %v765_v22 = vrot.slane %v642_v12, 10  ;;  %v766_v11 = vrot.slane %v643_v13, 10  ;;  %v767_v23 = vrot.slane %v644_v14, 10  ;;  %v768_v10 = vrot.slane %v645_v15, 10 }
  0x58   :  { %v662_v32 = vadd.f32 %v765_v22, %v634_v24  ;;  %v663_v26 = vadd.f32 %v766_v11, %v635_v16  ;;  %v664_v54 = vadd.f32 %v767_v23, %v636_v29  ;;  %v665_v27 = vadd.f32 %v768_v10, %v637_v21 }
  0x5a   :  { %v673_v33 = vadd.f32 %v769_v28, %v662_v32  ;;  %v674_v31 = vadd.f32 %v769_v28, %v663_v26  ;;  %v675_v34 = vadd.f32 %v769_v28, %v664_v54  ;;  %v676_v35 = vadd.f32 %v769_v28, %v665_v27 }
  0x5c   :  { %v677_v49 = vmax.f32 %v673_v33, 0.0  ;;  %v678_v50 = vmax.f32 %v674_v31, 0.0  ;;  %v679_v60 = vmax.f32 %v675_v34, 0.0  ;;  %v680_v55 = vmax.f32 %v676_v35, 0.0 }
  0x5e   :  { %v681_v38 = vmin.f32 %v677_v49, 6.0  ;;  %v682_v19 = vmin.f32 %v678_v50, 6.0  ;;  %v683_v20 = vmin.f32 %v679_v60, 6.0  ;;  %v684_v56 = vmin.f32 %v680_v55, 6.0 }
  0x60   :  { %v685_v57 = vpack.c.bf16 %v681_v38, %v681_v38  ;;  %v686_v58 = vpack.c.bf16 %v682_v19, %v682_v19  ;;  %v687_v36 = vpack.c.bf16 %v683_v20, %v683_v20  ;;  %v688_v59 = vpack.c.bf16 %v684_v56, %v684_v56 }
  0x62   :  { %689 = vst [vmem:[%s1082_s3] sm:$0x1] %v685_v57  ;;  %690 = vst [vmem:[%s1082_s3 + $0x1] sm:$0x1] %v686_v58 }
  0x63   :  { %691 = vst [vmem:[%s1082_s3 + $0x2] sm:$0x1] %v687_v36  ;;  %692 = vst [vmem:[%s1082_s3 + $0x3] sm:$0x1] %v688_v59 }

// kernel: _forward.103
= control target key start
LH: loop header
LB: loop body
LE: loop exit
PB: predicated region body
PF: predicated region fallthrough
CT: control target
= control target key end

     0   :  { %s710_s12 = smov 0   ;;  %s712_s13 = smov 0   ;;  %s800_s0 = inlined_call_operand.vmem [shape: bf16[8,128], index: 0, kind: input, shape index: {}]   ;;  %s801_s1 = inlined_call_operand.vmem [shape: bf16[128,256], index: 1, kind: input, shape index: {}]   ;;  %s802_s2 = inlined_call_operand.vmem [shape: f32[1,256], index: 2, kind: input, shape index: {}]   ;;  %s803_s3 = inlined_call_operand.vmem [shape: bf16[8,256], index: 3, kind: output, shape index: {}]  }
   0x1   :  { %s714_s14 = smov 0   ;;  %s716_s15 = smov 0  }
   0x2   :  { %s718_s16 = smov 0  }
   0x3 LB: > { %s22_s17 = sadd.s32 1, %s682_s15  ;;  %p65_p1 = scmp.ne.s32.totalorder %s674_s13, %s670_s12  ;;  %s686_s16 = sphi %s718_s16, %s13_s16   ;;  %s682_s15 = sphi %s716_s15, %s807_s15   ;;  %s678_s14 = sphi %s714_s14, %s806_s14   ;;  %s674_s13 = sphi %s712_s13, %s805_s13   ;;  %s670_s12 = sphi %s710_s12, %s804_s12  }
   0x4   : > { %p23_p0 = scmp.ge.s32.totalorder %s22_s17, 2  ;;  %p66_p2 = scmp.eq.s32.totalorder %s686_s16, 0 }
   0x5   : > { %s58_s19 = sadd.s32 1, %s674_s13  ;;  %p552_p5 = scmp.ge.s32.totalorder %s686_s16, 2 }
   0x6   : > { %s809_s17 = smov (%p23_p0, %s22_s17), 0  ;;  %p67_p3 = por %p66_p2, %p65_p1 }
   0x7   : > { %s55_s18 = ssub.s32 %s682_s15, %s809_s17  ;;  %152 = sbr.rel (%p552_p5) target bundleno = 28 (0x1c), region = 20 }
   0x8   : > { %p56_p4 = scmp.eq.s32.totalorder %s55_s18, 0 }
   0xa   : > { %s745_s20 = scalar_select %p56_p4, %s674_s13, %s58_s19  }
   0xe   : > { %155 = sbr.rel (!%p67_p3) target bundleno = 28 (0x1c), region = 24  ;;  %s157_s21 = sand.u32 (%p67_p3), 1, %s674_s13  }
   0xf   : > { %s554_s22 = sshll.u32 (%p67_p3), %s682_s15, 2  ;;  %s553_s23 = sshll.u32 (%p67_p3), %s157_s21, 6 }
  0x10   : > { %s753_s26 = scalar_lea.vmem (%p67_p3), %s801_s1, %s554_s22  ;;  %s159_s27 = scalar_lea.vmem (%p67_p3), [#allocation2], %s553_s23 }
  0x11   : > { %v177_v0 = vld [vmem:[%s753_s26] sm:$0xf] (%p67_p3)  ;;  %v179_v1 = vld [vmem:[%s753_s26 + $0x8] sm:$0xf] (%p67_p3)  ;;  %v181_v2 = vld [vmem:[%s753_s26 + $0x10] sm:$0xf] (%p67_p3) }
  0x12   : > { %178 = vst [vmem:[%s159_s27] sm:$0xf] (%p67_p3), %v177_v0  ;;  %180 = vst [vmem:[%s159_s27 + $0x4] sm:$0xf] (%p67_p3), %v179_v1  ;;  %v183_v3 = vld [vmem:[%s753_s26 + $0x18] sm:$0xf] (%p67_p3) }
  0x13   : > { %v185_v4 = vld [vmem:[%s753_s26 + $0x20] sm:$0xf] (%p67_p3)  ;;  %182 = vst [vmem:[%s159_s27 + $0x8] sm:$0xf] (%p67_p3), %v181_v2  ;;  %184 = vst [vmem:[%s159_s27 + $0xc] sm:$0xf] (%p67_p3), %v183_v3 }
  0x14   : > { %186 = vst [vmem:[%s159_s27 + $0x10] sm:$0xf] (%p67_p3), %v185_v4  ;;  %v187_v5 = vld [vmem:[%s753_s26 + $0x28] sm:$0xf] (%p67_p3)  ;;  %v189_v6 = vld [vmem:[%s753_s26 + $0x30] sm:$0xf] (%p67_p3) }
  0x15   : > { %v191_v7 = vld [vmem:[%s753_s26 + $0x38] sm:$0xf]  ;;  %188 = vst [vmem:[%s159_s27 + $0x14] sm:$0xf] %v187_v5  ;;  %190 = vst [vmem:[%s159_s27 + $0x18] sm:$0xf] %v189_v6 }
  0x16   : > { %192 = vst [vmem:[%s159_s27 + $0x1c] sm:$0xf] %v191_v7  ;;  %v193_v8 = vld [vmem:[%s753_s26 + $0x40] sm:$0xf]  ;;  %v195_v9 = vld [vmem:[%s753_s26 + $0x48] sm:$0xf] }
  0x17   : > { %v197_v10 = vld [vmem:[%s753_s26 + $0x50] sm:$0xf]  ;;  %194 = vst [vmem:[%s159_s27 + $0x20] sm:$0xf] %v193_v8  ;;  %196 = vst [vmem:[%s159_s27 + $0x24] sm:$0xf] %v195_v9 }
  0x18   : > { %198 = vst [vmem:[%s159_s27 + $0x28] sm:$0xf] %v197_v10  ;;  %v199_v11 = vld [vmem:[%s753_s26 + $0x58] sm:$0xf]  ;;  %v201_v12 = vld [vmem:[%s753_s26 + $0x60] sm:$0xf] }
  0x19   : > { %v203_v13 = vld [vmem:[%s753_s26 + $0x68] sm:$0xf]  ;;  %200 = vst [vmem:[%s159_s27 + $0x2c] sm:$0xf] %v199_v11  ;;  %202 = vst [vmem:[%s159_s27 + $0x30] sm:$0xf] %v201_v12 }
  0x1a   : > { %204 = vst [vmem:[%s159_s27 + $0x34] sm:$0xf] %v203_v13  ;;  %v205_v14 = vld [vmem:[%s753_s26 + $0x70] sm:$0xf]  ;;  %v207_v15 = vld [vmem:[%s753_s26 + $0x78] sm:$0xf] }
  0x1b   : > { %206 = vst [vmem:[%s159_s27 + $0x38] sm:$0xf] %v205_v14  ;;  %208 = vst [vmem:[%s159_s27 + $0x3c] sm:$0xf] %v207_v15 }
  0x1c PF: > { %p555_p6 = scmp.ge.s32.totalorder %s686_s16, 1  ;;  %p268_p7 = scmp.lt.s32.totalorder %s686_s16, 3 }
  0x1e   : > { %p269_p8 = pnand %p555_p6, %p268_p7 }
  0x1f   : > { %s275_s28 = sand.u32 (!%p269_p8), 1, %s670_s12   ;;  %v688_v16 = vmov (!%p269_p8), 0.0   ;;  %vm689_vm0 = vmmov (!%p269_p8), 0   ;;  %v324_v25 = vld [vmem:[%s800_s0] sm:$0xf] (!%p269_p8)  ;;  %p312_p9 = scmp.lt.s32.totalorder (!%p269_p8), %s678_s14, 1 }
  0x20   : > { %272 = sbr.rel (%p269_p8) target bundleno = 287 (0x11f), region = 69  ;;  %578 = vmatprep.subr.bf16.mxu0 (!%p269_p8), %v688_v16  ;;  %s556_s29 = sshll.u32 (!%p269_p8), %s275_s28, 6  ;;  %594 = vmatprep.mubr.msk.bf16.mxu0 (!%p269_p8), %vm689_vm0, %v688_v16 }
  0x21   : > { %s277_s30 = scalar_lea.vmem (!%p269_p8), [#allocation2], %s556_s29 }
  0x22   : > { %v640_v17 = vld [vmem:[%s277_s30] sm:$0xff] (!%p269_p8)   ;;  %v641_v18 = vld [vmem:[%s277_s30 + $0x8] sm:$0xff] (!%p269_p8)   ;;  %v642_v19 = vld [vmem:[%s277_s30 + $0x10] sm:$0xff] (!%p269_p8)  }
  0x23   : > { %579 = vmatpush3.bf16.msra.mxu0 (!%p269_p8), %v640_v17  ;;  %v643_v20 = vld [vmem:[%s277_s30 + $0x18] sm:$0xff] (!%p269_p8)   ;;  %v644_v21 = vld [vmem:[%s277_s30 + $0x20] sm:$0xff] (!%p269_p8)   ;;  %v645_v22 = vld [vmem:[%s277_s30 + $0x28] sm:$0xff] (!%p269_p8)  }
  0x24   : > { %580 = vmatprep.subr.bf16.mxu0 (!%p269_p8), %v688_v16  ;;  %v646_v23 = vld [vmem:[%s277_s30 + $0x30] sm:$0xff] (!%p269_p8)   ;;  %v647_v24 = vld [vmem:[%s277_s30 + $0x38] sm:$0xff] (!%p269_p8)  }
  0x27   : > { %581 = vmatpush3.bf16.msra.mxu0 %v641_v18  ;;  %s811_s14 = smov (!%p312_p9, %s678_s14), 1 }
  0x28   : > { %582 = vmatprep.subr.bf16.mxu0 %v688_v16  ;;  %s314_s8 = scalar_lea.vmem %s802_s2, %s811_s14  ;;  %s557_s9 = sshll.u32 %s811_s14, 2 }
  0x29   : > { %v558_v26 = vld [vmem:[%s314_s8] ss:$0 sm:$0xff]  ;;  %s322_s12 = scalar_lea.vmem %s803_s3, %s557_s9 }
  0x2b   : > { %583 = vmatpush3.bf16.msra.mxu0 %v642_v19 }
  0x2c   : > { %584 = vmatprep.subr.bf16.mxu0 %v688_v16 }
  0x2f   : > { %585 = vmatpush3.bf16.msra.mxu0 %v643_v20 }
  0x30   : > { %586 = vmatprep.subr.bf16.mxu0 %v688_v16 }
  0x33   : > { %587 = vmatpush3.bf16.msra.mxu0 %v644_v21 }
  0x34   : > { %588 = vmatprep.subr.bf16.mxu0 %v688_v16 }
  0x37   : > { %589 = vmatpush3.bf16.msra.mxu0 %v645_v22 }
  0x38   : > { %590 = vmatprep.subr.bf16.mxu0 %v688_v16 }
  0x3b   : > { %591 = vmatpush3.bf16.msra.mxu0 %v646_v23 }
  0x3c   : > { %592 = vmatprep.subr.bf16.mxu0 %v688_v16 }
  0x3f   : > { %593 = vmatpush3.bf16.msra.mxu0 %v647_v24 }
  0x42   : > { %595 = vmatmul.mubr.bf16.vlgmr.msra.gmra.mrb[0].mxu0 %v324_v25 }
 0x115   : > { %v430_v27 = vpop.f32.mrb[0].mxu0 }
 0x116   : > { %v431_v28 = vadd.f32 %v558_v26, %v430_v27  ;;  %v596_v29 = vpop.f32.mrb[1].mxu0 }
 0x117   : > { %v433_v30 = vpop.f32.mrb[2].mxu0 }
 0x118   : > { %v436_v31 = vmax.f32 %v431_v28, 0.0  ;;  %v597_v32 = vpop.f32.mrb[3].mxu0 }
 0x11a   : > { %v437_v33 = vmin.f32 %v436_v31, 6.0 }
 0x11c   : > { %v438_v34 = vpack.c.bf16 %v437_v33, %v437_v33 }
 0x11e   : > { %439 = vst [vmem:[%s322_s12] sm:$0xf] %v438_v34 }
 0x11f PF: > { %s13_s16 = sadd.s32 1, %s686_s16   ;;  %s804_s12 = smov %s674_s13 }
 0x120   : > { %p10_p10 = scmp.ge.s32.totalorder %s13_s16, 4   ;;  %s805_s13 = smov %s745_s20 }
 0x121   : > { %s806_s14 = smov %s682_s15  ;;  %s807_s15 = smov %s809_s17 }
 0x122   :  { %12 = sbr.rel (!%p10_p10) target bundleno = 3 (0x3), region = 114 }

// kernel: _forward.74
= control target key start
LH: loop header
LB: loop body
LE: loop exit
PB: predicated region body
PF: predicated region fallthrough
CT: control target
= control target key end

     0   :  { %vm298_vm0 = vcmask 1040384   ;;  %vm299_vm1 = vsmask.f32 256  ;;  %s449_s0 = inlined_call_operand.vmem [shape: bf16[1,4,3,3,128], index: 0, kind: input, shape index: {}]   ;;  %s450_s1 = inlined_call_operand.vmem [shape: bf16[27,128], index: 1, kind: input, shape index: {}]   ;;  %s451_s2 = inlined_call_operand.vmem [shape: f32[1,128], index: 2, kind: input, shape index: {}]   ;;  %s452_s3 = inlined_call_operand.vmem [shape: bf16[1,2,1,1,128], index: 3, kind: output, shape index: {}]  }
   0x1   :  { %v14_v0 = vld [vmem:[%s449_s0] sm:$0x3]  ;;  %v17_v1 = vld [vmem:[%s449_s0 + $0x6] sm:$0x3]  ;;  %v15_v5 = vld [vmem:[%s449_s0 + $0x2] sm:$0x3] }
   0x2   :  { %v26_v2 = vunpack.c.l.bf16 %v14_v0  ;;  %v29_v3 = vunpack.c.l.bf16 %v17_v1  ;;  %v348_v4 = vld [vmem:[%s450_s1] sm:$0xff]   ;;  %v18_v6 = vld [vmem:[%s449_s0 + $0x8] sm:$0x3]  ;;  %v19_v14 = vld [vmem:[%s449_s0 + $0xa] sm:$0x3]  ;;  %v27_v15 = vunpack.c.l.bf16 %v15_v5 }
   0x3   :  { %v349_v7 = vunpack.c.l.bf16 %v348_v4  ;;  %v350_v8 = vunpack.c.h.bf16 %v348_v4  ;;  %v16_v9 = vld [vmem:[%s449_s0 + $0x4] sm:$0x3]  ;;  %v30_v16 = vunpack.c.l.bf16 %v18_v6  ;;  %v392_v25 = vunpack.c.l.bf16 %v19_v14  ;;  %v20_v37 = vld [vmem:[%s449_s0 + $0xc] sm:$0x3]  ;;  %v404_v56 = vld [vmem:[%s449_s0 + $0xe] sm:$0x3] }
   0x4   :  { %v28_v21 = vunpack.c.l.bf16 %v16_v9  ;;  %v399_v48 = vunpack.c.l.bf16 %v20_v37  ;;  %v40_v59 = vld [vmem:[%s450_s1 + $0x8] sm:$0xf]  ;;  %v33_v1 = vunpack.c.l.bf16 %v404_v56  ;;  %vm300_vm2 = vmand %vm298_vm0, %vm299_vm1 }
   0x5   :  { %v46_v10 = vmul.f32 %v349_v7, %v26_v2  ;;  %v47_v11 = vmul.f32 %v349_v7, %v29_v3  ;;  %v69_v12 = vrot.slane %v349_v7, 7  ;;  %v76_v13 = vcombine.high %v349_v7, %v349_v7 }
   0x6   :  { %v117_v28 = vrot.slane %v350_v8, 6  ;;  %v131_v36 = vrot.slane %v350_v8, 5  ;;  %v156_v0 = vcombine.high %v350_v8, %v350_v8  ;;  %v44_v5 = vunpack.c.l.bf16 %v40_v59 }
   0x7   :  { %v311_v17 = vrot.slane %v46_v10, 9  ;;  %v312_v18 = vrot.slane %v47_v11, 9  ;;  %v313_v19 = vrot.slane %v46_v10, 10  ;;  %v314_v20 = vrot.slane %v47_v11, 10 }
   0x8   :  { %v70_v22 = vrot.slane %v69_v12, 4  ;;  %v77_v23 = vrot.slane %v76_v13, 7  ;;  %v99_v24 = vrot.slane %v76_v13, 6  ;;  %v119_v46 = vmul.f32 %v117_v28, %v28_v21 }
   0x9   :  { %v58_v26 = vadd.f32 %v311_v17, %v46_v10  ;;  %v59_v27 = vadd.f32 %v312_v18, %v47_v11  ;;  %v120_v47 = vmul.f32 %v117_v28, %v392_v25  ;;  %v132_v51 = vrot.slane %v131_v36, 4  ;;  %v22_v11 = vld [vmem:[%s449_s0 + $0x10] sm:$0x3] }
   0xa   :  { %v72_v29 = vmul.f32 %v70_v22, %v27_v15  ;;  %v73_v30 = vmul.f32 %v70_v22, %v30_v16  ;;  %v79_v31 = vmul.f32 %v77_v23, %v27_v15  ;;  %v80_v32 = vmul.f32 %v77_v23, %v30_v16 }
   0xb   :  { %v66_v33 = vadd.f32 %v313_v19, %v58_v26  ;;  %v67_v34 = vadd.f32 %v314_v20, %v59_v27  ;;  %v100_v35 = vrot.slane %v99_v24, 4  ;;  %v321_v57 = vrot.slane %v119_v46, 10  ;;  %v23_v24 = vld [vmem:[%s449_s0 + $0x12] sm:$0x3] }
   0xc   :  { %v315_v38 = vrot.slane %v79_v31, 9  ;;  %v316_v39 = vrot.slane %v80_v32, 9  ;;  %v317_v40 = vrot.slane %v79_v31, 10  ;;  %v318_v41 = vrot.slane %v80_v32, 10 }
   0xd   :  { %v74_v42 = vadd.f32 %v72_v29, %v66_v33  ;;  %v75_v43 = vadd.f32 %v73_v30, %v67_v34  ;;  %v102_v44 = vmul.f32 %v100_v35, %v28_v21  ;;  %v103_v45 = vmul.f32 %v100_v35, %v392_v25 }
   0xe   :  { %v322_v58 = vrot.slane %v120_v47, 10  ;;  %v134_v62 = vmul.f32 %v132_v51, %v29_v3  ;;  %v135_v63 = vmul.f32 %v132_v51, %v399_v48  ;;  %v158_v13 = vmul.f32 %v156_v0, %v30_v16 }
   0xf   :  { %v89_v49 = vadd.f32 %v315_v38, %v74_v42  ;;  %v90_v50 = vadd.f32 %v316_v39, %v75_v43  ;;  %v319_v54 = vrot.slane %v102_v44, 9  ;;  %v320_v55 = vrot.slane %v103_v45, 9 }
  0x10   :  { %v323_v9 = vrot.slane %v134_v62, 9  ;;  %v324_v10 = vrot.slane %v135_v63, 9  ;;  %v325_v12 = vrot.slane %v134_v62, 10  ;;  %v180_v14 = vrot.slane %v156_v0, 7 }
  0x11   :  { %v97_v52 = vadd.f32 %v317_v40, %v89_v49  ;;  %v98_v53 = vadd.f32 %v318_v41, %v90_v50  ;;  %v326_v17 = vrot.slane %v135_v63, 10  ;;  %v159_v8 = vmul.f32 %v156_v0, %v33_v1  ;;  %v24_v49 = vld [vmem:[%s449_s0 + $0x14] sm:$0x3] }
  0x12   :  { %v188_v18 = vrot.slane %v44_v5, 7  ;;  %v34_v19 = vunpack.c.l.bf16 %v22_v11  ;;  %v327_v22 = vrot.slane %v158_v13, 9  ;;  %v181_v23 = vrot.slane %v180_v14, 4 }
  0x13   :  { %v104_v60 = vadd.f32 %v102_v44, %v97_v52  ;;  %v105_v61 = vadd.f32 %v103_v45, %v98_v53  ;;  %v328_v16 = vrot.slane %v159_v8, 9  ;;  %v210_v28 = vrot.slane %v44_v5, 6 }
  0x14   :  { %v329_v29 = vrot.slane %v158_v13, 10  ;;  %v190_v30 = vmul.f32 %v188_v18, %v392_v25  ;;  %v227_v31 = vcombine.high %v44_v5, %v44_v5  ;;  %v330_v34 = vrot.slane %v159_v8, 10 }
  0x15   :  { %v114_v2 = vadd.f32 %v319_v54, %v104_v60  ;;  %v115_v4 = vadd.f32 %v320_v55, %v105_v61  ;;  %v191_v35 = vmul.f32 %v188_v18, %v34_v19  ;;  %v35_v36 = vunpack.c.l.bf16 %v23_v24 }
  0x16   :  { %v183_v37 = vmul.f32 %v181_v23, %v392_v25  ;;  %v184_v40 = vmul.f32 %v181_v23, %v34_v19  ;;  %v211_v41 = vrot.slane %v210_v28, 4  ;;  %v331_v42 = vrot.slane %v190_v30, 9 }
  0x17   :  { %v129_v6 = vadd.f32 %v321_v57, %v114_v2  ;;  %v130_v7 = vadd.f32 %v322_v58, %v115_v4  ;;  %v228_v43 = vrot.slane %v227_v31, 6  ;;  %v332_v46 = vrot.slane %v191_v35, 9 }
  0x18   :  { %v242_v47 = vrot.slane %v227_v31, 5  ;;  %v333_v50 = vrot.slane %v190_v30, 10  ;;  %v334_v51 = vrot.slane %v191_v35, 10  ;;  %v213_v25 = vmul.f32 %v211_v41, %v399_v48 }
  0x19   :  { %v136_v3 = vadd.f32 %v134_v62, %v129_v6  ;;  %v137_v15 = vadd.f32 %v135_v63, %v130_v7  ;;  %v214_v54 = vmul.f32 %v211_v41, %v35_v36  ;;  %v230_v55 = vmul.f32 %v228_v43, %v399_v48  ;;  %v25_v62 = vld [vmem:[%s449_s0 + $0x16] sm:$0x3]  ;;  %v41_v63 = vld [vmem:[%s450_s1 + $0xc] sm:$0x3] }
  0x1a   :  { %v231_v57 = vmul.f32 %v228_v43, %v35_v36  ;;  %v36_v58 = vunpack.c.l.bf16 %v24_v49  ;;  %v243_v61 = vrot.slane %v242_v47, 4  ;;  %v335_v4 = vrot.slane %v213_v25, 9 }
  0x1b   :  { %v146_v20 = vadd.f32 %v323_v9, %v136_v3  ;;  %v147_v21 = vadd.f32 %v324_v10, %v137_v15  ;;  %v336_v5 = vrot.slane %v214_v54, 9  ;;  %v337_v6 = vrot.slane %v230_v55, 10 }
  0x1c   :  { %v338_v7 = vrot.slane %v231_v57, 10  ;;  %v245_v10 = vmul.f32 %v243_v61, %v33_v1  ;;  %v246_v11 = vmul.f32 %v243_v61, %v36_v58 }
  0x1d   :  { %v154_v26 = vadd.f32 %v325_v12, %v146_v20  ;;  %v155_v27 = vadd.f32 %v326_v17, %v147_v21  ;;  %v37_v12 = vunpack.c.l.bf16 %v25_v62 }
  0x1e   :  { %v340_v18 = vrot.slane %v246_v11, 9  ;;  %v341_v24 = vrot.slane %v245_v10, 10 }
  0x1f   :  { %v160_v32 = vadd.f32 %v158_v13, %v154_v26  ;;  %v161_v33 = vadd.f32 %v159_v8, %v155_v27  ;;  %v45_v13 = vunpack.c.l.bf16 %v41_v63  ;;  %v339_v8 = vrot.slane %v245_v10, 9 }
  0x20   :  { %v342_v26 = vrot.slane %v246_v11, 10 }
  0x21   :  { %v170_v38 = vadd.f32 %v327_v22, %v160_v32  ;;  %v171_v39 = vadd.f32 %v328_v16, %v161_v33  ;;  %v267_v20 = vmul.f32 %v45_v13, %v34_v19  ;;  %v268_v21 = vmul.f32 %v45_v13, %v37_v12  ;;  %v289_v19 = vld [vmem:[%s451_s2] sm:$0x1] }
  0x23   :  { %v178_v44 = vadd.f32 %v329_v29, %v170_v38  ;;  %v179_v45 = vadd.f32 %v330_v34, %v171_v39  ;;  %v343_v1 = vrot.slane %v267_v20, 9  ;;  %v344_v29 = vrot.slane %v268_v21, 9 }
  0x24   :  { %v345_v32 = vrot.slane %v267_v20, 10  ;;  %v346_v33 = vrot.slane %v268_v21, 10 }
  0x25   :  { %v185_v52 = vadd.f32 %v183_v37, %v178_v44  ;;  %v186_v53 = vadd.f32 %v184_v40, %v179_v45  ;;  %v301_v44 = vld [vmem:[%s452_s3] sm:$0x1]  ;;  %v304_v45 = vld [vmem:[%s452_s3 + $0x1] sm:$0x1] }
  0x27   :  { %v200_v59 = vadd.f32 %v331_v42, %v185_v52  ;;  %v201_v60 = vadd.f32 %v332_v46, %v186_v53 }
  0x29   :  { %v208_v0 = vadd.f32 %v333_v50, %v200_v59  ;;  %v209_v2 = vadd.f32 %v334_v51, %v201_v60 }
  0x2b   :  { %v215_v48 = vadd.f32 %v213_v25, %v208_v0  ;;  %v216_v9 = vadd.f32 %v214_v54, %v209_v2 }
  0x2d   :  { %v225_v14 = vadd.f32 %v335_v4, %v215_v48  ;;  %v226_v3 = vadd.f32 %v336_v5, %v216_v9 }
  0x2f   :  { %v240_v15 = vadd.f32 %v337_v6, %v225_v14  ;;  %v241_v17 = vadd.f32 %v338_v7, %v226_v3 }
  0x31   :  { %v247_v22 = vadd.f32 %v245_v10, %v240_v15  ;;  %v248_v23 = vadd.f32 %v246_v11, %v241_v17 }
  0x33   :  { %v257_v27 = vadd.f32 %v339_v8, %v247_v22  ;;  %v258_v16 = vadd.f32 %v340_v18, %v248_v23 }
  0x35   :  { %v265_v28 = vadd.f32 %v341_v24, %v257_v27  ;;  %v266_v56 = vadd.f32 %v342_v26, %v258_v16 }
  0x37   :  { %v269_v30 = vadd.f32 %v267_v20, %v265_v28  ;;  %v270_v31 = vadd.f32 %v268_v21, %v266_v56 }
  0x39   :  { %v279_v34 = vadd.f32 %v343_v1, %v269_v30  ;;  %v280_v35 = vadd.f32 %v344_v29, %v270_v31 }
  0x3b   :  { %v287_v36 = vadd.f32 %v345_v32, %v279_v34  ;;  %v288_v37 = vadd.f32 %v346_v33, %v280_v35 }
  0x3d   :  { %v290_v38 = vadd.f32 %v289_v19, %v287_v36  ;;  %v291_v39 = vadd.f32 %v289_v19, %v288_v37 }
  0x3f   :  { %v292_v40 = vmax.f32 %v290_v38, 0.0  ;;  %v293_v41 = vmax.f32 %v291_v39, 0.0 }
  0x41   :  { %v294_v42 = vmin.f32 %v292_v40, 6.0  ;;  %v295_v43 = vmin.f32 %v293_v41, 6.0 }
  0x43   :  { %v296_v46 = vpack.c.bf16 %v294_v42, %v294_v42  ;;  %v297_v47 = vpack.c.bf16 %v295_v43, %v295_v43 }
  0x45   :  { %v302_v49 = vsel %vm300_vm2, %v296_v46, %v301_v44  ;;  %v305_v50 = vsel %vm300_vm2, %v297_v47, %v304_v45 }
  0x46   :  { %303 = vst [vmem:[%s452_s3] sm:$0x1] %v302_v49  ;;  %306 = vst [vmem:[%s452_s3 + $0x1] sm:$0x1] %v305_v50 }

</bundles_post_ra>
